<compile_context>
chip_gen: v5e
topology: v5e:2x2
jax: 0.10.0
libtpu: 0.0.40
codegen_flags: <defaults>
</compile_context>

<pallas_src>
import functools

import jax
import jax.numpy as jnp
from jax.experimental import pallas as pl
from jax.experimental.pallas import tpu as pltpu


def _cparams(num_parallel_axes):
    return pltpu.CompilerParams(
        dimension_semantics=("parallel",) * num_parallel_axes,
        vmem_limit_bytes=32 * 1024 * 1024)


def _prefer_multi_blocks():
    """True on chips with 2 TensorCores per chip (v4 / v5p / v7x)."""
    try:
        kind = jax.devices()[0].device_kind.lower()
        return any(tag in kind for tag in ("v7", "v5p", "v4"))
    except Exception:
        return False


def _pick_m_tile(m, prefer_multi):
    """Largest tile <=512 dividing m; require >=2 blocks only on 2-TC chips."""
    cands = (512, 256, 128, 64, 32, 16, 8)
    if prefer_multi:
        for c in cands:
            if c <= m and m % c == 0 and m // c >= 2:
                return c
    for c in cands:
        if c <= m and m % c == 0:
            return c
    return m


# ----------------------------------------------------------------------------
# Kernel 1: fused qkv (1x1 conv + folded BN) + per-head softmax area attention.
#   grid = (B*area,); each step handles every head.  Outputs are built as full
#   (Na, C) values and written with a single lane-dense store each.
#   Weight layout (wrapper-permuted): [Q | K | V], heads contiguous, BN scale
#   and the attention scale already folded into the weight/bias.
# ----------------------------------------------------------------------------
def _aattn_kernel(x_ref, w_ref, b_ref, xo_ref, vo_ref, *, num_heads, head_dim):
    C = num_heads * head_dim
    x = x_ref[0]                                              # (Na, C) f32
    # qkv 1x1 conv (bf16 MXU operands, f32 accumulation) + folded-BN bias.
    qkv = jnp.dot(x.astype(jnp.bfloat16), w_ref[...],
                  preferred_element_type=jnp.float32) + b_ref[...]   # (Na, 3C)

    outs = []
    for h in range(num_heads):                                # static unroll
        q_h = qkv[:, h * head_dim:(h + 1) * head_dim]                 # (Na, hd)
        k_h = qkv[:, C + h * head_dim:C + (h + 1) * head_dim]         # (Na, hd)
        v_h = qkv[:, 2 * C + h * head_dim:2 * C + (h + 1) * head_dim]  # (Na, hd)

        s = jax.lax.dot_general(                              # (Na, Na), scale
            q_h.astype(jnp.bfloat16), k_h.astype(jnp.bfloat16),
            (((1,), (1,)), ((), ())),                         # already in W_q
            preferred_element_type=jnp.float32)
        m = jnp.max(s, axis=-1, keepdims=True)
        p = jnp.exp(s - m)                                    # f32 (v5e-safe)
        denom = jnp.sum(p, axis=-1, keepdims=True)
        o = jnp.dot(p.astype(jnp.bfloat16), v_h.astype(jnp.bfloat16),
                    preferred_element_type=jnp.float32)
        # EUP reciprocal; use approx=False for bit-parity with torch division.
        outs.append(o * pl.reciprocal(denom, approx=True))

    # Single lane-dense stores (review item #1).
    xo_ref[0] = jnp.concatenate(outs, axis=-1).astype(xo_ref.dtype)   # (Na, C)
    vo_ref[0] = qkv[:, 2 * C:3 * C].astype(vo_ref.dtype)              # (Na, C)


def aattn_qkv(x_tok, w_qkv, b_qkv, num_heads, head_dim):
    """x_tok: (BA, Na, C) tokens; returns (attention out, merged v), (BA, Na, C)."""
    BA, Na, C = x_tok.shape
    C3 = 3 * C
    blk = pl.BlockSpec((1, Na, C), lambda b: (b, 0, 0))
    kernel = functools.partial(_aattn_kernel, num_heads=num_heads,
                               head_dim=head_dim)
    return pl.pallas_call(
        kernel,
        out_shape=(jax.ShapeDtypeStruct((BA, Na, C), x_tok.dtype),
                   jax.ShapeDtypeStruct((BA, Na, C), x_tok.dtype)),
        grid=(BA,),
        in_specs=[blk,
                  pl.BlockSpec((C, C3), lambda b: (0, 0)),
                  pl.BlockSpec((1, C3), lambda b: (0, 0))],
        out_specs=(blk, blk),
        compiler_params=_cparams(1),
    )(x_tok, w_qkv, b_qkv.reshape(1, -1))


# ----------------------------------------------------------------------------
# Kernel 2: depthwise 7x7 conv (padding=3, groups=C) + folded BN.
#   W is folded into the lane axis; x is written into a padded VMEM scratch at
#   lane offset 3*C and each of the 49 taps is a static slice of the scratch
#   (no pltpu.roll / XLU rotations).  Only the zero borders are rewritten each
#   step (megacore-safe; a once-only zero would break when the "parallel" grid
#   axis is split across TensorCores, since each core has its own scratch).
# ----------------------------------------------------------------------------
def _dwconv7_bn_kernel(x_ref, w_ref, b_ref, o_ref, xp_ref, *, H, W, C):
    WC = W * C
    WPC = (W + 6) * C
    zrow = jnp.zeros((3, WPC), jnp.float32)
    zcol = jnp.zeros((H, 3 * C), jnp.float32)
    xp_ref[0:3, :] = zrow                       # top pad rows
    xp_ref[3 + H:H + 6, :] = zrow               # bottom pad rows
    xp_ref[3:3 + H, 0:3 * C] = zcol             # left pad lanes
    xp_ref[3:3 + H, 3 * C + WC:WPC] = zcol      # right pad lanes
    xp_ref[3:3 + H, 3 * C:3 * C + WC] = x_ref[0].astype(jnp.float32)

    acc = jnp.zeros((H, WC), jnp.float32)
    for kh in range(7):                         # static unroll, 49 taps
        for kw in range(7):
            tap = xp_ref[kh:kh + H, kw * C:kw * C + WC]       # static slice
            idx = kh * 7 + kw
            acc = acc + tap * w_ref[idx:idx + 1, :]           # VPU FMA (f32)
    acc = acc + b_ref[...]
    o_ref[0] = acc.astype(o_ref.dtype)


def dwconv7x7_bn(x_nhwc, w_flat, bias):
    """x_nhwc: (B, H, W, C), w_flat: (49, C) scale-folded -> (B, H, W, C)."""
    B, H, W, C = x_nhwc.shape
    WC = W * C
    x_f = x_nhwc.reshape(B, H, WC)                            # free reshape
    w_t = jnp.tile(w_flat, (1, W)).astype(jnp.float32)        # (49, W*C)
    b_t = jnp.tile(bias.reshape(1, C), (1, W)).astype(jnp.float32)
    out = pl.pallas_call(
        functools.partial(_dwconv7_bn_kernel, H=H, W=W, C=C),
        out_shape=jax.ShapeDtypeStruct((B, H, WC), x_nhwc.dtype),
        grid=(B,),
        in_specs=[pl.BlockSpec((1, H, WC), lambda b: (b, 0, 0)),
                  pl.BlockSpec((49, WC), lambda b: (0, 0)),
                  pl.BlockSpec((1, WC), lambda b: (0, 0))],
        out_specs=pl.BlockSpec((1, H, WC), lambda b: (b, 0, 0)),
        scratch_shapes=[pltpu.VMEM((H + 6, (W + 6) * C), jnp.float32)],
        compiler_params=_cparams(1),
    )(x_f, w_t, b_t)
    return out.reshape(B, H, W, C)


# ----------------------------------------------------------------------------
# Kernel 3: fused epilogue — proj conv + outer residual + MLP + MLP residual:
#   x1 = res + (xo + pe) @ Wp + bp
#   x2 = x1 + BN2(SiLU(BN1(x1 @ W1)) @ W2)        (BN scales folded into W)
#   Tiled over tokens; weights VMEM-resident (bf16); x1/hidden never hit HBM.
# ----------------------------------------------------------------------------
def _proj_mlp_kernel(xo_ref, pe_ref, res_ref, wp_ref, bp_ref,
                     w1_ref, b1_ref, w2_ref, b2_ref, o_ref):
    y = xo_ref[...].astype(jnp.float32) + pe_ref[...].astype(jnp.float32)
    z = jnp.dot(y.astype(jnp.bfloat16), wp_ref[...],
                preferred_element_type=jnp.float32) + bp_ref[...]
    x1 = res_ref[...].astype(jnp.float32) + z                 # x + attn(x)
    h = jnp.dot(x1.astype(jnp.bfloat16), w1_ref[...],
                preferred_element_type=jnp.float32) + b1_ref[...]
    h = h * jax.nn.sigmoid(h)                                 # SiLU (f32)
    z2 = jnp.dot(h.astype(jnp.bfloat16), w2_ref[...],
                 preferred_element_type=jnp.float32) + b2_ref[...]
    o_ref[...] = (x1 + z2).astype(o_ref.dtype)


def proj_mlp_residual(xo, pe, res, wp, bp, w1, b1, w2, b2):
    M, C = xo.shape
    Hp = w1.shape[1]
    tm = _pick_m_tile(M, _prefer_multi_blocks())
    row = pl.BlockSpec((tm, C), lambda i: (i, 0))
    const = lambda r, c: pl.BlockSpec((r, c), lambda i: (0, 0))
    return pl.pallas_call(
        _proj_mlp_kernel,
        out_shape=jax.ShapeDtypeStruct((M, C), xo.dtype),
        grid=(M // tm,),
        in_specs=[row, row, row,
                  const(C, C), const(1, C),
                  const(C, Hp), const(1, Hp),
                  const(Hp, C), const(1, C)],
        out_specs=row,
        compiler_params=_cparams(1),
    )(xo, pe, res, wp, bp.reshape(1, -1), w1, b1.reshape(1, -1),
      w2, b2.reshape(1, -1))


# ----------------------------------------------------------------------------
# Parameter construction (deterministic, synthetic; matches module shapes).
# All constant folding (BN scale, attention scale, qkv column permutation,
# MLP hidden zero-padding, bf16 casts) is done here, in f32, once.
# ----------------------------------------------------------------------------
def init_params(key, dim, num_heads, mlp_ratio=1.2):
    hd = dim // num_heads
    hidden = int(dim * mlp_ratio)
    hidden_pad = ((hidden + 127) // 128) * 128                # lane-dense MLP
    keys = jax.random.split(key, 10)

    def conv_w(k, cin, cout):
        # trunc_normal(std=0.02) approximated by normal*0.02 (synthetic weights)
        return (0.02 * jax.random.normal(k, (cin, cout))).astype(jnp.float32)

    def bn_fold(k, c):
        k1, k2, k3, k4 = jax.random.split(k, 4)
        gamma = 1.0 + 0.1 * jax.random.normal(k1, (c,))
        beta = 0.1 * jax.random.normal(k2, (c,))
        mean = 0.1 * jax.random.normal(k3, (c,))
        var = 1.0 + 0.1 * jnp.abs(jax.random.normal(k4, (c,)))
        scale = gamma / jnp.sqrt(var + 1e-5)
        return scale.astype(jnp.float32), (beta - mean * scale).astype(jnp.float32)

    p = {}
    # ---- qkv 1x1 conv + BN ----------------------------------------------
    # PyTorch qkv output channel c belongs to head c // (3*hd) with role
    # (c % (3*hd)) // hd  (per-head interleaved [q_h|k_h|v_h]).  Permute the
    # columns to contiguous Q|K|V blocks with heads contiguous inside each
    # block, which matches the (B, N, C) channel order c = h*hd + d used by
    # the downstream pe conv / proj (so the merged v needs no reassembly).
    w_qkv = conv_w(keys[0], dim, 3 * dim)
    s_qkv, b_qkv = bn_fold(keys[1], 3 * dim)
    perm = jnp.asarray(
        [h * 3 * hd + r * hd + d
         for r in range(3) for h in range(num_heads) for d in range(hd)],
        dtype=jnp.int32)
    w_qkv = (w_qkv * s_qkv[None, :])[:, perm]                 # fold BN, permute
    b_qkv = b_qkv[perm]
    attn_scale = float(hd) ** -0.5                            # fold into Q
    w_qkv = w_qkv.at[:, :dim].multiply(attn_scale)
    b_qkv = b_qkv.at[:dim].multiply(attn_scale)
    p["qkv_w"] = w_qkv.astype(jnp.bfloat16)
    p["qkv_b"] = b_qkv
    # ---- proj 1x1 conv + BN ----------------------------------------------
    w_proj = conv_w(keys[2], dim, dim)
    s_proj, b_proj = bn_fold(keys[3], dim)
    p["proj_w"] = (w_proj * s_proj[None, :]).astype(jnp.bfloat16)
    p["proj_b"] = b_proj
    # ---- pe: depthwise 7x7 + BN; torch weight (dim,1,7,7) stored as (49,dim),
    #      flat index kh*7 + kw.  BN scale folded; stays f32 (VPU conv). ------
    w_pe = (0.02 * jax.random.normal(keys[4], (49, dim))).astype(jnp.float32)
    s_pe, b_pe = bn_fold(keys[5], dim)
    p["pe_w"] = w_pe * s_pe[None, :]
    p["pe_b"] = b_pe
    # ---- MLP: conv+BN+SiLU -> conv+BN; hidden zero-padded to 128 lanes
    #      (padding is inert: padded hidden units stay exactly zero). ---------
    w1 = conv_w(keys[6], dim, hidden)
    s1, b1 = bn_fold(keys[7], hidden)
    padh = hidden_pad - hidden
    p["mlp1_w"] = jnp.pad(w1 * s1[None, :], ((0, 0), (0, padh))).astype(jnp.bfloat16)
    p["mlp1_b"] = jnp.pad(b1, (0, padh))
    w2 = conv_w(keys[8], hidden, dim)
    s2, b2 = bn_fold(keys[9], dim)
    p["mlp2_w"] = jnp.pad(w2 * s2[None, :], ((0, padh), (0, 0))).astype(jnp.bfloat16)
    p["mlp2_b"] = b2
    return p


# ----------------------------------------------------------------------------
# ABlock forward (wrapper: NCHW in / NCHW out; all internal reshapes are
# layout-free; only the two NCHW<->NHWC transposes remain outside kernels)
# ----------------------------------------------------------------------------
def ablock_forward(params, x_nchw, num_heads, area=1):
    B, C, H, W = x_nchw.shape
    N = H * W
    hd = C // num_heads

    x_nhwc = jnp.transpose(x_nchw, (0, 2, 3, 1))              # NHWC
    x_tok = x_nhwc.reshape(B, N, C)                           # (B, N, C)

    # ---- AAttn: fused qkv conv+BN + per-head softmax attention ----
    x_attn = x_tok.reshape(B * area, N // area, C) if area > 1 else x_tok
    xo, vo = aattn_qkv(x_attn, params["qkv_w"], params["qkv_b"],
                       num_heads, hd)                         # (BA, Na, C) each
    xo = xo.reshape(B * N, C)
    vo = vo.reshape(B, H, W, C)

    # ---- positional encoding: depthwise 7x7 conv + folded BN on v ----
    pe = dwconv7x7_bn(vo, params["pe_w"], params["pe_b"])

    # ---- proj conv + outer residual + MLP + MLP residual (single kernel) ----
    x2 = proj_mlp_residual(
        xo, pe.reshape(B * N, C), x_tok.reshape(B * N, C),
        params["proj_w"], params["proj_b"],
        params["mlp1_w"], params["mlp1_b"],
        params["mlp2_w"], params["mlp2_b"])

    return jnp.transpose(x2.reshape(B, H, W, C), (0, 3, 1, 2))  # back to NCHW


if __name__ == "__main__":
    # Small shapes consistent with the module: dim=64, num_heads=8, area=1,
    # mlp_ratio=1.2, input x: (B=2, C=64, H=8, W=8).
    dim, num_heads, area, mlp_ratio = 64, 8, 1, 1.2
    B, H, W = 2, 8, 8

    key = jax.random.PRNGKey(0)
    kp, kx = jax.random.split(key)
    params = init_params(kp, dim, num_heads, mlp_ratio)
    x = jax.random.normal(kx, (B, dim, H, W), dtype=jnp.float32)

    fwd = jax.jit(functools.partial(ablock_forward, num_heads=num_heads, area=area))
    out = fwd(params, x)
    jax.block_until_ready(out)

    assert out.shape == (B, dim, H, W), out.shape
    assert out.dtype == jnp.float32
    assert bool(jnp.all(jnp.isfinite(out)))
    print("KERNEL_OK")
</pallas_src>

<mosaic_0001>
module attributes {stable_mosaic.version = 11 : i64} {
  func.func @_aattn_kernel(%arg0: i32, %arg1: memref<1x64x64xf32, #tpu.memory_space<vmem>>, %arg2: memref<64x192xbf16, #tpu.memory_space<vmem>>, %arg3: memref<1x192xf32, #tpu.memory_space<vmem>>, %arg4: memref<1x64x64xf32, #tpu.memory_space<vmem>>, %arg5: memref<1x64x64xf32, #tpu.memory_space<vmem>>) attributes {dimension_semantics = [#tpu.dimension_semantics<parallel>], iteration_bounds = array<i64: 2>, scalar_prefetch = 0 : i64, scratch_operands = 0 : i64, tpu.core_type = #tpu.core_type<tc>, window_params = [{transform_indices = @transform_0, window_bounds = array<i64: 1, 64, 64>}, {pipeline_mode = #tpu.pipeline_mode<synchronous>, transform_indices = @transform_1, window_bounds = array<i64: 64, 192>}, {pipeline_mode = #tpu.pipeline_mode<synchronous>, transform_indices = @transform_2, window_bounds = array<i64: 1, 192>}, {transform_indices = @transform_3, window_bounds = array<i64: 1, 64, 64>}, {transform_indices = @transform_4, window_bounds = array<i64: 1, 64, 64>}]} {
    %c0 = arith.constant 0 : index
    %c0_0 = arith.constant 0 : index
    %c0_1 = arith.constant 0 : index
    %0 = vector.load %arg1[%c0, %c0_0, %c0_1] : memref<1x64x64xf32, #tpu.memory_space<vmem>>, vector<1x64x64xf32>
    %1 = vector.shape_cast %0 : vector<1x64x64xf32> to vector<64x64xf32>
    %2 = arith.truncf %1 : vector<64x64xf32> to vector<64x64xbf16>
    %c0_2 = arith.constant 0 : index
    %c0_3 = arith.constant 0 : index
    %3 = vector.load %arg2[%c0_2, %c0_3] : memref<64x192xbf16, #tpu.memory_space<vmem>>, vector<64x192xbf16>
    %cst = arith.constant dense<0.000000e+00> : vector<64x192xf32>
    %4 = tpu.matmul %2, %3, %cst {dimension_numbers = #tpu.dot_dimension_numbers<[1], [0], [0], [1], [0, 0, 1, 1], [], []>} : vector<64x64xbf16>, vector<64x192xbf16>, vector<64x192xf32> -> vector<64x192xf32>
    %c0_4 = arith.constant 0 : index
    %c0_5 = arith.constant 0 : index
    %5 = vector.load %arg3[%c0_4, %c0_5] : memref<1x192xf32, #tpu.memory_space<vmem>>, vector<1x192xf32>
    %6 = vector.broadcast %5 : vector<1x192xf32> to vector<64x192xf32>
    %7 = arith.addf %4, %6 : vector<64x192xf32>
    %8 = vector.extract_strided_slice %7 {offsets = [0, 0], sizes = [64, 8], strides = [1, 1]} : vector<64x192xf32> to vector<64x8xf32>
    %9 = vector.extract_strided_slice %7 {offsets = [0, 64], sizes = [64, 8], strides = [1, 1]} : vector<64x192xf32> to vector<64x8xf32>
    %10 = vector.extract_strided_slice %7 {offsets = [0, 128], sizes = [64, 8], strides = [1, 1]} : vector<64x192xf32> to vector<64x8xf32>
    %11 = arith.truncf %8 : vector<64x8xf32> to vector<64x8xbf16>
    %12 = arith.truncf %9 : vector<64x8xf32> to vector<64x8xbf16>
    %cst_6 = arith.constant dense<0.000000e+00> : vector<64x64xf32>
    %13 = tpu.matmul %11, %12, %cst_6 {dimension_numbers = #tpu.dot_dimension_numbers<[1], [1], [0], [0], [0, 0, 1, 0], [], []>} : vector<64x8xbf16>, vector<64x8xbf16>, vector<64x64xf32> -> vector<64x64xf32>
    %cst_7 = arith.constant dense<0xFF800000> : vector<64xf32>
    %14 = vector.multi_reduction <maximumf>, %13, %cst_7 [1] : vector<64x64xf32> to vector<64xf32>
    %15 = vector.shape_cast %14 : vector<64xf32> to vector<64x1xf32>
    %16 = vector.broadcast %15 : vector<64x1xf32> to vector<64x64xf32>
    %17 = arith.subf %13, %16 : vector<64x64xf32>
    %18 = math.exp %17 : vector<64x64xf32>
    %cst_8 = arith.constant dense<0.000000e+00> : vector<64xf32>
    %19 = vector.multi_reduction <add>, %18, %cst_8 [1] : vector<64x64xf32> to vector<64xf32>
    %20 = vector.shape_cast %19 : vector<64xf32> to vector<64x1xf32>
    %21 = arith.truncf %18 : vector<64x64xf32> to vector<64x64xbf16>
    %22 = arith.truncf %10 : vector<64x8xf32> to vector<64x8xbf16>
    %cst_9 = arith.constant dense<0.000000e+00> : vector<64x8xf32>
    %23 = tpu.matmul %21, %22, %cst_9 {dimension_numbers = #tpu.dot_dimension_numbers<[1], [0], [0], [1], [0, 0, 1, 1], [], []>} : vector<64x64xbf16>, vector<64x8xbf16>, vector<64x8xf32> -> vector<64x8xf32>
    %24 = tpu.reciprocal %20 {approx = true} : vector<64x1xf32> -> vector<64x1xf32>
    %25 = vector.broadcast %24 : vector<64x1xf32> to vector<64x8xf32>
    %26 = arith.mulf %23, %25 : vector<64x8xf32>
    %27 = vector.extract_strided_slice %7 {offsets = [0, 8], sizes = [64, 8], strides = [1, 1]} : vector<64x192xf32> to vector<64x8xf32>
    %28 = vector.extract_strided_slice %7 {offsets = [0, 72], sizes = [64, 8], strides = [1, 1]} : vector<64x192xf32> to vector<64x8xf32>
    %29 = vector.extract_strided_slice %7 {offsets = [0, 136], sizes = [64, 8], strides = [1, 1]} : vector<64x192xf32> to vector<64x8xf32>
    %30 = arith.truncf %27 : vector<64x8xf32> to vector<64x8xbf16>
    %31 = arith.truncf %28 : vector<64x8xf32> to vector<64x8xbf16>
    %cst_10 = arith.constant dense<0.000000e+00> : vector<64x64xf32>
    %32 = tpu.matmul %30, %31, %cst_10 {dimension_numbers = #tpu.dot_dimension_numbers<[1], [1], [0], [0], [0, 0, 1, 0], [], []>} : vector<64x8xbf16>, vector<64x8xbf16>, vector<64x64xf32> -> vector<64x64xf32>
    %cst_11 = arith.constant dense<0xFF800000> : vector<64xf32>
    %33 = vector.multi_reduction <maximumf>, %32, %cst_11 [1] : vector<64x64xf32> to vector<64xf32>
    %34 = vector.shape_cast %33 : vector<64xf32> to vector<64x1xf32>
    %35 = vector.broadcast %34 : vector<64x1xf32> to vector<64x64xf32>
    %36 = arith.subf %32, %35 : vector<64x64xf32>
    %37 = math.exp %36 : vector<64x64xf32>
    %cst_12 = arith.constant dense<0.000000e+00> : vector<64xf32>
    %38 = vector.multi_reduction <add>, %37, %cst_12 [1] : vector<64x64xf32> to vector<64xf32>
    %39 = vector.shape_cast %38 : vector<64xf32> to vector<64x1xf32>
    %40 = arith.truncf %37 : vector<64x64xf32> to vector<64x64xbf16>
    %41 = arith.truncf %29 : vector<64x8xf32> to vector<64x8xbf16>
    %cst_13 = arith.constant dense<0.000000e+00> : vector<64x8xf32>
    %42 = tpu.matmul %40, %41, %cst_13 {dimension_numbers = #tpu.dot_dimension_numbers<[1], [0], [0], [1], [0, 0, 1, 1], [], []>} : vector<64x64xbf16>, vector<64x8xbf16>, vector<64x8xf32> -> vector<64x8xf32>
    %43 = tpu.reciprocal %39 {approx = true} : vector<64x1xf32> -> vector<64x1xf32>
    %44 = vector.broadcast %43 : vector<64x1xf32> to vector<64x8xf32>
    %45 = arith.mulf %42, %44 : vector<64x8xf32>
    %46 = vector.extract_strided_slice %7 {offsets = [0, 16], sizes = [64, 8], strides = [1, 1]} : vector<64x192xf32> to vector<64x8xf32>
    %47 = vector.extract_strided_slice %7 {offsets = [0, 80], sizes = [64, 8], strides = [1, 1]} : vector<64x192xf32> to vector<64x8xf32>
    %48 = vector.extract_strided_slice %7 {offsets = [0, 144], sizes = [64, 8], strides = [1, 1]} : vector<64x192xf32> to vector<64x8xf32>
    %49 = arith.truncf %46 : vector<64x8xf32> to vector<64x8xbf16>
    %50 = arith.truncf %47 : vector<64x8xf32> to vector<64x8xbf16>
    %cst_14 = arith.constant dense<0.000000e+00> : vector<64x64xf32>
    %51 = tpu.matmul %49, %50, %cst_14 {dimension_numbers = #tpu.dot_dimension_numbers<[1], [1], [0], [0], [0, 0, 1, 0], [], []>} : vector<64x8xbf16>, vector<64x8xbf16>, vector<64x64xf32> -> vector<64x64xf32>
    %cst_15 = arith.constant dense<0xFF800000> : vector<64xf32>
    %52 = vector.multi_reduction <maximumf>, %51, %cst_15 [1] : vector<64x64xf32> to vector<64xf32>
    %53 = vector.shape_cast %52 : vector<64xf32> to vector<64x1xf32>
    %54 = vector.broadcast %53 : vector<64x1xf32> to vector<64x64xf32>
    %55 = arith.subf %51, %54 : vector<64x64xf32>
    %56 = math.exp %55 : vector<64x64xf32>
    %cst_16 = arith.constant dense<0.000000e+00> : vector<64xf32>
    %57 = vector.multi_reduction <add>, %56, %cst_16 [1] : vector<64x64xf32> to vector<64xf32>
    %58 = vector.shape_cast %57 : vector<64xf32> to vector<64x1xf32>
    %59 = arith.truncf %56 : vector<64x64xf32> to vector<64x64xbf16>
    %60 = arith.truncf %48 : vector<64x8xf32> to vector<64x8xbf16>
    %cst_17 = arith.constant dense<0.000000e+00> : vector<64x8xf32>
    %61 = tpu.matmul %59, %60, %cst_17 {dimension_numbers = #tpu.dot_dimension_numbers<[1], [0], [0], [1], [0, 0, 1, 1], [], []>} : vector<64x64xbf16>, vector<64x8xbf16>, vector<64x8xf32> -> vector<64x8xf32>
    %62 = tpu.reciprocal %58 {approx = true} : vector<64x1xf32> -> vector<64x1xf32>
    %63 = vector.broadcast %62 : vector<64x1xf32> to vector<64x8xf32>
    %64 = arith.mulf %61, %63 : vector<64x8xf32>
    %65 = vector.extract_strided_slice %7 {offsets = [0, 24], sizes = [64, 8], strides = [1, 1]} : vector<64x192xf32> to vector<64x8xf32>
    %66 = vector.extract_strided_slice %7 {offsets = [0, 88], sizes = [64, 8], strides = [1, 1]} : vector<64x192xf32> to vector<64x8xf32>
    %67 = vector.extract_strided_slice %7 {offsets = [0, 152], sizes = [64, 8], strides = [1, 1]} : vector<64x192xf32> to vector<64x8xf32>
    %68 = arith.truncf %65 : vector<64x8xf32> to vector<64x8xbf16>
    %69 = arith.truncf %66 : vector<64x8xf32> to vector<64x8xbf16>
    %cst_18 = arith.constant dense<0.000000e+00> : vector<64x64xf32>
    %70 = tpu.matmul %68, %69, %cst_18 {dimension_numbers = #tpu.dot_dimension_numbers<[1], [1], [0], [0], [0, 0, 1, 0], [], []>} : vector<64x8xbf16>, vector<64x8xbf16>, vector<64x64xf32> -> vector<64x64xf32>
    %cst_19 = arith.constant dense<0xFF800000> : vector<64xf32>
    %71 = vector.multi_reduction <maximumf>, %70, %cst_19 [1] : vector<64x64xf32> to vector<64xf32>
    %72 = vector.shape_cast %71 : vector<64xf32> to vector<64x1xf32>
    %73 = vector.broadcast %72 : vector<64x1xf32> to vector<64x64xf32>
    %74 = arith.subf %70, %73 : vector<64x64xf32>
    %75 = math.exp %74 : vector<64x64xf32>
    %cst_20 = arith.constant dense<0.000000e+00> : vector<64xf32>
    %76 = vector.multi_reduction <add>, %75, %cst_20 [1] : vector<64x64xf32> to vector<64xf32>
    %77 = vector.shape_cast %76 : vector<64xf32> to vector<64x1xf32>
    %78 = arith.truncf %75 : vector<64x64xf32> to vector<64x64xbf16>
    %79 = arith.truncf %67 : vector<64x8xf32> to vector<64x8xbf16>
    %cst_21 = arith.constant dense<0.000000e+00> : vector<64x8xf32>
    %80 = tpu.matmul %78, %79, %cst_21 {dimension_numbers = #tpu.dot_dimension_numbers<[1], [0], [0], [1], [0, 0, 1, 1], [], []>} : vector<64x64xbf16>, vector<64x8xbf16>, vector<64x8xf32> -> vector<64x8xf32>
    %81 = tpu.reciprocal %77 {approx = true} : vector<64x1xf32> -> vector<64x1xf32>
    %82 = vector.broadcast %81 : vector<64x1xf32> to vector<64x8xf32>
    %83 = arith.mulf %80, %82 : vector<64x8xf32>
    %84 = vector.extract_strided_slice %7 {offsets = [0, 32], sizes = [64, 8], strides = [1, 1]} : vector<64x192xf32> to vector<64x8xf32>
    %85 = vector.extract_strided_slice %7 {offsets = [0, 96], sizes = [64, 8], strides = [1, 1]} : vector<64x192xf32> to vector<64x8xf32>
    %86 = vector.extract_strided_slice %7 {offsets = [0, 160], sizes = [64, 8], strides = [1, 1]} : vector<64x192xf32> to vector<64x8xf32>
    %87 = arith.truncf %84 : vector<64x8xf32> to vector<64x8xbf16>
    %88 = arith.truncf %85 : vector<64x8xf32> to vector<64x8xbf16>
    %cst_22 = arith.constant dense<0.000000e+00> : vector<64x64xf32>
    %89 = tpu.matmul %87, %88, %cst_22 {dimension_numbers = #tpu.dot_dimension_numbers<[1], [1], [0], [0], [0, 0, 1, 0], [], []>} : vector<64x8xbf16>, vector<64x8xbf16>, vector<64x64xf32> -> vector<64x64xf32>
    %cst_23 = arith.constant dense<0xFF800000> : vector<64xf32>
    %90 = vector.multi_reduction <maximumf>, %89, %cst_23 [1] : vector<64x64xf32> to vector<64xf32>
    %91 = vector.shape_cast %90 : vector<64xf32> to vector<64x1xf32>
    %92 = vector.broadcast %91 : vector<64x1xf32> to vector<64x64xf32>
    %93 = arith.subf %89, %92 : vector<64x64xf32>
    %94 = math.exp %93 : vector<64x64xf32>
    %cst_24 = arith.constant dense<0.000000e+00> : vector<64xf32>
    %95 = vector.multi_reduction <add>, %94, %cst_24 [1] : vector<64x64xf32> to vector<64xf32>
    %96 = vector.shape_cast %95 : vector<64xf32> to vector<64x1xf32>
    %97 = arith.truncf %94 : vector<64x64xf32> to vector<64x64xbf16>
    %98 = arith.truncf %86 : vector<64x8xf32> to vector<64x8xbf16>
    %cst_25 = arith.constant dense<0.000000e+00> : vector<64x8xf32>
    %99 = tpu.matmul %97, %98, %cst_25 {dimension_numbers = #tpu.dot_dimension_numbers<[1], [0], [0], [1], [0, 0, 1, 1], [], []>} : vector<64x64xbf16>, vector<64x8xbf16>, vector<64x8xf32> -> vector<64x8xf32>
    %100 = tpu.reciprocal %96 {approx = true} : vector<64x1xf32> -> vector<64x1xf32>
    %101 = vector.broadcast %100 : vector<64x1xf32> to vector<64x8xf32>
    %102 = arith.mulf %99, %101 : vector<64x8xf32>
    %103 = vector.extract_strided_slice %7 {offsets = [0, 40], sizes = [64, 8], strides = [1, 1]} : vector<64x192xf32> to vector<64x8xf32>
    %104 = vector.extract_strided_slice %7 {offsets = [0, 104], sizes = [64, 8], strides = [1, 1]} : vector<64x192xf32> to vector<64x8xf32>
    %105 = vector.extract_strided_slice %7 {offsets = [0, 168], sizes = [64, 8], strides = [1, 1]} : vector<64x192xf32> to vector<64x8xf32>
    %106 = arith.truncf %103 : vector<64x8xf32> to vector<64x8xbf16>
    %107 = arith.truncf %104 : vector<64x8xf32> to vector<64x8xbf16>
    %cst_26 = arith.constant dense<0.000000e+00> : vector<64x64xf32>
    %108 = tpu.matmul %106, %107, %cst_26 {dimension_numbers = #tpu.dot_dimension_numbers<[1], [1], [0], [0], [0, 0, 1, 0], [], []>} : vector<64x8xbf16>, vector<64x8xbf16>, vector<64x64xf32> -> vector<64x64xf32>
    %cst_27 = arith.constant dense<0xFF800000> : vector<64xf32>
    %109 = vector.multi_reduction <maximumf>, %108, %cst_27 [1] : vector<64x64xf32> to vector<64xf32>
    %110 = vector.shape_cast %109 : vector<64xf32> to vector<64x1xf32>
    %111 = vector.broadcast %110 : vector<64x1xf32> to vector<64x64xf32>
    %112 = arith.subf %108, %111 : vector<64x64xf32>
    %113 = math.exp %112 : vector<64x64xf32>
    %cst_28 = arith.constant dense<0.000000e+00> : vector<64xf32>
    %114 = vector.multi_reduction <add>, %113, %cst_28 [1] : vector<64x64xf32> to vector<64xf32>
    %115 = vector.shape_cast %114 : vector<64xf32> to vector<64x1xf32>
    %116 = arith.truncf %113 : vector<64x64xf32> to vector<64x64xbf16>
    %117 = arith.truncf %105 : vector<64x8xf32> to vector<64x8xbf16>
    %cst_29 = arith.constant dense<0.000000e+00> : vector<64x8xf32>
    %118 = tpu.matmul %116, %117, %cst_29 {dimension_numbers = #tpu.dot_dimension_numbers<[1], [0], [0], [1], [0, 0, 1, 1], [], []>} : vector<64x64xbf16>, vector<64x8xbf16>, vector<64x8xf32> -> vector<64x8xf32>
    %119 = tpu.reciprocal %115 {approx = true} : vector<64x1xf32> -> vector<64x1xf32>
    %120 = vector.broadcast %119 : vector<64x1xf32> to vector<64x8xf32>
    %121 = arith.mulf %118, %120 : vector<64x8xf32>
    %122 = vector.extract_strided_slice %7 {offsets = [0, 48], sizes = [64, 8], strides = [1, 1]} : vector<64x192xf32> to vector<64x8xf32>
    %123 = vector.extract_strided_slice %7 {offsets = [0, 112], sizes = [64, 8], strides = [1, 1]} : vector<64x192xf32> to vector<64x8xf32>
    %124 = vector.extract_strided_slice %7 {offsets = [0, 176], sizes = [64, 8], strides = [1, 1]} : vector<64x192xf32> to vector<64x8xf32>
    %125 = arith.truncf %122 : vector<64x8xf32> to vector<64x8xbf16>
    %126 = arith.truncf %123 : vector<64x8xf32> to vector<64x8xbf16>
    %cst_30 = arith.constant dense<0.000000e+00> : vector<64x64xf32>
    %127 = tpu.matmul %125, %126, %cst_30 {dimension_numbers = #tpu.dot_dimension_numbers<[1], [1], [0], [0], [0, 0, 1, 0], [], []>} : vector<64x8xbf16>, vector<64x8xbf16>, vector<64x64xf32> -> vector<64x64xf32>
    %cst_31 = arith.constant dense<0xFF800000> : vector<64xf32>
    %128 = vector.multi_reduction <maximumf>, %127, %cst_31 [1] : vector<64x64xf32> to vector<64xf32>
    %129 = vector.shape_cast %128 : vector<64xf32> to vector<64x1xf32>
    %130 = vector.broadcast %129 : vector<64x1xf32> to vector<64x64xf32>
    %131 = arith.subf %127, %130 : vector<64x64xf32>
    %132 = math.exp %131 : vector<64x64xf32>
    %cst_32 = arith.constant dense<0.000000e+00> : vector<64xf32>
    %133 = vector.multi_reduction <add>, %132, %cst_32 [1] : vector<64x64xf32> to vector<64xf32>
    %134 = vector.shape_cast %133 : vector<64xf32> to vector<64x1xf32>
    %135 = arith.truncf %132 : vector<64x64xf32> to vector<64x64xbf16>
    %136 = arith.truncf %124 : vector<64x8xf32> to vector<64x8xbf16>
    %cst_33 = arith.constant dense<0.000000e+00> : vector<64x8xf32>
    %137 = tpu.matmul %135, %136, %cst_33 {dimension_numbers = #tpu.dot_dimension_numbers<[1], [0], [0], [1], [0, 0, 1, 1], [], []>} : vector<64x64xbf16>, vector<64x8xbf16>, vector<64x8xf32> -> vector<64x8xf32>
    %138 = tpu.reciprocal %134 {approx = true} : vector<64x1xf32> -> vector<64x1xf32>
    %139 = vector.broadcast %138 : vector<64x1xf32> to vector<64x8xf32>
    %140 = arith.mulf %137, %139 : vector<64x8xf32>
    %141 = vector.extract_strided_slice %7 {offsets = [0, 56], sizes = [64, 8], strides = [1, 1]} : vector<64x192xf32> to vector<64x8xf32>
    %142 = vector.extract_strided_slice %7 {offsets = [0, 120], sizes = [64, 8], strides = [1, 1]} : vector<64x192xf32> to vector<64x8xf32>
    %143 = vector.extract_strided_slice %7 {offsets = [0, 184], sizes = [64, 8], strides = [1, 1]} : vector<64x192xf32> to vector<64x8xf32>
    %144 = arith.truncf %141 : vector<64x8xf32> to vector<64x8xbf16>
    %145 = arith.truncf %142 : vector<64x8xf32> to vector<64x8xbf16>
    %cst_34 = arith.constant dense<0.000000e+00> : vector<64x64xf32>
    %146 = tpu.matmul %144, %145, %cst_34 {dimension_numbers = #tpu.dot_dimension_numbers<[1], [1], [0], [0], [0, 0, 1, 0], [], []>} : vector<64x8xbf16>, vector<64x8xbf16>, vector<64x64xf32> -> vector<64x64xf32>
    %cst_35 = arith.constant dense<0xFF800000> : vector<64xf32>
    %147 = vector.multi_reduction <maximumf>, %146, %cst_35 [1] : vector<64x64xf32> to vector<64xf32>
    %148 = vector.shape_cast %147 : vector<64xf32> to vector<64x1xf32>
    %149 = vector.broadcast %148 : vector<64x1xf32> to vector<64x64xf32>
    %150 = arith.subf %146, %149 : vector<64x64xf32>
    %151 = math.exp %150 : vector<64x64xf32>
    %cst_36 = arith.constant dense<0.000000e+00> : vector<64xf32>
    %152 = vector.multi_reduction <add>, %151, %cst_36 [1] : vector<64x64xf32> to vector<64xf32>
    %153 = vector.shape_cast %152 : vector<64xf32> to vector<64x1xf32>
    %154 = arith.truncf %151 : vector<64x64xf32> to vector<64x64xbf16>
    %155 = arith.truncf %143 : vector<64x8xf32> to vector<64x8xbf16>
    %cst_37 = arith.constant dense<0.000000e+00> : vector<64x8xf32>
    %156 = tpu.matmul %154, %155, %cst_37 {dimension_numbers = #tpu.dot_dimension_numbers<[1], [0], [0], [1], [0, 0, 1, 1], [], []>} : vector<64x64xbf16>, vector<64x8xbf16>, vector<64x8xf32> -> vector<64x8xf32>
    %157 = tpu.reciprocal %153 {approx = true} : vector<64x1xf32> -> vector<64x1xf32>
    %158 = vector.broadcast %157 : vector<64x1xf32> to vector<64x8xf32>
    %159 = arith.mulf %156, %158 : vector<64x8xf32>
    %160 = tpu.concatenate %26, %45, %64, %83, %102, %121, %140, %159 in 1 : vector<64x8xf32>, vector<64x8xf32>, vector<64x8xf32>, vector<64x8xf32>, vector<64x8xf32>, vector<64x8xf32>, vector<64x8xf32>, vector<64x8xf32> -> vector<64x64xf32>
    %c0_38 = arith.constant 0 : index
    %c0_39 = arith.constant 0 : index
    %c0_40 = arith.constant 0 : index
    %161 = vector.load %arg4[%c0_38, %c0_39, %c0_40] : memref<1x64x64xf32, #tpu.memory_space<vmem>>, vector<1x64x64xf32>
    %162 = vector.shape_cast %161 : vector<1x64x64xf32> to vector<64x64xf32>
    %163 = vector.shape_cast %160 : vector<64x64xf32> to vector<1x64x64xf32>
    tpu.vector_store %arg4[%c0_38, %c0_39, %c0_40], %163 {strides = array<i32>} : memref<1x64x64xf32, #tpu.memory_space<vmem>>, vector<1x64x64xf32>,
    %164 = vector.extract_strided_slice %7 {offsets = [0, 128], sizes = [64, 64], strides = [1, 1]} : vector<64x192xf32> to vector<64x64xf32>
    %c0_41 = arith.constant 0 : index
    %c0_42 = arith.constant 0 : index
    %c0_43 = arith.constant 0 : index
    %165 = vector.load %arg5[%c0_41, %c0_42, %c0_43] : memref<1x64x64xf32, #tpu.memory_space<vmem>>, vector<1x64x64xf32>
    %166 = vector.shape_cast %165 : vector<1x64x64xf32> to vector<64x64xf32>
    %167 = vector.shape_cast %164 : vector<64x64xf32> to vector<1x64x64xf32>
    tpu.vector_store %arg5[%c0_41, %c0_42, %c0_43], %167 {strides = array<i32>} : memref<1x64x64xf32, #tpu.memory_space<vmem>>, vector<1x64x64xf32>,
    return
  }
  func.func @transform_0(%arg0: i32) -> (i32, i32, i32) {
    %c0_i32 = arith.constant 0 : i32
    %c0_i32_0 = arith.constant 0 : i32
    %c0_i32_1 = arith.constant 0 : i32
    return %arg0, %c0_i32, %c0_i32_0 : i32, i32, i32
  }
  func.func @transform_1(%arg0: i32) -> (i32, i32) {
    %c0_i32 = arith.constant 0 : i32
    %c0_i32_0 = arith.constant 0 : i32
    %c0_i32_1 = arith.constant 0 : i32
    return %c0_i32, %c0_i32_0 : i32, i32
  }
  func.func @transform_2(%arg0: i32) -> (i32, i32) {
    %c0_i32 = arith.constant 0 : i32
    %c0_i32_0 = arith.constant 0 : i32
    %c0_i32_1 = arith.constant 0 : i32
    return %c0_i32, %c0_i32_0 : i32, i32
  }
  func.func @transform_3(%arg0: i32) -> (i32, i32, i32) {
    %c0_i32 = arith.constant 0 : i32
    %c0_i32_0 = arith.constant 0 : i32
    %c0_i32_1 = arith.constant 0 : i32
    return %arg0, %c0_i32, %c0_i32_0 : i32, i32, i32
  }
  func.func @transform_4(%arg0: i32) -> (i32, i32, i32) {
    %c0_i32 = arith.constant 0 : i32
    %c0_i32_0 = arith.constant 0 : i32
    %c0_i32_1 = arith.constant 0 : i32
    return %arg0, %c0_i32, %c0_i32_0 : i32, i32, i32
  }
}

module attributes {stable_mosaic.version = 11 : i64} {
  func.func @_proj_mlp_kernel(%arg0: i32, %arg1: memref<128x64xf32, #tpu.memory_space<vmem>>, %arg2: memref<128x64xf32, #tpu.memory_space<vmem>>, %arg3: memref<128x64xf32, #tpu.memory_space<vmem>>, %arg4: memref<64x64xbf16, #tpu.memory_space<vmem>>, %arg5: memref<1x64xf32, #tpu.memory_space<vmem>>, %arg6: memref<64x128xbf16, #tpu.memory_space<vmem>>, %arg7: memref<1x128xf32, #tpu.memory_space<vmem>>, %arg8: memref<128x64xbf16, #tpu.memory_space<vmem>>, %arg9: memref<1x64xf32, #tpu.memory_space<vmem>>, %arg10: memref<128x64xf32, #tpu.memory_space<vmem>>) attributes {dimension_semantics = [#tpu.dimension_semantics<parallel>], iteration_bounds = array<i64: 1>, scalar_prefetch = 0 : i64, scratch_operands = 0 : i64, tpu.core_type = #tpu.core_type<tc>, window_params = [{transform_indices = @transform_0, window_bounds = array<i64: 128, 64>}, {transform_indices = @transform_1, window_bounds = array<i64: 128, 64>}, {transform_indices = @transform_2, window_bounds = array<i64: 128, 64>}, {pipeline_mode = #tpu.pipeline_mode<synchronous>, transform_indices = @transform_3, window_bounds = array<i64: 64, 64>}, {pipeline_mode = #tpu.pipeline_mode<synchronous>, transform_indices = @transform_4, window_bounds = array<i64: 1, 64>}, {pipeline_mode = #tpu.pipeline_mode<synchronous>, transform_indices = @transform_5, window_bounds = array<i64: 64, 128>}, {pipeline_mode = #tpu.pipeline_mode<synchronous>, transform_indices = @transform_6, window_bounds = array<i64: 1, 128>}, {pipeline_mode = #tpu.pipeline_mode<synchronous>, transform_indices = @transform_7, window_bounds = array<i64: 128, 64>}, {pipeline_mode = #tpu.pipeline_mode<synchronous>, transform_indices = @transform_8, window_bounds = array<i64: 1, 64>}, {transform_indices = @transform_9, window_bounds = array<i64: 128, 64>}]} {
    %c0 = arith.constant 0 : index
    %c0_0 = arith.constant 0 : index
    %0 = vector.load %arg1[%c0, %c0_0] : memref<128x64xf32, #tpu.memory_space<vmem>>, vector<128x64xf32>
    %c0_1 = arith.constant 0 : index
    %c0_2 = arith.constant 0 : index
    %1 = vector.load %arg2[%c0_1, %c0_2] : memref<128x64xf32, #tpu.memory_space<vmem>>, vector<128x64xf32>
    %2 = arith.addf %0, %1 : vector<128x64xf32>
    %3 = arith.truncf %2 : vector<128x64xf32> to vector<128x64xbf16>
    %c0_3 = arith.constant 0 : index
    %c0_4 = arith.constant 0 : index
    %4 = vector.load %arg4[%c0_3, %c0_4] : memref<64x64xbf16, #tpu.memory_space<vmem>>, vector<64x64xbf16>
    %cst = arith.constant dense<0.000000e+00> : vector<128x64xf32>
    %5 = tpu.matmul %3, %4, %cst {dimension_numbers = #tpu.dot_dimension_numbers<[1], [0], [0], [1], [0, 0, 1, 1], [], []>} : vector<128x64xbf16>, vector<64x64xbf16>, vector<128x64xf32> -> vector<128x64xf32>
    %c0_5 = arith.constant 0 : index
    %c0_6 = arith.constant 0 : index
    %6 = vector.load %arg5[%c0_5, %c0_6] : memref<1x64xf32, #tpu.memory_space<vmem>>, vector<1x64xf32>
    %7 = vector.broadcast %6 : vector<1x64xf32> to vector<128x64xf32>
    %8 = arith.addf %5, %7 : vector<128x64xf32>
    %c0_7 = arith.constant 0 : index
    %c0_8 = arith.constant 0 : index
    %9 = vector.load %arg3[%c0_7, %c0_8] : memref<128x64xf32, #tpu.memory_space<vmem>>, vector<128x64xf32>
    %10 = arith.addf %9, %8 : vector<128x64xf32>
    %11 = arith.truncf %10 : vector<128x64xf32> to vector<128x64xbf16>
    %c0_9 = arith.constant 0 : index
    %c0_10 = arith.constant 0 : index
    %12 = vector.load %arg6[%c0_9, %c0_10] : memref<64x128xbf16, #tpu.memory_space<vmem>>, vector<64x128xbf16>
    %cst_11 = arith.constant dense<0.000000e+00> : vector<128x128xf32>
    %13 = tpu.matmul %11, %12, %cst_11 {dimension_numbers = #tpu.dot_dimension_numbers<[1], [0], [0], [1], [0, 0, 1, 1], [], []>} : vector<128x64xbf16>, vector<64x128xbf16>, vector<128x128xf32> -> vector<128x128xf32>
    %c0_12 = arith.constant 0 : index
    %c0_13 = arith.constant 0 : index
    %14 = vector.load %arg7[%c0_12, %c0_13] : memref<1x128xf32, #tpu.memory_space<vmem>>, vector<1x128xf32>
    %15 = vector.broadcast %14 : vector<1x128xf32> to vector<128x128xf32>
    %16 = arith.addf %13, %15 : vector<128x128xf32>
    %17 = arith.negf %16 : vector<128x128xf32>
    %18 = math.exp %17 : vector<128x128xf32>
    %cst_14 = arith.constant 1.000000e+00 : f32
    %19 = vector.broadcast %cst_14 : f32 to vector<128x128xf32>
    %20 = arith.addf %19, %18 : vector<128x128xf32>
    %21 = arith.divf %19, %20 : vector<128x128xf32>
    %22 = arith.mulf %16, %21 : vector<128x128xf32>
    %23 = arith.truncf %22 : vector<128x128xf32> to vector<128x128xbf16>
    %c0_15 = arith.constant 0 : index
    %c0_16 = arith.constant 0 : index
    %24 = vector.load %arg8[%c0_15, %c0_16] : memref<128x64xbf16, #tpu.memory_space<vmem>>, vector<128x64xbf16>
    %cst_17 = arith.constant dense<0.000000e+00> : vector<128x64xf32>
    %25 = tpu.matmul %23, %24, %cst_17 {dimension_numbers = #tpu.dot_dimension_numbers<[1], [0], [0], [1], [0, 0, 1, 1], [], []>} : vector<128x128xbf16>, vector<128x64xbf16>, vector<128x64xf32> -> vector<128x64xf32>
    %c0_18 = arith.constant 0 : index
    %c0_19 = arith.constant 0 : index
    %26 = vector.load %arg9[%c0_18, %c0_19] : memref<1x64xf32, #tpu.memory_space<vmem>>, vector<1x64xf32>
    %27 = vector.broadcast %26 : vector<1x64xf32> to vector<128x64xf32>
    %28 = arith.addf %25, %27 : vector<128x64xf32>
    %29 = arith.addf %10, %28 : vector<128x64xf32>
    %c0_20 = arith.constant 0 : index
    %c0_21 = arith.constant 0 : index
    %30 = vector.load %arg10[%c0_20, %c0_21] : memref<128x64xf32, #tpu.memory_space<vmem>>, vector<128x64xf32>
    tpu.vector_store %arg10[%c0_20, %c0_21], %29 {strides = array<i32>} : memref<128x64xf32, #tpu.memory_space<vmem>>, vector<128x64xf32>,
    return
  }
  func.func @transform_0(%arg0: i32) -> (i32, i32) {
    %c0_i32 = arith.constant 0 : i32
    %c0_i32_0 = arith.constant 0 : i32
    return %arg0, %c0_i32 : i32, i32
  }
  func.func @transform_1(%arg0: i32) -> (i32, i32) {
    %c0_i32 = arith.constant 0 : i32
    %c0_i32_0 = arith.constant 0 : i32
    return %arg0, %c0_i32 : i32, i32
  }
  func.func @transform_2(%arg0: i32) -> (i32, i32) {
    %c0_i32 = arith.constant 0 : i32
    %c0_i32_0 = arith.constant 0 : i32
    return %arg0, %c0_i32 : i32, i32
  }
  func.func @transform_3(%arg0: i32) -> (i32, i32) {
    %c0_i32 = arith.constant 0 : i32
    %c0_i32_0 = arith.constant 0 : i32
    %c0_i32_1 = arith.constant 0 : i32
    return %c0_i32, %c0_i32_0 : i32, i32
  }
  func.func @transform_4(%arg0: i32) -> (i32, i32) {
    %c0_i32 = arith.constant 0 : i32
    %c0_i32_0 = arith.constant 0 : i32
    %c0_i32_1 = arith.constant 0 : i32
    return %c0_i32, %c0_i32_0 : i32, i32
  }
  func.func @transform_5(%arg0: i32) -> (i32, i32) {
    %c0_i32 = arith.constant 0 : i32
    %c0_i32_0 = arith.constant 0 : i32
    %c0_i32_1 = arith.constant 0 : i32
    return %c0_i32, %c0_i32_0 : i32, i32
  }
  func.func @transform_6(%arg0: i32) -> (i32, i32) {
    %c0_i32 = arith.constant 0 : i32
    %c0_i32_0 = arith.constant 0 : i32
    %c0_i32_1 = arith.constant 0 : i32
    return %c0_i32, %c0_i32_0 : i32, i32
  }
  func.func @transform_7(%arg0: i32) -> (i32, i32) {
    %c0_i32 = arith.constant 0 : i32
    %c0_i32_0 = arith.constant 0 : i32
    %c0_i32_1 = arith.constant 0 : i32
    return %c0_i32, %c0_i32_0 : i32, i32
  }
  func.func @transform_8(%arg0: i32) -> (i32, i32) {
    %c0_i32 = arith.constant 0 : i32
    %c0_i32_0 = arith.constant 0 : i32
    %c0_i32_1 = arith.constant 0 : i32
    return %c0_i32, %c0_i32_0 : i32, i32
  }
  func.func @transform_9(%arg0: i32) -> (i32, i32) {
    %c0_i32 = arith.constant 0 : i32
    %c0_i32_0 = arith.constant 0 : i32
    return %arg0, %c0_i32 : i32, i32
  }
}

module attributes {stable_mosaic.version = 11 : i64} {
  func.func @_dwconv7_bn_kernel(%arg0: i32, %arg1: memref<1x8x512xf32, #tpu.memory_space<vmem>>, %arg2: memref<49x512xf32, #tpu.memory_space<vmem>>, %arg3: memref<1x512xf32, #tpu.memory_space<vmem>>, %arg4: memref<1x8x512xf32, #tpu.memory_space<vmem>>, %arg5: memref<14x896xf32, #tpu.memory_space<vmem>>) attributes {dimension_semantics = [#tpu.dimension_semantics<parallel>], iteration_bounds = array<i64: 2>, scalar_prefetch = 0 : i64, scratch_operands = 1 : i64, tpu.core_type = #tpu.core_type<tc>, window_params = [{transform_indices = @transform_0, window_bounds = array<i64: 1, 8, 512>}, {pipeline_mode = #tpu.pipeline_mode<synchronous>, transform_indices = @transform_1, window_bounds = array<i64: 49, 512>}, {pipeline_mode = #tpu.pipeline_mode<synchronous>, transform_indices = @transform_2, window_bounds = array<i64: 1, 512>}, {transform_indices = @transform_3, window_bounds = array<i64: 1, 8, 512>}]} {
    %cst = arith.constant 0.000000e+00 : f32
    %0 = vector.broadcast %cst : f32 to vector<3x896xf32>
    %cst_0 = arith.constant 0.000000e+00 : f32
    %1 = vector.broadcast %cst_0 : f32 to vector<8x192xf32>
    %c0 = arith.constant 0 : index
    %c0_1 = arith.constant 0 : index
    %2 = vector.load %arg5[%c0, %c0_1] : memref<14x896xf32, #tpu.memory_space<vmem>>, vector<3x896xf32>
    tpu.vector_store %arg5[%c0, %c0_1], %0 {strides = array<i32>} : memref<14x896xf32, #tpu.memory_space<vmem>>, vector<3x896xf32>,
    %c11 = arith.constant 11 : index
    %c0_2 = arith.constant 0 : index
    %3 = vector.load %arg5[%c11, %c0_2] : memref<14x896xf32, #tpu.memory_space<vmem>>, vector<3x896xf32>
    tpu.vector_store %arg5[%c11, %c0_2], %0 {strides = array<i32>} : memref<14x896xf32, #tpu.memory_space<vmem>>, vector<3x896xf32>,
    %c3 = arith.constant 3 : index
    %c0_3 = arith.constant 0 : index
    %4 = vector.load %arg5[%c3, %c0_3] : memref<14x896xf32, #tpu.memory_space<vmem>>, vector<8x192xf32>
    tpu.vector_store %arg5[%c3, %c0_3], %1 {strides = array<i32>} : memref<14x896xf32, #tpu.memory_space<vmem>>, vector<8x192xf32>,
    %c3_4 = arith.constant 3 : index
    %c704 = arith.constant 704 : index
    %5 = vector.load %arg5[%c3_4, %c704] : memref<14x896xf32, #tpu.memory_space<vmem>>, vector<8x192xf32>
    tpu.vector_store %arg5[%c3_4, %c704], %1 {strides = array<i32>} : memref<14x896xf32, #tpu.memory_space<vmem>>, vector<8x192xf32>,
    %c0_5 = arith.constant 0 : index
    %c0_6 = arith.constant 0 : index
    %c0_7 = arith.constant 0 : index
    %6 = vector.load %arg1[%c0_5, %c0_6, %c0_7] : memref<1x8x512xf32, #tpu.memory_space<vmem>>, vector<1x8x512xf32>
    %7 = vector.shape_cast %6 : vector<1x8x512xf32> to vector<8x512xf32>
    %c3_8 = arith.constant 3 : index
    %c192 = arith.constant 192 : index
    %8 = vector.load %arg5[%c3_8, %c192] : memref<14x896xf32, #tpu.memory_space<vmem>>, vector<8x512xf32>
    tpu.vector_store %arg5[%c3_8, %c192], %7 {strides = array<i32>} : memref<14x896xf32, #tpu.memory_space<vmem>>, vector<8x512xf32>,
    %cst_9 = arith.constant 0.000000e+00 : f32
    %9 = vector.broadcast %cst_9 : f32 to vector<8x512xf32>
    %c0_10 = arith.constant 0 : index
    %c0_11 = arith.constant 0 : index
    %10 = vector.load %arg5[%c0_10, %c0_11] : memref<14x896xf32, #tpu.memory_space<vmem>>, vector<8x512xf32>
    %c0_12 = arith.constant 0 : index
    %c0_13 = arith.constant 0 : index
    %11 = vector.load %arg2[%c0_12, %c0_13] : memref<49x512xf32, #tpu.memory_space<vmem>>, vector<1x512xf32>
    %12 = vector.broadcast %11 : vector<1x512xf32> to vector<8x512xf32>
    %13 = arith.mulf %10, %12 : vector<8x512xf32>
    %14 = arith.addf %9, %13 : vector<8x512xf32>
    %c0_14 = arith.constant 0 : index
    %c64 = arith.constant 64 : index
    %15 = vector.load %arg5[%c0_14, %c64] : memref<14x896xf32, #tpu.memory_space<vmem>>, vector<8x512xf32>
    %c1 = arith.constant 1 : index
    %c0_15 = arith.constant 0 : index
    %16 = vector.load %arg2[%c1, %c0_15] : memref<49x512xf32, #tpu.memory_space<vmem>>, vector<1x512xf32>
    %17 = vector.broadcast %16 : vector<1x512xf32> to vector<8x512xf32>
    %18 = arith.mulf %15, %17 : vector<8x512xf32>
    %19 = arith.addf %14, %18 : vector<8x512xf32>
    %c0_16 = arith.constant 0 : index
    %c128 = arith.constant 128 : index
    %20 = vector.load %arg5[%c0_16, %c128] : memref<14x896xf32, #tpu.memory_space<vmem>>, vector<8x512xf32>
    %c2 = arith.constant 2 : index
    %c0_17 = arith.constant 0 : index
    %21 = vector.load %arg2[%c2, %c0_17] : memref<49x512xf32, #tpu.memory_space<vmem>>, vector<1x512xf32>
    %22 = vector.broadcast %21 : vector<1x512xf32> to vector<8x512xf32>
    %23 = arith.mulf %20, %22 : vector<8x512xf32>
    %24 = arith.addf %19, %23 : vector<8x512xf32>
    %c0_18 = arith.constant 0 : index
    %c192_19 = arith.constant 192 : index
    %25 = vector.load %arg5[%c0_18, %c192_19] : memref<14x896xf32, #tpu.memory_space<vmem>>, vector<8x512xf32>
    %c3_20 = arith.constant 3 : index
    %c0_21 = arith.constant 0 : index
    %26 = vector.load %arg2[%c3_20, %c0_21] : memref<49x512xf32, #tpu.memory_space<vmem>>, vector<1x512xf32>
    %27 = vector.broadcast %26 : vector<1x512xf32> to vector<8x512xf32>
    %28 = arith.mulf %25, %27 : vector<8x512xf32>
    %29 = arith.addf %24, %28 : vector<8x512xf32>
    %c0_22 = arith.constant 0 : index
    %c256 = arith.constant 256 : index
    %30 = vector.load %arg5[%c0_22, %c256] : memref<14x896xf32, #tpu.memory_space<vmem>>, vector<8x512xf32>
    %c4 = arith.constant 4 : index
    %c0_23 = arith.constant 0 : index
    %31 = vector.load %arg2[%c4, %c0_23] : memref<49x512xf32, #tpu.memory_space<vmem>>, vector<1x512xf32>
    %32 = vector.broadcast %31 : vector<1x512xf32> to vector<8x512xf32>
    %33 = arith.mulf %30, %32 : vector<8x512xf32>
    %34 = arith.addf %29, %33 : vector<8x512xf32>
    %c0_24 = arith.constant 0 : index
    %c320 = arith.constant 320 : index
    %35 = vector.load %arg5[%c0_24, %c320] : memref<14x896xf32, #tpu.memory_space<vmem>>, vector<8x512xf32>
    %c5 = arith.constant 5 : index
    %c0_25 = arith.constant 0 : index
    %36 = vector.load %arg2[%c5, %c0_25] : memref<49x512xf32, #tpu.memory_space<vmem>>, vector<1x512xf32>
    %37 = vector.broadcast %36 : vector<1x512xf32> to vector<8x512xf32>
    %38 = arith.mulf %35, %37 : vector<8x512xf32>
    %39 = arith.addf %34, %38 : vector<8x512xf32>
    %c0_26 = arith.constant 0 : index
    %c384 = arith.constant 384 : index
    %40 = vector.load %arg5[%c0_26, %c384] : memref<14x896xf32, #tpu.memory_space<vmem>>, vector<8x512xf32>
    %c6 = arith.constant 6 : index
    %c0_27 = arith.constant 0 : index
    %41 = vector.load %arg2[%c6, %c0_27] : memref<49x512xf32, #tpu.memory_space<vmem>>, vector<1x512xf32>
    %42 = vector.broadcast %41 : vector<1x512xf32> to vector<8x512xf32>
    %43 = arith.mulf %40, %42 : vector<8x512xf32>
    %44 = arith.addf %39, %43 : vector<8x512xf32>
    %c1_28 = arith.constant 1 : index
    %c0_29 = arith.constant 0 : index
    %45 = vector.load %arg5[%c1_28, %c0_29] : memref<14x896xf32, #tpu.memory_space<vmem>>, vector<8x512xf32>
    %c7 = arith.constant 7 : index
    %c0_30 = arith.constant 0 : index
    %46 = vector.load %arg2[%c7, %c0_30] : memref<49x512xf32, #tpu.memory_space<vmem>>, vector<1x512xf32>
    %47 = vector.broadcast %46 : vector<1x512xf32> to vector<8x512xf32>
    %48 = arith.mulf %45, %47 : vector<8x512xf32>
    %49 = arith.addf %44, %48 : vector<8x512xf32>
    %c1_31 = arith.constant 1 : index
    %c64_32 = arith.constant 64 : index
    %50 = vector.load %arg5[%c1_31, %c64_32] : memref<14x896xf32, #tpu.memory_space<vmem>>, vector<8x512xf32>
    %c8 = arith.constant 8 : index
    %c0_33 = arith.constant 0 : index
    %51 = vector.load %arg2[%c8, %c0_33] : memref<49x512xf32, #tpu.memory_space<vmem>>, vector<1x512xf32>
    %52 = vector.broadcast %51 : vector<1x512xf32> to vector<8x512xf32>
    %53 = arith.mulf %50, %52 : vector<8x512xf32>
    %54 = arith.addf %49, %53 : vector<8x512xf32>
    %c1_34 = arith.constant 1 : index
    %c128_35 = arith.constant 128 : index
    %55 = vector.load %arg5[%c1_34, %c128_35] : memref<14x896xf32, #tpu.memory_space<vmem>>, vector<8x512xf32>
    %c9 = arith.constant 9 : index
    %c0_36 = arith.constant 0 : index
    %56 = vector.load %arg2[%c9, %c0_36] : memref<49x512xf32, #tpu.memory_space<vmem>>, vector<1x512xf32>
    %57 = vector.broadcast %56 : vector<1x512xf32> to vector<8x512xf32>
    %58 = arith.mulf %55, %57 : vector<8x512xf32>
    %59 = arith.addf %54, %58 : vector<8x512xf32>
    %c1_37 = arith.constant 1 : index
    %c192_38 = arith.constant 192 : index
    %60 = vector.load %arg5[%c1_37, %c192_38] : memref<14x896xf32, #tpu.memory_space<vmem>>, vector<8x512xf32>
    %c10 = arith.constant 10 : index
    %c0_39 = arith.constant 0 : index
    %61 = vector.load %arg2[%c10, %c0_39] : memref<49x512xf32, #tpu.memory_space<vmem>>, vector<1x512xf32>
    %62 = vector.broadcast %61 : vector<1x512xf32> to vector<8x512xf32>
    %63 = arith.mulf %60, %62 : vector<8x512xf32>
    %64 = arith.addf %59, %63 : vector<8x512xf32>
    %c1_40 = arith.constant 1 : index
    %c256_41 = arith.constant 256 : index
    %65 = vector.load %arg5[%c1_40, %c256_41] : memref<14x896xf32, #tpu.memory_space<vmem>>, vector<8x512xf32>
    %c11_42 = arith.constant 11 : index
    %c0_43 = arith.constant 0 : index
    %66 = vector.load %arg2[%c11_42, %c0_43] : memref<49x512xf32, #tpu.memory_space<vmem>>, vector<1x512xf32>
    %67 = vector.broadcast %66 : vector<1x512xf32> to vector<8x512xf32>
    %68 = arith.mulf %65, %67 : vector<8x512xf32>
    %69 = arith.addf %64, %68 : vector<8x512xf32>
    %c1_44 = arith.constant 1 : index
    %c320_45 = arith.constant 320 : index
    %70 = vector.load %arg5[%c1_44, %c320_45] : memref<14x896xf32, #tpu.memory_space<vmem>>, vector<8x512xf32>
    %c12 = arith.constant 12 : index
    %c0_46 = arith.constant 0 : index
    %71 = vector.load %arg2[%c12, %c0_46] : memref<49x512xf32, #tpu.memory_space<vmem>>, vector<1x512xf32>
    %72 = vector.broadcast %71 : vector<1x512xf32> to vector<8x512xf32>
    %73 = arith.mulf %70, %72 : vector<8x512xf32>
    %74 = arith.addf %69, %73 : vector<8x512xf32>
    %c1_47 = arith.constant 1 : index
    %c384_48 = arith.constant 384 : index
    %75 = vector.load %arg5[%c1_47, %c384_48] : memref<14x896xf32, #tpu.memory_space<vmem>>, vector<8x512xf32>
    %c13 = arith.constant 13 : index
    %c0_49 = arith.constant 0 : index
    %76 = vector.load %arg2[%c13, %c0_49] : memref<49x512xf32, #tpu.memory_space<vmem>>, vector<1x512xf32>
    %77 = vector.broadcast %76 : vector<1x512xf32> to vector<8x512xf32>
    %78 = arith.mulf %75, %77 : vector<8x512xf32>
    %79 = arith.addf %74, %78 : vector<8x512xf32>
    %c2_50 = arith.constant 2 : index
    %c0_51 = arith.constant 0 : index
    %80 = vector.load %arg5[%c2_50, %c0_51] : memref<14x896xf32, #tpu.memory_space<vmem>>, vector<8x512xf32>
    %c14 = arith.constant 14 : index
    %c0_52 = arith.constant 0 : index
    %81 = vector.load %arg2[%c14, %c0_52] : memref<49x512xf32, #tpu.memory_space<vmem>>, vector<1x512xf32>
    %82 = vector.broadcast %81 : vector<1x512xf32> to vector<8x512xf32>
    %83 = arith.mulf %80, %82 : vector<8x512xf32>
    %84 = arith.addf %79, %83 : vector<8x512xf32>
    %c2_53 = arith.constant 2 : index
    %c64_54 = arith.constant 64 : index
    %85 = vector.load %arg5[%c2_53, %c64_54] : memref<14x896xf32, #tpu.memory_space<vmem>>, vector<8x512xf32>
    %c15 = arith.constant 15 : index
    %c0_55 = arith.constant 0 : index
    %86 = vector.load %arg2[%c15, %c0_55] : memref<49x512xf32, #tpu.memory_space<vmem>>, vector<1x512xf32>
    %87 = vector.broadcast %86 : vector<1x512xf32> to vector<8x512xf32>
    %88 = arith.mulf %85, %87 : vector<8x512xf32>
    %89 = arith.addf %84, %88 : vector<8x512xf32>
    %c2_56 = arith.constant 2 : index
    %c128_57 = arith.constant 128 : index
    %90 = vector.load %arg5[%c2_56, %c128_57] : memref<14x896xf32, #tpu.memory_space<vmem>>, vector<8x512xf32>
    %c16 = arith.constant 16 : index
    %c0_58 = arith.constant 0 : index
    %91 = vector.load %arg2[%c16, %c0_58] : memref<49x512xf32, #tpu.memory_space<vmem>>, vector<1x512xf32>
    %92 = vector.broadcast %91 : vector<1x512xf32> to vector<8x512xf32>
    %93 = arith.mulf %90, %92 : vector<8x512xf32>
    %94 = arith.addf %89, %93 : vector<8x512xf32>
    %c2_59 = arith.constant 2 : index
    %c192_60 = arith.constant 192 : index
    %95 = vector.load %arg5[%c2_59, %c192_60] : memref<14x896xf32, #tpu.memory_space<vmem>>, vector<8x512xf32>
    %c17 = arith.constant 17 : index
    %c0_61 = arith.constant 0 : index
    %96 = vector.load %arg2[%c17, %c0_61] : memref<49x512xf32, #tpu.memory_space<vmem>>, vector<1x512xf32>
    %97 = vector.broadcast %96 : vector<1x512xf32> to vector<8x512xf32>
    %98 = arith.mulf %95, %97 : vector<8x512xf32>
    %99 = arith.addf %94, %98 : vector<8x512xf32>
    %c2_62 = arith.constant 2 : index
    %c256_63 = arith.constant 256 : index
    %100 = vector.load %arg5[%c2_62, %c256_63] : memref<14x896xf32, #tpu.memory_space<vmem>>, vector<8x512xf32>
    %c18 = arith.constant 18 : index
    %c0_64 = arith.constant 0 : index
    %101 = vector.load %arg2[%c18, %c0_64] : memref<49x512xf32, #tpu.memory_space<vmem>>, vector<1x512xf32>
    %102 = vector.broadcast %101 : vector<1x512xf32> to vector<8x512xf32>
    %103 = arith.mulf %100, %102 : vector<8x512xf32>
    %104 = arith.addf %99, %103 : vector<8x512xf32>
    %c2_65 = arith.constant 2 : index
    %c320_66 = arith.constant 320 : index
    %105 = vector.load %arg5[%c2_65, %c320_66] : memref<14x896xf32, #tpu.memory_space<vmem>>, vector<8x512xf32>
    %c19 = arith.constant 19 : index
    %c0_67 = arith.constant 0 : index
    %106 = vector.load %arg2[%c19, %c0_67] : memref<49x512xf32, #tpu.memory_space<vmem>>, vector<1x512xf32>
    %107 = vector.broadcast %106 : vector<1x512xf32> to vector<8x512xf32>
    %108 = arith.mulf %105, %107 : vector<8x512xf32>
    %109 = arith.addf %104, %108 : vector<8x512xf32>
    %c2_68 = arith.constant 2 : index
    %c384_69 = arith.constant 384 : index
    %110 = vector.load %arg5[%c2_68, %c384_69] : memref<14x896xf32, #tpu.memory_space<vmem>>, vector<8x512xf32>
    %c20 = arith.constant 20 : index
    %c0_70 = arith.constant 0 : index
    %111 = vector.load %arg2[%c20, %c0_70] : memref<49x512xf32, #tpu.memory_space<vmem>>, vector<1x512xf32>
    %112 = vector.broadcast %111 : vector<1x512xf32> to vector<8x512xf32>
    %113 = arith.mulf %110, %112 : vector<8x512xf32>
    %114 = arith.addf %109, %113 : vector<8x512xf32>
    %c3_71 = arith.constant 3 : index
    %c0_72 = arith.constant 0 : index
    %115 = vector.load %arg5[%c3_71, %c0_72] : memref<14x896xf32, #tpu.memory_space<vmem>>, vector<8x512xf32>
    %c21 = arith.constant 21 : index
    %c0_73 = arith.constant 0 : index
    %116 = vector.load %arg2[%c21, %c0_73] : memref<49x512xf32, #tpu.memory_space<vmem>>, vector<1x512xf32>
    %117 = vector.broadcast %116 : vector<1x512xf32> to vector<8x512xf32>
    %118 = arith.mulf %115, %117 : vector<8x512xf32>
    %119 = arith.addf %114, %118 : vector<8x512xf32>
    %c3_74 = arith.constant 3 : index
    %c64_75 = arith.constant 64 : index
    %120 = vector.load %arg5[%c3_74, %c64_75] : memref<14x896xf32, #tpu.memory_space<vmem>>, vector<8x512xf32>
    %c22 = arith.constant 22 : index
    %c0_76 = arith.constant 0 : index
    %121 = vector.load %arg2[%c22, %c0_76] : memref<49x512xf32, #tpu.memory_space<vmem>>, vector<1x512xf32>
    %122 = vector.broadcast %121 : vector<1x512xf32> to vector<8x512xf32>
    %123 = arith.mulf %120, %122 : vector<8x512xf32>
    %124 = arith.addf %119, %123 : vector<8x512xf32>
    %c3_77 = arith.constant 3 : index
    %c128_78 = arith.constant 128 : index
    %125 = vector.load %arg5[%c3_77, %c128_78] : memref<14x896xf32, #tpu.memory_space<vmem>>, vector<8x512xf32>
    %c23 = arith.constant 23 : index
    %c0_79 = arith.constant 0 : index
    %126 = vector.load %arg2[%c23, %c0_79] : memref<49x512xf32, #tpu.memory_space<vmem>>, vector<1x512xf32>
    %127 = vector.broadcast %126 : vector<1x512xf32> to vector<8x512xf32>
    %128 = arith.mulf %125, %127 : vector<8x512xf32>
    %129 = arith.addf %124, %128 : vector<8x512xf32>
    %c3_80 = arith.constant 3 : index
    %c192_81 = arith.constant 192 : index
    %130 = vector.load %arg5[%c3_80, %c192_81] : memref<14x896xf32, #tpu.memory_space<vmem>>, vector<8x512xf32>
    %c24 = arith.constant 24 : index
    %c0_82 = arith.constant 0 : index
    %131 = vector.load %arg2[%c24, %c0_82] : memref<49x512xf32, #tpu.memory_space<vmem>>, vector<1x512xf32>
    %132 = vector.broadcast %131 : vector<1x512xf32> to vector<8x512xf32>
    %133 = arith.mulf %130, %132 : vector<8x512xf32>
    %134 = arith.addf %129, %133 : vector<8x512xf32>
    %c3_83 = arith.constant 3 : index
    %c256_84 = arith.constant 256 : index
    %135 = vector.load %arg5[%c3_83, %c256_84] : memref<14x896xf32, #tpu.memory_space<vmem>>, vector<8x512xf32>
    %c25 = arith.constant 25 : index
    %c0_85 = arith.constant 0 : index
    %136 = vector.load %arg2[%c25, %c0_85] : memref<49x512xf32, #tpu.memory_space<vmem>>, vector<1x512xf32>
    %137 = vector.broadcast %136 : vector<1x512xf32> to vector<8x512xf32>
    %138 = arith.mulf %135, %137 : vector<8x512xf32>
    %139 = arith.addf %134, %138 : vector<8x512xf32>
    %c3_86 = arith.constant 3 : index
    %c320_87 = arith.constant 320 : index
    %140 = vector.load %arg5[%c3_86, %c320_87] : memref<14x896xf32, #tpu.memory_space<vmem>>, vector<8x512xf32>
    %c26 = arith.constant 26 : index
    %c0_88 = arith.constant 0 : index
    %141 = vector.load %arg2[%c26, %c0_88] : memref<49x512xf32, #tpu.memory_space<vmem>>, vector<1x512xf32>
    %142 = vector.broadcast %141 : vector<1x512xf32> to vector<8x512xf32>
    %143 = arith.mulf %140, %142 : vector<8x512xf32>
    %144 = arith.addf %139, %143 : vector<8x512xf32>
    %c3_89 = arith.constant 3 : index
    %c384_90 = arith.constant 384 : index
    %145 = vector.load %arg5[%c3_89, %c384_90] : memref<14x896xf32, #tpu.memory_space<vmem>>, vector<8x512xf32>
    %c27 = arith.constant 27 : index
    %c0_91 = arith.constant 0 : index
    %146 = vector.load %arg2[%c27, %c0_91] : memref<49x512xf32, #tpu.memory_space<vmem>>, vector<1x512xf32>
    %147 = vector.broadcast %146 : vector<1x512xf32> to vector<8x512xf32>
    %148 = arith.mulf %145, %147 : vector<8x512xf32>
    %149 = arith.addf %144, %148 : vector<8x512xf32>
    %c4_92 = arith.constant 4 : index
    %c0_93 = arith.constant 0 : index
    %150 = vector.load %arg5[%c4_92, %c0_93] : memref<14x896xf32, #tpu.memory_space<vmem>>, vector<8x512xf32>
    %c28 = arith.constant 28 : index
    %c0_94 = arith.constant 0 : index
    %151 = vector.load %arg2[%c28, %c0_94] : memref<49x512xf32, #tpu.memory_space<vmem>>, vector<1x512xf32>
    %152 = vector.broadcast %151 : vector<1x512xf32> to vector<8x512xf32>
    %153 = arith.mulf %150, %152 : vector<8x512xf32>
    %154 = arith.addf %149, %153 : vector<8x512xf32>
    %c4_95 = arith.constant 4 : index
    %c64_96 = arith.constant 64 : index
    %155 = vector.load %arg5[%c4_95, %c64_96] : memref<14x896xf32, #tpu.memory_space<vmem>>, vector<8x512xf32>
    %c29 = arith.constant 29 : index
    %c0_97 = arith.constant 0 : index
    %156 = vector.load %arg2[%c29, %c0_97] : memref<49x512xf32, #tpu.memory_space<vmem>>, vector<1x512xf32>
    %157 = vector.broadcast %156 : vector<1x512xf32> to vector<8x512xf32>
    %158 = arith.mulf %155, %157 : vector<8x512xf32>
    %159 = arith.addf %154, %158 : vector<8x512xf32>
    %c4_98 = arith.constant 4 : index
    %c128_99 = arith.constant 128 : index
    %160 = vector.load %arg5[%c4_98, %c128_99] : memref<14x896xf32, #tpu.memory_space<vmem>>, vector<8x512xf32>
    %c30 = arith.constant 30 : index
    %c0_100 = arith.constant 0 : index
    %161 = vector.load %arg2[%c30, %c0_100] : memref<49x512xf32, #tpu.memory_space<vmem>>, vector<1x512xf32>
    %162 = vector.broadcast %161 : vector<1x512xf32> to vector<8x512xf32>
    %163 = arith.mulf %160, %162 : vector<8x512xf32>
    %164 = arith.addf %159, %163 : vector<8x512xf32>
    %c4_101 = arith.constant 4 : index
    %c192_102 = arith.constant 192 : index
    %165 = vector.load %arg5[%c4_101, %c192_102] : memref<14x896xf32, #tpu.memory_space<vmem>>, vector<8x512xf32>
    %c31 = arith.constant 31 : index
    %c0_103 = arith.constant 0 : index
    %166 = vector.load %arg2[%c31, %c0_103] : memref<49x512xf32, #tpu.memory_space<vmem>>, vector<1x512xf32>
    %167 = vector.broadcast %166 : vector<1x512xf32> to vector<8x512xf32>
    %168 = arith.mulf %165, %167 : vector<8x512xf32>
    %169 = arith.addf %164, %168 : vector<8x512xf32>
    %c4_104 = arith.constant 4 : index
    %c256_105 = arith.constant 256 : index
    %170 = vector.load %arg5[%c4_104, %c256_105] : memref<14x896xf32, #tpu.memory_space<vmem>>, vector<8x512xf32>
    %c32 = arith.constant 32 : index
    %c0_106 = arith.constant 0 : index
    %171 = vector.load %arg2[%c32, %c0_106] : memref<49x512xf32, #tpu.memory_space<vmem>>, vector<1x512xf32>
    %172 = vector.broadcast %171 : vector<1x512xf32> to vector<8x512xf32>
    %173 = arith.mulf %170, %172 : vector<8x512xf32>
    %174 = arith.addf %169, %173 : vector<8x512xf32>
    %c4_107 = arith.constant 4 : index
    %c320_108 = arith.constant 320 : index
    %175 = vector.load %arg5[%c4_107, %c320_108] : memref<14x896xf32, #tpu.memory_space<vmem>>, vector<8x512xf32>
    %c33 = arith.constant 33 : index
    %c0_109 = arith.constant 0 : index
    %176 = vector.load %arg2[%c33, %c0_109] : memref<49x512xf32, #tpu.memory_space<vmem>>, vector<1x512xf32>
    %177 = vector.broadcast %176 : vector<1x512xf32> to vector<8x512xf32>
    %178 = arith.mulf %175, %177 : vector<8x512xf32>
    %179 = arith.addf %174, %178 : vector<8x512xf32>
    %c4_110 = arith.constant 4 : index
    %c384_111 = arith.constant 384 : index
    %180 = vector.load %arg5[%c4_110, %c384_111] : memref<14x896xf32, #tpu.memory_space<vmem>>, vector<8x512xf32>
    %c34 = arith.constant 34 : index
    %c0_112 = arith.constant 0 : index
    %181 = vector.load %arg2[%c34, %c0_112] : memref<49x512xf32, #tpu.memory_space<vmem>>, vector<1x512xf32>
    %182 = vector.broadcast %181 : vector<1x512xf32> to vector<8x512xf32>
    %183 = arith.mulf %180, %182 : vector<8x512xf32>
    %184 = arith.addf %179, %183 : vector<8x512xf32>
    %c5_113 = arith.constant 5 : index
    %c0_114 = arith.constant 0 : index
    %185 = vector.load %arg5[%c5_113, %c0_114] : memref<14x896xf32, #tpu.memory_space<vmem>>, vector<8x512xf32>
    %c35 = arith.constant 35 : index
    %c0_115 = arith.constant 0 : index
    %186 = vector.load %arg2[%c35, %c0_115] : memref<49x512xf32, #tpu.memory_space<vmem>>, vector<1x512xf32>
    %187 = vector.broadcast %186 : vector<1x512xf32> to vector<8x512xf32>
    %188 = arith.mulf %185, %187 : vector<8x512xf32>
    %189 = arith.addf %184, %188 : vector<8x512xf32>
    %c5_116 = arith.constant 5 : index
    %c64_117 = arith.constant 64 : index
    %190 = vector.load %arg5[%c5_116, %c64_117] : memref<14x896xf32, #tpu.memory_space<vmem>>, vector<8x512xf32>
    %c36 = arith.constant 36 : index
    %c0_118 = arith.constant 0 : index
    %191 = vector.load %arg2[%c36, %c0_118] : memref<49x512xf32, #tpu.memory_space<vmem>>, vector<1x512xf32>
    %192 = vector.broadcast %191 : vector<1x512xf32> to vector<8x512xf32>
    %193 = arith.mulf %190, %192 : vector<8x512xf32>
    %194 = arith.addf %189, %193 : vector<8x512xf32>
    %c5_119 = arith.constant 5 : index
    %c128_120 = arith.constant 128 : index
    %195 = vector.load %arg5[%c5_119, %c128_120] : memref<14x896xf32, #tpu.memory_space<vmem>>, vector<8x512xf32>
    %c37 = arith.constant 37 : index
    %c0_121 = arith.constant 0 : index
    %196 = vector.load %arg2[%c37, %c0_121] : memref<49x512xf32, #tpu.memory_space<vmem>>, vector<1x512xf32>
    %197 = vector.broadcast %196 : vector<1x512xf32> to vector<8x512xf32>
    %198 = arith.mulf %195, %197 : vector<8x512xf32>
    %199 = arith.addf %194, %198 : vector<8x512xf32>
    %c5_122 = arith.constant 5 : index
    %c192_123 = arith.constant 192 : index
    %200 = vector.load %arg5[%c5_122, %c192_123] : memref<14x896xf32, #tpu.memory_space<vmem>>, vector<8x512xf32>
    %c38 = arith.constant 38 : index
    %c0_124 = arith.constant 0 : index
    %201 = vector.load %arg2[%c38, %c0_124] : memref<49x512xf32, #tpu.memory_space<vmem>>, vector<1x512xf32>
    %202 = vector.broadcast %201 : vector<1x512xf32> to vector<8x512xf32>
    %203 = arith.mulf %200, %202 : vector<8x512xf32>
    %204 = arith.addf %199, %203 : vector<8x512xf32>
    %c5_125 = arith.constant 5 : index
    %c256_126 = arith.constant 256 : index
    %205 = vector.load %arg5[%c5_125, %c256_126] : memref<14x896xf32, #tpu.memory_space<vmem>>, vector<8x512xf32>
    %c39 = arith.constant 39 : index
    %c0_127 = arith.constant 0 : index
    %206 = vector.load %arg2[%c39, %c0_127] : memref<49x512xf32, #tpu.memory_space<vmem>>, vector<1x512xf32>
    %207 = vector.broadcast %206 : vector<1x512xf32> to vector<8x512xf32>
    %208 = arith.mulf %205, %207 : vector<8x512xf32>
    %209 = arith.addf %204, %208 : vector<8x512xf32>
    %c5_128 = arith.constant 5 : index
    %c320_129 = arith.constant 320 : index
    %210 = vector.load %arg5[%c5_128, %c320_129] : memref<14x896xf32, #tpu.memory_space<vmem>>, vector<8x512xf32>
    %c40 = arith.constant 40 : index
    %c0_130 = arith.constant 0 : index
    %211 = vector.load %arg2[%c40, %c0_130] : memref<49x512xf32, #tpu.memory_space<vmem>>, vector<1x512xf32>
    %212 = vector.broadcast %211 : vector<1x512xf32> to vector<8x512xf32>
    %213 = arith.mulf %210, %212 : vector<8x512xf32>
    %214 = arith.addf %209, %213 : vector<8x512xf32>
    %c5_131 = arith.constant 5 : index
    %c384_132 = arith.constant 384 : index
    %215 = vector.load %arg5[%c5_131, %c384_132] : memref<14x896xf32, #tpu.memory_space<vmem>>, vector<8x512xf32>
    %c41 = arith.constant 41 : index
    %c0_133 = arith.constant 0 : index
    %216 = vector.load %arg2[%c41, %c0_133] : memref<49x512xf32, #tpu.memory_space<vmem>>, vector<1x512xf32>
    %217 = vector.broadcast %216 : vector<1x512xf32> to vector<8x512xf32>
    %218 = arith.mulf %215, %217 : vector<8x512xf32>
    %219 = arith.addf %214, %218 : vector<8x512xf32>
    %c6_134 = arith.constant 6 : index
    %c0_135 = arith.constant 0 : index
    %220 = vector.load %arg5[%c6_134, %c0_135] : memref<14x896xf32, #tpu.memory_space<vmem>>, vector<8x512xf32>
    %c42 = arith.constant 42 : index
    %c0_136 = arith.constant 0 : index
    %221 = vector.load %arg2[%c42, %c0_136] : memref<49x512xf32, #tpu.memory_space<vmem>>, vector<1x512xf32>
    %222 = vector.broadcast %221 : vector<1x512xf32> to vector<8x512xf32>
    %223 = arith.mulf %220, %222 : vector<8x512xf32>
    %224 = arith.addf %219, %223 : vector<8x512xf32>
    %c6_137 = arith.constant 6 : index
    %c64_138 = arith.constant 64 : index
    %225 = vector.load %arg5[%c6_137, %c64_138] : memref<14x896xf32, #tpu.memory_space<vmem>>, vector<8x512xf32>
    %c43 = arith.constant 43 : index
    %c0_139 = arith.constant 0 : index
    %226 = vector.load %arg2[%c43, %c0_139] : memref<49x512xf32, #tpu.memory_space<vmem>>, vector<1x512xf32>
    %227 = vector.broadcast %226 : vector<1x512xf32> to vector<8x512xf32>
    %228 = arith.mulf %225, %227 : vector<8x512xf32>
    %229 = arith.addf %224, %228 : vector<8x512xf32>
    %c6_140 = arith.constant 6 : index
    %c128_141 = arith.constant 128 : index
    %230 = vector.load %arg5[%c6_140, %c128_141] : memref<14x896xf32, #tpu.memory_space<vmem>>, vector<8x512xf32>
    %c44 = arith.constant 44 : index
    %c0_142 = arith.constant 0 : index
    %231 = vector.load %arg2[%c44, %c0_142] : memref<49x512xf32, #tpu.memory_space<vmem>>, vector<1x512xf32>
    %232 = vector.broadcast %231 : vector<1x512xf32> to vector<8x512xf32>
    %233 = arith.mulf %230, %232 : vector<8x512xf32>
    %234 = arith.addf %229, %233 : vector<8x512xf32>
    %c6_143 = arith.constant 6 : index
    %c192_144 = arith.constant 192 : index
    %235 = vector.load %arg5[%c6_143, %c192_144] : memref<14x896xf32, #tpu.memory_space<vmem>>, vector<8x512xf32>
    %c45 = arith.constant 45 : index
    %c0_145 = arith.constant 0 : index
    %236 = vector.load %arg2[%c45, %c0_145] : memref<49x512xf32, #tpu.memory_space<vmem>>, vector<1x512xf32>
    %237 = vector.broadcast %236 : vector<1x512xf32> to vector<8x512xf32>
    %238 = arith.mulf %235, %237 : vector<8x512xf32>
    %239 = arith.addf %234, %238 : vector<8x512xf32>
    %c6_146 = arith.constant 6 : index
    %c256_147 = arith.constant 256 : index
    %240 = vector.load %arg5[%c6_146, %c256_147] : memref<14x896xf32, #tpu.memory_space<vmem>>, vector<8x512xf32>
    %c46 = arith.constant 46 : index
    %c0_148 = arith.constant 0 : index
    %241 = vector.load %arg2[%c46, %c0_148] : memref<49x512xf32, #tpu.memory_space<vmem>>, vector<1x512xf32>
    %242 = vector.broadcast %241 : vector<1x512xf32> to vector<8x512xf32>
    %243 = arith.mulf %240, %242 : vector<8x512xf32>
    %244 = arith.addf %239, %243 : vector<8x512xf32>
    %c6_149 = arith.constant 6 : index
    %c320_150 = arith.constant 320 : index
    %245 = vector.load %arg5[%c6_149, %c320_150] : memref<14x896xf32, #tpu.memory_space<vmem>>, vector<8x512xf32>
    %c47 = arith.constant 47 : index
    %c0_151 = arith.constant 0 : index
    %246 = vector.load %arg2[%c47, %c0_151] : memref<49x512xf32, #tpu.memory_space<vmem>>, vector<1x512xf32>
    %247 = vector.broadcast %246 : vector<1x512xf32> to vector<8x512xf32>
    %248 = arith.mulf %245, %247 : vector<8x512xf32>
    %249 = arith.addf %244, %248 : vector<8x512xf32>
    %c6_152 = arith.constant 6 : index
    %c384_153 = arith.constant 384 : index
    %250 = vector.load %arg5[%c6_152, %c384_153] : memref<14x896xf32, #tpu.memory_space<vmem>>, vector<8x512xf32>
    %c48 = arith.constant 48 : index
    %c0_154 = arith.constant 0 : index
    %251 = vector.load %arg2[%c48, %c0_154] : memref<49x512xf32, #tpu.memory_space<vmem>>, vector<1x512xf32>
    %252 = vector.broadcast %251 : vector<1x512xf32> to vector<8x512xf32>
    %253 = arith.mulf %250, %252 : vector<8x512xf32>
    %254 = arith.addf %249, %253 : vector<8x512xf32>
    %c0_155 = arith.constant 0 : index
    %c0_156 = arith.constant 0 : index
    %255 = vector.load %arg3[%c0_155, %c0_156] : memref<1x512xf32, #tpu.memory_space<vmem>>, vector<1x512xf32>
    %256 = vector.broadcast %255 : vector<1x512xf32> to vector<8x512xf32>
    %257 = arith.addf %254, %256 : vector<8x512xf32>
    %c0_157 = arith.constant 0 : index
    %c0_158 = arith.constant 0 : index
    %c0_159 = arith.constant 0 : index
    %258 = vector.load %arg4[%c0_157, %c0_158, %c0_159] : memref<1x8x512xf32, #tpu.memory_space<vmem>>, vector<1x8x512xf32>
    %259 = vector.shape_cast %258 : vector<1x8x512xf32> to vector<8x512xf32>
    %260 = vector.shape_cast %257 : vector<8x512xf32> to vector<1x8x512xf32>
    tpu.vector_store %arg4[%c0_157, %c0_158, %c0_159], %260 {strides = array<i32>} : memref<1x8x512xf32, #tpu.memory_space<vmem>>, vector<1x8x512xf32>,
    return
  }
  func.func @transform_0(%arg0: i32) -> (i32, i32, i32) {
    %c0_i32 = arith.constant 0 : i32
    %c0_i32_0 = arith.constant 0 : i32
    %c0_i32_1 = arith.constant 0 : i32
    return %arg0, %c0_i32, %c0_i32_0 : i32, i32, i32
  }
  func.func @transform_1(%arg0: i32) -> (i32, i32) {
    %c0_i32 = arith.constant 0 : i32
    %c0_i32_0 = arith.constant 0 : i32
    %c0_i32_1 = arith.constant 0 : i32
    return %c0_i32, %c0_i32_0 : i32, i32
  }
  func.func @transform_2(%arg0: i32) -> (i32, i32) {
    %c0_i32 = arith.constant 0 : i32
    %c0_i32_0 = arith.constant 0 : i32
    %c0_i32_1 = arith.constant 0 : i32
    return %c0_i32, %c0_i32_0 : i32, i32
  }
  func.func @transform_3(%arg0: i32) -> (i32, i32, i32) {
    %c0_i32 = arith.constant 0 : i32
    %c0_i32_0 = arith.constant 0 : i32
    %c0_i32_1 = arith.constant 0 : i32
    return %arg0, %c0_i32, %c0_i32_0 : i32, i32, i32
  }
}

</mosaic_0001>

<bundles_post_ra>
// kernel: tile.13
= control target key start
LH: loop header
LB: loop body
LE: loop exit
PB: predicated region body
PF: predicated region fallthrough
CT: control target
= control target key end

     0   :  { %vm177_vm0 = vcmask 1047556   ;;  %s772_s14 = smov 64   ;;  %s239_s23 = smov 3  ;;  %vm243_vm1 = vcmask 1045506   ;;  %vm261_vm2 = vcmask 1046532   ;;  %vm248_vm3 = vcmask 1047558   ;;  %s1506_s0 = inlined_call_operand.vmem [shape: f32[49,8,64], index: 0, kind: input, shape index: {}]   ;;  %s1507_s1 = inlined_call_operand.vmem [shape: f32[49,512], index: 1, kind: output, shape index: {}]  }
   0x1   :  { %v659_v0 = vld [vmem:[%s1506_s0 + $0x1] ss:$8 sm:$0xf]   ;;  %v677_v12 = vld [vmem:[%s1506_s0 - $0x5] ss:$8 sm:$0x3c]  }
   0x2   :  { %v660_v1 = vld [vmem:[%s1506_s0 + $0x1] ss:$8 sm:$0xf0]   ;;  %s246_s30 = smov 192  ;;  %v683_v21 = vld [vmem:[%s1506_s0 + $0x34] sm:$0x80]  }
   0x3   :  { %v178_v2 = vsel %vm177_vm0, %v660_v1, %v659_v0  ;;  %v664_v3 = vld [vmem:[%s1506_s0 + $0x81] ss:$8 sm:$0xf]   ;;  %v681_v16 = vld [vmem:[%s1506_s0 + $0x43] ss:$8 sm:$0xf]  }
   0x4   :  { %v665_v4 = vld [vmem:[%s1506_s0 + $0x81] ss:$8 sm:$0xf0]   ;;  %179 = vrot.lane.b32.xlu0 %v178_v2, %s772_s14  ;;  %v682_v17 = vld [vmem:[%s1506_s0 + $0x43] ss:$8 sm:$0x70]  }
   0x5   :  { %v199_v5 = vsel %vm177_vm0, %v665_v4, %v664_v3  ;;  %v661_v6 = vld [vmem:[%s1506_s0 + $0x41] ss:$8 sm:$0xf]   ;;  %v678_v20 = vld [vmem:[%s1506_s0 - $0x5] ss:$8 sm:%s246_s30]   ;;  %vm265_vm4 = vcmask 1047559   ;;  %v262_v22 = vsel %vm261_vm2, %v682_v17, %v681_v16 }
   0x6   :  { %200 = vrot.lane.b32.xlu1 %v199_v5, %s772_s14  ;;  %v662_v7 = vld [vmem:[%s1506_s0 + $0x41] ss:$8 sm:$0xf0]   ;;  %v266_v26 = vsel %vm265_vm4, %v683_v21, %v262_v22  ;;  %v691_v27 = vld [vmem:[%s1506_s0 + $0xc3] ss:$8 sm:$0xf]  }
   0x7   :  { %v667_v8 = vld [vmem:[%s1506_s0 + $0xc1] ss:$8 sm:$0xf]   ;;  %v188_v10 = vsel %vm177_vm0, %v662_v7, %v661_v6  ;;  %v692_v28 = vld [vmem:[%s1506_s0 + $0xc3] ss:$8 sm:$0x70]  }
   0x8   :  { %v668_v9 = vld [vmem:[%s1506_s0 + $0xc1] ss:$8 sm:$0xf0]   ;;  %v696_v30 = vld [vmem:[%s1506_s0 + $0x103] ss:$8 sm:$0xf]   ;;  %v296_v34 = vsel %vm261_vm2, %v692_v28, %v691_v27 }
   0x9   :  { %v210_v11 = vsel %vm177_vm0, %v668_v9, %v667_v8  ;;  %v670_v13 = vld [vmem:[%s1506_s0 + $0x101] ss:$8 sm:$0xf]   ;;  %v697_v31 = vld [vmem:[%s1506_s0 + $0x103] ss:$8 sm:$0x70]  }
   0xa   :  { %v676_v14 = vld [vmem:[%s1506_s0 + $0x181] ss:$-382 sm:%s239_s23]   ;;  %v693_v35 = vld [vmem:[%s1506_s0 + $0xb4] sm:$0x80]   ;;  %v313_v36 = vsel %vm261_vm2, %v697_v31, %v696_v30  ;;  %s343_s4 = smov 3  ;;  %s364_s7 = smov 48 }
   0xb   :  { %v671_v15 = vld [vmem:[%s1506_s0 + $0x101] ss:$8 sm:$0xf0]   ;;  %v244_v19 = vsel %vm243_vm1, %v677_v12, %v676_v14  ;;  %v686_v32 = vld [vmem:[%s1506_s0 + $0x83] ss:$8 sm:$0xf]   ;;  %v300_v40 = vsel %vm265_vm4, %v693_v35, %v296_v34 }
   0xc   :  { %189 = vrot.lane.b32.xlu0 %v188_v10, %s772_s14  ;;  %v221_v18 = vsel %vm177_vm0, %v671_v15, %v670_v13  ;;  %v673_v23 = vld [vmem:[%s1506_s0 + $0x141] ss:$8 sm:$0xf]   ;;  %v249_v25 = vsel %vm248_vm3, %v678_v20, %v244_v19  ;;  %v687_v33 = vld [vmem:[%s1506_s0 + $0x83] ss:$8 sm:$0x70]  }
   0xd   :  { %222 = vrot.lane.b32.xlu2 %v221_v18, %s772_s14  ;;  %v674_v24 = vld [vmem:[%s1506_s0 + $0x141] ss:$8 sm:$0xf0]   ;;  %v698_v37 = vld [vmem:[%s1506_s0 + $0xf4] sm:$0x80]   ;;  %v279_v38 = vsel %vm261_vm2, %v687_v33, %v686_v32  ;;  %s350_s8 = smov 192 }
   0xe   :  { %211 = vrot.lane.b32.xlu1 %v210_v11, %s772_s14  ;;  %v232_v29 = vsel %vm177_vm0, %v674_v24, %v673_v23  ;;  %v688_v39 = vld [vmem:[%s1506_s0 + $0x74] sm:$0x80]   ;;  %v317_v41 = vsel %vm265_vm4, %v698_v37, %v313_v36  ;;  %v707_v43 = vld [vmem:[%s1506_s0 - $0xb] ss:$8 sm:$0x3c]   ;;  %vm366_vm5 = vcmask 1045508  }
   0xf   :  { %v706_v42 = vld [vmem:[%s1506_s0 + $0x183] ss:$-8 sm:%s343_s4]   ;;  %v283_v44 = vsel %vm265_vm4, %v688_v39, %v279_v38  ;;  %v711_v45 = vld [vmem:[%s1506_s0 + $0x45] ss:$8 sm:$0xf]   ;;  %s369_s18 = smov 192 }
  0x10   :  { %v712_v46 = vld [vmem:[%s1506_s0 + $0x45] ss:$8 sm:%s364_s7]   ;;  %v701_v47 = vld [vmem:[%s1506_s0 + $0x143] ss:$8 sm:$0xf]   ;;  %v348_v49 = vsel %vm243_vm1, %v707_v43, %v706_v42  ;;  %s402_s27 = smov 48 }
  0x11   :  { %v702_v48 = vld [vmem:[%s1506_s0 + $0x143] ss:$8 sm:$0x70]   ;;  %v708_v50 = vld [vmem:[%s1506_s0 - $0xb] ss:$8 sm:%s350_s8]   ;;  %v367_v51 = vsel %vm366_vm5, %v712_v46, %v711_v45  ;;  %s421_s30 = smov 48 }
  0x12   :  { %v713_v52 = vld [vmem:[%s1506_s0 + $0x5] ss:$8 sm:%s369_s18]   ;;  %v330_v53 = vsel %vm261_vm2, %v702_v48, %v701_v47  ;;  %v703_v54 = vld [vmem:[%s1506_s0 + $0x134] sm:$0x80]   ;;  %v353_v55 = vsel %vm248_vm3, %v708_v50, %v348_v49  ;;  %s383_s2 = smov 48  ;;  %s407_s7 = smov 192 }
  0x13   :  { %v372_v56 = vsel %vm248_vm3, %v713_v52, %v367_v51  ;;  %v721_v57 = vld [vmem:[%s1506_s0 + $0xc5] ss:$8 sm:$0xf]   ;;  %v334_v59 = vsel %vm265_vm4, %v703_v54, %v330_v53  ;;  %s426_s12 = smov 192  ;;  %s388_s18 = smov 192  ;;  %vm462_vm6 = vcmask 1043458  }
  0x14   :  { %250 = vrot.lane.b32.xlu0 %v249_v25, %s772_s14  ;;  %v722_v58 = vld [vmem:[%s1506_s0 + $0xc5] ss:$8 sm:%s402_s27]   ;;  %s457_s23 = smov 3  ;;  %s460_s24 = smov 12  ;;  %vm3_vm7 = vcmask 523264   ;;  %vm181_vm8 = vcmask 1048064  }
  0x15   :  { %233 = vrot.lane.b32.xlu2 %v232_v29, %s772_s14  ;;  %v726_v60 = vld [vmem:[%s1506_s0 + $0x105] ss:$8 sm:$0xf]   ;;  %v405_v0 = vsel %vm366_vm5, %v722_v58, %v721_v57  ;;  %s480_s27 = smov 48  ;;  %s440_s28 = smov 48 }
  0x16   :  { %267 = vrot.lane.b32.xlu1 %v266_v26, %s772_s14  ;;  %v727_v61 = vld [vmem:[%s1506_s0 + $0x105] ss:$8 sm:%s421_s30]   ;;  %v742_v11 = vld [vmem:[%s1506_s0 + $0x47] ss:$8 sm:$0xf]   ;;  %s485_s8 = smov 192 }
  0x17   :  { %v716_v62 = vld [vmem:[%s1506_s0 + $0x85] ss:$8 sm:$0xf]   ;;  %v424_v2 = vsel %vm366_vm5, %v727_v61, %v726_v60  ;;  %v743_v12 = vld [vmem:[%s1506_s0 + $0x147] ss:$-56 sm:%s480_s27]   ;;  %s445_s13 = smov 192 }
  0x18   :  { %v717_v63 = vld [vmem:[%s1506_s0 + $0x85] ss:$8 sm:%s383_s2]   ;;  %v738_v16 = vld [vmem:[%s1506_s0 - $0x11] ss:$8 sm:$0xf0]   ;;  %v483_v17 = vsel %vm366_vm5, %v743_v12, %v742_v11  ;;  %s518_s19 = smov 48 }
  0x19   :  { %v723_v1 = vld [vmem:[%s1506_s0 + $0x85] ss:$8 sm:%s407_s7]   ;;  %v386_v4 = vsel %vm366_vm5, %v717_v63, %v716_v62  ;;  %v744_v18 = vld [vmem:[%s1506_s0 + $0x7] ss:$8 sm:%s485_s8]   ;;  %s537_s22 = smov 48  ;;  %s542_s4 = smov 192 }
  0x1a   :  { %v728_v3 = vld [vmem:[%s1506_s0 + $0xc5] ss:$8 sm:%s426_s12]   ;;  %v410_v6 = vsel %vm248_vm3, %v723_v1, %v405_v0  ;;  %v488_v22 = vsel %vm248_vm3, %v744_v18, %v483_v17  ;;  %v752_v23 = vld [vmem:[%s1506_s0 + $0xc7] ss:$8 sm:$0xf]   ;;  %s504_s9 = smov 192 }
  0x1b   :  { %v718_v5 = vld [vmem:[%s1506_s0 + $0x45] ss:$8 sm:%s388_s18]   ;;  %v429_v7 = vsel %vm248_vm3, %v728_v3, %v424_v2  ;;  %v753_v24 = vld [vmem:[%s1506_s0 + $0x1c7] ss:$-56 sm:%s518_s19]   ;;  %s556_s17 = smov 48  ;;  %s573_s18 = smov 3 }
  0x1c   :  { %301 = vrot.lane.b32.xlu0 %v300_v40, %s772_s14  ;;  %v736_v8 = vld [vmem:[%s1506_s0 + $0x185] ss:$-16 sm:%s457_s23]   ;;  %v391_v10 = vsel %vm248_vm3, %v718_v5, %v386_v4  ;;  %s499_s23 = smov 48  ;;  %v757_v26 = vld [vmem:[%s1506_s0 + $0x107] ss:$8 sm:$0xf]   ;;  %v521_v30 = vsel %vm366_vm5, %v753_v24, %v752_v23 }
  0x1d   :  { %284 = vrot.lane.b32.xlu2 %v283_v44, %s772_s14  ;;  %v737_v9 = vld [vmem:[%s1506_s0 + $0x469] ss:$-374 sm:%s460_s24]   ;;  %s576_s19 = smov 12  ;;  %s561_s24 = smov 192  ;;  %v2_v47 = vld [vmem:[%s1506_s0] ss:$2 sm:$0xff]  }
  0x1e   :  { %318 = vrot.lane.b32.xlu1 %v317_v41, %s772_s14  ;;  %v731_v13 = vld [vmem:[%s1506_s0 + $0x145] ss:$8 sm:$0xf]   ;;  %v463_v15 = vsel %vm462_vm6, %v737_v9, %v736_v8  ;;  %v758_v27 = vld [vmem:[%s1506_s0 + $0x207] ss:$-56 sm:%s537_s22]  }
  0x1f   :  { %v732_v14 = vld [vmem:[%s1506_s0 + $0x145] ss:$8 sm:%s440_s28]   ;;  %v467_v21 = vsel %vm177_vm0, %v738_v16, %v463_v15  ;;  %s523_s28 = smov 192  ;;  %v747_v28 = vld [vmem:[%s1506_s0 + $0x87] ss:$8 sm:$0xf]   ;;  %v540_v32 = vsel %vm366_vm5, %v758_v27, %v757_v26 }
  0x20   :  { %v443_v19 = vsel %vm366_vm5, %v732_v14, %v731_v13  ;;  %v733_v20 = vld [vmem:[%s1506_s0 + $0x105] ss:$8 sm:%s445_s13]   ;;  %v748_v29 = vld [vmem:[%s1506_s0 + $0x187] ss:$-56 sm:%s499_s23]  }
  0x21   :  { %v448_v25 = vsel %vm248_vm3, %v733_v20, %v443_v19  ;;  %v754_v31 = vld [vmem:[%s1506_s0 + $0x87] ss:$8 sm:%s523_s28]   ;;  %v502_v34 = vsel %vm366_vm5, %v748_v29, %v747_v28  ;;  %v588_v48 = vld [vmem:[%s1506_s0 + $0x10] ss:$2 sm:$0xff]   ;;  %v591_v49 = vld [vmem:[%s1506_s0 + $0x20] ss:$2 sm:$0xff]  }
  0x22   :  { %v759_v33 = vld [vmem:[%s1506_s0 + $0xc7] ss:$8 sm:%s542_s4]   ;;  %v526_v36 = vsel %vm248_vm3, %v754_v31, %v521_v30  ;;  %4 = vst.msk [vmem:[%s1507_s1] ss:$8 sm:$0xf] %vm3_vm7, %v2_v47  }
  0x23   :  { %v749_v35 = vld [vmem:[%s1506_s0 + $0x47] ss:$8 sm:%s504_s9]   ;;  %v545_v37 = vsel %vm248_vm3, %v759_v33, %v540_v32  ;;  %587 = vst.msk [vmem:[%s1507_s1 - $0x1f] ss:$8 sm:$0xf0] %vm3_vm7, %v2_v47  }
  0x24   :  { %354 = vrot.lane.b32.xlu0 %v353_v55, %s772_s14  ;;  %v507_v38 = vsel %vm248_vm3, %v749_v35, %v502_v34  ;;  %v762_v39 = vld [vmem:[%s1506_s0 + $0x147] ss:$8 sm:$0xf]   ;;  %589 = vst.msk [vmem:[%s1507_s1 + $0x2] ss:$8 sm:$0xf] %vm3_vm7, %v588_v48  }
  0x25   :  { %335 = vrot.lane.b32.xlu2 %v334_v59, %s772_s14  ;;  %v763_v40 = vld [vmem:[%s1506_s0 + $0x247] ss:$-56 sm:%s556_s17]   ;;  %590 = vst.msk [vmem:[%s1507_s1 - $0x1d] ss:$8 sm:$0xf0] %vm3_vm7, %v588_v48  }
  0x26   :  { %373 = vrot.lane.b32.xlu1 %v372_v56, %s772_s14  ;;  %v767_v41 = vld [vmem:[%s1506_s0 + $0x187] ss:$-24 sm:%s573_s18]   ;;  %v559_v43 = vsel %vm366_vm5, %v763_v40, %v762_v39  ;;  %v594_v50 = vld [vmem:[%s1506_s0 + $0x30] ss:$2 sm:$0xff]  }
  0x27   :  { %v768_v42 = vld [vmem:[%s1506_s0 + $0x167] ss:$8 sm:%s576_s19]   ;;  %592 = vst.msk [vmem:[%s1507_s1 + $0x4] ss:$8 sm:$0xf] %vm3_vm7, %v591_v49  }
  0x28   :  { %v764_v44 = vld [vmem:[%s1506_s0 + $0x107] ss:$8 sm:%s561_s24]   ;;  %v579_v45 = vsel %vm462_vm6, %v768_v42, %v767_v41  ;;  %593 = vst.msk [vmem:[%s1507_s1 - $0x1b] ss:$8 sm:$0xf0] %vm3_vm7, %v591_v49  }
  0x29   :  { %v564_v46 = vsel %vm248_vm3, %v764_v44, %v559_v43  ;;  %v633_v51 = vld [vmem:[%s1506_s0 + $0x100] ss:$2 sm:$0xff]   ;;  %595 = vst.msk [vmem:[%s1507_s1 + $0x6] ss:$8 sm:$0xf] %vm3_vm7, %v594_v50  }
  0x2a   :  { %596 = vst.msk [vmem:[%s1507_s1 - $0x19] ss:$8 sm:$0xf0] %vm3_vm7, %v594_v50   ;;  %v636_v52 = vld [vmem:[%s1506_s0 + $0x110] ss:$2 sm:$0xff]  }
  0x2b   :  { %634 = vst.msk [vmem:[%s1507_s1 + $0x80] ss:$8 sm:$0xf] %vm3_vm7, %v633_v51   ;;  %v639_v53 = vld [vmem:[%s1506_s0 + $0x120] ss:$2 sm:$0xff]  }
  0x2c   :  { %411 = vrot.lane.b32.xlu0 %v410_v6, %s772_s14  ;;  %635 = vst.msk [vmem:[%s1507_s1 + $0x61] ss:$8 sm:$0xf0] %vm3_vm7, %v633_v51   ;;  %v642_v54 = vld [vmem:[%s1506_s0 + $0x130] ss:$2 sm:$0xff]  }
  0x2d   :  { %392 = vrot.lane.b32.xlu2 %v391_v10, %s772_s14  ;;  %637 = vst.msk [vmem:[%s1507_s1 + $0x82] ss:$8 sm:$0xf] %vm3_vm7, %v636_v52   ;;  %v609_v55 = vld [vmem:[%s1506_s0 + $0x80] ss:$2 sm:$0xff]  }
  0x2e   :  { %430 = vrot.lane.b32.xlu1 %v429_v7, %s772_s14  ;;  %638 = vst.msk [vmem:[%s1507_s1 + $0x63] ss:$8 sm:$0xf0] %vm3_vm7, %v636_v52   ;;  %v612_v56 = vld [vmem:[%s1506_s0 + $0x90] ss:$2 sm:$0xff]  }
  0x2f   :  { %640 = vst.msk [vmem:[%s1507_s1 + $0x84] ss:$8 sm:$0xf] %vm3_vm7, %v639_v53   ;;  %v615_v58 = vld [vmem:[%s1506_s0 + $0xa0] ss:$2 sm:$0xff]  }
  0x30   :  { %641 = vst.msk [vmem:[%s1507_s1 + $0x65] ss:$8 sm:$0xf0] %vm3_vm7, %v639_v53   ;;  %v618_v59 = vld [vmem:[%s1506_s0 + $0xb0] ss:$2 sm:$0xff]  }
  0x31   :  { %643 = vst.msk [vmem:[%s1507_s1 + $0x86] ss:$8 sm:$0xf] %vm3_vm7, %v642_v54   ;;  %v597_v60 = vld [vmem:[%s1506_s0 + $0x40] ss:$2 sm:$0xff]  }
  0x32   :  { %644 = vst.msk [vmem:[%s1507_s1 + $0x67] ss:$8 sm:$0xf0] %vm3_vm7, %v642_v54   ;;  %v600_v61 = vld [vmem:[%s1506_s0 + $0x50] ss:$2 sm:$0xff]  }
  0x33   :  { %610 = vst.msk [vmem:[%s1507_s1 + $0x40] ss:$8 sm:$0xf] %vm3_vm7, %v609_v55   ;;  %v603_v63 = vld [vmem:[%s1506_s0 + $0x60] ss:$2 sm:$0xff]  }
  0x34   :  { %468 = vrot.lane.b32.xlu0 %v467_v21, %s772_s14  ;;  %611 = vst.msk [vmem:[%s1507_s1 + $0x21] ss:$8 sm:$0xf0] %vm3_vm7, %v609_v55   ;;  %v606_v0 = vld [vmem:[%s1506_s0 + $0x70] ss:$2 sm:$0xff]  }
  0x35   :  { %449 = vrot.lane.b32.xlu2 %v448_v25, %s772_s14  ;;  %613 = vst.msk [vmem:[%s1507_s1 + $0x42] ss:$8 sm:$0xf] %vm3_vm7, %v612_v56   ;;  %v645_v2 = vld [vmem:[%s1506_s0 + $0x140] ss:$2 sm:$0xff]  }
  0x36   :  { %489 = vrot.lane.b32.xlu1 %v488_v22, %s772_s14  ;;  %614 = vst.msk [vmem:[%s1507_s1 + $0x23] ss:$8 sm:$0xf0] %vm3_vm7, %v612_v56   ;;  %v648_v5 = vld [vmem:[%s1506_s0 + $0x150] ss:$2 sm:$0xff]  }
  0x37   :  { %616 = vst.msk [vmem:[%s1507_s1 + $0x44] ss:$8 sm:$0xf] %vm3_vm7, %v615_v58   ;;  %v651_v6 = vld [vmem:[%s1506_s0 + $0x160] ss:$2 sm:$0xff]  }
  0x38   :  { %617 = vst.msk [vmem:[%s1507_s1 + $0x25] ss:$8 sm:$0xf0] %vm3_vm7, %v615_v58   ;;  %v654_v7 = vld [vmem:[%s1506_s0 + $0x170] ss:$2 sm:$0xff]  }
  0x39   :  { %619 = vst.msk [vmem:[%s1507_s1 + $0x46] ss:$8 sm:$0xf] %vm3_vm7, %v618_v59   ;;  %v621_v11 = vld [vmem:[%s1506_s0 + $0xc0] ss:$2 sm:$0xff]  }
  0x3a   :  { %620 = vst.msk [vmem:[%s1507_s1 + $0x27] ss:$8 sm:$0xf0] %vm3_vm7, %v618_v59   ;;  %v624_v12 = vld [vmem:[%s1506_s0 + $0xd0] ss:$2 sm:$0xff]  }
  0x3b   :  { %598 = vst.msk [vmem:[%s1507_s1 + $0x20] ss:$8 sm:$0xf] %vm3_vm7, %v597_v60   ;;  %v627_v13 = vld [vmem:[%s1506_s0 + $0xe0] ss:$2 sm:$0xff]  }
  0x3c   :  { %527 = vrot.lane.b32.xlu0 %v526_v36, %s772_s14  ;;  %599 = vst.msk [vmem:[%s1507_s1 + $0x1] ss:$8 sm:$0xf0] %vm3_vm7, %v597_v60   ;;  %v630_v14 = vld [vmem:[%s1506_s0 + $0xf0] ss:$2 sm:$0xff]  }
  0x3d   :  { %508 = vrot.lane.b32.xlu2 %v507_v38, %s772_s14  ;;  %601 = vst.msk [vmem:[%s1507_s1 + $0x22] ss:$8 sm:$0xf] %vm3_vm7, %v600_v61   ;;  %v657_v18 = vld [vmem:[%s1506_s0 + $0x180] ss:$2 sm:$0xf]  }
  0x3e   :  { %546 = vrot.lane.b32.xlu1 %v545_v37, %s772_s14  ;;  %602 = vst.msk [vmem:[%s1507_s1 + $0x3] ss:$8 sm:$0xf0] %vm3_vm7, %v600_v61  }
  0x3f   :  { %604 = vst.msk [vmem:[%s1507_s1 + $0x24] ss:$8 sm:$0xf] %vm3_vm7, %v603_v63  }
  0x40   :  { %605 = vst.msk [vmem:[%s1507_s1 + $0x5] ss:$8 sm:$0xf0] %vm3_vm7, %v603_v63  }
  0x41   :  { %607 = vst.msk [vmem:[%s1507_s1 + $0x26] ss:$8 sm:$0xf] %vm3_vm7, %v606_v0  }
  0x42   :  { %608 = vst.msk [vmem:[%s1507_s1 + $0x7] ss:$8 sm:$0xf0] %vm3_vm7, %v606_v0  }
  0x43   :  { %646 = vst.msk [vmem:[%s1507_s1 + $0xa0] ss:$8 sm:$0xf] %vm3_vm7, %v645_v2  }
  0x44   :  { %580 = vrot.lane.b32.xlu0 %v579_v45, %s772_s14  ;;  %647 = vst.msk [vmem:[%s1507_s1 + $0x81] ss:$8 sm:$0xf0] %vm3_vm7, %v645_v2  }
  0x45   :  { %565 = vrot.lane.b32.xlu2 %v564_v46, %s772_s14  ;;  %649 = vst.msk [vmem:[%s1507_s1 + $0xa2] ss:$8 sm:$0xf] %vm3_vm7, %v648_v5  }
  0x46   :  { %650 = vst.msk [vmem:[%s1507_s1 + $0x83] ss:$8 sm:$0xf0] %vm3_vm7, %v648_v5  }
  0x47   :  { %652 = vst.msk [vmem:[%s1507_s1 + $0xa4] ss:$8 sm:$0xf] %vm3_vm7, %v651_v6  }
  0x48   :  { %653 = vst.msk [vmem:[%s1507_s1 + $0x85] ss:$8 sm:$0xf0] %vm3_vm7, %v651_v6  }
  0x49   :  { %655 = vst.msk [vmem:[%s1507_s1 + $0xa6] ss:$8 sm:$0xf] %vm3_vm7, %v654_v7  }
  0x4a   :  { %656 = vst.msk [vmem:[%s1507_s1 + $0x87] ss:$8 sm:$0xf0] %vm3_vm7, %v654_v7  }
  0x4b   :  { %622 = vst.msk [vmem:[%s1507_s1 + $0x60] ss:$8 sm:$0xf] %vm3_vm7, %v621_v11  }
  0x4c   :  { %623 = vst.msk [vmem:[%s1507_s1 + $0x41] ss:$8 sm:$0xf0] %vm3_vm7, %v621_v11  }
  0x4d   :  { %625 = vst.msk [vmem:[%s1507_s1 + $0x62] ss:$8 sm:$0xf] %vm3_vm7, %v624_v12  }
  0x4e   :  { %626 = vst.msk [vmem:[%s1507_s1 + $0x43] ss:$8 sm:$0xf0] %vm3_vm7, %v624_v12  }
  0x4f   :  { %628 = vst.msk [vmem:[%s1507_s1 + $0x64] ss:$8 sm:$0xf] %vm3_vm7, %v627_v13  }
  0x50   :  { %629 = vst.msk [vmem:[%s1507_s1 + $0x45] ss:$8 sm:$0xf0] %vm3_vm7, %v627_v13  }
  0x51   :  { %631 = vst.msk [vmem:[%s1507_s1 + $0x66] ss:$8 sm:$0xf] %vm3_vm7, %v630_v14  }
  0x52   :  { %632 = vst.msk [vmem:[%s1507_s1 + $0x47] ss:$8 sm:$0xf0] %vm3_vm7, %v630_v14  }
  0x53   :  { %658 = vst.msk [vmem:[%s1507_s1 + $0xc0] ss:$8 sm:$0xf] %vm3_vm7, %v657_v18  }
  0x67   :  { %v223_v57 = vpop.permute.xlu2 %222  }
  0x68   :  { %672 = vst.msk [vmem:[%s1507_s1 + $0x80] sm:$0xff] %vm181_vm8, %v223_v57  }
  0x6f   :  { %v234_v62 = vpop.permute.xlu2 %233  }
  0x70   :  { %675 = vst.msk [vmem:[%s1507_s1 + $0xa0] sm:$0xff] %vm181_vm8, %v234_v62  }
  0x76   :  { %v180_v1 = vpop.permute.xlu0 %179  }
  0x77   :  { %182 = vst.msk [vmem:[%s1507_s1] sm:$0xff] %vm181_vm8, %v180_v1   ;;  %v285_v4 = vpop.permute.xlu2 %284  }
  0x78   :  { %v201_v3 = vpop.permute.xlu1 %200   ;;  %689 = vst.msk [vmem:[%s1507_s1 + $0x48] sm:$0x7f] %vm181_vm8, %v285_v4  }
  0x79   :  { %666 = vst.msk [vmem:[%s1507_s1 + $0x40] sm:$0xff] %vm181_vm8, %v201_v3  }
  0x7a   :  { %690 = vst.msk [vmem:[%s1507_s1 + $0x28] sm:$0x80] %vm181_vm8, %v285_v4  }
  0x7e   :  { %v190_v8 = vpop.permute.xlu0 %189  }
  0x7f   :  { %663 = vst.msk [vmem:[%s1507_s1 + $0x20] sm:$0xff] %vm181_vm8, %v190_v8   ;;  %v336_v10 = vpop.permute.xlu2 %335  }
  0x80   :  { %v212_v9 = vpop.permute.xlu1 %211   ;;  %704 = vst.msk [vmem:[%s1507_s1 + $0xa8] sm:$0x7f] %vm181_vm8, %v336_v10  }
  0x81   :  { %669 = vst.msk [vmem:[%s1507_s1 + $0x60] sm:$0xff] %vm181_vm8, %v212_v9  }
  0x82   :  { %705 = vst.msk [vmem:[%s1507_s1 + $0x88] sm:$0x80] %vm181_vm8, %v336_v10  }
  0x86   :  { %v251_v15 = vpop.permute.xlu0 %250  }
  0x87   :  { %v393_v17 = vpop.permute.xlu2 %392   ;;  %679 = vst.msk [vmem:[%s1507_s1 + $0xc0] ss:$-184 sm:$0x3] %vm181_vm8, %v251_v15  }
  0x88   :  { %v268_v16 = vpop.permute.xlu1 %267   ;;  %680 = vst.msk [vmem:[%s1507_s1 + $0x7] sm:$0xfc] %vm181_vm8, %v251_v15  }
  0x89   :  { %684 = vst.msk [vmem:[%s1507_s1 + $0x28] sm:$0x7f] %vm181_vm8, %v268_v16  }
  0x8a   :  { %685 = vst.msk [vmem:[%s1507_s1 + $0x8] sm:$0x80] %vm181_vm8, %v268_v16  }
  0x8b   :  { %719 = vst.msk [vmem:[%s1507_s1 + $0x50] sm:$0x3f] %vm181_vm8, %v393_v17  }
  0x8c   :  { %720 = vst.msk [vmem:[%s1507_s1 + $0x30] sm:$0xc0] %vm181_vm8, %v393_v17  }
  0x8e   :  { %v302_v19 = vpop.permute.xlu0 %301  }
  0x8f   :  { %v450_v21 = vpop.permute.xlu2 %449   ;;  %694 = vst.msk [vmem:[%s1507_s1 + $0x68] sm:$0x7f] %vm181_vm8, %v302_v19  }
  0x90   :  { %v319_v20 = vpop.permute.xlu1 %318   ;;  %695 = vst.msk [vmem:[%s1507_s1 + $0x48] sm:$0x80] %vm181_vm8, %v302_v19  }
  0x91   :  { %699 = vst.msk [vmem:[%s1507_s1 + $0x88] sm:$0x7f] %vm181_vm8, %v319_v20  }
  0x92   :  { %700 = vst.msk [vmem:[%s1507_s1 + $0x68] sm:$0x80] %vm181_vm8, %v319_v20  }
  0x93   :  { %734 = vst.msk [vmem:[%s1507_s1 + $0xb0] sm:$0x3f] %vm181_vm8, %v450_v21  }
  0x94   :  { %735 = vst.msk [vmem:[%s1507_s1 + $0x90] sm:$0xc0] %vm181_vm8, %v450_v21  }
  0x96   :  { %v355_v22 = vpop.permute.xlu0 %354  }
  0x97   :  { %v509_v24 = vpop.permute.xlu2 %508   ;;  %709 = vst.msk [vmem:[%s1507_s1 + $0xc8] ss:$-25 sm:$0x3] %vm181_vm8, %v355_v22  }
  0x98   :  { %v374_v23 = vpop.permute.xlu1 %373   ;;  %710 = vst.msk [vmem:[%s1507_s1 + $0xe] sm:$0xfc] %vm181_vm8, %v355_v22  }
  0x99   :  { %714 = vst.msk [vmem:[%s1507_s1 + $0x30] sm:$0x3f] %vm181_vm8, %v374_v23  }
  0x9a   :  { %715 = vst.msk [vmem:[%s1507_s1 + $0x10] sm:$0xc0] %vm181_vm8, %v374_v23  }
  0x9b   :  { %750 = vst.msk [vmem:[%s1507_s1 + $0x58] sm:$0x1f] %vm181_vm8, %v509_v24  }
  0x9c   :  { %751 = vst.msk [vmem:[%s1507_s1 + $0x38] sm:$0xe0] %vm181_vm8, %v509_v24  }
  0x9e   :  { %v412_v25 = vpop.permute.xlu0 %411  }
  0x9f   :  { %724 = vst.msk [vmem:[%s1507_s1 + $0x70] sm:$0x3f] %vm181_vm8, %v412_v25   ;;  %v566_v27 = vpop.permute.xlu2 %565  }
  0xa0   :  { %v431_v26 = vpop.permute.xlu1 %430   ;;  %725 = vst.msk [vmem:[%s1507_s1 + $0x50] sm:$0xc0] %vm181_vm8, %v412_v25  }
  0xa1   :  { %729 = vst.msk [vmem:[%s1507_s1 + $0x90] sm:$0x3f] %vm181_vm8, %v431_v26  }
  0xa2   :  { %730 = vst.msk [vmem:[%s1507_s1 + $0x70] sm:$0xc0] %vm181_vm8, %v431_v26  }
  0xa3   :  { %765 = vst.msk [vmem:[%s1507_s1 + $0xb8] sm:$0x1f] %vm181_vm8, %v566_v27  }
  0xa4   :  { %766 = vst.msk [vmem:[%s1507_s1 + $0x98] sm:$0xe0] %vm181_vm8, %v566_v27  }
  0xa6   :  { %v469_v28 = vpop.permute.xlu0 %468  }
  0xa7   :  { %739 = vst.msk [vmem:[%s1507_s1 + $0xd0] ss:$-26 sm:$0x3] %vm181_vm8, %v469_v28  }
  0xa8   :  { %v490_v29 = vpop.permute.xlu1 %489   ;;  %740 = vst.msk [vmem:[%s1507_s1 + $0x1f5] ss:$-159 sm:$0xc] %vm181_vm8, %v469_v28  }
  0xa9   :  { %741 = vst.msk [vmem:[%s1507_s1 + $0x15] sm:$0xf0] %vm181_vm8, %v469_v28  }
  0xaa   :  { %745 = vst.msk [vmem:[%s1507_s1 + $0x38] sm:$0x1f] %vm181_vm8, %v490_v29  }
  0xab   :  { %746 = vst.msk [vmem:[%s1507_s1 + $0x18] sm:$0xe0] %vm181_vm8, %v490_v29  }
  0xae   :  { %v528_v30 = vpop.permute.xlu0 %527  }
  0xaf   :  { %755 = vst.msk [vmem:[%s1507_s1 + $0x78] sm:$0x1f] %vm181_vm8, %v528_v30  }
  0xb0   :  { %v547_v31 = vpop.permute.xlu1 %546   ;;  %756 = vst.msk [vmem:[%s1507_s1 + $0x58] sm:$0xe0] %vm181_vm8, %v528_v30  }
  0xb1   :  { %760 = vst.msk [vmem:[%s1507_s1 + $0x98] sm:$0x1f] %vm181_vm8, %v547_v31  }
  0xb2   :  { %761 = vst.msk [vmem:[%s1507_s1 + $0x78] sm:$0xe0] %vm181_vm8, %v547_v31  }
  0xb6   :  { %v581_v32 = vpop.permute.xlu0 %580  }
  0xb7   :  { %769 = vst.msk [vmem:[%s1507_s1 + $0xd8] ss:$-27 sm:$0x3] %vm181_vm8, %v581_v32  }
  0xb8   :  { %770 = vst.msk [vmem:[%s1507_s1 + $0xbc] sm:$0xc] %vm181_vm8, %v581_v32  }

// kernel: ablock_forward.5
= control target key start
LH: loop header
LB: loop body
LE: loop exit
PB: predicated region body
PF: predicated region fallthrough
CT: control target
= control target key end

     0   :  { %s1605_s0 = inlined_call_operand.vmem [shape: f32[128,64], index: 0, kind: input, shape index: {}]   ;;  %s1606_s1 = inlined_call_operand.vmem [shape: f32[128,64], index: 1, kind: input, shape index: {}]   ;;  %s1607_s2 = inlined_call_operand.vmem [shape: f32[128,64], index: 2, kind: input, shape index: {}]   ;;  %s1608_s3 = inlined_call_operand.vmem [shape: bf16[64,64], index: 3, kind: input, shape index: {}]   ;;  %s1609_s4 = inlined_call_operand.vmem [shape: f32[1,64], index: 4, kind: input, shape index: {}]   ;;  %s1610_s5 = inlined_call_operand.vmem [shape: bf16[64,128], index: 5, kind: input, shape index: {}]   ;;  %s1611_s6 = inlined_call_operand.vmem [shape: f32[1,128], index: 6, kind: input, shape index: {}]   ;;  %s1612_s7 = inlined_call_operand.vmem [shape: bf16[128,64], index: 7, kind: input, shape index: {}]   ;;  %s1613_s8 = inlined_call_operand.vmem [shape: f32[1,64], index: 8, kind: input, shape index: {}]   ;;  %s1614_s9 = inlined_call_operand.hbm [shape: f32[128,64], index: 9, kind: output, shape index: {}]  }
   0x1   :  { %v943_v0 = vld [vmem:[%s1608_s3 + $0x18] sm:$0xff]  ;;  %v942_v1 = vld [vmem:[%s1608_s3 + $0x10] sm:$0xff]  ;;  %v941_v2 = vld [vmem:[%s1608_s3 + $0x8] sm:$0xff] }
   0x2   :  { %155 = vmatpush.bf16.msra.mxu0 %v943_v0  ;;  %v34_v3 = vld [vmem:[%s1605_s0] sm:$0xff]  ;;  %v35_v4 = vld [vmem:[%s1605_s0 + $0x8] sm:$0xff] }
   0x3   :  { %v50_v5 = vld [vmem:[%s1606_s1] sm:$0xff]  ;;  %v51_v6 = vld [vmem:[%s1606_s1 + $0x8] sm:$0xff] }
   0x6   :  { %156 = vmatpush.bf16.msra.mxu0 %v942_v1 }
   0x7   :  { %14 = vsyncpa [#allocation3], 0  ;;  %v66_v7 = vadd.f32 %v50_v5, %v34_v3  ;;  %v67_v8 = vadd.f32 %v51_v6, %v35_v4  ;;  %v940_v9 = vld [vmem:[%s1608_s3] sm:$0xff]  ;;  %vm126_vm0 = vcmask 523264   ;;  %v36_v11 = vld [vmem:[%s1605_s0 + $0x10] sm:$0xff]  ;;  %s1061_s24 = smov 128  }
   0x8   :  { %v37_v12 = vld [vmem:[%s1605_s0 + $0x18] sm:$0xff]  ;;  %v52_v13 = vld [vmem:[%s1606_s1 + $0x10] sm:$0xff]  ;;  %v38_v18 = vld [vmem:[%s1605_s0 + $0x20] sm:$0xff] }
   0x9   :  { %v82_v10 = vpack.c.bf16 %v67_v8, %v66_v7  ;;  %v53_v14 = vld [vmem:[%s1606_s1 + $0x18] sm:$0xff]  ;;  %v68_v15 = vadd.f32 %v52_v13, %v36_v11  ;;  %v39_v19 = vld [vmem:[%s1605_s0 + $0x28] sm:$0xff]  ;;  %v54_v20 = vld [vmem:[%s1606_s1 + $0x20] sm:$0xff] }
   0xa   :  { %157 = vmatpush.bf16.msra.mxu0 %v941_v2  ;;  %v69_v16 = vadd.f32 %v53_v14, %v37_v12  ;;  %v55_v21 = vld [vmem:[%s1606_s1 + $0x28] sm:$0xff]  ;;  %v70_v22 = vadd.f32 %v54_v20, %v38_v18  ;;  %v40_v25 = vld [vmem:[%s1605_s0 + $0x30] sm:$0xff]  ;;  %v41_v26 = vld [vmem:[%s1605_s0 + $0x38] sm:$0xff] }
   0xb   :  { %v71_v23 = vadd.f32 %v55_v21, %v39_v19  ;;  %v56_v27 = vld [vmem:[%s1606_s1 + $0x30] sm:$0xff]  ;;  %v57_v28 = vld [vmem:[%s1606_s1 + $0x38] sm:$0xff]  ;;  %v42_v32 = vld [vmem:[%s1605_s0 + $0x40] sm:$0xff] }
   0xc   :  { %v83_v17 = vpack.c.bf16 %v69_v16, %v68_v15  ;;  %v72_v29 = vadd.f32 %v56_v27, %v40_v25  ;;  %v73_v30 = vadd.f32 %v57_v28, %v41_v26  ;;  %v43_v33 = vld [vmem:[%s1605_s0 + $0x48] sm:$0xff]  ;;  %v58_v34 = vld [vmem:[%s1606_s1 + $0x40] sm:$0xff]  ;;  %v44_v39 = vld [vmem:[%s1605_s0 + $0x50] sm:$0xff] }
   0xd   :  { %v84_v24 = vpack.c.bf16 %v71_v23, %v70_v22  ;;  %v59_v35 = vld [vmem:[%s1606_s1 + $0x48] sm:$0xff]  ;;  %v74_v36 = vadd.f32 %v58_v34, %v42_v32  ;;  %v45_v40 = vld [vmem:[%s1605_s0 + $0x58] sm:$0xff]  ;;  %v60_v41 = vld [vmem:[%s1606_s1 + $0x50] sm:$0xff] }
   0xe   :  { %158 = vmatpush.bf16.msra.mxu0 %v940_v9  ;;  %v85_v31 = vpack.c.bf16 %v73_v30, %v72_v29  ;;  %v75_v37 = vadd.f32 %v59_v35, %v43_v33  ;;  %v61_v42 = vld [vmem:[%s1606_s1 + $0x58] sm:$0xff]  ;;  %v76_v43 = vadd.f32 %v60_v41, %v44_v39  ;;  %v46_v46 = vld [vmem:[%s1605_s0 + $0x60] sm:$0xff]  ;;  %v47_v47 = vld [vmem:[%s1605_s0 + $0x68] sm:$0xff] }
   0xf   :  { %v77_v44 = vadd.f32 %v61_v42, %v45_v40  ;;  %v62_v48 = vld [vmem:[%s1606_s1 + $0x60] sm:$0xff]  ;;  %v63_v49 = vld [vmem:[%s1606_s1 + $0x68] sm:$0xff]  ;;  %v947_v52 = vld [vmem:[%s1610_s5 + $0x18] sm:$0xff] }
  0x10   :  { %v86_v38 = vpack.c.bf16 %v75_v37, %v74_v36  ;;  %v78_v50 = vadd.f32 %v62_v48, %v46_v46  ;;  %v79_v51 = vadd.f32 %v63_v49, %v47_v47  ;;  %304 = vmatpush.bf16.msra.mxu1 %v947_v52  ;;  %v946_v54 = vld [vmem:[%s1610_s5 + $0x10] sm:$0xff]  ;;  %v945_v55 = vld [vmem:[%s1610_s5 + $0x8] sm:$0xff]  ;;  %v49_v57 = vld [vmem:[%s1605_s0 + $0x78] sm:$0xff] }
  0x11   :  { %860 = vmatmul.msk.bf16.vlgmr.msra.gmra.mxu0 %vm126_vm0, %v82_v10  ;;  %v87_v45 = vpack.c.bf16 %v77_v44, %v76_v43  ;;  %v48_v56 = vld [vmem:[%s1605_s0 + $0x70] sm:$0xff]  ;;  %v65_v59 = vld [vmem:[%s1606_s1 + $0x78] sm:$0xff]  ;;  %v944_v60 = vld [vmem:[%s1610_s5] sm:$0xff]  ;;  %s1062_s5 = smov 8  }
  0x12   :  { %v88_v53 = vpack.c.bf16 %v79_v51, %v78_v50  ;;  %v64_v58 = vld [vmem:[%s1606_s1 + $0x70] sm:$0xff]  ;;  %v81_v62 = vadd.f32 %v65_v59, %v49_v57  ;;  %v1244_v1 = vld [vmem:[%s1609_s4] ss:$0 sm:$0xff]  ;;  %v201_v5 = vld [vmem:[%s1607_s2 + $0x8] sm:$0xff]  ;;  %s832_s1 = sshll.u32 %s1614_s9, 4  ;;  %s833_s1 = int_to_ptr.hbm [resolvable:$true] %s832_s1 }
  0x13   :  { %v80_v61 = vadd.f32 %v64_v58, %v48_v56  ;;  %v200_v3 = vld [vmem:[%s1607_s2] sm:$0xff]  ;;  %v202_v12 = vld [vmem:[%s1607_s2 + $0x10] sm:$0xff]  ;;  %v203_v14 = vld [vmem:[%s1607_s2 + $0x18] sm:$0xff] }
  0x14   :  { %305 = vmatpush.bf16.msra.mxu1 %v946_v54  ;;  %v204_v21 = vld [vmem:[%s1607_s2 + $0x20] sm:$0xff]  ;;  %v205_v23 = vld [vmem:[%s1607_s2 + $0x28] sm:$0xff]  ;;  %v206_v30 = vld [vmem:[%s1607_s2 + $0x30] sm:$0xff] }
  0x15   :  { %v89_v63 = vpack.c.bf16 %v81_v62, %v80_v61  ;;  %v207_v32 = vld [vmem:[%s1607_s2 + $0x38] sm:$0xff]  ;;  %v208_v39 = vld [vmem:[%s1607_s2 + $0x40] sm:$0xff]  ;;  %v209_v41 = vld [vmem:[%s1607_s2 + $0x48] sm:$0xff] }
  0x16   :  { %v210_v48 = vld [vmem:[%s1607_s2 + $0x50] sm:$0xff]  ;;  %v211_v50 = vld [vmem:[%s1607_s2 + $0x58] sm:$0xff]  ;;  %v212_v57 = vld [vmem:[%s1607_s2 + $0x60] sm:$0xff] }
  0x17   :  { %v213_v59 = vld [vmem:[%s1607_s2 + $0x68] sm:$0xff] }
  0x18   :  { %306 = vmatpush.bf16.msra.mxu1 %v945_v55 }
  0x1c   :  { %307 = vmatpush.bf16.msra.mxu1 %v944_v60 }
  0x21   :  { %861 = vmatmul.msk.bf16.gmra.mxu0 %vm126_vm0, %v83_v17 }
  0x31   :  { %862 = vmatmul.msk.bf16.gmra.mxu0 %vm126_vm0, %v84_v24 }
  0x41   :  { %863 = vmatmul.msk.bf16.gmra.mxu0 %vm126_vm0, %v85_v31 }
  0x51   :  { %864 = vmatmul.msk.bf16.gmra.mxu0 %vm126_vm0, %v86_v38 }
  0x61   :  { %865 = vmatmul.msk.bf16.gmra.mxu0 %vm126_vm0, %v87_v45 }
  0x71   :  { %866 = vmatmul.msk.bf16.gmra.mxu0 %vm126_vm0, %v88_v53 }
  0x81   :  { %867 = vmatmul.msk.bf16.gmra.mxu0 %vm126_vm0, %v89_v63 }
  0x8e   :  { %v160_v0 = vpop.f32.mrf.mxu0 }
  0x8f   :  { %v161_v2 = vadd.f32 %v1244_v1, %v160_v0 }
  0x91   :  { %v1254_v7 = vadd.f32 %v200_v3, %v161_v2  ;;  %v955_v2 = vld [vmem:[%s1612_s7 + $0x38] sm:$0xff] }
  0x92   :  { %745 = vmatpush.bf16.msra.mxu2 %v955_v2  ;;  %956 = vmatpush.bf16.msra.mxu3 %v955_v2 }
  0x96   :  { %v162_v4 = vpop.f32.mrf.mxu0 }
  0x97   :  { %v163_v6 = vadd.f32 %v1244_v1, %v162_v4  ;;  %v214_v4 = vld [vmem:[%s1607_s2 + $0x70] sm:$0xff] }
  0x99   :  { %v1256_v8 = vadd.f32 %v201_v5, %v163_v6  ;;  %v215_v6 = vld [vmem:[%s1607_s2 + $0x78] sm:$0xff] }
  0x9b   :  { %v232_v9 = vpack.c.bf16 %v1256_v8, %v1254_v7 }
  0x9d   :  { %884 = vmatmul.msk.bf16.vlgmr.msra.gmra.mxu1 %vm126_vm0, %v232_v9 }
  0x9e   :  { %v165_v10 = vpop.f32.mrf.mxu0 }
  0x9f   :  { %v166_v11 = vadd.f32 %v1244_v1, %v165_v10 }
  0xa1   :  { %v1269_v16 = vadd.f32 %v202_v12, %v166_v11  ;;  %v954_v12 = vld [vmem:[%s1612_s7 + $0x30] sm:$0xff] }
  0xa2   :  { %746 = vmatpush.bf16.msra.mxu2 %v954_v12  ;;  %957 = vmatpush.bf16.msra.mxu3 %v954_v12 }
  0xa6   :  { %v167_v13 = vpop.f32.mrf.mxu0 }
  0xa7   :  { %v168_v15 = vadd.f32 %v1244_v1, %v167_v13 }
  0xa9   :  { %v1271_v17 = vadd.f32 %v203_v14, %v168_v15  ;;  %v953_v14 = vld [vmem:[%s1612_s7 + $0x28] sm:$0xff]  ;;  %v951_v15 = vld [vmem:[%s1612_s7 + $0x18] sm:$0xff] }
  0xaa   :  { %747 = vmatpush.bf16.msra.mxu2 %v953_v14  ;;  %958 = vmatpush.bf16.msra.mxu3 %v953_v14 }
  0xab   :  { %v233_v18 = vpack.c.bf16 %v1271_v17, %v1269_v16 }
  0xad   :  { %885 = vmatmul.msk.bf16.gmra.mxu1 %vm126_vm0, %v233_v18  ;;  %v1384_v18 = vld [vmem:[%s1611_s6] ss:$0 sm:$0xff] }
  0xae   :  { %v170_v19 = vpop.f32.mrf.mxu0 }
  0xaf   :  { %v171_v20 = vadd.f32 %v1244_v1, %v170_v19  ;;  %v950_v19 = vld [vmem:[%s1612_s7 + $0x10] sm:$0xff] }
  0xb1   :  { %v1284_v25 = vadd.f32 %v204_v21, %v171_v20 }
  0xb6   :  { %v172_v22 = vpop.f32.mrf.mxu0 }
  0xb7   :  { %v173_v24 = vadd.f32 %v1244_v1, %v172_v22 }
  0xb9   :  { %v1286_v26 = vadd.f32 %v205_v23, %v173_v24  ;;  %v949_v23 = vld [vmem:[%s1612_s7 + $0x8] sm:$0xff]  ;;  %v948_v24 = vld [vmem:[%s1612_s7] sm:$0xff] }
  0xbb   :  { %v234_v27 = vpack.c.bf16 %v1286_v26, %v1284_v25 }
  0xbd   :  { %886 = vmatmul.msk.bf16.gmra.mxu1 %vm126_vm0, %v234_v27 }
  0xbe   :  { %v175_v28 = vpop.f32.mrf.mxu0 }
  0xbf   :  { %v176_v29 = vadd.f32 %v1244_v1, %v175_v28 }
  0xc1   :  { %v1299_v34 = vadd.f32 %v206_v30, %v176_v29 }
  0xc6   :  { %v177_v31 = vpop.f32.mrf.mxu0 }
  0xc7   :  { %v178_v33 = vadd.f32 %v1244_v1, %v177_v31 }
  0xc9   :  { %v1301_v35 = vadd.f32 %v207_v32, %v178_v33 }
  0xcb   :  { %v235_v36 = vpack.c.bf16 %v1301_v35, %v1299_v34 }
  0xcd   :  { %887 = vmatmul.msk.bf16.gmra.mxu1 %vm126_vm0, %v235_v36 }
  0xce   :  { %v180_v37 = vpop.f32.mrf.mxu0 }
  0xcf   :  { %v181_v38 = vadd.f32 %v1244_v1, %v180_v37 }
  0xd1   :  { %v1314_v43 = vadd.f32 %v208_v39, %v181_v38 }
  0xd6   :  { %v182_v40 = vpop.f32.mrf.mxu0 }
  0xd7   :  { %v183_v42 = vadd.f32 %v1244_v1, %v182_v40 }
  0xd9   :  { %v1316_v44 = vadd.f32 %v209_v41, %v183_v42 }
  0xdb   :  { %v236_v45 = vpack.c.bf16 %v1316_v44, %v1314_v43 }
  0xdd   :  { %888 = vmatmul.msk.bf16.gmra.mxu1 %vm126_vm0, %v236_v45 }
  0xde   :  { %v185_v46 = vpop.f32.mrf.mxu0 }
  0xdf   :  { %v186_v47 = vadd.f32 %v1244_v1, %v185_v46 }
  0xe1   :  { %v1329_v52 = vadd.f32 %v210_v48, %v186_v47 }
  0xe6   :  { %v187_v49 = vpop.f32.mrf.mxu0 }
  0xe7   :  { %v188_v51 = vadd.f32 %v1244_v1, %v187_v49 }
  0xe9   :  { %v1331_v53 = vadd.f32 %v211_v50, %v188_v51 }
  0xeb   :  { %v237_v54 = vpack.c.bf16 %v1331_v53, %v1329_v52 }
  0xed   :  { %889 = vmatmul.msk.bf16.gmra.mxu1 %vm126_vm0, %v237_v54 }
  0xee   :  { %v190_v55 = vpop.f32.mrf.mxu0 }
  0xef   :  { %v191_v56 = vadd.f32 %v1244_v1, %v190_v55 }
  0xf1   :  { %v1344_v61 = vadd.f32 %v212_v57, %v191_v56 }
  0xf6   :  { %v192_v58 = vpop.f32.mrf.mxu0 }
  0xf7   :  { %v193_v60 = vadd.f32 %v1244_v1, %v192_v58 }
  0xf9   :  { %v1346_v62 = vadd.f32 %v213_v59, %v193_v60 }
  0xfb   :  { %v238_v63 = vpack.c.bf16 %v1346_v62, %v1344_v61 }
  0xfd   :  { %890 = vmatmul.msk.bf16.gmra.mxu1 %vm126_vm0, %v238_v63 }
  0xfe   :  { %v195_v0 = vpop.f32.mrf.mxu0 }
  0xff   :  { %v196_v3 = vadd.f32 %v1244_v1, %v195_v0 }
 0x101   :  { %v1362_v10 = vadd.f32 %v214_v4, %v196_v3 }
 0x106   :  { %v197_v5 = vpop.f32.mrf.mxu0 }
 0x107   :  { %v198_v9 = vadd.f32 %v1244_v1, %v197_v5  ;;  %v952_v1 = vld [vmem:[%s1612_s7 + $0x20] sm:$0xff] }
 0x108   :  { %748 = vmatpush.bf16.msra.mxu2 %v952_v1  ;;  %959 = vmatpush.bf16.msra.mxu3 %v952_v1 }
 0x109   :  { %v1364_v11 = vadd.f32 %v215_v6, %v198_v9 }
 0x10b   :  { %v239_v13 = vpack.c.bf16 %v1364_v11, %v1362_v10 }
 0x10c   :  { %749 = vmatpush.bf16.msra.mxu2 %v951_v15  ;;  %960 = vmatpush.bf16.msra.mxu3 %v951_v15 }
 0x10d   :  { %891 = vmatmul.msk.bf16.gmra.mxu1 %vm126_vm0, %v239_v13 }
 0x110   :  { %750 = vmatpush.bf16.msra.mxu2 %v950_v19  ;;  %961 = vmatpush.bf16.msra.mxu3 %v950_v19 }
 0x114   :  { %751 = vmatpush.bf16.msra.mxu2 %v949_v23  ;;  %962 = vmatpush.bf16.msra.mxu3 %v949_v23 }
 0x118   :  { %752 = vmatpush.bf16.msra.mxu2 %v948_v24  ;;  %963 = vmatpush.bf16.msra.mxu3 %v948_v24 }
 0x11a   :  { %v309_v20 = vpop.f32.mrf.mxu1 }
 0x11b   :  { %v1390_v21 = vadd.f32 %v1384_v18, %v309_v20 }
 0x11d   :  { %v892_v22 = vmul.f32 -1.442695, %v1390_v21 }
 0x11f   :  { %970 = vpow2.f32 %v892_v22 }
 0x122   :  { %v311_v27 = vpop.f32.mrf.mxu1 }
 0x123   :  { %v312_v28 = vadd.f32 %v1384_v18, %v311_v27 }
 0x125   :  { %v971_v29 = vpop.eup %970  ;;  %v893_v30 = vmul.f32 -1.442695, %v312_v28 }
 0x126   :  { %v397_v31 = vadd.f32 1.0, %v971_v29 }
 0x127   :  { %972 = vpow2.f32 %v893_v30 }
 0x128   :  { %974 = vrcp.f32 %v397_v31  ;;  %v424_v55 = vand.u32 2147483648, %v397_v31  ;;  %vm418_vm2 = vweird.f32 %v397_v31  ;;  %v422_v56 = vand.u32 2147483647, %v397_v31 }
 0x12a   :  { %v314_v32 = vpop.f32.mrf.mxu1  ;;  %v425_v4 = vor.u32 1.1754944e-38, %v424_v55  ;;  %vm423_vm5 = vcmp.eq.f32.partialorder %v422_v56, 8.507059e+37 }
 0x12b   :  { %v1401_v33 = vadd.f32 %v1384_v18, %v314_v32 }
 0x12d   :  { %v973_v36 = vpop.eup %972  ;;  %v894_v37 = vmul.f32 -1.442695, %v1401_v33 }
 0x12e   :  { %v975_v38 = vpop.eup %974  ;;  %v398_v39 = vadd.f32 1.0, %v973_v36 }
 0x12f   :  { %v414_v40 = vmul.f32 %v975_v38, %v397_v31  ;;  %976 = vpow2.f32 %v894_v37  ;;  %vm419_vm1 = vweird.f32 %v975_v38 }
 0x130   :  { %978 = vrcp.f32 %v398_v39  ;;  %vm1411_vm3 = vmor %vm418_vm2, %vm419_vm1  ;;  %v437_v59 = vand.u32 2147483647, %v398_v39  ;;  %v439_v60 = vand.u32 2147483648, %v398_v39  ;;  %vm433_vm6 = vweird.f32 %v398_v39 }
 0x131   :  { %v415_v41 = vsub.f32 1.0, %v414_v40 }
 0x132   :  { %v316_v42 = vpop.f32.mrf.mxu1  ;;  %v440_v14 = vor.u32 1.1754944e-38, %v439_v60  ;;  %vm438_vm8 = vcmp.eq.f32.partialorder %v437_v59, 8.507059e+37 }
 0x133   :  { %v416_v45 = vmul.f32 %v975_v38, %v415_v41  ;;  %v1405_v46 = vadd.f32 %v1384_v18, %v316_v42 }
 0x135   :  { %v977_v47 = vpop.eup %976  ;;  %v895_v48 = vmul.f32 -1.442695, %v1405_v46  ;;  %v417_v51 = vadd.f32 %v975_v38, %v416_v45 }
 0x136   :  { %v979_v49 = vpop.eup %978  ;;  %v1408_v50 = vadd.f32 1.0, %v977_v47 }
 0x137   :  { %v429_v54 = vmul.f32 %v979_v49, %v398_v39  ;;  %980 = vpow2.f32 %v895_v48  ;;  %v421_v0 = vsel %vm1411_vm3, %v975_v38, %v417_v51  ;;  %vm434_vm4 = vweird.f32 %v979_v49 }
 0x138   :  { %982 = vrcp.f32 %v1408_v50  ;;  %v426_v13 = vsel %vm423_vm5, %v425_v4, %v421_v0  ;;  %vm435_vm7 = vmor %vm433_vm6, %vm434_vm4  ;;  %vm448_vm10 = vweird.f32 %v1408_v50 }
 0x139   :  { %v430_v57 = vsub.f32 1.0, %v429_v54  ;;  %v653_v22 = vmul.f32 %v426_v13, %v1390_v21  ;;  %v454_v21 = vand.u32 2147483648, %v1408_v50 }
 0x13a   :  { %v319_v63 = vpop.f32.mrf.mxu1 }
 0x13b   :  { %v431_v2 = vmul.f32 %v979_v49, %v430_v57  ;;  %v1418_v3 = vadd.f32 %v1384_v18, %v319_v63  ;;  %v455_v55 = vor.u32 1.1754944e-38, %v454_v21 }
 0x13d   :  { %v981_v5 = vpop.eup %980  ;;  %v432_v6 = vadd.f32 %v979_v49, %v431_v2  ;;  %v896_v9 = vmul.f32 -1.442695, %v1418_v3 }
 0x13e   :  { %v983_v12 = vpop.eup %982  ;;  %v400_v1 = vadd.f32 1.0, %v981_v5 }
 0x13f   :  { %v436_v15 = vsel %vm435_vm7, %v979_v49, %v432_v6  ;;  %v444_v19 = vmul.f32 %v983_v12, %v1408_v50  ;;  %984 = vpow2.f32 %v896_v9  ;;  %vm449_vm9 = vweird.f32 %v983_v12 }
 0x140   :  { %v441_v20 = vsel %vm438_vm8, %v440_v14, %v436_v15  ;;  %986 = vrcp.f32 %v400_v1  ;;  %vm1433_vm11 = vmor %vm448_vm10, %vm449_vm9  ;;  %v467_v45 = vand.u32 2147483647, %v400_v1  ;;  %v469_v47 = vand.u32 2147483648, %v400_v1 }
 0x141   :  { %v654_v23 = vmul.f32 %v441_v20, %v312_v28  ;;  %v445_v24 = vsub.f32 1.0, %v444_v19  ;;  %v452_v28 = vand.u32 2147483647, %v1408_v50  ;;  %vm463_vm14 = vweird.f32 %v400_v1 }
 0x142   :  { %v321_v27 = vpop.f32.mrf.mxu1  ;;  %v470_v60 = vor.u32 1.1754944e-38, %v469_v47  ;;  %vm468_vm1 = vcmp.eq.f32.partialorder %v467_v45, 8.507059e+37 }
 0x143   :  { %v446_v29 = vmul.f32 %v983_v12, %v445_v24  ;;  %v1424_v30 = vadd.f32 %v1384_v18, %v321_v27  ;;  %v669_v31 = vpack.c.bf16 %v654_v23, %v653_v22  ;;  %vm453_vm13 = vcmp.eq.f32.partialorder %v452_v28, 8.507059e+37 }
 0x145   :  { %v985_v32 = vpop.eup %984  ;;  %v897_v36 = vmul.f32 -1.442695, %v1424_v30  ;;  %753 = vmatmul.bf16.vlgmr.msra.gmra.mxu2 %v669_v31  ;;  %v447_v39 = vadd.f32 %v983_v12, %v446_v29 }
 0x146   :  { %v987_v37 = vpop.eup %986  ;;  %v1427_v38 = vadd.f32 1.0, %v985_v32 }
 0x147   :  { %v459_v40 = vmul.f32 %v987_v37, %v400_v1  ;;  %988 = vpow2.f32 %v897_v36  ;;  %v451_v49 = vsel %vm1433_vm11, %v983_v12, %v447_v39  ;;  %vm464_vm12 = vweird.f32 %v987_v37 }
 0x148   :  { %990 = vrcp.f32 %v1427_v38  ;;  %v456_v59 = vsel %vm453_vm13, %v455_v55, %v451_v49  ;;  %vm465_vm15 = vmor %vm463_vm14, %vm464_vm12  ;;  %vm478_vm3 = vweird.f32 %v1427_v38 }
 0x149   :  { %v460_v41 = vsub.f32 1.0, %v459_v40  ;;  %v655_v5 = vmul.f32 %v456_v59, %v1401_v33  ;;  %v484_v33 = vand.u32 2147483648, %v1427_v38 }
 0x14a   :  { %v324_v48 = vpop.f32.mrf.mxu1 }
 0x14b   :  { %v461_v51 = vmul.f32 %v987_v37, %v460_v41  ;;  %v1440_v54 = vadd.f32 %v1384_v18, %v324_v48  ;;  %v485_v21 = vor.u32 1.1754944e-38, %v484_v33 }
 0x14d   :  { %v989_v56 = vpop.eup %988  ;;  %v462_v50 = vadd.f32 %v987_v37, %v461_v51  ;;  %v898_v57 = vmul.f32 -1.442695, %v1440_v54 }
 0x14e   :  { %v991_v58 = vpop.eup %990  ;;  %v402_v63 = vadd.f32 1.0, %v989_v56 }
 0x14f   :  { %v466_v0 = vsel %vm465_vm15, %v987_v37, %v462_v50  ;;  %v474_v2 = vmul.f32 %v991_v58, %v1427_v38  ;;  %992 = vpow2.f32 %v898_v57  ;;  %vm479_vm2 = vweird.f32 %v991_v58 }
 0x150   :  { %v471_v4 = vsel %vm468_vm1, %v470_v60, %v466_v0  ;;  %994 = vrcp.f32 %v402_v63  ;;  %vm1456_vm4 = vmor %vm478_vm3, %vm479_vm2  ;;  %v497_v31 = vand.u32 2147483647, %v402_v63  ;;  %v499_v32 = vand.u32 2147483648, %v402_v63 }
 0x151   :  { %v656_v6 = vmul.f32 %v471_v4, %v1405_v46  ;;  %v475_v9 = vsub.f32 1.0, %v474_v2  ;;  %v482_v46 = vand.u32 2147483647, %v1427_v38  ;;  %vm493_vm7 = vweird.f32 %v402_v63 }
 0x152   :  { %v326_v12 = vpop.f32.mrf.mxu1  ;;  %v500_v47 = vor.u32 1.1754944e-38, %v499_v32  ;;  %vm498_vm9 = vcmp.eq.f32.partialorder %v497_v31, 8.507059e+37 }
 0x153   :  { %v476_v13 = vmul.f32 %v991_v58, %v475_v9  ;;  %v1447_v14 = vadd.f32 %v1384_v18, %v326_v12  ;;  %v670_v1 = vpack.c.bf16 %v656_v6, %v655_v5  ;;  %vm483_vm6 = vcmp.eq.f32.partialorder %v482_v46, 8.507059e+37 }
 0x155   :  { %v993_v15 = vpop.eup %992  ;;  %v899_v19 = vmul.f32 -1.442695, %v1447_v14  ;;  %758 = vmatmul.bf16.gmra.mxu2 %v670_v1  ;;  %v477_v23 = vadd.f32 %v991_v58, %v476_v13 }
 0x156   :  { %v995_v20 = vpop.eup %994  ;;  %v1450_v22 = vadd.f32 1.0, %v993_v15 }
 0x157   :  { %v489_v24 = vmul.f32 %v995_v20, %v402_v63  ;;  %996 = vpow2.f32 %v899_v19  ;;  %v481_v37 = vsel %vm1456_vm4, %v991_v58, %v477_v23  ;;  %vm494_vm5 = vweird.f32 %v995_v20 }
 0x158   :  { %998 = vrcp.f32 %v1450_v22  ;;  %v486_v45 = vsel %vm483_vm6, %v485_v21, %v481_v37  ;;  %vm495_vm8 = vmor %vm493_vm7, %vm494_vm5  ;;  %vm508_vm11 = vweird.f32 %v1450_v22 }
 0x159   :  { %v490_v27 = vsub.f32 1.0, %v489_v24  ;;  %v657_v56 = vmul.f32 %v486_v45, %v1418_v3  ;;  %v514_v3 = vand.u32 2147483648, %v1450_v22 }
 0x15a   :  { %v329_v36 = vpop.f32.mrf.mxu1 }
 0x15b   :  { %v491_v39 = vmul.f32 %v995_v20, %v490_v27  ;;  %v1463_v40 = vadd.f32 %v1384_v18, %v329_v36  ;;  %v515_v33 = vor.u32 1.1754944e-38, %v514_v3 }
 0x15d   :  { %v997_v28 = vpop.eup %996  ;;  %v492_v38 = vadd.f32 %v995_v20, %v491_v39  ;;  %v900_v41 = vmul.f32 -1.442695, %v1463_v40 }
 0x15e   :  { %v999_v42 = vpop.eup %998  ;;  %v404_v48 = vadd.f32 1.0, %v997_v28 }
 0x15f   :  { %v496_v49 = vsel %vm495_vm8, %v995_v20, %v492_v38  ;;  %v504_v51 = vmul.f32 %v999_v42, %v1450_v22  ;;  %1000 = vpow2.f32 %v900_v41  ;;  %vm509_vm10 = vweird.f32 %v999_v42 }
 0x160   :  { %v501_v55 = vsel %vm498_vm9, %v500_v47, %v496_v49  ;;  %1002 = vrcp.f32 %v404_v48  ;;  %vm1479_vm12 = vmor %vm508_vm11, %vm509_vm10  ;;  %v527_v1 = vand.u32 2147483647, %v404_v48  ;;  %v529_v15 = vand.u32 2147483648, %v404_v48 }
 0x161   :  { %v658_v50 = vmul.f32 %v501_v55, %v1424_v30  ;;  %v505_v57 = vsub.f32 1.0, %v504_v51  ;;  %v512_v30 = vand.u32 2147483647, %v1450_v22  ;;  %vm523_vm15 = vweird.f32 %v404_v48 }
 0x162   :  { %v331_v58 = vpop.f32.mrf.mxu1  ;;  %v530_v32 = vor.u32 1.1754944e-38, %v529_v15  ;;  %vm528_vm2 = vcmp.eq.f32.partialorder %v527_v1, 8.507059e+37 }
 0x163   :  { %v506_v59 = vmul.f32 %v999_v42, %v505_v57  ;;  %v1470_v60 = vadd.f32 %v1384_v18, %v331_v58  ;;  %v671_v63 = vpack.c.bf16 %v658_v50, %v657_v56  ;;  %vm513_vm14 = vcmp.eq.f32.partialorder %v512_v30, 8.507059e+37 }
 0x165   :  { %v1001_v0 = vpop.eup %1000  ;;  %v901_v2 = vmul.f32 -1.442695, %v1470_v60  ;;  %763 = vmatmul.bf16.gmra.mxu2 %v671_v63  ;;  %v507_v6 = vadd.f32 %v999_v42, %v506_v59 }
 0x166   :  { %v1003_v4 = vpop.eup %1002  ;;  %v1473_v5 = vadd.f32 1.0, %v1001_v0 }
 0x167   :  { %v519_v9 = vmul.f32 %v1003_v4, %v404_v48  ;;  %1004 = vpow2.f32 %v901_v2  ;;  %v511_v20 = vsel %vm1479_vm12, %v999_v42, %v507_v6  ;;  %vm524_vm13 = vweird.f32 %v1003_v4 }
 0x168   :  { %1006 = vrcp.f32 %v1473_v5  ;;  %v516_v31 = vsel %vm513_vm14, %v515_v33, %v511_v20  ;;  %vm525_vm1 = vmor %vm523_vm15, %vm524_vm13  ;;  %vm538_vm4 = vweird.f32 %v1473_v5 }
 0x169   :  { %v520_v12 = vsub.f32 1.0, %v519_v9  ;;  %v659_v28 = vmul.f32 %v516_v31, %v1440_v54  ;;  %v544_v54 = vand.u32 2147483648, %v1473_v5 }
 0x16a   :  { %v334_v19 = vpop.f32.mrf.mxu1 }
 0x16b   :  { %v521_v23 = vmul.f32 %v1003_v4, %v520_v12  ;;  %v1486_v24 = vadd.f32 %v1384_v18, %v334_v19  ;;  %v545_v3 = vor.u32 1.1754944e-38, %v544_v54 }
 0x16d   :  { %v1005_v46 = vpop.eup %1004  ;;  %v522_v22 = vadd.f32 %v1003_v4, %v521_v23  ;;  %v902_v27 = vmul.f32 -1.442695, %v1486_v24 }
 0x16e   :  { %v1007_v29 = vpop.eup %1006  ;;  %v406_v36 = vadd.f32 1.0, %v1005_v46 }
 0x16f   :  { %v526_v37 = vsel %vm525_vm1, %v1003_v4, %v522_v22  ;;  %v534_v39 = vmul.f32 %v1007_v29, %v1473_v5  ;;  %1008 = vpow2.f32 %v902_v27  ;;  %vm539_vm3 = vweird.f32 %v1007_v29 }
 0x170   :  { %v531_v21 = vsel %vm528_vm2, %v530_v32, %v526_v37  ;;  %1010 = vrcp.f32 %v406_v36  ;;  %vm1502_vm5 = vmor %vm538_vm4, %vm539_vm3  ;;  %v557_v63 = vand.u32 2147483647, %v406_v36  ;;  %v559_v0 = vand.u32 2147483648, %v406_v36 }
 0x171   :  { %v660_v38 = vmul.f32 %v531_v21, %v1447_v14  ;;  %v535_v41 = vsub.f32 1.0, %v534_v39  ;;  %v542_v14 = vand.u32 2147483647, %v1473_v5  ;;  %vm553_vm8 = vweird.f32 %v406_v36 }
 0x172   :  { %v336_v42 = vpop.f32.mrf.mxu1  ;;  %v560_v15 = vor.u32 1.1754944e-38, %v559_v0  ;;  %vm558_vm10 = vcmp.eq.f32.partialorder %v557_v63, 8.507059e+37 }
 0x173   :  { %v536_v45 = vmul.f32 %v1007_v29, %v535_v41  ;;  %v1493_v47 = vadd.f32 %v1384_v18, %v336_v42  ;;  %v672_v48 = vpack.c.bf16 %v660_v38, %v659_v28  ;;  %vm543_vm7 = vcmp.eq.f32.partialorder %v542_v14, 8.507059e+37 }
 0x175   :  { %v1009_v49 = vpop.eup %1008  ;;  %v903_v51 = vmul.f32 -1.442695, %v1493_v47  ;;  %768 = vmatmul.bf16.gmra.mxu2 %v672_v48  ;;  %v537_v50 = vadd.f32 %v1007_v29, %v536_v45 }
 0x176   :  { %v1011_v55 = vpop.eup %1010  ;;  %v1496_v56 = vadd.f32 1.0, %v1009_v49 }
 0x177   :  { %v549_v57 = vmul.f32 %v1011_v55, %v406_v36  ;;  %1012 = vpow2.f32 %v903_v51  ;;  %v541_v4 = vsel %vm1502_vm5, %v1007_v29, %v537_v50  ;;  %vm554_vm6 = vweird.f32 %v1011_v55 }
 0x178   :  { %1014 = vrcp.f32 %v1496_v56  ;;  %v546_v1 = vsel %vm543_vm7, %v545_v3, %v541_v4  ;;  %vm555_vm9 = vmor %vm553_vm8, %vm554_vm6  ;;  %vm568_vm12 = vweird.f32 %v1496_v56 }
 0x179   :  { %v550_v58 = vsub.f32 1.0, %v549_v57  ;;  %v661_v46 = vmul.f32 %v546_v1, %v1463_v40  ;;  %v574_v40 = vand.u32 2147483648, %v1496_v56 }
 0x17a   :  { %v339_v2 = vpop.f32.mrf.mxu1 }
 0x17b   :  { %v551_v6 = vmul.f32 %v1011_v55, %v550_v58  ;;  %v1509_v9 = vadd.f32 %v1384_v18, %v339_v2  ;;  %v575_v54 = vor.u32 1.1754944e-38, %v574_v40 }
 0x17d   :  { %v1013_v30 = vpop.eup %1012  ;;  %v552_v5 = vadd.f32 %v1011_v55, %v551_v6  ;;  %v904_v12 = vmul.f32 -1.442695, %v1509_v9 }
 0x17e   :  { %v1015_v13 = vpop.eup %1014  ;;  %v408_v19 = vadd.f32 1.0, %v1013_v30 }
 0x17f   :  { %v556_v20 = vsel %vm555_vm9, %v1011_v55, %v552_v5  ;;  %v564_v23 = vmul.f32 %v1015_v13, %v1496_v56  ;;  %1016 = vpow2.f32 %v904_v12  ;;  %vm569_vm11 = vweird.f32 %v1015_v13 }
 0x180   :  { %v561_v33 = vsel %vm558_vm10, %v560_v15, %v556_v20  ;;  %1018 = vrcp.f32 %v408_v19  ;;  %vm1525_vm13 = vmor %vm568_vm12, %vm569_vm11  ;;  %v587_v48 = vand.u32 2147483647, %v408_v19  ;;  %v589_v49 = vand.u32 2147483648, %v408_v19 }
 0x181   :  { %v662_v22 = vmul.f32 %v561_v33, %v1470_v60  ;;  %v565_v27 = vsub.f32 1.0, %v564_v23  ;;  %v572_v60 = vand.u32 2147483647, %v1496_v56  ;;  %vm583_vm1 = vweird.f32 %v408_v19 }
 0x182   :  { %v341_v29 = vpop.f32.mrf.mxu1  ;;  %v590_v0 = vor.u32 1.1754944e-38, %v589_v49  ;;  %vm588_vm3 = vcmp.eq.f32.partialorder %v587_v48, 8.507059e+37 }
 0x183   :  { %v566_v31 = vmul.f32 %v1015_v13, %v565_v27  ;;  %v1516_v32 = vadd.f32 %v1384_v18, %v341_v29  ;;  %v673_v36 = vpack.c.bf16 %v662_v22, %v661_v46  ;;  %vm573_vm15 = vcmp.eq.f32.partialorder %v572_v60, 8.507059e+37 }
 0x185   :  { %v1017_v37 = vpop.eup %1016  ;;  %v905_v39 = vmul.f32 -1.442695, %v1516_v32  ;;  %773 = vmatmul.bf16.gmra.mxu2 %v673_v36  ;;  %v567_v38 = vadd.f32 %v1015_v13, %v566_v31 }
 0x186   :  { %v1019_v21 = vpop.eup %1018  ;;  %v1519_v28 = vadd.f32 1.0, %v1017_v37 }
 0x187   :  { %v579_v41 = vmul.f32 %v1019_v21, %v408_v19  ;;  %1020 = vpow2.f32 %v905_v39  ;;  %v571_v55 = vsel %vm1525_vm13, %v1015_v13, %v567_v38  ;;  %vm584_vm14 = vweird.f32 %v1019_v21 }
 0x188   :  { %1022 = vrcp.f32 %v1519_v28  ;;  %v576_v63 = vsel %vm573_vm15, %v575_v54, %v571_v55  ;;  %vm585_vm2 = vmor %vm583_vm1, %vm584_vm14  ;;  %vm598_vm5 = vweird.f32 %v1519_v28 }
 0x189   :  { %v580_v42 = vsub.f32 1.0, %v579_v41  ;;  %v663_v30 = vmul.f32 %v576_v63, %v1486_v24  ;;  %v604_v24 = vand.u32 2147483648, %v1519_v28 }
 0x18a   :  { %v344_v51 = vpop.f32.mrf.mxu1 }
 0x18b   :  { %v581_v50 = vmul.f32 %v1019_v21, %v580_v42  ;;  %v1532_v57 = vadd.f32 %v1384_v18, %v344_v51  ;;  %v605_v39 = vor.u32 1.1754944e-38, %v604_v24 }
 0x18d   :  { %v1021_v14 = vpop.eup %1020  ;;  %v582_v56 = vadd.f32 %v1019_v21, %v581_v50  ;;  %v906_v58 = vmul.f32 -1.442695, %v1532_v57 }
 0x18e   :  { %v1023_v59 = vpop.eup %1022  ;;  %v410_v2 = vadd.f32 1.0, %v1021_v14 }
 0x18f   :  { %v586_v4 = vsel %vm585_vm2, %v1019_v21, %v582_v56  ;;  %v594_v6 = vmul.f32 %v1023_v59, %v1519_v28  ;;  %1024 = vpow2.f32 %v906_v58  ;;  %vm599_vm4 = vweird.f32 %v1023_v59 }
 0x190   :  { %v591_v3 = vsel %vm588_vm3, %v590_v0, %v586_v4  ;;  %1026 = vrcp.f32 %v410_v2  ;;  %vm600_vm6 = vmor %vm598_vm5, %vm599_vm4  ;;  %v619_v29 = vand.u32 2147483648, %v410_v2  ;;  %v617_v37 = vand.u32 2147483647, %v410_v2 }
 0x191   :  { %v664_v5 = vmul.f32 %v591_v3, %v1493_v47  ;;  %v595_v12 = vsub.f32 1.0, %v594_v6  ;;  %v602_v47 = vand.u32 2147483647, %v1519_v28  ;;  %vm613_vm9 = vweird.f32 %v410_v2 }
 0x192   :  { %v346_v13 = vpop.f32.mrf.mxu1  ;;  %v620_v60 = vor.u32 1.1754944e-38, %v619_v29  ;;  %vm618_vm11 = vcmp.eq.f32.partialorder %v617_v37, 8.507059e+37 }
 0x193   :  { %v596_v1 = vmul.f32 %v1023_v59, %v595_v12  ;;  %v1539_v15 = vadd.f32 %v1384_v18, %v346_v13  ;;  %v674_v19 = vpack.c.bf16 %v664_v5, %v663_v30  ;;  %vm603_vm8 = vcmp.eq.f32.partialorder %v602_v47, 8.507059e+37 }
 0x195   :  { %v1025_v20 = vpop.eup %1024  ;;  %v907_v23 = vmul.f32 -1.442695, %v1539_v15  ;;  %778 = vmatmul.bf16.gmra.mxu2 %v674_v19  ;;  %v597_v22 = vadd.f32 %v1023_v59, %v596_v1 }
 0x196   :  { %v1027_v33 = vpop.eup %1026  ;;  %v411_v46 = vadd.f32 1.0, %v1025_v20 }
 0x197   :  { %v609_v27 = vmul.f32 %v1027_v33, %v410_v2  ;;  %1028 = vpow2.f32 %v907_v23  ;;  %v601_v31 = vsel %vm600_vm6, %v1023_v59, %v597_v22  ;;  %vm614_vm7 = vweird.f32 %v1027_v33  ;;  %v1552_v23 = vld [vmem:[%s1613_s8] ss:$0 sm:$0xff]  ;;  %s1060_s8 = smov [#allocation2]  }
 0x198   :  { %1030 = vrcp.f32 %v411_v46  ;;  %v606_v40 = vsel %vm603_vm8, %v605_v39, %v601_v31  ;;  %vm615_vm10 = vmor %vm613_vm9, %vm614_vm7  ;;  %v634_v59 = vand.u32 2147483648, %v411_v46  ;;  %vm628_vm13 = vweird.f32 %v411_v46  ;;  %s830_s22 = sshll.u32 %s1060_s8, 4  ;;  %s831_s22 = int_to_ptr.vmem [resolvable:$true] %s830_s22 }
 0x199   :  { %v610_v18 = vsub.f32 1.0, %v609_v27  ;;  %v665_v49 = vmul.f32 %v606_v40, %v1509_v9  ;;  %v632_v63 = vand.u32 2147483647, %v411_v46 }
 0x19a   :  { %v635_v3 = vor.u32 1.1754944e-38, %v634_v59 }
 0x19b   :  { %v611_v36 = vmul.f32 %v1027_v33, %v610_v18  ;;  %vm633_vm1 = vcmp.eq.f32.partialorder %v632_v63, 8.507059e+37 }
 0x19d   :  { %v1029_v21 = vpop.eup %1028  ;;  %v612_v38 = vadd.f32 %v1027_v33, %v611_v36 }
 0x19e   :  { %v1031_v41 = vpop.eup %1030  ;;  %v412_v42 = vadd.f32 1.0, %v1029_v21 }
 0x19f   :  { %v616_v45 = vsel %vm615_vm10, %v1027_v33, %v612_v38  ;;  %v624_v28 = vmul.f32 %v1031_v41, %v411_v46  ;;  %vm629_vm12 = vweird.f32 %v1031_v41 }
 0x1a0   :  { %v621_v48 = vsel %vm618_vm11, %v620_v60, %v616_v45  ;;  %1032 = vrcp.f32 %v412_v42  ;;  %vm630_vm14 = vmor %vm628_vm13, %vm629_vm12  ;;  %v649_v2 = vand.u32 2147483648, %v412_v42  ;;  %v647_v9 = vand.u32 2147483647, %v412_v42 }
 0x1a1   :  { %v666_v51 = vmul.f32 %v621_v48, %v1516_v32  ;;  %v625_v55 = vsub.f32 1.0, %v624_v28  ;;  %vm643_vm2 = vweird.f32 %v412_v42 }
 0x1a2   :  { %v650_v5 = vor.u32 1.1754944e-38, %v649_v2  ;;  %vm648_vm4 = vcmp.eq.f32.partialorder %v647_v9, 8.507059e+37 }
 0x1a3   :  { %v626_v50 = vmul.f32 %v1031_v41, %v625_v55  ;;  %v675_v54 = vpack.c.bf16 %v666_v51, %v665_v49 }
 0x1a5   :  { %783 = vmatmul.bf16.vlgmr.msra.gmra.mxu3 %v675_v54  ;;  %v627_v56 = vadd.f32 %v1031_v41, %v626_v50 }
 0x1a6   :  { %v1033_v14 = vpop.eup %1032 }
 0x1a7   :  { %v639_v58 = vmul.f32 %v1033_v14, %v412_v42  ;;  %v631_v4 = vsel %vm630_vm14, %v1031_v41, %v627_v56  ;;  %vm644_vm15 = vweird.f32 %v1033_v14 }
 0x1a8   :  { %v636_v30 = vsel %vm633_vm1, %v635_v3, %v631_v4  ;;  %vm645_vm3 = vmor %vm643_vm2, %vm644_vm15 }
 0x1a9   :  { %v640_v0 = vsub.f32 1.0, %v639_v58  ;;  %v667_v1 = vmul.f32 %v636_v30, %v1532_v57 }
 0x1ab   :  { %v641_v6 = vmul.f32 %v1033_v14, %v640_v0 }
 0x1ad   :  { %v642_v32 = vadd.f32 %v1033_v14, %v641_v6 }
 0x1af   :  { %v646_v12 = vsel %vm645_vm3, %v1033_v14, %v642_v32 }
 0x1b0   :  { %v651_v13 = vsel %vm648_vm4, %v650_v5, %v646_v12 }
 0x1b1   :  { %v668_v19 = vmul.f32 %v651_v13, %v1539_v15 }
 0x1b3   :  { %v676_v20 = vpack.c.bf16 %v668_v19, %v667_v1 }
 0x1b5   :  { %788 = vmatmul.bf16.gmra.mxu3 %v676_v20 }
 0x1c8   :  { %v754_v33 = vpop.f32.mrf.mxu2 }
 0x1c9   :  { %v755_v46 = vadd.f32 %v1552_v23, %v754_v33 }
 0x1cb   :  { %v794_v22 = vadd.f32 %v755_v46, %v1254_v7 }
 0x1cd   :  { %810 = vst.msk [vmem:[#allocation2] sm:$0xff] %vm126_vm0, %v794_v22 }
 0x1d0   :  { %v756_v27 = vpop.f32.mrf.mxu2 }
 0x1d1   :  { %v757_v24 = vadd.f32 %v1552_v23, %v756_v27 }
 0x1d3   :  { %v795_v57 = vadd.f32 %v757_v24, %v1256_v8 }
 0x1d5   :  { %811 = vst.msk [vmem:[#allocation2 + $0x8] sm:$0xff] %vm126_vm0, %v795_v57 }
 0x1d8   :  { %v759_v15 = vpop.f32.mrf.mxu2 }
 0x1d9   :  { %v760_v47 = vadd.f32 %v1552_v23, %v759_v15 }
 0x1db   :  { %v796_v18 = vadd.f32 %v760_v47, %v1269_v16 }
 0x1dd   :  { %812 = vst.msk [vmem:[#allocation2 + $0x10] sm:$0xff] %vm126_vm0, %v796_v18 }
 0x1e0   :  { %v761_v29 = vpop.f32.mrf.mxu2 }
 0x1e1   :  { %v762_v31 = vadd.f32 %v1552_v23, %v761_v29 }
 0x1e3   :  { %v797_v7 = vadd.f32 %v762_v31, %v1271_v17 }
 0x1e5   :  { %813 = vst.msk [vmem:[#allocation2 + $0x18] sm:$0xff] %vm126_vm0, %v797_v7 }
 0x1e8   :  { %v764_v36 = vpop.f32.mrf.mxu2 }
 0x1e9   :  { %v765_v37 = vadd.f32 %v1552_v23, %v764_v36 }
 0x1eb   :  { %v798_v8 = vadd.f32 %v765_v37, %v1284_v25 }
 0x1ed   :  { %814 = vst.msk [vmem:[#allocation2 + $0x20] sm:$0xff] %vm126_vm0, %v798_v8 }
 0x1f0   :  { %v766_v39 = vpop.f32.mrf.mxu2 }
 0x1f1   :  { %v767_v21 = vadd.f32 %v1552_v23, %v766_v39 }
 0x1f3   :  { %v799_v16 = vadd.f32 %v767_v21, %v1286_v26 }
 0x1f5   :  { %815 = vst.msk [vmem:[#allocation2 + $0x28] sm:$0xff] %vm126_vm0, %v799_v16 }
 0x1f8   :  { %v769_v38 = vpop.f32.mrf.mxu2 }
 0x1f9   :  { %v770_v41 = vadd.f32 %v1552_v23, %v769_v38 }
 0x1fb   :  { %v800_v17 = vadd.f32 %v770_v41, %v1299_v34 }
 0x1fd   :  { %816 = vst.msk [vmem:[#allocation2 + $0x30] sm:$0xff] %vm126_vm0, %v800_v17 }
 0x200   :  { %v771_v40 = vpop.f32.mrf.mxu2 }
 0x201   :  { %v772_v60 = vadd.f32 %v1552_v23, %v771_v40 }
 0x203   :  { %v801_v25 = vadd.f32 %v772_v60, %v1301_v35 }
 0x205   :  { %817 = vst.msk [vmem:[#allocation2 + $0x38] sm:$0xff] %vm126_vm0, %v801_v25 }
 0x208   :  { %v774_v42 = vpop.f32.mrf.mxu2 }
 0x209   :  { %v775_v45 = vadd.f32 %v1552_v23, %v774_v42 }
 0x20b   :  { %v802_v26 = vadd.f32 %v775_v45, %v1314_v43 }
 0x20d   :  { %818 = vst.msk [vmem:[#allocation2 + $0x40] sm:$0xff] %vm126_vm0, %v802_v26 }
 0x210   :  { %v776_v28 = vpop.f32.mrf.mxu2 }
 0x211   :  { %v777_v48 = vadd.f32 %v1552_v23, %v776_v28 }
 0x213   :  { %v803_v34 = vadd.f32 %v777_v48, %v1316_v44 }
 0x215   :  { %819 = vst.msk [vmem:[#allocation2 + $0x48] sm:$0xff] %vm126_vm0, %v803_v34 }
 0x218   :  { %v779_v49 = vpop.f32.mrf.mxu2 }
 0x219   :  { %v780_v51 = vadd.f32 %v1552_v23, %v779_v49 }
 0x21b   :  { %v804_v35 = vadd.f32 %v780_v51, %v1329_v52 }
 0x21d   :  { %820 = vst.msk [vmem:[#allocation2 + $0x50] sm:$0xff] %vm126_vm0, %v804_v35 }
 0x220   :  { %v781_v55 = vpop.f32.mrf.mxu2 }
 0x221   :  { %v782_v50 = vadd.f32 %v1552_v23, %v781_v55 }
 0x223   :  { %v805_v43 = vadd.f32 %v782_v50, %v1331_v53 }
 0x225   :  { %821 = vst.msk [vmem:[#allocation2 + $0x58] sm:$0xff] %vm126_vm0, %v805_v43 }
 0x228   :  { %v784_v54 = vpop.f32.mrf.mxu3 }
 0x229   :  { %v785_v14 = vadd.f32 %v1552_v23, %v784_v54 }
 0x22b   :  { %v806_v44 = vadd.f32 %v785_v14, %v1344_v61 }
 0x22d   :  { %822 = vst.msk [vmem:[#allocation2 + $0x60] sm:$0xff] %vm126_vm0, %v806_v44 }
 0x230   :  { %v786_v56 = vpop.f32.mrf.mxu3 }
 0x231   :  { %v787_v58 = vadd.f32 %v1552_v23, %v786_v56 }
 0x233   :  { %v807_v52 = vadd.f32 %v787_v58, %v1346_v62 }
 0x235   :  { %823 = vst.msk [vmem:[#allocation2 + $0x68] sm:$0xff] %vm126_vm0, %v807_v52 }
 0x238   :  { %v789_v59 = vpop.f32.mrf.mxu3 }
 0x239   :  { %v790_v63 = vadd.f32 %v1552_v23, %v789_v59 }
 0x23b   :  { %v808_v53 = vadd.f32 %v790_v63, %v1362_v10 }
 0x23d   :  { %824 = vst.msk [vmem:[#allocation2 + $0x70] sm:$0xff] %vm126_vm0, %v808_v53 }
 0x240   :  { %v791_v61 = vpop.f32.mrf.mxu3 }
 0x241   :  { %v792_v0 = vadd.f32 %v1552_v23, %v791_v61 }
 0x243   :  { %v809_v62 = vadd.f32 %v792_v0, %v1364_v11 }
 0x245   :  { %825 = vst.msk [vmem:[#allocation2 + $0x78] sm:$0xff] %vm126_vm0, %v809_v62 }
 0x246   :  { %838 = dma.vmem_to_hbm [thread:$0]  %s831_s22, 2048, %s833_s1, [#allocation3], %s1061_s24, %s1061_s24, %s1062_s5  }
 0x247   :  { %1058 = dma.done.wait [#allocation3], 2048  }
 0x248   :  { %1059 = vsyncadd [#allocation3], 4294965248 }
 0x249   :  { %843 = vsyncpa [#allocation3], 1 }

// kernel: ablock_forward.3
= control target key start
LH: loop header
LB: loop body
LE: loop exit
PB: predicated region body
PF: predicated region fallthrough
CT: control target
= control target key end

     0   :  { %10 = vsyncpa [#allocation3], 0  ;;  %s4650_s0 = inlined_call_operand.hbm [shape: f32[2,64,64], index: 0, kind: input, shape index: {}]   ;;  %s4651_s1 = inlined_call_operand.hbm [shape: bf16[64,192], index: 1, kind: input, shape index: {}]   ;;  %s4652_s2 = inlined_call_operand.vmem [shape: f32[1,192], index: 2, kind: input, shape index: {}]   ;;  %s4653_s3 = inlined_call_operand.vmem [shape: f32[2,64,64], index: 3, kind: output, shape index: {0}]   ;;  %s4654_s4 = inlined_call_operand.vmem [shape: f32[2,64,64], index: 4, kind: output, shape index: {1}]  }
   0x1   :  { %12 = vsyncpa [#allocation3 + $0x1], 0 }
   0x2   :  { %13 = vsyncpa [#allocation5], 0  ;;  %s3114_s15 = smov 0   ;;  %s3116_s16 = smov 0  }
   0x3   :  { %s3118_s17 = smov 0   ;;  %s3120_s18 = smov 0  }
   0x4 LB: > { %s3133_s19 = sadd.s32 4294967295, %s3069_s18   ;;  %p39_p0 = scmp.ne.s32.totalorder %s3061_s16, %s3057_s15  ;;  %s3069_s18 = sphi %s3120_s18, %s4677_s18   ;;  %s3065_s17 = sphi %s3118_s17, %s4676_s17   ;;  %s3061_s16 = sphi %s3116_s16, %s4675_s16   ;;  %s3057_s15 = sphi %s3114_s15, %s4674_s15  }
   0x5   : > { %p40_p1 = scmp.eq.s32.totalorder %s3133_s19, 0  ;;  %p2510_p2 = scmp.ge.s32.totalorder %s3069_s18, 1 }
   0x6   : > { %p144_p3 = scmp.lt.s32.totalorder %s3069_s18, 3  ;;  %s155_s23 = sshll.u32 %s4651_s1, 4  ;;  %s156_s23 = int_to_ptr.hbm [resolvable:$true] %s155_s23 }
   0x7   : > { %p3141_p4 = por %p40_p1, %p39_p0  ;;  %s3071_s25 = smov [#allocation4]  }
   0x8   : > { %p3148_p5 = pnand %p2510_p2, %p144_p3  ;;  %s157_s26 = sshll.u32 %s3071_s25, 4  ;;  %s158_s26 = int_to_ptr.vmem [resolvable:$true] %s157_s26 }
   0x9   : > { %s3157_s27 = sadd.s32 1, %s3069_s18   ;;  %s3072_s28 = smov 128  }
   0xa   : > { %p2654_p6 = pneg %p3148_p5  ;;  %s3073_s29 = smov 8  }
   0xb   : > { %s23_s30 = ssub.s32 %s3069_s18, %s3157_s27  ;;  %s26_s5 = sadd.s32 1, %s3065_s17 }
   0xc   : > { %p2655_p7 = pnand %p2654_p6, %p40_p1  ;;  %p24_p8 = scmp.eq.s32.totalorder %s23_s30, 0 }
   0xd   : > { %p33_p9 = scmp.ne.s32.totalorder %s3065_s17, %s3061_s16  ;;  %p34_p10 = scmp.eq.s32.totalorder %s3069_s18, 0 }
   0xe   : > { %2657 = dma.hbm_to_vmem [thread:$0]  (!%p2655_p7), %s156_s23, 1024, %s158_s26, [#allocation5], %s3072_s28, %s3072_s28, %s3073_s29  }
   0xf   : > { %p2663_p11 = scmp.lt.s32.totalorder %s3069_s18, 2  ;;  %p35_p12 = por %p34_p10, %p33_p9 }
  0x10   : > { %s3170_s6 = scalar_select %p24_p8, %s3065_s17, %s26_s5  }
  0x11   : > { %s174_s7 = sand.u32 1, %s3065_s17   ;;  %s2629_s9 = sshll.u32 %s3069_s18, 6 }
  0x12   : > { %s2513_s8 = sshll.u32 %s174_s7, 6  ;;  %s183_s12 = scalar_lea.hbm %s4650_s0, %s2629_s9 }
  0x13   : > { %s178_s13 = scalar_lea.vmem [#allocation2], %s2513_s8  ;;  %s184_s15 = sshll.u32 %s183_s12, 4  ;;  %s185_s15 = int_to_ptr.hbm [resolvable:$true] %s184_s15 }
  0x14   : > { %s186_s14 = sshll.u32 %s178_s13, 4  ;;  %p3177_p13 = pnand %p2663_p11, %p35_p12  ;;  %s187_s14 = int_to_ptr.vmem [resolvable:$true] %s186_s14 }
  0x15   : > { %s175_s22 = scalar_lea.sflag [#allocation3], %s174_s7  ;;  %s3001_s23 = sshra.s32 %s185_s15, 4  ;;  %s3002_s23 = int_to_ptr.hbm [resolvable:$true] %s3001_s23 }
  0x16   : > { %s3003_s25 = scalar_lea.hbm %s3002_s23, 64  ;;  %p3005_p2 = pneg %p3177_p13 }
  0x17   : > { %p3004_p0 = scmp.ne.s32.totalorder %s3002_s23, %s3003_s25  ;;  %s3008_s30 = scalar_lea.hbm %s4650_s0, 128 }
  0x18   : > { %p3009_p7 = scmp.lt.s32.totalorder %s3002_s23, %s4650_s0  ;;  %p3010_p8 = scmp.lt.s32.totalorder %s3008_s30, %s3003_s25 }
  0x19   : > { %p3006_p3 = pnand %p3005_p2, %p3004_p0 }
  0x1a   : > { %p3011_p9 = por %p3010_p8, %p3009_p7 }
  0x1b   : > { %p3007_p6 = pneg %p3006_p3 }
  0x1d   : > { %p3012_p10 = pnand %p3011_p9, %p3007_p6 }
  0x1f   : > { %3015 = shalt.err (!%p3012_p10)
}
  0x20   : > { %2661 = dma.hbm_to_vmem [thread:$0]  (!%p3177_p13), %s185_s15, 1024, %s187_s14, %s175_s22, %s3072_s28, %s3072_s28, %s3073_s29  }
  0x21   : > { %198 = sbr.rel (%p3148_p5) target bundleno = 1798 (0x706), region = 32 }
  0x26   : > { %s200_s7 = sand.u32 1, %s3061_s16  }
  0x27   : > { %s2517_s9 = sshll.u32 %s200_s7, 6  ;;  %s201_s10 = scalar_lea.sflag [#allocation3], %s200_s7 }
  0x28   : > { %s3197_s11 = scalar_lea.vmem [#allocation2], %s2517_s9 }
  0x29   : > { %3048 = dma.done.wait (%p3141_p4), %s201_s10, 1024  }
  0x2a   : > { %3050 = vsyncadd (%p3141_p4), %s201_s10, 4294966272 }
  0x2b   : > { %3052 = dma.done.wait (%p40_p1), [#allocation5], 1024  }
  0x2c   : > { %3054 = vsyncadd (%p40_p1), [#allocation5], 4294966272  ;;  %v2549_v0 = vld [vmem:[#allocation4 + $0x30] sm:$0xf]  ;;  %v2639_v1 = vld [vmem:[#allocation4 + $0x34] sm:$0xf0] }
  0x2d   : > { %v2638_v2 = vld [vmem:[#allocation4 + $0x34] sm:$0xf]  ;;  %v2550_v3 = vor.u32 %v2639_v1, %v2549_v0  ;;  %v2551_v4 = vld [vmem:[#allocation4 + $0x38] sm:$0xf0]  ;;  %v2541_v5 = vld [vmem:[#allocation4 + $0x20] sm:$0xf] }
  0x2e   : > { %v2637_v6 = vld [vmem:[#allocation4 + $0x24] sm:$0xf0]  ;;  %v2554_v7 = vor.u32 %v2638_v2, %v2551_v4  ;;  %v2636_v8 = vld [vmem:[#allocation4 + $0x24] sm:$0xf]  ;;  %v2543_v9 = vld [vmem:[#allocation4 + $0x28] sm:$0xf0] }
  0x2f   : > { %334 = vmatpush.bf16.msra.mxu0 %v2550_v3  ;;  %v2542_v10 = vor.u32 %v2637_v6, %v2541_v5  ;;  %2640 = vmatpush.bf16.msra.mxu3 %v2550_v3  ;;  %v2546_v11 = vor.u32 %v2636_v8, %v2543_v9  ;;  %v2533_v12 = vld [vmem:[#allocation4 + $0x10] sm:$0xf]  ;;  %v2635_v13 = vld [vmem:[#allocation4 + $0x14] sm:$0xf0]  ;;  %v2634_v14 = vld [vmem:[#allocation4 + $0x14] sm:$0xf] }
  0x30   : > { %363 = vmatpush.bf16.msra.mxu1 %v2554_v7  ;;  %2644 = vmatpush.bf16.msra.mxu2 %v2554_v7  ;;  %v2535_v15 = vld [vmem:[#allocation4 + $0x18] sm:$0xf0]  ;;  %v2534_v16 = vor.u32 %v2635_v13, %v2533_v12  ;;  %v2525_v18 = vld [vmem:[#allocation4] sm:$0xf]  ;;  %v2633_v19 = vld [vmem:[#allocation4 + $0x4] sm:$0xf0] }
  0x31   : > { %v2538_v17 = vor.u32 %v2634_v14, %v2535_v15  ;;  %v2632_v20 = vld [vmem:[#allocation4 + $0x4] sm:$0xf]  ;;  %v2527_v21 = vld [vmem:[#allocation4 + $0x8] sm:$0xf0]  ;;  %v2526_v22 = vor.u32 %v2633_v19, %v2525_v18  ;;  %vm317_vm0 = vcmask 523264   ;;  %v257_v30 = vld [vmem:[%s3197_s11 + $0x30] sm:$0xff] }
  0x32   : > { %v251_v23 = vld [vmem:[%s3197_s11] sm:$0xff]  ;;  %v252_v24 = vld [vmem:[%s3197_s11 + $0x8] sm:$0xff]  ;;  %v2530_v25 = vor.u32 %v2632_v20, %v2527_v21  ;;  %v258_v31 = vld [vmem:[%s3197_s11 + $0x38] sm:$0xff]  ;;  %p240_p1 = scmp.lt.s32.totalorder %s3133_s19, 1  ;;  %s3074_s14 = smov 56   ;;  %vm404_vm1 = vcmask 64512  }
  0x33   : > { %335 = vmatpush.bf16.msra.mxu0 %v2542_v10  ;;  %2641 = vmatpush.bf16.msra.mxu3 %v2542_v10  ;;  %v255_v26 = vld [vmem:[%s3197_s11 + $0x20] sm:$0xff]  ;;  %v256_v27 = vld [vmem:[%s3197_s11 + $0x28] sm:$0xff]  ;;  %v259_v28 = vpack.c.bf16 %v252_v24, %v251_v23  ;;  %v253_v32 = vld [vmem:[%s3197_s11 + $0x10] sm:$0xff]  ;;  %v262_v34 = vpack.c.bf16 %v258_v31, %v257_v30  ;;  %s3075_s15 = smov 64   ;;  %s3076_s21 = smov 120   ;;  %vm2329_vm2 = vcmask 130048  }
  0x34   : > { %364 = vmatpush.bf16.msra.mxu1 %v2546_v11  ;;  %2645 = vmatpush.bf16.msra.mxu2 %v2546_v11  ;;  %v261_v29 = vpack.c.bf16 %v256_v27, %v255_v26  ;;  %v254_v33 = vld [vmem:[%s3197_s11 + $0x18] sm:$0xff]  ;;  %s4679_s19 = smov (!%p240_p1, %s3133_s19), 1  ;;  %v271_v36 = vld [vmem:[%s4652_s2] sm:$0x3]  ;;  %s3077_s22 = smov 48   ;;  %vm2338_vm3 = vcmask 195584  }
  0x35   : > { %v260_v35 = vpack.c.bf16 %v254_v33, %v253_v32  ;;  %s2630_s28 = sshll.u32 %s4679_s19, 6  ;;  %v274_v37 = vperm.slane %v271_v36, 1  ;;  %v3240_v41 = vperm.slane %v271_v36, 0  ;;  %s3078_s23 = smov 96   ;;  %vm2347_vm4 = vcmask 261120  }
  0x36   : > { %s3236_s13 = scalar_lea.vmem %s4654_s4, %s2630_s28  ;;  %s3079_s25 = smov 104   ;;  %vm2356_vm5 = vcmask 326656   ;;  %vm2365_vm6 = vcmask 392192   ;;  %vm2374_vm7 = vcmask 457728  }
  0x37   : > { %336 = vmatpush.bf16.msra.mxu0 %v2534_v16  ;;  %2642 = vmatpush.bf16.msra.mxu3 %v2534_v16  ;;  %s3080_s18 = smov 112   ;;  %s3081_s26 = smov 40  }
  0x38   : > { %365 = vmatpush.bf16.msra.mxu1 %v2538_v17  ;;  %2646 = vmatpush.bf16.msra.mxu2 %v2538_v17  ;;  %s3082_s30 = smov 24   ;;  %s3083_s5 = smov 32  }
  0x39   : > { %s3084_s8 = smov 8   ;;  %s3085_s7 = smov 88  }
  0x3a   : > { %s3086_s9 = smov 80   ;;  %s3087_s10 = smov 72  }
  0x3b   : > { %337 = vmatpush.bf16.msra.mxu0 %v2526_v22  ;;  %2643 = vmatpush.bf16.msra.mxu3 %v2526_v22  ;;  %s3088_s11 = smov 16   ;;  %s4557_s29 = scalar_lea.vmem %s4653_s3, %s2630_s28 }
  0x3c   : > { %366 = vmatpush.bf16.msra.mxu1 %v2530_v25  ;;  %2647 = vmatpush.bf16.msra.mxu2 %v2530_v25 }
  0x3e   : > { %2555 = vmatmul.msk.bf16.vlgmr.msra.gmra.mxu0 %vm317_vm0, %v259_v28  ;;  %2557 = vmatmul.msk.bf16.vlgmr.msra.gmra.mxu3 %vm317_vm0, %v261_v29 }
  0x3f   : > { %2559 = vmatmul.msk.bf16.vlgmr.msra.gmra.mxu1 %vm317_vm0, %v259_v28  ;;  %2561 = vmatmul.msk.bf16.vlgmr.msra.gmra.mxu2 %vm317_vm0, %v261_v29 }
  0x4e   : > { %2556 = vmatmul.msk.bf16.gmra.mxu0 %vm317_vm0, %v260_v35  ;;  %2558 = vmatmul.msk.bf16.gmra.mxu3 %vm317_vm0, %v262_v34 }
  0x4f   : > { %2562 = vmatmul.msk.bf16.gmra.mxu2 %vm317_vm0, %v262_v34  ;;  %2560 = vmatmul.msk.bf16.gmra.mxu1 %vm317_vm0, %v260_v35 }
  0xbb   : > { %v339_v38 = vpop.f32.mrf.mxu0 }
  0xbc   : > { %v368_v39 = vpop.f32.mrf.mxu1  ;;  %v340_v45 = vadd.f32 %v339_v38, %v3240_v41 }
  0xbd   : > { %v369_v40 = vadd.f32 %v368_v39, %v274_v37 }
  0xbf   : > { %2391 = vst.msk [vmem:[%s3236_s13] sm:$0xff] %vm317_vm0, %v369_v40 }
  0xc1   : > { %v349_v48 = vpop.f32.mrf.mxu3 }
  0xc2   : > { %v378_v42 = vpop.f32.mrf.mxu2  ;;  %v350_v57 = vadd.f32 %v349_v48, %v3240_v41 }
  0xc3   : > { %v379_v43 = vadd.f32 %v378_v42, %v274_v37  ;;  %v341_v44 = vpop.f32.mrf.mxu0 }
  0xc4   : > { %v342_v46 = vadd.f32 %v341_v44, %v3240_v41  ;;  %v370_v47 = vpop.f32.mrf.mxu1 }
  0xc5   : > { %2395 = vst.msk [vmem:[%s3236_s13 + $0x20] sm:$0xff] %vm317_vm0, %v379_v43  ;;  %v371_v49 = vadd.f32 %v370_v47, %v274_v37 }
  0xc6   : > { %v3246_v50 = vpack.c.bf16 %v342_v46, %v340_v45 }
  0xc7   : > { %v3248_v51 = vpack.c.bf16 %v371_v49, %v369_v40  ;;  %2392 = vst.msk [vmem:[%s3236_s13 + $0x8] sm:$0xff] %vm317_vm0, %v371_v49 }
  0xc8   : > { %603 = vrot.lane.b32.xlu1 %v3246_v50, %s3074_s14  ;;  %396 = vrot.lane.b32.xlu0 %v3246_v50, %s3075_s15 }
  0xc9   : > { %744 = vrot.lane.b32.xlu2 %v3248_v51, %s3076_s21  ;;  %v351_v56 = vpop.f32.mrf.mxu3 }
  0xca   : > { %v380_v52 = vpop.f32.mrf.mxu2  ;;  %v352_v58 = vadd.f32 %v351_v56, %v3240_v41 }
  0xcb   : > { %v381_v53 = vadd.f32 %v380_v52, %v274_v37  ;;  %v344_v5 = vpop.f32.mrf.mxu0 }
  0xcc   : > { %v373_v54 = vpop.f32.mrf.mxu1  ;;  %v3272_v62 = vpack.c.bf16 %v352_v58, %v350_v57  ;;  %v345_v7 = vadd.f32 %v344_v5, %v3240_v41 }
  0xcd   : > { %2396 = vst.msk [vmem:[%s3236_s13 + $0x28] sm:$0xff] %vm317_vm0, %v381_v53  ;;  %v374_v55 = vadd.f32 %v373_v54, %v274_v37  ;;  %v3286_v3 = vpack.c.bf16 %v381_v53, %v379_v43 }
  0xcf   : > { %2393 = vst.msk [vmem:[%s3236_s13 + $0x10] sm:$0xff] %vm317_vm0, %v374_v55 }
  0xd0   : > { %821 = vrot.lane.b32.xlu1 %v3246_v50, %s3077_s22  ;;  %595 = vrot.lane.b32.xlu0 %v3246_v50, %s3076_s21 }
  0xd1   : > { %1241 = vrot.lane.b32.xlu2 %v3246_v50, %s3078_s23  ;;  %v354_v10 = vpop.f32.mrf.mxu3 }
  0xd2   : > { %v383_v59 = vpop.f32.mrf.mxu2  ;;  %v355_v12 = vadd.f32 %v354_v10, %v3240_v41 }
  0xd3   : > { %v384_v60 = vadd.f32 %v383_v59, %v274_v37  ;;  %v346_v6 = vpop.f32.mrf.mxu0 }
  0xd4   : > { %v375_v61 = vpop.f32.mrf.mxu1  ;;  %v347_v8 = vadd.f32 %v346_v6, %v3240_v41 }
  0xd5   : > { %2397 = vst.msk [vmem:[%s3236_s13 + $0x30] sm:$0xff] %vm317_vm0, %v384_v60  ;;  %v376_v63 = vadd.f32 %v375_v61, %v274_v37 }
  0xd6   : > { %v3314_v9 = vpack.c.bf16 %v347_v8, %v345_v7 }
  0xd7   : > { %2394 = vst.msk [vmem:[%s3236_s13 + $0x18] sm:$0xff] %vm317_vm0, %v376_v63  ;;  %v3295_v4 = vpack.c.bf16 %v376_v63, %v374_v55 }
  0xd8   : > { %1027 = vrot.lane.b32.xlu1 %v3246_v50, %s3079_s25  ;;  %813 = vrot.lane.b32.xlu0 %v3246_v50, %s3080_s18 }
  0xd9   : > { %599 = vrot.lane.b32.xlu2 %v3272_v62, %s3076_s21  ;;  %v356_v11 = vpop.f32.mrf.mxu3 }
  0xda   : > { %v385_v0 = vpop.f32.mrf.mxu2  ;;  %v357_v13 = vadd.f32 %v356_v11, %v3240_v41 }
  0xdb   : > { %v386_v1 = vadd.f32 %v385_v0, %v274_v37 }
  0xdc   : > { %v3348_v14 = vpack.c.bf16 %v357_v13, %v355_v12 }
  0xdd   : > { %v3282_v2 = vpack.c.bf16 %v386_v1, %v384_v60  ;;  %2398 = vst.msk [vmem:[%s3236_s13 + $0x38] sm:$0xff] %vm317_vm0, %v386_v1 }
  0xdf   : > { %554 = vmatpush.bf16.msrb.mxu3 %v3282_v2 }
  0xe0   : > { %1172 = vrot.lane.b32.xlu1 %v3248_v51, %s3079_s25  ;;  %958 = vrot.lane.b32.xlu0 %v3248_v51, %s3080_s18 }
  0xe1   : > { %607 = vrot.lane.b32.xlu2 %v3272_v62, %s3074_s14 }
  0xe3   : > { %555 = vmatpush.bf16.msrb.mxu3 %v3286_v3 }
  0xe7   : > { %556 = vmatpush.bf16.msrb.mxu3 %v3295_v4 }
  0xe8   : > { %400 = vrot.lane.b32.xlu1 %v3272_v62, %s3075_s15  ;;  %1035 = vrot.lane.b32.xlu0 %v3246_v50, %s3081_s26 }
  0xe9   : > { %817 = vrot.lane.b32.xlu2 %v3272_v62, %s3080_s18 }
  0xeb   : > { %557 = vmatpush.bf16.msrb.mxu3 %v3248_v51 }
  0xf0   : > { %1039 = vrot.lane.b32.xlu1 %v3272_v62, %s3081_s26  ;;  %748 = vrot.lane.b32.xlu0 %v3286_v3, %s3076_s21 }
  0xf1   : > { %962 = vrot.lane.b32.xlu2 %v3286_v3, %s3080_s18 }
  0xf8   : > { %597 = vrot.lane.b32.xlu1 %v3314_v9, %s3076_s21  ;;  %825 = vrot.lane.b32.xlu0 %v3272_v62, %s3077_s22 }
  0xf9   : > { %1031 = vrot.lane.b32.xlu2 %v3272_v62, %s3079_s25 }
 0x100   : > { %746 = vrot.lane.b32.xlu1 %v3295_v4, %s3076_s21  ;;  %1176 = vrot.lane.b32.xlu0 %v3286_v3, %s3079_s25 }
 0x101   : > { %1245 = vrot.lane.b32.xlu2 %v3272_v62, %s3078_s23 }
 0x108   : > { %815 = vrot.lane.b32.xlu1 %v3314_v9, %s3080_s18  ;;  %398 = vrot.lane.b32.xlu0 %v3314_v9, %s3075_s15 }
 0x109   : > { %823 = vrot.lane.b32.xlu2 %v3314_v9, %s3077_s22 }
 0x110   : > { %960 = vrot.lane.b32.xlu1 %v3295_v4, %s3080_s18  ;;  %605 = vrot.lane.b32.xlu0 %v3314_v9, %s3074_s14 }
 0x111   : > { %1037 = vrot.lane.b32.xlu2 %v3314_v9, %s3081_s26 }
 0x118   : > { %1243 = vrot.lane.b32.xlu1 %v3314_v9, %s3078_s23  ;;  %1029 = vrot.lane.b32.xlu0 %v3314_v9, %s3079_s25 }
 0x119   : > { %1174 = vrot.lane.b32.xlu2 %v3295_v4, %s3079_s25 }
 0x120   : > { %402 = vrot.lane.b32.xlu1 %v3348_v14, %s3075_s15  ;;  %601 = vrot.lane.b32.xlu0 %v3348_v14, %s3076_s21 }
 0x121   : > { %750 = vrot.lane.b32.xlu2 %v3282_v2, %s3076_s21 }
 0x123   : > { %v3356_v15 = vpop.permute.xlu2 %744 }
 0x128   : > { %609 = vrot.lane.b32.xlu1 %v3348_v14, %s3074_s14  ;;  %819 = vrot.lane.b32.xlu0 %v3348_v14, %s3080_s18 }
 0x129   : > { %1467 = vrot.lane.b32.xlu2 %v3272_v62, %s3082_s30 }
 0x12b   : > { %v3364_v16 = vpop.permute.xlu2 %1241 }
 0x130   : > { %827 = vrot.lane.b32.xlu1 %v3348_v14, %s3077_s22  ;;  %964 = vrot.lane.b32.xlu0 %v3282_v2, %s3080_s18 }
 0x131   : > { %1463 = vrot.lane.b32.xlu2 %v3246_v50, %s3082_s30 }
 0x133   : > { %v3372_v17 = vpop.permute.xlu2 %599 }
 0x138   : > { %1033 = vrot.lane.b32.xlu1 %v3348_v14, %s3079_s25  ;;  %1041 = vrot.lane.b32.xlu0 %v3348_v14, %s3081_s26 }
 0x139   : > { %1469 = vrot.lane.b32.xlu2 %v3348_v14, %s3082_s30 }
 0x13a   : > { %v3380_v18 = vpop.permute.xlu1 %603  ;;  %v3382_v19 = vpop.permute.xlu0 %396 }
 0x13b   : > { %v3384_v20 = vpop.permute.xlu2 %607  ;;  %v418_v6 = vsel %vm404_vm1, %v3382_v19, 0  ;;  %v624_v13 = vsel %vm404_vm1, %v3380_v18, 0 }
 0x13c   : > { %v630_v1 = vsel %vm404_vm1, %v3384_v20, 0 }
 0x140   : > { %1253 = vrot.lane.b32.xlu1 %v3272_v62, %s3083_s5  ;;  %1178 = vrot.lane.b32.xlu0 %v3282_v2, %s3079_s25 }
 0x141   : > { %1895 = vrot.lane.b32.xlu2 %v3272_v62, %s3084_s8 }
 0x142   : > { %v3392_v21 = vpop.permute.xlu1 %821  ;;  %v3394_v22 = vpop.permute.xlu0 %595 }
 0x143   : > { %v3396_v23 = vpop.permute.xlu2 %817 }
 0x148   : > { %1251 = vrot.lane.b32.xlu1 %v3314_v9, %s3083_s5  ;;  %1255 = vrot.lane.b32.xlu0 %v3348_v14, %s3083_s5 }
 0x149   : > { %1392 = vrot.lane.b32.xlu2 %v3282_v2, %s3078_s23 }
 0x14a   : > { %v3404_v24 = vpop.permute.xlu1 %1027  ;;  %v3406_v25 = vpop.permute.xlu0 %813 }
 0x14b   : > { %v3408_v26 = vpop.permute.xlu2 %962 }
 0x150   : > { %1459 = vrot.lane.b32.xlu1 %v3272_v62, %s3085_s7  ;;  %1247 = vrot.lane.b32.xlu0 %v3348_v14, %s3078_s23 }
 0x151   : > { %1388 = vrot.lane.b32.xlu2 %v3295_v4, %s3078_s23 }
 0x152   : > { %v3416_v27 = vpop.permute.xlu1 %1172  ;;  %v3418_v28 = vpop.permute.xlu0 %958 }
 0x153   : > { %v3420_v29 = vpop.permute.xlu2 %1031 }
 0x158   : > { %1461 = vrot.lane.b32.xlu1 %v3348_v14, %s3085_s7  ;;  %1249 = vrot.lane.b32.xlu0 %v3246_v50, %s3083_s5 }
 0x159   : > { %1604 = vrot.lane.b32.xlu2 %v3286_v3, %s3085_s7 }
 0x15a   : > { %v401_v30 = vpop.permute.xlu1 %400  ;;  %v3428_v31 = vpop.permute.xlu0 %1035 }
 0x15b   : > { %v3430_v32 = vpop.permute.xlu2 %1245  ;;  %v424_v58 = vsel %vm404_vm1, %v401_v30, 0 }
 0x160   : > { %1669 = vrot.lane.b32.xlu1 %v3246_v50, %s3086_s9  ;;  %1465 = vrot.lane.b32.xlu0 %v3314_v9, %s3082_s30 }
 0x161   : > { %1386 = vrot.lane.b32.xlu2 %v3248_v51, %s3078_s23 }
 0x162   : > { %v3438_v33 = vpop.permute.xlu1 %1039  ;;  %v749_v34 = vpop.permute.xlu0 %748 }
 0x163   : > { %v3440_v35 = vpop.permute.xlu2 %823  ;;  %v1062_v30 = vsel %vm404_vm1, %v3438_v33, 0  ;;  %v1056_v33 = vsel %vm404_vm1, %v3428_v31, 0 }
 0x168   : > { %1883 = vrot.lane.b32.xlu1 %v3246_v50, %s3087_s10  ;;  %1455 = vrot.lane.b32.xlu0 %v3246_v50, %s3085_s7 }
 0x169   : > { %1602 = vrot.lane.b32.xlu2 %v3295_v4, %s3085_s7 }
 0x16a   : > { %v3448_v36 = vpop.permute.xlu1 %597  ;;  %v826_v37 = vpop.permute.xlu0 %825 }
 0x16b   : > { %v3450_v38 = vpop.permute.xlu2 %1037  ;;  %v848_v8 = vsel %vm404_vm1, %v826_v37, 0 }
 0x170   : > { %1885 = vrot.lane.b32.xlu1 %v3314_v9, %s3087_s10  ;;  %1457 = vrot.lane.b32.xlu0 %v3314_v9, %s3085_s7 }
 0x171   : > { %1600 = vrot.lane.b32.xlu2 %v3248_v51, %s3085_s7 }
 0x172   : > { %v747_v39 = vpop.permute.xlu1 %746  ;;  %v3458_v40 = vpop.permute.xlu0 %1176 }
 0x173   : > { %v3460_v41 = vpop.permute.xlu2 %1174 }
 0x178   : > { %1390 = vrot.lane.b32.xlu1 %v3286_v3, %s3078_s23  ;;  %1683 = vrot.lane.b32.xlu0 %v3348_v14, %s3088_s11 }
 0x179   : > { %1818 = vrot.lane.b32.xlu2 %v3286_v3, %s3086_s9 }
 0x17a   : > { %v3468_v42 = vpop.permute.xlu1 %815  ;;  %v399_v43 = vpop.permute.xlu0 %398 }
 0x17b   : > { %v751_v44 = vpop.permute.xlu2 %750  ;;  %v421_v0 = vsel %vm404_vm1, %v399_v43, 0 }
 0x17c   : > { %772 = vmatpush.bf16.msrb.mxu1 %v751_v44 }
 0x180   : > { %773 = vmatpush.bf16.msrb.mxu1 %v749_v34  ;;  %1820 = vrot.lane.b32.xlu1 %v3282_v2, %s3086_s9 }
 0x181   : > { %2032 = vrot.lane.b32.xlu2 %v3286_v3, %s3087_s10  ;;  %1681 = vrot.lane.b32.xlu0 %v3272_v62, %s3088_s11 }
 0x182   : > { %v961_v45 = vpop.permute.xlu1 %960  ;;  %v606_v46 = vpop.permute.xlu0 %605 }
 0x183   : > { %v3487_v49 = vpop.permute.xlu2 %1467  ;;  %v627_v7 = vsel %vm404_vm1, %v606_v46, 0 }
 0x184   : > { %774 = vmatpush.bf16.msrb.mxu1 %v747_v39 }
 0x188   : > { %775 = vmatpush.bf16.msrb.mxu1 %v3356_v15  ;;  %1816 = vrot.lane.b32.xlu1 %v3295_v4, %s3086_s9  ;;  %v845_v15 = vsel %vm404_vm1, %v3440_v35, 0 }
 0x189   : > { %1814 = vrot.lane.b32.xlu2 %v3248_v51, %s3086_s9  ;;  %1897 = vrot.lane.b32.xlu0 %v3348_v14, %s3084_s8 }
 0x18a   : > { %v3483_v47 = vpop.permute.xlu1 %1243  ;;  %v3485_v48 = vpop.permute.xlu0 %1029 }
 0x18b   : > { %v3500_v57 = vpop.permute.xlu2 %1463 }
 0x18c   : > { %v1484_v43 = vsel %vm404_vm1, %v3500_v57, 0 }
 0x191   : > { %2030 = vrot.lane.b32.xlu2 %v3295_v4, %s3087_s10  ;;  %1679 = vrot.lane.b32.xlu0 %v3314_v9, %s3088_s11 }
 0x192   : > { %v403_v52 = vpop.permute.xlu1 %402  ;;  %v3493_v53 = vpop.permute.xlu0 %601 }
 0x193   : > { %v427_v54 = vsel %vm404_vm1, %v403_v52, 0  ;;  %v1470_v3 = vpop.permute.xlu2 %1469 }
 0x194   : > { %433 = vmatpush.bf16.xpose.msrb.mxu2 %v427_v54  ;;  %v1493_v35 = vsel %vm404_vm1, %v1470_v3, 0 }
 0x199   : > { %1677 = vrot.lane.b32.xlu0 %v3246_v50, %s3088_s11 }
 0x19a   : > { %v610_v55 = vpop.permute.xlu1 %609  ;;  %v3498_v56 = vpop.permute.xlu0 %819 }
 0x19b   : > { %v633_v59 = vsel %vm404_vm1, %v610_v55, 0  ;;  %v3518_v10 = vpop.permute.xlu2 %1895 }
 0x19c   : > { %434 = vmatpush.bf16.xpose.msrb.mxu2 %v424_v58  ;;  %639 = vmatpush.bf16.xpose.msrb.mxu0 %v633_v59  ;;  %v1918_v54 = vsel %vm404_vm1, %v3518_v10, 0 }
 0x1a1   : > { %1893 = vrot.lane.b32.xlu0 %v3314_v9, %s3084_s8 }
 0x1a2   : > { %v828_v60 = vpop.permute.xlu1 %827  ;;  %v965_v61 = vpop.permute.xlu0 %964 }
 0x1a3   : > { %v851_v63 = vsel %vm404_vm1, %v828_v60, 0  ;;  %v1393_v20 = vpop.permute.xlu2 %1392 }
 0x1a4   : > { %435 = vmatpush.bf16.xpose.msrb.mxu2 %v421_v0  ;;  %640 = vmatpush.bf16.xpose.msrb.mxu0 %v630_v1 }
 0x1a5   : > { %857 = vmatpush.bf16.xpose.msra.mxu3 %v851_v63 }
 0x1a9   : > { %1891 = vrot.lane.b32.xlu0 %v3246_v50, %s3084_s8 }
 0x1aa   : > { %v3512_v4 = vpop.permute.xlu1 %1033  ;;  %v1042_v5 = vpop.permute.xlu0 %1041 }
 0x1ab   : > { %v1065_v19 = vsel %vm404_vm1, %v1042_v5, 0  ;;  %v1389_v39 = vpop.permute.xlu2 %1388 }
 0x1ac   : > { %436 = vmatpush.bf16.xpose.msrb.mxu2 %v418_v6  ;;  %641 = vmatpush.bf16.xpose.msrb.mxu0 %v627_v7 }
 0x1ad   : > { %858 = vmatpush.bf16.xpose.msra.mxu3 %v848_v8 }
 0x1b1   : > { %1671 = vrot.lane.b32.xlu0 %v3314_v9, %s3086_s9 }
 0x1b2   : > { %v3523_v11 = vpop.permute.xlu1 %1253  ;;  %v1179_v12 = vpop.permute.xlu0 %1178 }
 0x1b3   : > { %2563 = vmatmul.msk.bf16.vlgmr.msrb.gmra.mxu2 %vm404_vm1, %v3246_v50  ;;  %1200 = vmatpush.bf16.msra.mxu1 %v1179_v12  ;;  %v3592_v44 = vpop.permute.xlu2 %1604 }
 0x1b4   : > { %986 = vmatpush.bf16.msra.mxu2 %v965_v61  ;;  %642 = vmatpush.bf16.xpose.msrb.mxu0 %v624_v13 }
 0x1b5   : > { %859 = vmatpush.bf16.xpose.msra.mxu3 %v845_v15 }
 0x1b7   : > { %1201 = vmatpush.bf16.msra.mxu1 %v3458_v40 }
 0x1b8   : > { %987 = vmatpush.bf16.msra.mxu2 %v3408_v26  ;;  %v842_v26 = vsel %vm404_vm1, %v3392_v21, 0  ;;  %v1059_v21 = vsel %vm404_vm1, %v3450_v38, 0  ;;  %v1490_v38 = vsel %vm404_vm1, %v3487_v49, 0 }
 0x1b9   : > { %1673 = vrot.lane.b32.xlu0 %v3272_v62, %s3086_s9 }
 0x1ba   : > { %v3536_v50 = vpop.permute.xlu1 %1251  ;;  %v3538_v18 = vpop.permute.xlu0 %1255 }
 0x1bb   : > { %2571 = vmatmul.msk.bf16.vlgmr.msrb.gmra.mxu0 %vm404_vm1, %v3394_v22  ;;  %1202 = vmatpush.bf16.msra.mxu1 %v3460_v41 }
 0x1bc   : > { %988 = vmatpush.bf16.msra.mxu2 %v961_v45  ;;  %1071 = vmatpush.bf16.xpose.msra.mxu0 %v1065_v19 }
 0x1bd   : > { %860 = vmatpush.bf16.xpose.msra.mxu3 %v842_v26 }
 0x1bf   : > { %1203 = vmatpush.bf16.msra.mxu1 %v3416_v27 }
 0x1c0   : > { %989 = vmatpush.bf16.msra.mxu2 %v3418_v28 }
 0x1c1   : > { %1887 = vrot.lane.b32.xlu0 %v3272_v62, %s3087_s10 }
 0x1c2   : > { %v3550_v28 = vpop.permute.xlu1 %1459  ;;  %v3552_v34 = vpop.permute.xlu0 %1247 }
 0x1c3   : > { %2564 = vmatmul.msk.bf16.gmra.mxu2 %vm404_vm1, %v3314_v9 }
 0x1c4   : > { %1414 = vmatpush.bf16.msrb.mxu2 %v1393_v20  ;;  %1072 = vmatpush.bf16.xpose.msra.mxu0 %v1062_v30 }
 0x1c9   : > { %1675 = vrot.lane.b32.xlu0 %v3348_v14, %s3086_s9 }
 0x1ca   : > { %v3560_v22 = vpop.permute.xlu1 %1461  ;;  %v3562_v27 = vpop.permute.xlu0 %1249 }
 0x1cb   : > { %2572 = vmatmul.msk.bf16.gmra.mxu0 %vm404_vm1, %v3448_v36 }
 0x1cc   : > { %1073 = vmatpush.bf16.xpose.msra.mxu0 %v1059_v21 }
 0x1d1   : > { %1889 = vrot.lane.b32.xlu0 %v3348_v14, %s3087_s10 }
 0x1d2   : > { %v3571_v9 = vpop.permute.xlu1 %1669  ;;  %v1466_v37 = vpop.permute.xlu0 %1465 }
 0x1d3   : > { %2565 = vmatmul.msk.bf16.gmra.mxu2 %vm404_vm1, %v3272_v62  ;;  %v1487_v40 = vsel %vm404_vm1, %v1466_v37, 0 }
 0x1d4   : > { %1074 = vmatpush.bf16.xpose.msra.mxu0 %v1056_v33 }
 0x1d9   : > { %1606 = vrot.lane.b32.xlu0 %v3282_v2, %s3085_s7 }
 0x1da   : > { %v3579_v31 = vpop.permute.xlu1 %1883  ;;  %v1456_v36 = vpop.permute.xlu0 %1455 }
 0x1db   : > { %2573 = vmatmul.msk.bf16.gmra.mxu0 %vm404_vm1, %v3372_v17 }
 0x1dc   : > { %1499 = vmatpush.bf16.xpose.msrb.mxu0 %v1493_v35 }
 0x1e1   : > { %2034 = vrot.lane.b32.xlu0 %v3282_v2, %s3087_s10  ;;  %v1387_v2 = vpop.permute.xlu2 %1386 }
 0x1e2   : > { %v3586_v62 = vpop.permute.xlu1 %1885  ;;  %v1458_v41 = vpop.permute.xlu0 %1457 }
 0x1e3   : > { %2566 = vmatmul.msk.bf16.gmra.mxu2 %vm404_vm1, %v3348_v14 }
 0x1e4   : > { %1500 = vmatpush.bf16.xpose.msrb.mxu0 %v1490_v38 }
 0x1ea   : > { %v1391_v17 = vpop.permute.xlu1 %1390  ;;  %v3594_v45 = vpop.permute.xlu0 %1683 }
 0x1eb   : > { %2574 = vmatmul.msk.bf16.gmra.mxu0 %vm404_vm1, %v3493_v53  ;;  %1415 = vmatpush.bf16.msrb.mxu2 %v1391_v17 }
 0x1ec   : > { %1501 = vmatpush.bf16.xpose.msrb.mxu0 %v1487_v40 }
 0x1ef   : > { %1416 = vmatpush.bf16.msrb.mxu2 %v1389_v39  ;;  %v3681_v39 = vpop.permute.xlu2 %1602 }
 0x1f3   : > { %v3598_v46 = vpop.permute.xlu0 %1681  ;;  %1417 = vmatpush.bf16.msrb.mxu2 %v1387_v2 }
 0x1f4   : > { %1502 = vmatpush.bf16.xpose.msrb.mxu0 %v1484_v43 }
 0x1f7   : > { %v3691_v2 = vpop.permute.xlu2 %1600 }
 0x1fb   : > { %v1898_v49 = vpop.permute.xlu0 %1897  ;;  %2587 = vmatmul.msk.bf16.vlgmr.msra.gmra.mxu0 %vm404_vm1, %v3404_v24 }
 0x1fc   : > { %v1921_v14 = vsel %vm404_vm1, %v1898_v49, 0 }
 0x1fd   : > { %1927 = vmatpush.bf16.xpose.msra.mxu0 %v1921_v14 }
 0x203   : > { %v3603_v52 = vpop.permute.xlu0 %1679 }
 0x205   : > { %1928 = vmatpush.bf16.xpose.msra.mxu0 %v1918_v54 }
 0x20b   : > { %v3607_v53 = vpop.permute.xlu0 %1677  ;;  %2588 = vmatmul.msk.bf16.gmra.mxu0 %vm404_vm1, %v3485_v48 }
 0x213   : > { %v1894_v55 = vpop.permute.xlu0 %1893 }
 0x214   : > { %v1915_v57 = vsel %vm404_vm1, %v1894_v55, 0 }
 0x215   : > { %1929 = vmatpush.bf16.xpose.msra.mxu0 %v1915_v57  ;;  %v3703_v57 = vpop.permute.xlu2 %1818 }
 0x216   : > { %4659 = vst [vmem:[#allocation9_spill] sm:$0xff] %v3703_v57 }
 0x21b   : > { %v1892_v58 = vpop.permute.xlu0 %1891  ;;  %2589 = vmatmul.msk.bf16.gmra.mxu0 %vm404_vm1, %v3420_v29 }
 0x21c   : > { %v1912_v24 = vsel %vm404_vm1, %v1892_v58, 0 }
 0x21d   : > { %1930 = vmatpush.bf16.xpose.msra.mxu0 %v1912_v24 }
 0x223   : > { %v3669_v35 = vpop.permute.xlu0 %1671 }
 0x22b   : > { %2590 = vmatmul.msk.bf16.gmra.mxu0 %vm404_vm1, %v3512_v4 }
 0x236   : > { %v3617_v59 = vpop.f32.mrf.mxu2 }
 0x237   : > { %v458_v60 = vsel %vm317_vm0, %v3617_v59, -inf }
 0x238   : > { %459 = vmax.xlane.f32.xlu2 %v458_v60  ;;  %v3621_v48 = vpop.f32.mrf.mxu0 }
 0x239   : > { %v664_v61 = vsel %vm317_vm0, %v3621_v48, -inf }
 0x23a   : > { %665 = vmax.xlane.f32.xlu0 %v664_v61  ;;  %v3715_v61 = vpop.permute.xlu2 %2032 }
 0x23b   : > { %2603 = vmatmul.msk.bf16.vlgmr.msrb.gmra.mxu0 %vm404_vm1, %v1456_v36 }
 0x23e   : > { %v3626_v29 = vpop.f32.mrf.mxu2 }
 0x23f   : > { %v461_v5 = vsel %vm317_vm0, %v3626_v29, -inf }
 0x240   : > { %v3628_v63 = vpop.f32.mrf.mxu0 }
 0x241   : > { %v667_v0 = vsel %vm317_vm0, %v3628_v63, -inf }
 0x242   : > { %668 = vmax.xlane.f32.xlu2 %v667_v0 }
 0x246   : > { %v3632_v1 = vpop.f32.mrf.mxu2 }
 0x247   : > { %v464_v3 = vsel %vm317_vm0, %v3632_v1, -inf }
 0x248   : > { %465 = vmax.xlane.f32.xlu0 %v464_v3  ;;  %v3636_v4 = vpop.f32.mrf.mxu0 }
 0x249   : > { %v670_v6 = vsel %vm317_vm0, %v3636_v4, -inf }
 0x24a   : > { %462 = vmax.xlane.f32.xlu2 %v461_v5  ;;  %671 = vmax.xlane.f32.xlu1 %v670_v6 }
 0x24b   : > { %2604 = vmatmul.msk.bf16.gmra.mxu0 %vm404_vm1, %v1458_v41  ;;  %v3685_v41 = vpop.permute.xlu0 %1673 }
 0x24c   : > { %4658 = vst [vmem:[#allocation8_spill] sm:$0xff] %v3685_v41 }
 0x24e   : > { %v3643_v7 = vpop.f32.mrf.mxu2 }
 0x24f   : > { %v467_v10 = vsel %vm317_vm0, %v3643_v7, -inf }
 0x250   : > { %v3645_v8 = vpop.f32.mrf.mxu0 }
 0x251   : > { %v673_v12 = vsel %vm317_vm0, %v3645_v8, -inf }
 0x252   : > { %468 = vmax.xlane.f32.xlu1 %v467_v10  ;;  %674 = vmax.xlane.f32.xlu0 %v673_v12  ;;  %v3723_v10 = vpop.permute.xlu2 %1814 }
 0x253   : > { %4661 = vst [vmem:[#allocation11_spill] sm:$0xff] %v3723_v10 }
 0x256   : > { %v3655_v19 = vpop.f32.mrf.mxu2 }
 0x257   : > { %v470_v26 = vsel %vm317_vm0, %v3655_v19, -inf }
 0x258   : > { %v3651_v13 = vpop.f32.mrf.mxu0 }
 0x259   : > { %v676_v15 = vsel %vm317_vm0, %v3651_v13, -inf }
 0x25a   : > { %677 = vmax.xlane.f32.xlu2 %v676_v15 }
 0x25b   : > { %2605 = vmatmul.msk.bf16.gmra.mxu0 %vm404_vm1, %v3550_v28 }
 0x25e   : > { %v3665_v21 = vpop.f32.mrf.mxu2 }
 0x25f   : > { %v473_v37 = vsel %vm317_vm0, %v3665_v21, -inf }
 0x260   : > { %v3659_v20 = vpop.f32.mrf.mxu0 }
 0x261   : > { %v679_v30 = vsel %vm317_vm0, %v3659_v20, -inf }
 0x262   : > { %471 = vmax.xlane.f32.xlu2 %v470_v26  ;;  %680 = vmax.xlane.f32.xlu1 %v679_v30  ;;  %v3732_v30 = vpop.permute.xlu2 %2030 }
 0x266   : > { %v3677_v38 = vpop.f32.mrf.mxu2 }
 0x267   : > { %v476_v40 = vsel %vm317_vm0, %v3677_v38, -inf }
 0x268   : > { %v3667_v33 = vpop.f32.mrf.mxu0 }
 0x269   : > { %v682_v28 = vsel %vm317_vm0, %v3667_v33, -inf }
 0x26a   : > { %474 = vmax.xlane.f32.xlu2 %v473_v37  ;;  %683 = vmax.xlane.f32.xlu0 %v682_v28 }
 0x26b   : > { %2606 = vmatmul.msk.bf16.gmra.mxu0 %vm404_vm1, %v3560_v22  ;;  %v1888_v22 = vpop.permute.xlu0 %1887 }
 0x26e   : > { %v3695_v49 = vpop.f32.mrf.mxu2 }
 0x26f   : > { %v479_v54 = vsel %vm317_vm0, %v3695_v49, -inf }
 0x270   : > { %v3679_v36 = vpop.f32.mrf.mxu0 }
 0x271   : > { %v685_v17 = vsel %vm317_vm0, %v3679_v36, -inf }
 0x272   : > { %477 = vmax.xlane.f32.xlu2 %v476_v40 }
 0x273   : > { %v3705_v58 = vpop.permute.xlu0 %1675 }
 0x274   : > { %4660 = vst [vmem:[#allocation10_spill] sm:$0xff] %v3705_v58 }
 0x278   : > { %v3687_v43 = vpop.f32.mrf.mxu0 }
 0x27a   : > { %686 = vmax.xlane.f32.xlu2 %v685_v17  ;;  %v3740_v17 = vpop.permute.xlu1 %1820 }
 0x27b   : > { %2619 = vmatmul.msk.bf16.vlgmr.msra.gmra.mxu0 %vm404_vm1, %v3579_v31  ;;  %v1096_v31 = vsel %vm317_vm0, %v3687_v43, -inf  ;;  %v1890_v3 = vpop.permute.xlu0 %1889  ;;  %4662 = vst [vmem:[#allocation12_spill] sm:$0xff] %v3740_v17 }
 0x280   : > { %v3697_v14 = vpop.f32.mrf.mxu0 }
 0x281   : > { %v1099_v55 = vsel %vm317_vm0, %v3697_v14, -inf }
 0x282   : > { %480 = vmax.xlane.f32.xlu2 %v479_v54  ;;  %1100 = vmax.xlane.f32.xlu1 %v1099_v55 }
 0x283   : > { %v1607_v15 = vpop.permute.xlu0 %1606 }
 0x288   : > { %v3707_v24 = vpop.f32.mrf.mxu0 }
 0x289   : > { %v1102_v60 = vsel %vm317_vm0, %v3707_v24, -inf }
 0x28a   : > { %1097 = vmax.xlane.f32.xlu2 %v1096_v31  ;;  %1103 = vmax.xlane.f32.xlu0 %v1102_v60 }
 0x28b   : > { %2620 = vmatmul.msk.bf16.gmra.mxu0 %vm404_vm1, %v3586_v62  ;;  %v3734_v37 = vpop.permute.xlu0 %2034 }
 0x290   : > { %v3717_v0 = vpop.f32.mrf.mxu0 }
 0x291   : > { %v1105_v5 = vsel %vm317_vm0, %v3717_v0, -inf }
 0x292   : > { %1106 = vmax.xlane.f32.xlu2 %v1105_v5 }
 0x298   : > { %v3721_v6 = vpop.f32.mrf.mxu0 }
 0x299   : > { %v1108_v12 = vsel %vm317_vm0, %v3721_v6, -inf }
 0x29a   : > { %1109 = vmax.xlane.f32.xlu1 %v1108_v12 }
 0x29b   : > { %2621 = vmatmul.msk.bf16.gmra.mxu0 %vm404_vm1, %v1888_v22 }
 0x2a0   : > { %v3728_v62 = vpop.f32.mrf.mxu0 }
 0x2a1   : > { %v1111_v26 = vsel %vm317_vm0, %v3728_v62, -inf }
 0x2a2   : > { %1112 = vmax.xlane.f32.xlu2 %v1111_v26 }
 0x2a8   : > { %v3736_v28 = vpop.f32.mrf.mxu0 }
 0x2a9   : > { %v1114_v40 = vsel %vm317_vm0, %v3736_v28, -inf }
 0x2aa   : > { %1115 = vmax.xlane.f32.xlu0 %v1114_v40  ;;  %v3749_v40 = vpop.permute.xlu1 %1816 }
 0x2ab   : > { %v460_v54 = vpop.xlane.xlu2 %459  ;;  %2622 = vmatmul.msk.bf16.gmra.mxu0 %vm404_vm1, %v1890_v3  ;;  %4663 = vst [vmem:[#allocation13_spill] sm:$0xff] %v3749_v40 }
 0x2ac   : > { %v482_v22 = vsub.f32 %v3617_v59, %v460_v54 }
 0x2ad   : > { %v666_v55 = vpop.xlane.xlu0 %665 }
 0x2ae   : > { %v490_v31 = vmul.f32 1.442695, %v482_v22  ;;  %v688_v60 = vsub.f32 %v3621_v48, %v666_v55 }
 0x2b0   : > { %2715 = vpow2.f32 %v490_v31  ;;  %v696_v5 = vmul.f32 1.442695, %v688_v60  ;;  %v3745_v12 = vpop.f32.mrf.mxu0 }
 0x2b1   : > { %v1117_v26 = vsel %vm317_vm0, %v3745_v12, -inf }
 0x2b2   : > { %2717 = vpow2.f32 %v696_v5  ;;  %1118 = vmax.xlane.f32.xlu1 %v1117_v26 }
 0x2b5   : > { %v669_v10 = vpop.xlane.xlu2 %668 }
 0x2b6   : > { %v2716_v57 = vpop.eup %2715  ;;  %v689_v3 = vsub.f32 %v3628_v63, %v669_v10 }
 0x2b7   : > { %v506_v59 = vsel %vm317_vm0, %v2716_v57, 0.0 }
 0x2b8   : > { %v2718_v54 = vpop.eup %2717  ;;  %v698_v22 = vmul.f32 1.442695, %v689_v3  ;;  %507 = vadd.xlane.f32.xlu2 %v506_v59  ;;  %v3753_v48 = vpop.f32.mrf.mxu0 }
 0x2b9   : > { %v1524_v55 = vsel %vm317_vm0, %v3753_v48, -inf  ;;  %v712_v31 = vsel %vm317_vm0, %v2718_v54, 0.0 }
 0x2ba   : > { %2719 = vpow2.f32 %v698_v22  ;;  %1525 = vmax.xlane.f32.xlu0 %v1524_v55  ;;  %713 = vadd.xlane.f32.xlu1 %v712_v31 }
 0x2bb   : > { %v466_v60 = vpop.xlane.xlu0 %465 }
 0x2bc   : > { %v484_v5 = vsub.f32 %v3632_v1, %v466_v60 }
 0x2bd   : > { %v463_v26 = vpop.xlane.xlu2 %462  ;;  %v672_v63 = vpop.xlane.xlu1 %671 }
 0x2be   : > { %v494_v10 = vmul.f32 1.442695, %v484_v5  ;;  %v483_v40 = vsub.f32 %v3626_v29, %v463_v26  ;;  %v690_v17 = vsub.f32 %v3636_v4, %v672_v63 }
 0x2c0   : > { %v2720_v3 = vpop.eup %2719  ;;  %2721 = vpow2.f32 %v494_v10  ;;  %v492_v59 = vmul.f32 1.442695, %v483_v40  ;;  %v3761_v58 = vpop.f32.mrf.mxu0  ;;  %v700_v1 = vmul.f32 1.442695, %v690_v17 }
 0x2c1   : > { %v715_v41 = vsel %vm317_vm0, %v2720_v3, 0.0  ;;  %v1527_v22 = vsel %vm317_vm0, %v3761_v58, -inf  ;;  %v736_v55 = vpack.c.bf16 %v2720_v3, %v2718_v54 }
 0x2c2   : > { %2723 = vpow2.f32 %v492_v59  ;;  %716 = vadd.xlane.f32.xlu0 %v715_v41  ;;  %1528 = vmax.xlane.f32.xlu1 %v1527_v22 }
 0x2c3   : > { %2575 = vmatmul.msk.bf16.vlgmr.msrb.gmra.mxu1 %vm317_vm0, %v736_v55  ;;  %2725 = vpow2.f32 %v700_v1 }
 0x2c4   : > { %1628 = vmatpush.bf16.msrb.mxu1 %v1607_v15  ;;  %v1279_v15 = vsel %vm404_vm1, %v3538_v18, 0 }
 0x2c5   : > { %v469_v29 = vpop.xlane.xlu1 %468  ;;  %v675_v31 = vpop.xlane.xlu0 %674 }
 0x2c6   : > { %v2722_v40 = vpop.eup %2721  ;;  %v691_v4 = vsub.f32 %v3645_v8, %v675_v31  ;;  %v485_v5 = vsub.f32 %v3643_v7, %v469_v29 }
 0x2c7   : > { %v512_v63 = vsel %vm317_vm0, %v2722_v40, 0.0 }
 0x2c8   : > { %v2724_v60 = vpop.eup %2723  ;;  %v702_v26 = vmul.f32 1.442695, %v691_v4  ;;  %1629 = vmatpush.bf16.msrb.mxu1 %v3592_v44  ;;  %v3770_v54 = vpop.f32.mrf.mxu0  ;;  %v496_v8 = vmul.f32 1.442695, %v485_v5 }
 0x2c9   : > { %v509_v41 = vsel %vm317_vm0, %v2724_v60, 0.0  ;;  %v530_v17 = vpack.c.bf16 %v2724_v60, %v2716_v57  ;;  %v2726_v7 = vpop.eup %2725 }
 0x2ca   : > { %510 = vadd.xlane.f32.xlu2 %v509_v41  ;;  %513 = vadd.xlane.f32.xlu0 %v512_v63  ;;  %2727 = vpow2.f32 %v702_v26  ;;  %v718_v18 = vsel %vm317_vm0, %v2726_v7, 0.0  ;;  %v1530_v63 = vsel %vm317_vm0, %v3770_v54, -inf }
 0x2cb   : > { %2567 = vmatmul.msk.bf16.vlgmr.msrb.gmra.mxu3 %vm317_vm0, %v530_v17  ;;  %2729 = vpow2.f32 %v496_v8 }
 0x2cc   : > { %1285 = vmatpush.bf16.xpose.msrb.mxu3 %v1279_v15  ;;  %1630 = vmatpush.bf16.msrb.mxu1 %v3681_v39 }
 0x2cd   : > { %v678_v44 = vpop.xlane.xlu2 %677 }
 0x2ce   : > { %v692_v10 = vsub.f32 %v3651_v13, %v678_v44  ;;  %v1276_v13 = vsel %vm404_vm1, %v3523_v11, 0 }
 0x2d0   : > { %v704_v3 = vmul.f32 1.442695, %v692_v10  ;;  %1631 = vmatpush.bf16.msrb.mxu1 %v3691_v2  ;;  %v3780_v57 = vpop.f32.mrf.mxu0  ;;  %v2728_v59 = vpop.eup %2727 }
 0x2d1   : > { %v1533_v22 = vsel %vm317_vm0, %v3780_v57, -inf  ;;  %v721_v39 = vsel %vm317_vm0, %v2728_v59, 0.0  ;;  %v737_v55 = vpack.c.bf16 %v2728_v59, %v2726_v7  ;;  %v2730_v29 = vpop.eup %2729 }
 0x2d2   : > { %2731 = vpow2.f32 %v704_v3  ;;  %719 = vadd.xlane.f32.xlu2 %v718_v18  ;;  %1534 = vmax.xlane.f32.xlu0 %v1533_v22  ;;  %v531_v17 = vpack.c.bf16 %v2730_v29, %v2722_v40  ;;  %v515_v15 = vsel %vm317_vm0, %v2730_v29, 0.0 }
 0x2d3   : > { %722 = vadd.xlane.f32.xlu1 %v721_v39  ;;  %2576 = vmatmul.msk.bf16.gmra.mxu1 %vm317_vm0, %v737_v55 }
 0x2d4   : > { %1286 = vmatpush.bf16.xpose.msrb.mxu3 %v1276_v13 }
 0x2d5   : > { %v472_v2 = vpop.xlane.xlu2 %471  ;;  %v681_v1 = vpop.xlane.xlu1 %680 }
 0x2d6   : > { %v486_v31 = vsub.f32 %v3655_v19, %v472_v2  ;;  %v693_v4 = vsub.f32 %v3659_v20, %v681_v1  ;;  %v1273_v19 = vsel %vm404_vm1, %v3536_v50, 0 }
 0x2d8   : > { %v2732_v60 = vpop.eup %2731  ;;  %v498_v5 = vmul.f32 1.442695, %v486_v31  ;;  %v706_v26 = vmul.f32 1.442695, %v693_v4  ;;  %v3791_v41 = vpop.f32.mrf.mxu0 }
 0x2d9   : > { %v724_v11 = vsel %vm317_vm0, %v2732_v60, 0.0  ;;  %v1536_v50 = vsel %vm317_vm0, %v3791_v41, -inf }
 0x2da   : > { %2733 = vpow2.f32 %v498_v5  ;;  %1531 = vmax.xlane.f32.xlu2 %v1530_v63  ;;  %725 = vadd.xlane.f32.xlu0 %v724_v11 }
 0x2db   : > { %2735 = vpow2.f32 %v706_v26  ;;  %516 = vadd.xlane.f32.xlu1 %v515_v15  ;;  %2568 = vmatmul.msk.bf16.gmra.mxu3 %vm317_vm0, %v531_v17 }
 0x2dc   : > { %1287 = vmatpush.bf16.xpose.msrb.mxu3 %v1273_v19 }
 0x2dd   : > { %v475_v20 = vpop.xlane.xlu2 %474  ;;  %v684_v8 = vpop.xlane.xlu0 %683 }
 0x2de   : > { %v487_v44 = vsub.f32 %v3665_v21, %v475_v20  ;;  %v694_v7 = vsub.f32 %v3667_v33, %v684_v8  ;;  %v1270_v33 = vsel %vm404_vm1, %v3562_v27, 0 }
 0x2e0   : > { %v2734_v40 = vpop.eup %2733  ;;  %v500_v10 = vmul.f32 1.442695, %v487_v44  ;;  %v708_v3 = vmul.f32 1.442695, %v694_v7  ;;  %v3802_v59 = vpop.f32.mrf.mxu0 }
 0x2e1   : > { %v2736_v18 = vpop.eup %2735  ;;  %v518_v22 = vsel %vm317_vm0, %v2734_v40, 0.0  ;;  %v1539_v39 = vsel %vm317_vm0, %v3802_v59, -inf }
 0x2e2   : > { %2737 = vpow2.f32 %v500_v10  ;;  %519 = vadd.xlane.f32.xlu2 %v518_v22  ;;  %1540 = vmax.xlane.f32.xlu0 %v1539_v39  ;;  %v738_v21 = vpack.c.bf16 %v2736_v18, %v2732_v60  ;;  %v727_v31 = vsel %vm317_vm0, %v2736_v18, 0.0 }
 0x2e3   : > { %2739 = vpow2.f32 %v708_v3  ;;  %1537 = vmax.xlane.f32.xlu1 %v1536_v50 }
 0x2e4   : > { %2577 = vmatmul.msk.bf16.gmra.mxu1 %vm317_vm0, %v738_v21  ;;  %1288 = vmatpush.bf16.xpose.msrb.mxu3 %v1270_v33 }
 0x2e5   : > { %v478_v55 = vpop.xlane.xlu2 %477 }
 0x2e6   : > { %v488_v29 = vsub.f32 %v3677_v38, %v478_v55 }
 0x2e8   : > { %v2738_v13 = vpop.eup %2737  ;;  %v3812_v2 = vpop.f32.mrf.mxu0  ;;  %v502_v27 = vmul.f32 1.442695, %v488_v29 }
 0x2e9   : > { %v2740_v1 = vpop.eup %2739  ;;  %v521_v4 = vsel %vm317_vm0, %v2738_v13, 0.0  ;;  %v532_v60 = vpack.c.bf16 %v2738_v13, %v2734_v40  ;;  %v1542_v38 = vsel %vm317_vm0, %v3812_v2, -inf }
 0x2ea   : > { %728 = vadd.xlane.f32.xlu2 %v727_v31  ;;  %522 = vadd.xlane.f32.xlu0 %v521_v4  ;;  %v730_v5 = vsel %vm317_vm0, %v2740_v1, 0.0  ;;  %2741 = vpow2.f32 %v502_v27 }
 0x2eb   : > { %731 = vadd.xlane.f32.xlu1 %v730_v5  ;;  %2569 = vmatmul.msk.bf16.gmra.mxu3 %vm317_vm0, %v532_v60 }
 0x2ed   : > { %v687_v26 = vpop.xlane.xlu2 %686 }
 0x2ee   : > { %v695_v63 = vsub.f32 %v3679_v36, %v687_v26 }
 0x2f0   : > { %v710_v11 = vmul.f32 1.442695, %v695_v63  ;;  %v3820_v17 = vpop.f32.mrf.mxu0  ;;  %v2742_v8 = vpop.eup %2741 }
 0x2f1   : > { %v524_v18 = vsel %vm317_vm0, %v2742_v8, 0.0  ;;  %v1545_v29 = vsel %vm317_vm0, %v3820_v17, -inf }
 0x2f2   : > { %2743 = vpow2.f32 %v710_v11 }
 0x2f3   : > { %1543 = vmax.xlane.f32.xlu1 %v1542_v38 }
 0x2f5   : > { %v481_v15 = vpop.xlane.xlu2 %480  ;;  %v1101_v19 = vpop.xlane.xlu1 %1100 }
 0x2f6   : > { %v489_v20 = vsub.f32 %v3695_v49, %v481_v15  ;;  %v1121_v40 = vsub.f32 %v3697_v14, %v1101_v19 }
 0x2f8   : > { %v2744_v44 = vpop.eup %2743  ;;  %v504_v7 = vmul.f32 1.442695, %v489_v20  ;;  %v3826_v10 = vpop.f32.mrf.mxu0  ;;  %v1130_v22 = vmul.f32 1.442695, %v1121_v40 }
 0x2f9   : > { %v733_v36 = vsel %vm317_vm0, %v2744_v44, 0.0  ;;  %v739_v3 = vpack.c.bf16 %v2744_v44, %v2740_v1 }
 0x2fa   : > { %2745 = vpow2.f32 %v504_v7  ;;  %734 = vadd.xlane.f32.xlu0 %v733_v36 }
 0x2fb   : > { %525 = vadd.xlane.f32.xlu1 %v524_v18  ;;  %2578 = vmatmul.msk.bf16.gmra.mxu1 %vm317_vm0, %v739_v3  ;;  %2747 = vpow2.f32 %v1130_v22 }
 0x2fd   : > { %v1098_v39 = vpop.xlane.xlu2 %1097  ;;  %v1104_v49 = vpop.xlane.xlu0 %1103 }
 0x2fe   : > { %v1120_v50 = vsub.f32 %v3687_v43, %v1098_v39  ;;  %v1122_v21 = vsub.f32 %v3707_v24, %v1104_v49  ;;  %v1952_v43 = vsel %vm317_vm0, %v3826_v10, -inf }
 0x300   : > { %v2746_v14 = vpop.eup %2745  ;;  %v1128_v33 = vmul.f32 1.442695, %v1120_v50  ;;  %v1132_v55 = vmul.f32 1.442695, %v1122_v21  ;;  %v3833_v13 = vpop.f32.mrf.mxu0 }
 0x301   : > { %v527_v1 = vsel %vm317_vm0, %v2746_v14, 0.0  ;;  %v533_v31 = vpack.c.bf16 %v2746_v14, %v2742_v8  ;;  %v2748_v4 = vpop.eup %2747  ;;  %v1955_v36 = vsel %vm317_vm0, %v3833_v13, -inf }
 0x302   : > { %2749 = vpow2.f32 %v1128_v33  ;;  %528 = vadd.xlane.f32.xlu2 %v527_v1  ;;  %1546 = vmax.xlane.f32.xlu0 %v1545_v29  ;;  %v1147_v15 = vsel %vm317_vm0, %v2748_v4, 0.0 }
 0x303   : > { %2751 = vpow2.f32 %v1132_v55  ;;  %1953 = vmax.xlane.f32.xlu1 %v1952_v43  ;;  %2570 = vmatmul.msk.bf16.gmra.mxu3 %vm317_vm0, %v533_v31 }
 0x305   : > { %v1107_v24 = vpop.xlane.xlu2 %1106 }
 0x306   : > { %v1123_v60 = vsub.f32 %v3717_v0, %v1107_v24 }
 0x308   : > { %v2750_v5 = vpop.eup %2749  ;;  %v1134_v27 = vmul.f32 1.442695, %v1123_v60  ;;  %v3842_v26 = vpop.f32.mrf.mxu0 }
 0x309   : > { %v2752_v63 = vpop.eup %2751  ;;  %v1168_v11 = vpack.c.bf16 %v2748_v4, %v2750_v5  ;;  %v1144_v38 = vsel %vm317_vm0, %v2750_v5, 0.0 }
 0x30a   : > { %2753 = vpow2.f32 %v1134_v27  ;;  %1145 = vadd.xlane.f32.xlu2 %v1144_v38  ;;  %1148 = vadd.xlane.f32.xlu0 %v1147_v15  ;;  %v1150_v19 = vsel %vm317_vm0, %v2752_v63, 0.0 }
 0x30b   : > { %1151 = vadd.xlane.f32.xlu1 %v1150_v19  ;;  %2591 = vmatmul.msk.bf16.vlgmr.msra.gmra.mxu1 %vm317_vm0, %v1168_v11 }
 0x30c   : > { %2056 = vmatpush.bf16.msra.mxu1 %v3734_v37  ;;  %v1958_v37 = vsel %vm317_vm0, %v3842_v26, -inf }
 0x30d   : > { %v1110_v0 = vpop.xlane.xlu1 %1109 }
 0x30e   : > { %v1124_v20 = vsub.f32 %v3721_v6, %v1110_v0  ;;  %v1707_v6 = vsel %vm404_vm1, %v3594_v45, 0 }
 0x310   : > { %v2754_v8 = vpop.eup %2753  ;;  %v1136_v44 = vmul.f32 1.442695, %v1124_v20  ;;  %2057 = vmatpush.bf16.msra.mxu1 %v3715_v61  ;;  %v3851_v7 = vpop.f32.mrf.mxu0 }
 0x311   : > { %v1153_v40 = vsel %vm317_vm0, %v2754_v8, 0.0  ;;  %v1169_v49 = vpack.c.bf16 %v2754_v8, %v2752_v63  ;;  %v1961_v45 = vsel %vm317_vm0, %v3851_v7, -inf }
 0x312   : > { %2755 = vpow2.f32 %v1136_v44  ;;  %1154 = vadd.xlane.f32.xlu2 %v1153_v40  ;;  %1956 = vmax.xlane.f32.xlu0 %v1955_v36 }
 0x313   : > { %1959 = vmax.xlane.f32.xlu1 %v1958_v37  ;;  %2579 = vmatmul.msk.bf16.vlgmr.msra.gmra.mxu3 %vm404_vm1, %v3406_v25  ;;  %v1704_v25 = vsel %vm404_vm1, %v3598_v46, 0  ;;  %v1701_v46 = vsel %vm404_vm1, %v3603_v52, 0 }
 0x314   : > { %1713 = vmatpush.bf16.xpose.msra.mxu3 %v1707_v6  ;;  %2058 = vmatpush.bf16.msra.mxu1 %v3732_v30 }
 0x315   : > { %v1113_v61 = vpop.xlane.xlu2 %1112 }
 0x316   : > { %v1125_v18 = vsub.f32 %v3728_v62, %v1113_v61 }
 0x318   : > { %v2756_v3 = vpop.eup %2755  ;;  %v3864_v22 = vpop.f32.mrf.mxu0  ;;  %v1138_v30 = vmul.f32 1.442695, %v1125_v18 }
 0x319   : > { %v1156_v39 = vsel %vm317_vm0, %v2756_v3, 0.0  ;;  %v1964_v55 = vsel %vm317_vm0, %v3864_v22, -inf }
 0x31a   : > { %1157 = vadd.xlane.f32.xlu0 %v1156_v39  ;;  %2757 = vpow2.f32 %v1138_v30 }
 0x31b   : > { %1962 = vmax.xlane.f32.xlu1 %v1961_v45  ;;  %2592 = vmatmul.msk.bf16.gmra.mxu1 %vm317_vm0, %v1169_v49 }
 0x31c   : > { %1714 = vmatpush.bf16.xpose.msra.mxu3 %v1704_v25 }
 0x31d   : > { %v1116_v50 = vpop.xlane.xlu0 %1115 }
 0x31e   : > { %v1126_v62 = vsub.f32 %v3736_v28, %v1116_v50 }
 0x320   : > { %v1140_v21 = vmul.f32 1.442695, %v1126_v62  ;;  %v3873_v14 = vpop.f32.mrf.mxu0  ;;  %v2758_v1 = vpop.eup %2757 }
 0x321   : > { %v1967_v33 = vsel %vm317_vm0, %v3873_v14, -inf  ;;  %v1170_v4 = vpack.c.bf16 %v2758_v1, %v2756_v3  ;;  %v1159_v60 = vsel %vm317_vm0, %v2758_v1, 0.0 }
 0x322   : > { %2759 = vpow2.f32 %v1140_v21  ;;  %1968 = vmax.xlane.f32.xlu2 %v1967_v33 }
 0x323   : > { %1965 = vmax.xlane.f32.xlu1 %v1964_v55  ;;  %2580 = vmatmul.msk.bf16.gmra.mxu3 %vm404_vm1, %v3468_v42  ;;  %v1698_v42 = vsel %vm404_vm1, %v3607_v53, 0 }
 0x324   : > { %1715 = vmatpush.bf16.xpose.msra.mxu3 %v1701_v46 }
 0x325   : > { %v1119_v28 = vpop.xlane.xlu1 %1118 }
 0x326   : > { %v1127_v31 = vsub.f32 %v3745_v12, %v1119_v28 }
 0x328   : > { %v2760_v29 = vpop.eup %2759  ;;  %v3884_v43 = vpop.f32.mrf.mxu0  ;;  %v1142_v52 = vmul.f32 1.442695, %v1127_v31 }
 0x329   : > { %v1162_v24 = vsel %vm317_vm0, %v2760_v29, 0.0  ;;  %v1970_v53 = vsel %vm317_vm0, %v3884_v43, -inf }
 0x32a   : > { %1163 = vadd.xlane.f32.xlu2 %v1162_v24  ;;  %2761 = vpow2.f32 %v1142_v52 }
 0x32b   : > { %1160 = vadd.xlane.f32.xlu1 %v1159_v60  ;;  %2593 = vmatmul.msk.bf16.gmra.mxu1 %vm317_vm0, %v1170_v4 }
 0x32c   : > { %1716 = vmatpush.bf16.xpose.msra.mxu3 %v1698_v42 }
 0x32d   : > { %v714_v5 = vpop.xlane.xlu1 %713  ;;  %v1526_v27 = vpop.xlane.xlu0 %1525 }
 0x32e   : > { %v1548_v12 = vsub.f32 %v3753_v48, %v1526_v27  ;;  %2028 = vrot.lane.b32.xlu0 %v3248_v51, %s3087_s10  ;;  %v3902_v48 = vpop.xlane.xlu2 %507 }
 0x330   : > { %v1556_v63 = vmul.f32 1.442695, %v1548_v12  ;;  %v3894_v11 = vpop.f32.mrf.mxu0  ;;  %v2762_v19 = vpop.eup %2761 }
 0x331   : > { %v1973_v38 = vsel %vm317_vm0, %v3894_v11, -inf  ;;  %v1171_v40 = vpack.c.bf16 %v2762_v19, %v2760_v29  ;;  %v1165_v31 = vsel %vm317_vm0, %v2762_v19, 0.0 }
 0x332   : > { %2763 = vpow2.f32 %v1556_v63  ;;  %1974 = vmax.xlane.f32.xlu2 %v1973_v38 }
 0x333   : > { %1971 = vmax.xlane.f32.xlu1 %v1970_v53  ;;  %2581 = vmatmul.msk.bf16.gmra.mxu3 %vm404_vm1, %v3396_v23 }
 0x335   : > { %v1529_v15 = vpop.xlane.xlu1 %1528  ;;  %v717_v51 = vpop.xlane.xlu0 %716 }
 0x336   : > { %v1549_v0 = vsub.f32 %v3761_v58, %v1529_v15 }
 0x338   : > { %v2764_v20 = vpop.eup %2763  ;;  %v1558_v8 = vmul.f32 1.442695, %v1549_v0 }
 0x339   : > { %v1572_v44 = vsel %vm317_vm0, %v2764_v20, 0.0 }
 0x33a   : > { %2765 = vpow2.f32 %v1558_v8 }
 0x33b   : > { %1573 = vadd.xlane.f32.xlu1 %v1572_v44  ;;  %2594 = vmatmul.msk.bf16.gmra.mxu1 %vm317_vm0, %v1171_v40  ;;  %2767 = vrcp.f32 %v714_v5 }
 0x33d   : > { %v3907_v36 = vpop.xlane.xlu2 %510  ;;  %v514_v37 = vpop.xlane.xlu0 %513 }
 0x340   : > { %v2766_v23 = vpop.eup %2765  ;;  %v777_v6 = vpop.f32.mrf.mxu1 }
 0x341   : > { %v1575_v61 = vsel %vm317_vm0, %v2766_v23, 0.0  ;;  %v1596_v49 = vpack.c.bf16 %v2766_v23, %v2764_v20  ;;  %v2768_v46 = vpop.eup %2767 }
 0x342   : > { %1576 = vadd.xlane.f32.xlu2 %v1575_v61  ;;  %v805_v4 = vmul.f32 %v2768_v46, %v777_v6 }
 0x343   : > { %2582 = vmatmul.msk.bf16.gmra.mxu3 %vm404_vm1, %v3498_v56 }
 0x345   : > { %v720_v58 = vpop.xlane.xlu2 %719  ;;  %v1535_v3 = vpop.xlane.xlu0 %1534 }
 0x346   : > { %v3912_v18 = vpop.xlane.xlu1 %722  ;;  %v1551_v45 = vsub.f32 %v3780_v57, %v1535_v3 }
 0x348   : > { %v779_v39 = vpop.f32.mrf.mxu1  ;;  %v1562_v25 = vmul.f32 1.442695, %v1551_v45 }
 0x34a   : > { %2769 = vpow2.f32 %v1562_v25 }
 0x34b   : > { %2607 = vmatmul.msk.bf16.vlgmr.msrb.gmra.mxu1 %vm317_vm0, %v1596_v49 }
 0x34d   : > { %v1532_v30 = vpop.xlane.xlu2 %1531  ;;  %v3916_v50 = vpop.xlane.xlu0 %725 }
 0x34e   : > { %v1550_v62 = vsub.f32 %v3770_v54, %v1532_v30  ;;  %v3919_v21 = vpop.xlane.xlu1 %516  ;;  %v3921_v33 = vpop.f32.mrf.mxu3 }
 0x350   : > { %v1560_v56 = vmul.f32 1.442695, %v1550_v62  ;;  %v782_v55 = vpop.f32.mrf.mxu1  ;;  %v3927_v29 = vpop.eup %2769 }
 0x352   : > { %2771 = vpow2.f32 %v1560_v56 }
 0x353   : > { %2595 = vmatmul.msk.bf16.vlgmr.msrb.gmra.mxu3 %vm404_vm1, %v3364_v16  ;;  %2773 = vrcp.f32 %v514_v37 }
 0x355   : > { %v1541_v57 = vpop.xlane.xlu0 %1540  ;;  %v3954_v40 = vpop.xlane.xlu2 %519 }
 0x356   : > { %v1538_v28 = vpop.xlane.xlu1 %1537  ;;  %v3925_v1 = vpop.f32.mrf.mxu3  ;;  %v1553_v54 = vsub.f32 %v3802_v59, %v1541_v57 }
 0x357   : > { %v1552_v60 = vsub.f32 %v3791_v41, %v1538_v28 }
 0x358   : > { %v2772_v24 = vpop.eup %2771  ;;  %1166 = vadd.xlane.f32.xlu0 %v1165_v31  ;;  %v1566_v52 = vmul.f32 1.442695, %v1553_v54  ;;  %v3936_v59 = vpop.f32.mrf.mxu1  ;;  %v1581_v31 = vsel %vm317_vm0, %v3927_v29, 0.0 }
 0x359   : > { %v1578_v42 = vsel %vm317_vm0, %v2772_v24, 0.0  ;;  %v1597_v16 = vpack.c.bf16 %v3927_v29, %v2772_v24  ;;  %v1564_v5 = vmul.f32 1.442695, %v1552_v60  ;;  %v2774_v27 = vpop.eup %2773 }
 0x35a   : > { %2105 = vrot.lane.b32.xlu2 %v805_v4, %s3084_s8  ;;  %1579 = vadd.xlane.f32.xlu1 %v1578_v42  ;;  %2775 = vpow2.f32 %v1566_v52 }
 0x35b   : > { %2608 = vmatmul.msk.bf16.gmra.mxu1 %vm317_vm0, %v1597_v16  ;;  %2777 = vpow2.f32 %v1564_v5 }
 0x35c   : > { %2779 = vrcp.f32 %v717_v51 }
 0x35d   : > { %v523_v53 = vpop.xlane.xlu0 %522  ;;  %2781 = vrcp.f32 %v720_v58  ;;  %v3968_v58 = vpop.xlane.xlu2 %728 }
 0x35e   : > { %v564_v12 = vpop.f32.mrf.mxu3  ;;  %v3940_v41 = vpop.xlane.xlu1 %731  ;;  %2783 = vrcp.f32 %v523_v53 }
 0x35f   : > { %v3938_v63 = vmul.f32 %v2774_v27, %v564_v12 }
 0x360   : > { %v3944_v38 = vpop.eup %2775 }
 0x361   : > { %v3946_v15 = vpop.eup %2777  ;;  %v3948_v19 = vpop.f32.mrf.mxu1 }
 0x362   : > { %v2780_v20 = vpop.eup %2779  ;;  %v1598_v8 = vpack.c.bf16 %v3944_v38, %v3946_v15 }
 0x363   : > { %2596 = vmatmul.msk.bf16.gmra.mxu3 %vm404_vm1, %v3483_v47  ;;  %v806_v44 = vmul.f32 %v2780_v20, %v779_v39  ;;  %v2782_v23 = vpop.eup %2781 }
 0x364   : > { %v807_v61 = vmul.f32 %v2782_v23, %v782_v55  ;;  %v2784_v45 = vpop.eup %2783 }
 0x366   : > { %v3950_v0 = vpop.f32.mrf.mxu3  ;;  %v1544_v47 = vpop.xlane.xlu1 %1543 }
 0x367   : > { %v1554_v3 = vsub.f32 %v3812_v2, %v1544_v47 }
 0x369   : > { %v3962_v6 = vpop.f32.mrf.mxu1  ;;  %v1568_v39 = vmul.f32 1.442695, %v1554_v3 }
 0x36b   : > { %2609 = vmatmul.msk.bf16.gmra.mxu1 %vm317_vm0, %v1598_v8  ;;  %2785 = vpow2.f32 %v1568_v39 }
 0x36c   : > { %2107 = vrot.lane.b32.xlu0 %v806_v44, %s3084_s8 }
 0x36d   : > { %v3958_v51 = vpop.xlane.xlu0 %734 }
 0x36e   : > { %v3960_v37 = vpop.f32.mrf.mxu3  ;;  %v526_v25 = vpop.xlane.xlu1 %525 }
 0x373   : > { %2597 = vmatmul.msk.bf16.gmra.mxu3 %vm404_vm1, %v3430_v32  ;;  %2109 = vrot.lane.b32.xlu1 %v807_v61, %s3084_s8  ;;  %v3975_v32 = vpop.eup %2785  ;;  %v1584_v61 = vsel %vm317_vm0, %v3946_v15, 0.0 }
 0x375   : > { %v1547_v49 = vpop.xlane.xlu0 %1546  ;;  %v529_v2 = vpop.xlane.xlu2 %528 }
 0x376   : > { %v1555_v30 = vsub.f32 %v3820_v17, %v1547_v49  ;;  %v571_v62 = vpop.f32.mrf.mxu3  ;;  %v1954_v28 = vpop.xlane.xlu1 %1953 }
 0x377   : > { %v3971_v56 = vmul.f32 %v2784_v45, %v571_v62  ;;  %v1976_v44 = vsub.f32 %v3826_v10, %v1954_v28 }
 0x378   : > { %v1570_v57 = vmul.f32 1.442695, %v1555_v30  ;;  %v3973_v55 = vpop.f32.mrf.mxu1 }
 0x379   : > { %v1984_v3 = vmul.f32 1.442695, %v1976_v44 }
 0x37a   : > { %2787 = vpow2.f32 %v1570_v57 }
 0x37b   : > { %2789 = vrcp.f32 %v526_v25 }
 0x37c   : > { %2791 = vrcp.f32 %v529_v2 }
 0x37d   : > { %v3987_v24 = vpop.xlane.xlu0 %1148  ;;  %v3990_v42 = vpop.xlane.xlu2 %1145  ;;  %2793 = vrcp.f32 %v3912_v18 }
 0x37e   : > { %v3996_v5 = vpop.xlane.xlu1 %1151 }
 0x380   : > { %v3977_v46 = vpop.eup %2787  ;;  %v3979_v54 = vpop.f32.mrf.mxu1 }
 0x381   : > { %v1599_v17 = vpack.c.bf16 %v3977_v46, %v3975_v32  ;;  %v2790_v4 = vpop.eup %2789 }
 0x382   : > { %v2792_v29 = vpop.eup %2791 }
 0x383   : > { %2598 = vmatmul.msk.bf16.gmra.mxu3 %vm404_vm1, %v3552_v34  ;;  %1582 = vadd.xlane.f32.xlu2 %v1581_v31  ;;  %v2794_v39 = vpop.eup %2793 }
 0x384   : > { %2610 = vmatmul.msk.bf16.gmra.mxu1 %vm317_vm0, %v1599_v17 }
 0x385   : > { %v1957_v27 = vpop.xlane.xlu0 %1956  ;;  %v4002_v20 = vpop.xlane.xlu2 %1154 }
 0x386   : > { %v574_v60 = vpop.f32.mrf.mxu3  ;;  %v1977_v8 = vsub.f32 %v3833_v13, %v1957_v27  ;;  %v1960_v47 = vpop.xlane.xlu1 %1959  ;;  %v808_v13 = vmul.f32 %v2794_v39, %v3936_v59 }
 0x387   : > { %v3992_v16 = vmul.f32 %v2790_v4, %v574_v60  ;;  %v1978_v2 = vsub.f32 %v3842_v26, %v1960_v47  ;;  %v4664_v47 = vld [vmem:[#allocation8_spill] sm:$0xff] }
 0x388   : > { %v3994_v52 = vpop.f32.mrf.mxu1  ;;  %v1986_v23 = vmul.f32 1.442695, %v1977_v8 }
 0x389   : > { %v1988_v31 = vmul.f32 1.442695, %v1978_v2  ;;  %v4665_v2 = vld [vmem:[#allocation10_spill] sm:$0xff] }
 0x38a   : > { %2795 = vpow2.f32 %v1986_v23 }
 0x38b   : > { %2797 = vpow2.f32 %v1984_v3 }
 0x38c   : > { %2799 = vrcp.f32 %v3916_v50 }
 0x38d   : > { %v4011_v49 = vpop.xlane.xlu0 %1157 }
 0x38e   : > { %v576_v12 = vpop.f32.mrf.mxu3  ;;  %v1963_v10 = vpop.xlane.xlu1 %1962 }
 0x38f   : > { %v3998_v34 = vmul.f32 %v2792_v29, %v576_v12  ;;  %v1979_v59 = vsub.f32 %v3851_v7, %v1963_v10 }
 0x390   : > { %v4000_v53 = vpop.f32.mrf.mxu1  ;;  %v4019_v15 = vpop.eup %2795 }
 0x391   : > { %v4023_v62 = vpop.eup %2797  ;;  %v1990_v28 = vmul.f32 1.442695, %v1979_v59 }
 0x392   : > { %v2024_v57 = vpack.c.bf16 %v4019_v15, %v4023_v62  ;;  %v2800_v17 = vpop.eup %2799 }
 0x393   : > { %2611 = vmatmul.msk.bf16.vlgmr.msra.gmra.mxu3 %vm404_vm1, %v3571_v9  ;;  %v1587_v9 = vsel %vm317_vm0, %v3944_v38, 0.0  ;;  %v809_v50 = vmul.f32 %v2800_v17, %v3948_v19  ;;  %2801 = vpow2.f32 %v1990_v28 }
 0x394   : > { %2803 = vpow2.f32 %v1988_v31 }
 0x395   : > { %v1969_v18 = vpop.xlane.xlu2 %1968  ;;  %2805 = vrcp.f32 %v3958_v51 }
 0x396   : > { %1585 = vadd.xlane.f32.xlu0 %v1584_v61  ;;  %v1966_v7 = vpop.xlane.xlu1 %1965  ;;  %2807 = vrcp.f32 %v3902_v48 }
 0x397   : > { %v1980_v19 = vsub.f32 %v3864_v22, %v1966_v7 }
 0x398   : > { %v4013_v45 = vpop.f32.mrf.mxu1 }
 0x399   : > { %v4040_v60 = vpop.eup %2801 }
 0x39a   : > { %v4045_v27 = vpop.eup %2803 }
 0x39b   : > { %2111 = vrot.lane.b32.xlu2 %v808_v13, %s3084_s8  ;;  %v2025_v12 = vpack.c.bf16 %v4040_v60, %v4045_v27  ;;  %v2806_v8 = vpop.eup %2805 }
 0x39c   : > { %v812_v51 = vmul.f32 %v2806_v8, %v3979_v54  ;;  %v2808_v3 = vpop.eup %2807 }
 0x39d   : > { %1588 = vadd.xlane.f32.xlu1 %v1587_v9  ;;  %v4030_v38 = vpop.xlane.xlu2 %1163  ;;  %v587_v39 = vmul.f32 %v2808_v3, %v3921_v33  ;;  %v1590_v33 = vsel %vm317_vm0, %v3975_v32, 0.0 }
 0x39e   : > { %v4050_v44 = vpop.xlane.xlu1 %1160 }
 0x3a0   : > { %v4021_v25 = vpop.f32.mrf.mxu1  ;;  %v2029_v30 = vpop.permute.xlu0 %2028 }
 0x3a1   : > { %2059 = vmatpush.bf16.msra.mxu1 %v2029_v30 }
 0x3a3   : > { %2612 = vmatmul.msk.bf16.gmra.mxu3 %vm404_vm1, %v3669_v35  ;;  %v1981_v35 = vsub.f32 %v3873_v14, %v1969_v18  ;;  %v1992_v14 = vmul.f32 1.442695, %v1980_v19 }
 0x3a4   : > { %2623 = vmatmul.msk.bf16.vlgmr.msra.gmra.mxu1 %vm317_vm0, %v2024_v57 }
 0x3a5   : > { %v1975_v26 = vpop.xlane.xlu2 %1974  ;;  %v1994_v23 = vmul.f32 1.442695, %v1981_v35  ;;  %v1593_v35 = vsel %vm317_vm0, %v3977_v46, 0.0 }
 0x3a6   : > { %v1972_v13 = vpop.xlane.xlu1 %1971  ;;  %v1983_v10 = vsub.f32 %v3894_v11, %v1975_v26 }
 0x3a7   : > { %2809 = vpow2.f32 %v1994_v23  ;;  %v1982_v59 = vsub.f32 %v3884_v43, %v1972_v13 }
 0x3a8   : > { %v4036_v4 = vpop.f32.mrf.mxu1  ;;  %2811 = vpow2.f32 %v1992_v14  ;;  %v1998_v28 = vmul.f32 1.442695, %v1983_v10 }
 0x3a9   : > { %v1996_v17 = vmul.f32 1.442695, %v1982_v59 }
 0x3aa   : > { %2113 = vrot.lane.b32.xlu0 %v809_v50, %s3084_s8  ;;  %2813 = vpow2.f32 %v1998_v28 }
 0x3ab   : > { %2815 = vpow2.f32 %v1996_v17 }
 0x3ad   : > { %v4063_v54 = vpop.eup %2809 }
 0x3ae   : > { %v4068_v48 = vpop.eup %2811  ;;  %v4081_v31 = vpop.xlane.xlu1 %1573 }
 0x3af   : > { %v2026_v57 = vpack.c.bf16 %v4063_v54, %v4068_v48 }
 0x3b0   : > { %v4043_v29 = vpop.f32.mrf.mxu1  ;;  %v4085_v43 = vpop.eup %2813 }
 0x3b1   : > { %v4087_v50 = vpop.eup %2815 }
 0x3b2   : > { %v2027_v32 = vpack.c.bf16 %v4085_v43, %v4087_v50 }
 0x3b3   : > { %2613 = vmatmul.msk.bf16.gmra.mxu3 %vm404_vm1, %v4664_v47 }
 0x3b4   : > { %2624 = vmatmul.msk.bf16.gmra.mxu1 %vm317_vm0, %v2025_v12 }
 0x3b5   : > { %v4057_v61 = vpop.xlane.xlu2 %1576 }
 0x3b6   : > { %2119 = vrot.lane.b32.xlu1 %v812_v51, %s3084_s8 }
 0x3b8   : > { %v4060_v22 = vpop.f32.mrf.mxu1 }
 0x3bd   : > { %v2106_v18 = vpop.permute.xlu2 %2105 }
 0x3be   : > { %v4066_v9 = vsel %vm404_vm1, %v587_v39, %v2106_v18 }
 0x3c0   : > { %v4071_v30 = vpop.f32.mrf.mxu1 }
 0x3c3   : > { %2614 = vmatmul.msk.bf16.gmra.mxu3 %vm404_vm1, %v4665_v2  ;;  %v2009_v2 = vsel %vm317_vm0, %v4040_v60, 0.0  ;;  %v2012_v60 = vsel %vm317_vm0, %v4068_v48, 0.0 }
 0x3c4   : > { %1591 = vadd.xlane.f32.xlu2 %v1590_v33  ;;  %2625 = vmatmul.msk.bf16.gmra.mxu1 %vm317_vm0, %v2026_v57  ;;  %v2006_v57 = vsel %vm317_vm0, %v4045_v27, 0.0 }
 0x3c8   : > { %v4083_v11 = vpop.f32.mrf.mxu1 }
 0x3cb   : > { %v4098_v19 = vpop.xlane.xlu0 %1166 }
 0x3cd   : > { %v1580_v7 = vpop.xlane.xlu1 %1579 }
 0x3ce   : > { %2817 = vrcp.f32 %v1580_v7 }
 0x3cf   : > { %2819 = vrcp.f32 %v3968_v58 }
 0x3d0   : > { %v4089_v26 = vpop.f32.mrf.mxu1  ;;  %2821 = vrcp.f32 %v3907_v36  ;;  %v2003_v36 = vsel %vm317_vm0, %v4019_v15, 0.0 }
 0x3d1   : > { %2823 = vrcp.f32 %v3940_v41 }
 0x3d2   : > { %2825 = vrcp.f32 %v3990_v42  ;;  %v4129_v42 = vpop.f32.mrf.mxu3 }
 0x3d3   : > { %2827 = vrcp.f32 %v3919_v21  ;;  %v2000_v21 = vsel %vm317_vm0, %v4023_v62, 0.0 }
 0x3d4   : > { %1594 = vadd.xlane.f32.xlu0 %v1593_v35  ;;  %2626 = vmatmul.msk.bf16.gmra.mxu1 %vm317_vm0, %v2027_v32  ;;  %v2818_v12 = vpop.eup %2817  ;;  %2829 = vrcp.f32 %v3954_v40 }
 0x3d5   : > { %v2820_v47 = vpop.eup %2819  ;;  %2831 = vrcp.f32 %v3987_v24 }
 0x3d6   : > { %v810_v23 = vmul.f32 %v2820_v47, %v3962_v6  ;;  %v2822_v14 = vpop.eup %2821  ;;  %2833 = vrcp.f32 %v3996_v5 }
 0x3d7   : > { %v588_v58 = vmul.f32 %v2822_v14, %v3925_v1  ;;  %v2824_v39 = vpop.eup %2823  ;;  %2835 = vrcp.f32 %v4002_v20  ;;  %v882_v20 = vsel %vm317_vm0, %v4129_v42, -inf }
 0x3d8   : > { %v1638_v8 = vpop.f32.mrf.mxu1  ;;  %v811_v18 = vmul.f32 %v2824_v39, %v3973_v55  ;;  %v2826_v1 = vpop.eup %2825  ;;  %2837 = vrcp.f32 %v4011_v49 }
 0x3d9   : > { %v4100_v51 = vmul.f32 %v2818_v12, %v1638_v8  ;;  %v1233_v15 = vmul.f32 %v2826_v1, %v3994_v52  ;;  %v2828_v10 = vpop.eup %2827  ;;  %2839 = vrcp.f32 %v4050_v44 }
 0x3da   : > { %v590_v55 = vmul.f32 %v2828_v10, %v3950_v0  ;;  %v2830_v0 = vpop.eup %2829  ;;  %v4139_v28 = vpop.f32.mrf.mxu3  ;;  %2841 = vrcp.f32 %v4030_v38 }
 0x3db   : > { %v2832_v33 = vpop.eup %2831  ;;  %v591_v27 = vmul.f32 %v2830_v0, %v3960_v37  ;;  %v885_v24 = vsel %vm317_vm0, %v4139_v28, -inf  ;;  %2843 = vrcp.f32 %v4098_v19 }
 0x3dc   : > { %2115 = vrot.lane.b32.xlu2 %v810_v23, %s3084_s8  ;;  %v1234_v17 = vmul.f32 %v2832_v33, %v4000_v53  ;;  %v2834_v12 = vpop.eup %2833  ;;  %2845 = vrcp.f32 %v4081_v31  ;;  %v4667_v31 = vld [vmem:[#allocation12_spill] sm:$0xff] }
 0x3dd   : > { %v1235_v8 = vmul.f32 %v2834_v12, %v4013_v45  ;;  %v2836_v23 = vpop.eup %2835 }
 0x3de   : > { %v2108_v46 = vpop.permute.xlu0 %2107  ;;  %v1236_v14 = vmul.f32 %v2836_v23, %v4021_v25  ;;  %v2838_v1 = vpop.eup %2837 }
 0x3df   : > { %v4107_v3 = vsel %vm404_vm1, %v588_v58, %v2108_v46  ;;  %v2015_v46 = vsel %vm317_vm0, %v4063_v54, 0.0  ;;  %v1237_v54 = vmul.f32 %v2838_v1, %v4036_v4 }
 0x3e0   : > { %2004 = vadd.xlane.f32.xlu1 %v2003_v36 }
 0x3e2   : > { %v4153_v32 = vpop.f32.mrf.mxu3 }
 0x3e5   : > { %v2110_v13 = vpop.permute.xlu1 %2109 }
 0x3e6   : > { %v4114_v6 = vsel %vm404_vm1, %v3938_v63, %v2110_v13  ;;  %v2018_v13 = vsel %vm317_vm0, %v4087_v50, 0.0  ;;  %v2021_v50 = vsel %vm317_vm0, %v4085_v43, 0.0  ;;  %v2840_v43 = vpop.eup %2839 }
 0x3e8   : > { %2117 = vrot.lane.b32.xlu0 %v811_v18, %s3084_s8 }
 0x3ea   : > { %v4160_v35 = vpop.f32.mrf.mxu3 }
 0x3eb   : > { %v891_v44 = vsel %vm317_vm0, %v4160_v35, -inf }
 0x3f2   : > { %v4167_v47 = vpop.f32.mrf.mxu3 }
 0x3f6   : > { %v4119_v41 = vpop.xlane.xlu2 %1582 }
 0x3f9   : > { %2169 = vrot.lane.b32.xlu1 %v1233_v15, %s3082_s30  ;;  %v888_v15 = vsel %vm317_vm0, %v4153_v32, -inf }
 0x3fa   : > { %v4175_v58 = vpop.f32.mrf.mxu3 }
 0x3fe   : > { %v2112_v59 = vpop.permute.xlu2 %2111 }
 0x3ff   : > { %v4125_v63 = vsel %vm404_vm1, %v590_v55, %v2112_v59  ;;  %v897_v55 = vsel %vm317_vm0, %v4175_v58, -inf }
 0x400   : > { %4666 = vst [vmem:[#allocation8_spill] sm:$0xff] %v4125_v63 }
 0x402   : > { %v4179_v45 = vpop.f32.mrf.mxu3 }
 0x405   : > { %2007 = vadd.xlane.f32.xlu2 %v2006_v57 }
 0x409   : > { %v4135_v52 = vpop.xlane.xlu0 %1585 }
 0x40a   : > { %v4185_v36 = vpop.f32.mrf.mxu3 }
 0x40b   : > { %v903_v10 = vsel %vm317_vm0, %v4185_v36, -inf }
 0x410   : > { %v4147_v40 = vpop.xlane.xlu1 %1588 }
 0x412   : > { %2001 = vadd.xlane.f32.xlu0 %v2000_v21  ;;  %v4194_v18 = vpop.f32.mrf.mxu3  ;;  %v1238_v21 = vmul.f32 %v2840_v43, %v4043_v29  ;;  %v2842_v29 = vpop.eup %2841 }
 0x413   : > { %v1310_v59 = vsel %vm317_vm0, %v4194_v18, -inf }
 0x41a   : > { %2010 = vadd.xlane.f32.xlu0 %v2009_v2  ;;  %v4202_v49 = vpop.f32.mrf.mxu3 }
 0x41c   : > { %v2114_v62 = vpop.permute.xlu0 %2113 }
 0x41d   : > { %v4144_v7 = vsel %vm404_vm1, %v591_v27, %v2114_v62  ;;  %2171 = vrot.lane.b32.xlu2 %v1234_v17, %s3082_s30  ;;  %v900_v27 = vsel %vm317_vm0, %v4179_v45, -inf  ;;  %v1239_v62 = vmul.f32 %v2842_v29, %v4060_v22 }
 0x422   : > { %886 = vmax.xlane.f32.xlu0 %v885_v24  ;;  %v4208_v4 = vpop.f32.mrf.mxu3 }
 0x423   : > { %2013 = vadd.xlane.f32.xlu1 %v2012_v60  ;;  %v1313_v60 = vsel %vm317_vm0, %v4202_v49, -inf  ;;  %v1316_v38 = vsel %vm317_vm0, %v4208_v4, -inf }
 0x428   : > { %v2120_v37 = vpop.permute.xlu1 %2119 }
 0x429   : > { %v4157_v53 = vsel %vm404_vm1, %v3998_v34, %v2120_v37 }
 0x42a   : > { %v4215_v57 = vpop.f32.mrf.mxu3 }
 0x42b   : > { %v1319_v0 = vsel %vm317_vm0, %v4215_v57, -inf }
 0x432   : > { %v4221_v2 = vpop.f32.mrf.mxu3 }
 0x436   : > { %2173 = vrot.lane.b32.xlu0 %v1235_v8, %s3082_s30 }
 0x437   : > { %v4165_v48 = vpop.xlane.xlu2 %1591 }
 0x43a   : > { %v4225_v33 = vpop.f32.mrf.mxu3 }
 0x43b   : > { %v1325_v22 = vsel %vm317_vm0, %v4225_v33, -inf }
 0x43c   : > { %2175 = vrot.lane.b32.xlu1 %v1236_v14, %s3082_s30 }
 0x43f   : > { %v2116_v34 = vpop.permute.xlu2 %2115 }
 0x440   : > { %v4173_v5 = vsel %vm404_vm1, %v3971_v56, %v2116_v34 }
 0x442   : > { %v4230_v17 = vpop.f32.mrf.mxu3 }
 0x446   : > { %883 = vmax.xlane.f32.xlu2 %v882_v20 }
 0x447   : > { %v4183_v25 = vpop.xlane.xlu0 %1594 }
 0x44a   : > { %v4238_v37 = vpop.f32.mrf.mxu3 }
 0x44e   : > { %2016 = vadd.xlane.f32.xlu2 %v2015_v46 }
 0x452   : > { %v4248_v23 = vpop.f32.mrf.mxu3 }
 0x453   : > { %v1738_v46 = vsel %vm317_vm0, %v4248_v23, -inf }
 0x45a   : > { %v2118_v39 = vpop.permute.xlu0 %2117 }
 0x45b   : > { %v4189_v56 = vsel %vm404_vm1, %v3992_v16, %v2118_v39  ;;  %v894_v16 = vsel %vm317_vm0, %v4167_v47, -inf  ;;  %v4256_v39 = vpop.xlane.xlu1 %2004 }
 0x460   : > { %2019 = vadd.xlane.f32.xlu0 %v2018_v13 }
 0x466   : > { %889 = vmax.xlane.f32.xlu1 %v888_v15  ;;  %2177 = vrot.lane.b32.xlu2 %v1237_v54, %s3082_s30  ;;  %v2844_v54 = vpop.eup %2843  ;;  %v4258_v15 = vpop.f32.mrf.mxu3 }
 0x467   : > { %v1741_v19 = vsel %vm317_vm0, %v4258_v15, -inf }
 0x468   : > { %895 = vmax.xlane.f32.xlu0 %v894_v16 }
 0x46e   : > { %2022 = vadd.xlane.f32.xlu1 %v2021_v50 }
 0x470   : > { %904 = vmax.xlane.f32.xlu0 %v903_v10  ;;  %v4266_v10 = vpop.permute.xlu1 %2169 }
 0x476   : > { %898 = vmax.xlane.f32.xlu1 %v897_v55  ;;  %v2846_v55 = vpop.eup %2845 }
 0x478   : > { %v4242_v12 = vpop.xlane.xlu2 %2007 }
 0x47e   : > { %1311 = vmax.xlane.f32.xlu1 %v1310_v59 }
 0x480   : > { %v4250_v14 = vpop.permute.xlu2 %2171 }
 0x484   : > { %2179 = vrot.lane.b32.xlu0 %v1238_v21, %s3082_s30 }
 0x485   : > { %v4233_v24 = vpop.xlane.xlu0 %2001 }
 0x486   : > { %1320 = vmax.xlane.f32.xlu1 %v1319_v0 }
 0x48d   : > { %v4244_v8 = vpop.xlane.xlu0 %2010 }
 0x48f   : > { %892 = vmax.xlane.f32.xlu2 %v891_v44  ;;  %v4668_v44 = vld [vmem:[#allocation9_spill] sm:$0xff] }
 0x495   : > { %v887_v34 = vpop.xlane.xlu0 %886 }
 0x496   : > { %v907_v20 = vsub.f32 %v4139_v28, %v887_v34  ;;  %v1240_v28 = vmul.f32 %v2844_v54, %v4071_v30  ;;  %v4273_v0 = vpop.xlane.xlu1 %2013 }
 0x497   : > { %901 = vmax.xlane.f32.xlu2 %v900_v27  ;;  %v4669_v27 = vld [vmem:[#allocation13_spill] sm:$0xff] }
 0x498   : > { %v916_v13 = vmul.f32 1.442695, %v907_v20  ;;  %v4285_v20 = vpop.f32.mrf.mxu1 }
 0x49a   : > { %2847 = vpow2.f32 %v916_v13 }
 0x49f   : > { %2181 = vrot.lane.b32.xlu1 %v1239_v62, %s3082_s30  ;;  %1314 = vmax.xlane.f32.xlu2 %v1313_v60  ;;  %v4671_v62 = vld [vmem:[#allocation11_spill] sm:$0xff] }
 0x4a0   : > { %v2848_v59 = vpop.eup %2847 }
 0x4a7   : > { %1317 = vmax.xlane.f32.xlu2 %v1316_v38  ;;  %v4281_v38 = vpop.f32.mrf.mxu3 }
 0x4ae   : > { %1326 = vmax.xlane.f32.xlu0 %v1325_v22  ;;  %v4277_v29 = vpop.permute.xlu1 %2175 }
 0x4af   : > { %4670 = vst [vmem:[#allocation10_spill] sm:$0xff] %v4277_v29 }
 0x4b6   : > { %1739 = vmax.xlane.f32.xlu0 %v1738_v46 }
 0x4b9   : > { %v884_v1 = vpop.xlane.xlu2 %883 }
 0x4ba   : > { %v906_v16 = vsub.f32 %v4129_v42, %v884_v1  ;;  %v1661_v42 = vmul.f32 %v2846_v55, %v4083_v11  ;;  %v4288_v1 = vpop.f32.mrf.mxu3 }
 0x4bc   : > { %v914_v50 = vmul.f32 1.442695, %v906_v16 }
 0x4be   : > { %2849 = vpow2.f32 %v914_v50  ;;  %1742 = vmax.xlane.f32.xlu0 %v1741_v19  ;;  %v1643_v19 = vpop.f32.mrf.mxu1 }
 0x4bf   : > { %2183 = vrot.lane.b32.xlu2 %v1240_v28, %s3082_s30 }
 0x4c1   : > { %v4295_v55 = vpop.xlane.xlu2 %2016 }
 0x4c2   : > { %v4293_v28 = vpop.f32.mrf.mxu3 }
 0x4c4   : > { %v2850_v43 = vpop.eup %2849 }
 0x4c5   : > { %v954_v21 = vpack.c.bf16 %v2848_v59, %v2850_v43  ;;  %v930_v30 = vsel %vm317_vm0, %v2850_v43, 0.0  ;;  %v4297_v43 = vpop.permute.xlu0 %2173 }
 0x4c7   : > { %2233 = vrot.lane.b32.xlu2 %v1661_v42, %s3081_s26  ;;  %2583 = vmatmul.msk.bf16.vlgmr.msra.gmra.mxu2 %vm317_vm0, %v954_v21 }
 0x4c8   : > { %1842 = vmatpush.bf16.msra.mxu2 %v4667_v31  ;;  %v4300_v31 = vpop.f32.mrf.mxu1 }
 0x4c9   : > { %931 = vadd.xlane.f32.xlu1 %v930_v30 }
 0x4cc   : > { %1843 = vmatpush.bf16.msra.mxu2 %v4668_v44  ;;  %v4306_v44 = vpop.f32.mrf.mxu3 }
 0x4d0   : > { %1844 = vmatpush.bf16.msra.mxu2 %v4669_v27  ;;  %v4308_v27 = vpop.permute.xlu2 %2177 }
 0x4d3   : > { %v4304_v30 = vpop.xlane.xlu0 %2019 }
 0x4d4   : > { %1845 = vmatpush.bf16.msra.mxu2 %v4671_v62  ;;  %v1753_v62 = vsel %vm317_vm0, %v4306_v44, -inf }
 0x4d9   : > { %v890_v11 = vpop.xlane.xlu1 %889 }
 0x4da   : > { %v908_v60 = vsub.f32 %v4153_v32, %v890_v11  ;;  %v1322_v32 = vsel %vm317_vm0, %v4221_v2, -inf  ;;  %v4312_v11 = vpop.f32.mrf.mxu1 }
 0x4dc   : > { %v918_v22 = vmul.f32 1.442695, %v908_v60  ;;  %v1331_v60 = vsel %vm317_vm0, %v4238_v37, -inf }
 0x4de   : > { %2851 = vpow2.f32 %v918_v22 }
 0x4e1   : > { %v4283_v34 = vpop.xlane.xlu1 %2022 }
 0x4e4   : > { %v2852_v46 = vpop.eup %2851 }
 0x4e5   : > { %v936_v13 = vsel %vm317_vm0, %v2852_v46, 0.0 }
 0x4e6   : > { %937 = vadd.xlane.f32.xlu0 %v936_v13  ;;  %v896_v13 = vpop.xlane.xlu0 %895 }
 0x4e9   : > { %v899_v54 = vpop.xlane.xlu1 %898 }
 0x4ea   : > { %v911_v16 = vsub.f32 %v4175_v58, %v899_v54  ;;  %v1328_v58 = vsel %vm317_vm0, %v4230_v17, -inf }
 0x4ec   : > { %v924_v50 = vmul.f32 1.442695, %v911_v16 }
 0x4ee   : > { %2853 = vpow2.f32 %v924_v50  ;;  %v910_v50 = vsub.f32 %v4167_v47, %v896_v13 }
 0x4f0   : > { %1323 = vmax.xlane.f32.xlu2 %v1322_v32  ;;  %v933_v32 = vsel %vm317_vm0, %v2848_v59, 0.0 }
 0x4f4   : > { %v2854_v42 = vpop.eup %2853 }
 0x4f5   : > { %v945_v21 = vsel %vm317_vm0, %v2854_v42, 0.0 }
 0x4f6   : > { %946 = vadd.xlane.f32.xlu0 %v945_v21  ;;  %v1650_v21 = vpop.f32.mrf.mxu1 }
 0x4f8   : > { %1329 = vmax.xlane.f32.xlu2 %v1328_v58  ;;  %v922_v58 = vmul.f32 1.442695, %v910_v50  ;;  %v1750_v50 = vsel %vm317_vm0, %v4293_v28, -inf }
 0x4fe   : > { %1754 = vmax.xlane.f32.xlu0 %v1753_v62 }
 0x500   : > { %1332 = vmax.xlane.f32.xlu2 %v1331_v60 }
 0x502   : > { %v893_v22 = vpop.xlane.xlu2 %892 }
 0x503   : > { %v909_v54 = vsub.f32 %v4160_v35, %v893_v22  ;;  %v1744_v35 = vsel %vm317_vm0, %v4281_v38, -inf }
 0x505   : > { %v920_v16 = vmul.f32 1.442695, %v909_v54 }
 0x507   : > { %2855 = vpow2.f32 %v920_v16 }
 0x508   : > { %934 = vadd.xlane.f32.xlu2 %v933_v32  ;;  %2857 = vrcp.f32 %v4057_v61  ;;  %v2061_v61 = vpop.f32.mrf.mxu1 }
 0x509   : > { %2859 = vpow2.f32 %v922_v58 }
 0x50a   : > { %2861 = vrcp.f32 %v4135_v52  ;;  %v902_v13 = vpop.xlane.xlu2 %901 }
 0x50b   : > { %2863 = vrcp.f32 %v4183_v25  ;;  %v912_v16 = vsub.f32 %v4179_v45, %v902_v13 }
 0x50c   : > { %2865 = vrcp.f32 %v4233_v24 }
 0x50d   : > { %v2856_v62 = vpop.eup %2855  ;;  %v926_v58 = vmul.f32 1.442695, %v912_v16  ;;  %2867 = vrcp.f32 %v4119_v41 }
 0x50e   : > { %v939_v29 = vsel %vm317_vm0, %v2856_v62, 0.0  ;;  %v955_v60 = vpack.c.bf16 %v2856_v62, %v2852_v46  ;;  %v2858_v63 = vpop.eup %2857  ;;  %v1747_v46 = vsel %vm317_vm0, %v4288_v1, -inf }
 0x50f   : > { %940 = vadd.xlane.f32.xlu1 %v939_v29  ;;  %v1662_v47 = vmul.f32 %v2858_v63, %v4089_v26  ;;  %v2860_v59 = vpop.eup %2859  ;;  %v905_v63 = vpop.xlane.xlu0 %904  ;;  %2869 = vpow2.f32 %v926_v58 }
 0x510   : > { %2584 = vmatmul.msk.bf16.gmra.mxu2 %vm317_vm0, %v955_v60  ;;  %1745 = vmax.xlane.f32.xlu2 %v1744_v35  ;;  %v2862_v22 = vpop.eup %2861  ;;  %v942_v52 = vsel %vm317_vm0, %v2860_v59, 0.0  ;;  %v4332_v26 = vpop.f32.mrf.mxu1  ;;  %v956_v32 = vpack.c.bf16 %v2854_v42, %v2860_v59  ;;  %v913_v25 = vsub.f32 %v4185_v36, %v905_v63  ;;  %2871 = vrcp.f32 %v4244_v8 }
 0x511   : > { %v1665_v29 = vmul.f32 %v2862_v22, %v1643_v19  ;;  %v2864_v54 = vpop.eup %2863  ;;  %v1312_v59 = vpop.xlane.xlu1 %1311 }
 0x512   : > { %2235 = vrot.lane.b32.xlu0 %v1662_v47, %s3081_s26  ;;  %v1668_v19 = vmul.f32 %v2864_v54, %v1650_v21  ;;  %v928_v62 = vmul.f32 1.442695, %v913_v25  ;;  %v2866_v60 = vpop.eup %2865  ;;  %v1315_v35 = vpop.xlane.xlu2 %1314 }
 0x513   : > { %v2089_v42 = vmul.f32 %v2866_v60, %v2061_v61  ;;  %v2868_v24 = vpop.eup %2867  ;;  %v1335_v41 = vsub.f32 %v4202_v49, %v1315_v35 }
 0x514   : > { %2873 = vpow2.f32 %v928_v62  ;;  %v1664_v22 = vmul.f32 %v2868_v24, %v4285_v20 }
 0x515   : > { %v4344_v36 = vpop.eup %2869  ;;  %2875 = vrcp.f32 %v4165_v48 }
 0x516   : > { %v2872_v21 = vpop.eup %2871  ;;  %2877 = vrcp.f32 %v4147_v40 }
 0x517   : > { %1748 = vmax.xlane.f32.xlu1 %v1747_v46  ;;  %v1334_v46 = vsub.f32 %v4194_v18, %v1312_v59  ;;  %2879 = vrcp.f32 %v4242_v12 }
 0x518   : > { %943 = vadd.xlane.f32.xlu2 %v942_v52  ;;  %v2066_v45 = vpop.f32.mrf.mxu1 }
 0x519   : > { %v1342_v49 = vmul.f32 1.442695, %v1334_v46  ;;  %v1321_v16 = vpop.xlane.xlu1 %1320 }
 0x51a   : > { %2241 = vrot.lane.b32.xlu0 %v1665_v29, %s3081_s26  ;;  %v4346_v47 = vpop.eup %2873  ;;  %v1344_v29 = vmul.f32 1.442695, %v1335_v41  ;;  %v1318_v63 = vpop.xlane.xlu2 %1317 }
 0x51b   : > { %v957_v8 = vpack.c.bf16 %v4346_v47, %v4344_v36  ;;  %v2876_v48 = vpop.eup %2875  ;;  %v1336_v12 = vsub.f32 %v4208_v4, %v1318_v63 }
 0x51c   : > { %2881 = vpow2.f32 %v1344_v29  ;;  %v1667_v20 = vmul.f32 %v2876_v48, %v4312_v11  ;;  %v2878_v18 = vpop.eup %2877 }
 0x51d   : > { %2883 = vpow2.f32 %v1342_v49  ;;  %v2880_v13 = vpop.eup %2879  ;;  %v1346_v25 = vmul.f32 1.442695, %v1336_v12  ;;  %v948_v12 = vsel %vm317_vm0, %v4344_v36, 0.0 }
 0x51e   : > { %2885 = vrcp.f32 %v4256_v39  ;;  %v2091_v11 = vmul.f32 %v2880_v13, %v2066_v45 }
 0x51f   : > { %1751 = vmax.xlane.f32.xlu1 %v1750_v50  ;;  %v1666_v50 = vmul.f32 %v2878_v18, %v4300_v31  ;;  %2887 = vrcp.f32 %v4273_v0  ;;  %v4383_v0 = vpop.permute.xlu0 %2179 }
 0x520   : > { %2585 = vmatmul.msk.bf16.gmra.mxu2 %vm317_vm0, %v956_v32  ;;  %v2068_v61 = vpop.f32.mrf.mxu1  ;;  %2889 = vpow2.f32 %v1346_v25 }
 0x521   : > { %v2092_v52 = vmul.f32 %v2872_v21, %v2068_v61  ;;  %v4388_v21 = vpop.f32.mrf.mxu3  ;;  %v951_v61 = vsel %vm317_vm0, %v4346_v47, 0.0  ;;  %v4402_v18 = vpop.permute.xlu1 %2181 }
 0x522   : > { %2247 = vrot.lane.b32.xlu0 %v1668_v19, %s3081_s26  ;;  %v2882_v54 = vpop.eup %2881  ;;  %v1756_v36 = vsel %vm317_vm0, %v4388_v21, -inf }
 0x523   : > { %v4364_v40 = vpop.eup %2883 }
 0x524   : > { %v1382_v32 = vpack.c.bf16 %v2882_v54, %v4364_v40  ;;  %v2886_v39 = vpop.eup %2885 }
 0x525   : > { %v2090_v4 = vmul.f32 %v2886_v39, %v4332_v26  ;;  %v2888_v31 = vpop.eup %2887 }
 0x526   : > { %v4376_v58 = vpop.eup %2889 }
 0x527   : > { %v1327_v24 = vpop.xlane.xlu0 %1326 }
 0x528   : > { %v1339_v35 = vsub.f32 %v4225_v33, %v1327_v24 }
 0x529   : > { %v4393_v29 = vpop.f32.mrf.mxu3 }
 0x52a   : > { %2297 = vrot.lane.b32.xlu0 %v2089_v42, %s3074_s14  ;;  %v4380_v42 = vpop.permute.xlu2 %2183  ;;  %v1352_v59 = vmul.f32 1.442695, %v1339_v35  ;;  %v1358_v35 = vsel %vm317_vm0, %v4364_v40, 0.0  ;;  %v1364_v40 = vsel %vm317_vm0, %v4376_v58, 0.0 }
 0x530   : > { %2239 = vrot.lane.b32.xlu2 %v1664_v22, %s3081_s26  ;;  %2586 = vmatmul.msk.bf16.gmra.mxu2 %vm317_vm0, %v957_v8 }
 0x532   : > { %2303 = vrot.lane.b32.xlu0 %v2092_v52, %s3074_s14  ;;  %v4385_v26 = vpop.permute.xlu2 %2233 }
 0x538   : > { %2237 = vrot.lane.b32.xlu1 %v4100_v51, %s3081_s26  ;;  %2245 = vrot.lane.b32.xlu2 %v1667_v20, %s3081_s26  ;;  %v1337_v51 = vsub.f32 %v4215_v57, %v1321_v16  ;;  %v2071_v57 = vpop.f32.mrf.mxu1  ;;  %v1740_v20 = vpop.xlane.xlu0 %1739 }
 0x539   : > { %v2093_v60 = vmul.f32 %v2888_v31, %v2071_v57 }
 0x53a   : > { %v1348_v19 = vmul.f32 1.442695, %v1337_v51 }
 0x53c   : > { %2891 = vpow2.f32 %v1348_v19  ;;  %v1762_v19 = vsub.f32 %v4248_v23, %v1740_v20 }
 0x53d   : > { %2893 = vpow2.f32 %v1352_v59 }
 0x540   : > { %2243 = vrot.lane.b32.xlu1 %v1666_v50, %s3081_s26  ;;  %2301 = vrot.lane.b32.xlu2 %v2091_v11, %s3074_s14  ;;  %v932_v50 = vpop.xlane.xlu1 %931  ;;  %v1743_v11 = vpop.xlane.xlu0 %1742 }
 0x541   : > { %2599 = vmatmul.msk.bf16.vlgmr.msrb.gmra.mxu2 %vm317_vm0, %v1382_v32  ;;  %v1763_v39 = vsub.f32 %v4258_v15, %v1743_v11  ;;  %v1770_v15 = vmul.f32 1.442695, %v1762_v19 }
 0x542   : > { %v2892_v62 = vpop.eup %2891 }
 0x543   : > { %v1383_v45 = vpack.c.bf16 %v2892_v62, %v4376_v58  ;;  %v2894_v52 = vpop.eup %2893  ;;  %v1772_v57 = vmul.f32 1.442695, %v1763_v39 }
 0x548   : > { %2299 = vrot.lane.b32.xlu1 %v2090_v4, %s3074_s14 }
 0x54a   : > { %v991_v31 = vpop.f32.mrf.mxu2 }
 0x550   : > { %2305 = vrot.lane.b32.xlu1 %v2093_v60, %s3074_s14 }
 0x551   : > { %2600 = vmatmul.msk.bf16.gmra.mxu2 %vm317_vm0, %v1383_v45 }
 0x552   : > { %v993_v59 = vpop.f32.mrf.mxu2 }
 0x563   : > { %v1324_v41 = vpop.xlane.xlu2 %1323 }
 0x564   : > { %v1338_v22 = vsub.f32 %v4221_v2, %v1324_v41  ;;  %v1759_v2 = vsel %vm317_vm0, %v4393_v29, -inf  ;;  %v938_v41 = vpop.xlane.xlu0 %937 }
 0x566   : > { %v1350_v8 = vmul.f32 1.442695, %v1338_v22 }
 0x568   : > { %2895 = vpow2.f32 %v1350_v8 }
 0x569   : > { %952 = vadd.xlane.f32.xlu2 %v951_v61 }
 0x56b   : > { %v1330_v46 = vpop.xlane.xlu2 %1329 }
 0x56c   : > { %v1340_v33 = vsub.f32 %v4230_v17, %v1330_v46  ;;  %v1361_v17 = vsel %vm317_vm0, %v2882_v54, 0.0  ;;  %v1367_v54 = vsel %vm317_vm0, %v2892_v62, 0.0  ;;  %v1373_v62 = vsel %vm317_vm0, %v2894_v52, 0.0  ;;  %v947_v20 = vpop.xlane.xlu0 %946 }
 0x56e   : > { %v4395_v48 = vpop.eup %2895  ;;  %v1354_v47 = vmul.f32 1.442695, %v1340_v33 }
 0x56f   : > { %v1384_v49 = vpack.c.bf16 %v2894_v52, %v4395_v48 }
 0x570   : > { %2897 = vpow2.f32 %v1354_v47 }
 0x571   : > { %1760 = vmax.xlane.f32.xlu2 %v1759_v2  ;;  %2601 = vmatmul.msk.bf16.gmra.mxu2 %vm317_vm0, %v1384_v49 }
 0x573   : > { %v1333_v13 = vpop.xlane.xlu2 %1332 }
 0x574   : > { %v1341_v63 = vsub.f32 %v4238_v37, %v1333_v13 }
 0x576   : > { %v1356_v16 = vmul.f32 1.442695, %v1341_v63  ;;  %v2898_v51 = vpop.eup %2897 }
 0x578   : > { %2899 = vpow2.f32 %v1356_v16 }
 0x579   : > { %1362 = vadd.xlane.f32.xlu2 %v1361_v17  ;;  %2901 = vpow2.f32 %v1772_v57  ;;  %v1755_v17 = vpop.xlane.xlu0 %1754 }
 0x57a   : > { %949 = vadd.xlane.f32.xlu1 %v948_v12  ;;  %2903 = vpow2.f32 %v1770_v15  ;;  %v1767_v58 = vsub.f32 %v4306_v44, %v1755_v17 }
 0x57b   : > { %v935_v32 = vpop.xlane.xlu2 %934 }
 0x57e   : > { %v2900_v25 = vpop.eup %2899 }
 0x57f   : > { %v1379_v37 = vsel %vm317_vm0, %v2900_v25, 0.0  ;;  %v1385_v4 = vpack.c.bf16 %v2900_v25, %v2898_v51  ;;  %v2902_v8 = vpop.eup %2901 }
 0x580   : > { %1380 = vadd.xlane.f32.xlu0 %v1379_v37  ;;  %v2904_v61 = vpop.eup %2903  ;;  %v1789_v2 = vsel %vm317_vm0, %v2902_v8, 0.0  ;;  %v1780_v37 = vmul.f32 1.442695, %v1767_v58 }
 0x581   : > { %1368 = vadd.xlane.f32.xlu2 %v1367_v54  ;;  %2602 = vmatmul.msk.bf16.gmra.mxu2 %vm317_vm0, %v1385_v4  ;;  %v1786_v44 = vsel %vm317_vm0, %v2904_v61, 0.0 }
 0x582   : > { %v4415_v60 = vpop.xlane.xlu1 %940  ;;  %1757 = vmax.xlane.f32.xlu1 %v1756_v36 }
 0x583   : > { %v1746_v45 = vpop.xlane.xlu2 %1745 }
 0x584   : > { %v1764_v23 = vsub.f32 %v4281_v38, %v1746_v45  ;;  %v1810_v38 = vpack.c.bf16 %v2902_v8, %v2904_v61 }
 0x586   : > { %v1774_v24 = vmul.f32 1.442695, %v1764_v23 }
 0x588   : > { %2905 = vpow2.f32 %v1774_v24 }
 0x589   : > { %1374 = vadd.xlane.f32.xlu2 %v1373_v62 }
 0x58a   : > { %1359 = vadd.xlane.f32.xlu1 %v1358_v35  ;;  %v1749_v22 = vpop.xlane.xlu1 %1748 }
 0x58b   : > { %v1765_v33 = vsub.f32 %v4288_v1, %v1749_v22  ;;  %v1370_v1 = vsel %vm317_vm0, %v4395_v48, 0.0  ;;  %v944_v23 = vpop.xlane.xlu2 %943 }
 0x58d   : > { %v1776_v52 = vmul.f32 1.442695, %v1765_v33 }
 0x58e   : > { %v2906_v46 = vpop.eup %2905 }
 0x58f   : > { %v1792_v49 = vsel %vm317_vm0, %v2906_v46, 0.0  ;;  %2907 = vpow2.f32 %v1776_v52 }
 0x590   : > { %1793 = vadd.xlane.f32.xlu0 %v1792_v49  ;;  %2909 = vrcp.f32 %v935_v32  ;;  %v1376_v32 = vsel %vm317_vm0, %v2898_v51, 0.0 }
 0x591   : > { %2615 = vmatmul.msk.bf16.vlgmr.msra.gmra.mxu2 %vm317_vm0, %v1810_v38  ;;  %1790 = vadd.xlane.f32.xlu2 %v1789_v2  ;;  %2911 = vrcp.f32 %v932_v50 }
 0x592   : > { %1365 = vadd.xlane.f32.xlu1 %v1364_v40  ;;  %v1752_v13 = vpop.xlane.xlu1 %1751  ;;  %2913 = vrcp.f32 %v947_v20 }
 0x593   : > { %v996_v47 = vpop.f32.mrf.mxu2  ;;  %v1766_v12 = vsub.f32 %v4293_v28, %v1752_v13  ;;  %v4444_v24 = vpop.permute.xlu2 %2239 }
 0x595   : > { %v2908_v16 = vpop.eup %2907  ;;  %v1778_v39 = vmul.f32 1.442695, %v1766_v12 }
 0x596   : > { %v2910_v11 = vpop.eup %2909  ;;  %v1811_v25 = vpack.c.bf16 %v2908_v16, %v2906_v46  ;;  %v1795_v45 = vsel %vm317_vm0, %v2908_v16, 0.0 }
 0x597   : > { %v1020_v48 = vmul.f32 %v2910_v11, %v993_v59  ;;  %v2912_v4 = vpop.eup %2911  ;;  %2915 = vpow2.f32 %v1778_v39 }
 0x598   : > { %v1019_v28 = vmul.f32 %v2912_v4, %v991_v31  ;;  %2917 = vpow2.f32 %v1780_v37  ;;  %v2914_v50 = vpop.eup %2913 }
 0x599   : > { %2919 = vrcp.f32 %v938_v41  ;;  %v4457_v41 = vpop.permute.xlu0 %2235 }
 0x59a   : > { %1371 = vadd.xlane.f32.xlu1 %v1370_v1  ;;  %2921 = vrcp.f32 %v944_v23 }
 0x59b   : > { %v4429_v63 = vpop.f32.mrf.mxu2  ;;  %v4448_v8 = vpop.permute.xlu2 %2245 }
 0x59d   : > { %v2916_v51 = vpop.eup %2915 }
 0x59e   : > { %v2918_v57 = vpop.eup %2917  ;;  %v1798_v38 = vsel %vm317_vm0, %v2916_v51, 0.0 }
 0x59f   : > { %v1812_v15 = vpack.c.bf16 %v2918_v57, %v2916_v51  ;;  %v2920_v59 = vpop.eup %2919  ;;  %v1801_v61 = vsel %vm317_vm0, %v2918_v57, 0.0 }
 0x5a0   : > { %v1021_v22 = vmul.f32 %v2920_v59, %v996_v47  ;;  %v2922_v20 = vpop.eup %2921 }
 0x5a1   : > { %2616 = vmatmul.msk.bf16.gmra.mxu2 %vm317_vm0, %v1811_v25  ;;  %v4463_v47 = vpop.permute.xlu0 %2241 }
 0x5a2   : > { %1377 = vadd.xlane.f32.xlu1 %v1376_v32 }
 0x5a3   : > { %v1001_v19 = vpop.f32.mrf.mxu2  ;;  %v4455_v49 = vpop.permute.xlu2 %2301 }
 0x5a4   : > { %2139 = vrot.lane.b32.xlu0 %v1020_v48, %s3088_s11  ;;  %v1023_v1 = vmul.f32 %v2922_v20, %v1001_v19 }
 0x5a9   : > { %2137 = vrot.lane.b32.xlu2 %v1019_v28, %s3088_s11  ;;  %v4472_v32 = vpop.permute.xlu0 %2247 }
 0x5aa   : > { %1787 = vadd.xlane.f32.xlu1 %v1786_v44  ;;  %v4446_v35 = vpop.permute.xlu1 %2237 }
 0x5ab   : > { %v1003_v54 = vpop.f32.mrf.mxu2 }
 0x5ac   : > { %v4438_v36 = vmul.f32 %v2914_v50, %v1003_v54 }
 0x5b1   : > { %2617 = vmatmul.msk.bf16.gmra.mxu2 %vm317_vm0, %v1812_v15  ;;  %v4477_v37 = vpop.permute.xlu0 %2297 }
 0x5b2   : > { %1796 = vadd.xlane.f32.xlu1 %v1795_v45  ;;  %v4452_v33 = vpop.permute.xlu1 %2243 }
 0x5b3   : > { %v4442_v31 = vpop.f32.mrf.mxu2 }
 0x5b9   : > { %v4482_v45 = vpop.permute.xlu0 %2303 }
 0x5ba   : > { %v4461_v40 = vpop.permute.xlu1 %2299 }
 0x5bb   : > { %v1008_v62 = vpop.f32.mrf.mxu2 }
 0x5c2   : > { %v4469_v12 = vpop.permute.xlu1 %2305 }
 0x5c4   : > { %v1419_v46 = vpop.f32.mrf.mxu2 }
 0x5cb   : > { %2141 = vrot.lane.b32.xlu1 %v1021_v22, %s3088_s11 }
 0x5cc   : > { %v4459_v2 = vpop.f32.mrf.mxu2 }
 0x5ce   : > { %1802 = vadd.xlane.f32.xlu0 %v1801_v61 }
 0x5d2   : > { %1799 = vadd.xlane.f32.xlu2 %v1798_v38 }
 0x5d4   : > { %v4466_v13 = vpop.f32.mrf.mxu2 }
 0x5dc   : > { %v953_v52 = vpop.xlane.xlu2 %952  ;;  %v1426_v39 = vpop.f32.mrf.mxu2 }
 0x5dd   : > { %2923 = vrcp.f32 %v953_v52 }
 0x5de   : > { %2925 = vrcp.f32 %v4415_v60 }
 0x5e2   : > { %2145 = vrot.lane.b32.xlu0 %v1023_v1, %s3088_s11 }
 0x5e3   : > { %v2924_v17 = vpop.eup %2923 }
 0x5e4   : > { %v1761_v16 = vpop.xlane.xlu2 %1760  ;;  %v2926_v11 = vpop.eup %2925  ;;  %v1026_v58 = vmul.f32 %v2924_v17, %v1008_v62 }
 0x5e5   : > { %v1022_v25 = vmul.f32 %v2926_v11, %v4429_v63  ;;  %v1769_v19 = vsub.f32 %v4393_v29, %v1761_v16 }
 0x5e7   : > { %v1784_v44 = vmul.f32 1.442695, %v1769_v19 }
 0x5e9   : > { %2927 = vpow2.f32 %v1784_v44 }
 0x5ea   : > { %2143 = vrot.lane.b32.xlu2 %v1022_v25, %s3088_s11  ;;  %2151 = vrot.lane.b32.xlu0 %v1026_v58, %s3088_s11 }
 0x5ec   : > { %v1363_v60 = vpop.xlane.xlu2 %1362 }
 0x5ed   : > { %v950_v48 = vpop.xlane.xlu1 %949 }
 0x5ef   : > { %v2928_v23 = vpop.eup %2927 }
 0x5f3   : > { %v1381_v20 = vpop.xlane.xlu0 %1380 }
 0x5f4   : > { %v1369_v4 = vpop.xlane.xlu2 %1368  ;;  %v1429_v28 = vpop.f32.mrf.mxu2 }
 0x5f5   : > { %v1758_v50 = vpop.xlane.xlu1 %1757 }
 0x5f6   : > { %v1768_v63 = vsub.f32 %v4388_v21, %v1758_v50 }
 0x5f8   : > { %v1782_v54 = vmul.f32 1.442695, %v1768_v63 }
 0x5fa   : > { %2929 = vpow2.f32 %v1782_v54 }
 0x5fc   : > { %v4480_v51 = vpop.f32.mrf.mxu2  ;;  %v1375_v57 = vpop.xlane.xlu2 %1374 }
 0x5fd   : > { %v1360_v15 = vpop.xlane.xlu1 %1359 }
 0x5fe   : > { %2931 = vrcp.f32 %v1360_v15 }
 0x5ff   : > { %2933 = vrcp.f32 %v1369_v4  ;;  %v1807_v4 = vsel %vm317_vm0, %v2928_v23, 0.0 }
 0x600   : > { %v2930_v29 = vpop.eup %2929 }
 0x601   : > { %v1804_v62 = vsel %vm317_vm0, %v2930_v29, 0.0  ;;  %v1813_v59 = vpack.c.bf16 %v2928_v23, %v2930_v29 }
 0x602   : > { %1805 = vadd.xlane.f32.xlu1 %v1804_v62 }
 0x603   : > { %2618 = vmatmul.msk.bf16.gmra.mxu2 %vm317_vm0, %v1813_v59  ;;  %v1794_v19 = vpop.xlane.xlu0 %1793 }
 0x604   : > { %v2932_v22 = vpop.eup %2931  ;;  %v1434_v21 = vpop.f32.mrf.mxu2 }
 0x605   : > { %v1791_v61 = vpop.xlane.xlu2 %1790  ;;  %v1366_v38 = vpop.xlane.xlu1 %1365  ;;  %v1447_v52 = vmul.f32 %v2932_v22, %v1419_v46 }
 0x606   : > { %v2934_v1 = vpop.eup %2933 }
 0x607   : > { %2201 = vrot.lane.b32.xlu0 %v1447_v52, %s3083_s5  ;;  %v1450_v58 = vmul.f32 %v2934_v1, %v1426_v39 }
 0x60c   : > { %v1436_v16 = vpop.f32.mrf.mxu2 }
 0x60d   : > { %v2138_v17 = vpop.permute.xlu2 %2137  ;;  %v1372_v25 = vpop.xlane.xlu1 %1371 }
 0x60e   : > { %v4489_v11 = vsel %vm2329_vm2, %v4066_v9, %v2138_v17 }
 0x60f   : > { %2207 = vrot.lane.b32.xlu0 %v1450_v58, %s3083_s5 }
 0x613   : > { %1808 = vadd.xlane.f32.xlu2 %v1807_v4 }
 0x614   : > { %v1847_v46 = vpop.f32.mrf.mxu2 }
 0x615   : > { %v1378_v44 = vpop.xlane.xlu1 %1377 }
 0x616   : > { %2935 = vrcp.f32 %v1378_v44  ;;  %v2140_v50 = vpop.permute.xlu0 %2139 }
 0x617   : > { %v4495_v63 = vsel %vm2329_vm2, %v4107_v3, %v2140_v50  ;;  %2937 = vrcp.f32 %v1363_v60  ;;  %v2073_v50 = vpop.f32.mrf.mxu1 }
 0x618   : > { %2939 = vrcp.f32 %v1794_v19 }
 0x619   : > { %2941 = vrcp.f32 %v950_v48 }
 0x61a   : > { %2943 = vrcp.f32 %v1372_v25 }
 0x61b   : > { %2147 = vrot.lane.b32.xlu1 %v4438_v36, %s3088_s11  ;;  %2945 = vrcp.f32 %v1366_v38 }
 0x61c   : > { %v2936_v9 = vpop.eup %2935  ;;  %v1849_v39 = vpop.f32.mrf.mxu2  ;;  %2947 = vrcp.f32 %v1381_v20 }
 0x61d   : > { %v1453_v54 = vmul.f32 %v2936_v9, %v1434_v21  ;;  %v2938_v15 = vpop.eup %2937  ;;  %v1788_v48 = vpop.xlane.xlu1 %1787  ;;  %2949 = vrcp.f32 %v1375_v57 }
 0x61e   : > { %v1448_v23 = vmul.f32 %v2938_v15, %v4459_v2  ;;  %v2940_v29 = vpop.eup %2939  ;;  %2951 = vrcp.f32 %v1788_v48 }
 0x61f   : > { %2213 = vrot.lane.b32.xlu0 %v1453_v54, %s3083_s5  ;;  %v2942_v62 = vpop.eup %2941  ;;  %v2076_v15 = vpop.f32.mrf.mxu1 }
 0x620   : > { %v2944_v59 = vpop.eup %2943  ;;  %v1025_v36 = vmul.f32 %v2942_v62, %v4442_v31 }
 0x621   : > { %v1451_v22 = vmul.f32 %v2944_v59, %v1429_v28  ;;  %v2946_v2 = vpop.eup %2945 }
 0x622   : > { %v2948_v21 = vpop.eup %2947  ;;  %v1449_v1 = vmul.f32 %v2946_v2, %v4466_v13 }
 0x623   : > { %2203 = vrot.lane.b32.xlu1 %v1448_v23, %s3083_s5  ;;  %v1454_v52 = vmul.f32 %v2948_v21, %v1436_v16  ;;  %v2950_v31 = vpop.eup %2949 }
 0x624   : > { %v1852_v3 = vpop.f32.mrf.mxu2  ;;  %v2952_v20 = vpop.eup %2951  ;;  %v1452_v17 = vmul.f32 %v2950_v31, %v4480_v51 }
 0x625   : > { %v1877_v60 = vmul.f32 %v2940_v29, %v1852_v3  ;;  %v1797_v28 = vpop.xlane.xlu1 %1796  ;;  %v1875_v25 = vmul.f32 %v2952_v20, %v1847_v46 }
 0x626   : > { %2953 = vrcp.f32 %v1797_v28 }
 0x627   : > { %2269 = vrot.lane.b32.xlu0 %v1877_v60, %s3077_s22  ;;  %2955 = vrcp.f32 %v1791_v61 }
 0x62b   : > { %2149 = vrot.lane.b32.xlu2 %v1025_v36, %s3088_s11  ;;  %2209 = vrot.lane.b32.xlu1 %v1451_v22, %s3083_s5 }
 0x62c   : > { %v1854_v38 = vpop.f32.mrf.mxu2  ;;  %v2954_v57 = vpop.eup %2953 }
 0x62d   : > { %v2956_v13 = vpop.eup %2955  ;;  %v1878_v19 = vmul.f32 %v2954_v57, %v1854_v38  ;;  %v2078_v38 = vpop.f32.mrf.mxu1 }
 0x62e   : > { %v1876_v58 = vmul.f32 %v2956_v13, %v1849_v39 }
 0x633   : > { %2205 = vrot.lane.b32.xlu2 %v1449_v1, %s3083_s5  ;;  %2215 = vrot.lane.b32.xlu1 %v1454_v52, %s3083_s5 }
 0x634   : > { %v1857_v16 = vpop.f32.mrf.mxu2 }
 0x63b   : > { %2211 = vrot.lane.b32.xlu2 %v1452_v17, %s3083_s5  ;;  %2265 = vrot.lane.b32.xlu1 %v1875_v25, %s3077_s22 }
 0x63c   : > { %v1859_v61 = vpop.f32.mrf.mxu2 }
 0x641   : > { %v1803_v4 = vpop.xlane.xlu0 %1802 }
 0x642   : > { %2957 = vrcp.f32 %v1803_v4 }
 0x643   : > { %2267 = vrot.lane.b32.xlu2 %v1876_v58, %s3077_s22  ;;  %2271 = vrot.lane.b32.xlu1 %v1878_v19, %s3077_s22 }
 0x645   : > { %v1800_v44 = vpop.xlane.xlu2 %1799 }
 0x646   : > { %2959 = vrcp.f32 %v1800_v44 }
 0x647   : > { %2961 = vrcp.f32 %v4304_v30  ;;  %v2142_v30 = vpop.permute.xlu1 %2141 }
 0x648   : > { %v2958_v51 = vpop.eup %2957  ;;  %v2332_v13 = vsel %vm2329_vm2, %v4114_v6, %v2142_v30 }
 0x649   : > { %v1880_v46 = vmul.f32 %v2958_v51, %v1859_v61  ;;  %v2341_v4 = vsel %vm2338_vm3, %v2332_v13, %v4297_v43 }
 0x64b   : > { %2275 = vrot.lane.b32.xlu0 %v1880_v46, %s3077_s22 }
 0x64c   : > { %v2960_v9 = vpop.eup %2959 }
 0x64d   : > { %v1879_v54 = vmul.f32 %v2960_v9, %v1857_v16  ;;  %v2962_v39 = vpop.eup %2961  ;;  %v4522_v59 = vpop.permute.xlu2 %2143 }
 0x64e   : > { %v2095_v23 = vmul.f32 %v2962_v39, %v2076_v15  ;;  %v2340_v39 = vsel %vm2338_vm3, %v4495_v63, %v4250_v14 }
 0x64f   : > { %2273 = vrot.lane.b32.xlu2 %v1879_v54, %s3077_s22 }
 0x653   : > { %2309 = vrot.lane.b32.xlu0 %v2095_v23, %s3074_s14 }
 0x654   : > { %v4518_v29 = vpop.permute.xlu0 %2145 }
 0x65c   : > { %v2152_v3 = vpop.permute.xlu0 %2151 }
 0x65d   : > { %v2337_v62 = vsel %vm2329_vm2, %v4157_v53, %v2152_v3 }
 0x65e   : > { %v2346_v23 = vsel %vm2338_vm3, %v2337_v62, %v4380_v42  ;;  %v2339_v42 = vsel %vm2338_vm3, %v4489_v11, %v4266_v10 }
 0x675   : > { %v1806_v60 = vpop.xlane.xlu1 %1805 }
 0x676   : > { %2963 = vrcp.f32 %v1806_v60 }
 0x677   : > { %2965 = vrcp.f32 %v4283_v34 }
 0x679   : > { %v4524_v36 = vpop.permute.xlu0 %2201 }
 0x67c   : > { %v2964_v22 = vpop.eup %2963 }
 0x67d   : > { %v2966_v1 = vpop.eup %2965 }
 0x67e   : > { %v2096_v57 = vmul.f32 %v2966_v1, %v2078_v38 }
 0x681   : > { %v4527_v52 = vpop.permute.xlu0 %2207 }
 0x686   : > { %v1809_v48 = vpop.xlane.xlu2 %1808  ;;  %v1862_v2 = vpop.f32.mrf.mxu2 }
 0x687   : > { %2967 = vrcp.f32 %v1809_v48  ;;  %v1881_v21 = vmul.f32 %v2964_v22, %v1862_v2  ;;  %v4673_v2 = vld [vmem:[#allocation10_spill] sm:$0xff] }
 0x688   : > { %2969 = vrcp.f32 %v4295_v55 }
 0x689   : > { %2277 = vrot.lane.b32.xlu1 %v1881_v21, %s3077_s22 }
 0x68d   : > { %v2968_v53 = vpop.eup %2967  ;;  %v2148_v31 = vpop.permute.xlu1 %2147 }
 0x68e   : > { %v2335_v28 = vsel %vm2329_vm2, %v4173_v5, %v2148_v31  ;;  %v2150_v20 = vpop.permute.xlu2 %2149  ;;  %v1864_v17 = vpop.f32.mrf.mxu2 }
 0x68f   : > { %v2336_v34 = vsel %vm2329_vm2, %v4189_v56, %v2150_v20  ;;  %v1882_v25 = vmul.f32 %v2968_v53, %v1864_v17  ;;  %v2970_v58 = vpop.eup %2969  ;;  %v2344_v46 = vsel %vm2338_vm3, %v2335_v28, %v4383_v0 }
 0x690   : > { %v2345_v16 = vsel %vm2338_vm3, %v2336_v34, %v4402_v18  ;;  %v2094_v51 = vmul.f32 %v2970_v58, %v2073_v50 }
 0x691   : > { %2279 = vrot.lane.b32.xlu2 %v1882_v25, %s3077_s22  ;;  %2311 = vrot.lane.b32.xlu1 %v2096_v57, %s3074_s14  ;;  %v2214_v55 = vpop.permute.xlu0 %2213 }
 0x692   : > { %v2354_v5 = vsel %vm2347_vm4, %v2345_v16, %v2214_v55 }
 0x693   : > { %v4544_v56 = vsel %vm2356_vm5, %v2354_v5, %v4448_v8 }
 0x695   : > { %v2204_v19 = vpop.permute.xlu1 %2203 }
 0x696   : > { %v2206_v18 = vpop.permute.xlu2 %2205  ;;  %v2349_v15 = vsel %vm2347_vm4, %v2340_v39, %v2204_v19 }
 0x697   : > { %v2350_v44 = vsel %vm2347_vm4, %v2341_v4, %v2206_v18  ;;  %v2358_v0 = vsel %vm2356_vm5, %v2349_v15, %v4457_v41  ;;  %v2348_v41 = vsel %vm2347_vm4, %v2339_v42, %v4524_v36 }
 0x698   : > { %v2359_v61 = vsel %vm2356_vm5, %v2350_v44, %v4446_v35 }
 0x699   : > { %2307 = vrot.lane.b32.xlu2 %v2094_v51, %s3074_s14  ;;  %v2270_v6 = vpop.permute.xlu0 %2269 }
 0x69a   : > { %v2368_v43 = vsel %vm2365_vm6, %v2359_v61, %v2270_v6 }
 0x69b   : > { %v2377_v8 = vsel %vm2374_vm7, %v2368_v43, %v4455_v49 }
 0x69c   : > { %2385 = vst.msk [vmem:[%s4557_s29 + $0x10] sm:$0xff] %vm317_vm0, %v2377_v8 }
 0x69d   : > { %v2210_v50 = vpop.permute.xlu1 %2209 }
 0x69e   : > { %v2212_v35 = vpop.permute.xlu2 %2211 }
 0x69f   : > { %v2353_v9 = vsel %vm2347_vm4, %v2344_v46, %v2212_v35 }
 0x6a0   : > { %v2362_v54 = vsel %vm2356_vm5, %v2353_v9, %v4452_v33  ;;  %v2334_v33 = vsel %vm2329_vm2, %v4144_v7, %v4518_v29 }
 0x6a1   : > { %v2343_v7 = vsel %vm2338_vm3, %v2334_v33, %v4308_v27 }
 0x6a2   : > { %v2352_v29 = vsel %vm2347_vm4, %v2343_v7, %v2210_v50 }
 0x6a3   : > { %v2361_v36 = vsel %vm2356_vm5, %v2352_v29, %v4463_v47 }
 0x6a5   : > { %v2216_v49 = vpop.permute.xlu1 %2215 }
 0x6a6   : > { %v2355_v3 = vsel %vm2347_vm4, %v2346_v23, %v2216_v49  ;;  %v2268_v30 = vpop.permute.xlu2 %2267 }
 0x6a7   : > { %v2367_v60 = vsel %vm2365_vm6, %v2358_v0, %v2268_v30  ;;  %v2364_v14 = vsel %vm2356_vm5, %v2355_v3, %v4472_v32  ;;  %v2357_v32 = vsel %vm2356_vm5, %v2348_v41, %v4385_v26 }
 0x6a8   : > { %v2376_v63 = vsel %vm2374_vm7, %v2367_v60, %v4461_v40  ;;  %v4672_v40 = vld [vmem:[#allocation8_spill] sm:$0xff] }
 0x6a9   : > { %2384 = vst.msk [vmem:[%s4557_s29 + $0x8] sm:$0xff] %vm317_vm0, %v2376_v63  ;;  %v2333_v10 = vsel %vm2329_vm2, %v4672_v40, %v4522_v59 }
 0x6aa   : > { %v2342_v59 = vsel %vm2338_vm3, %v2333_v10, %v4673_v2 }
 0x6ab   : > { %v2351_v21 = vsel %vm2347_vm4, %v2342_v59, %v4527_v52 }
 0x6ad   : > { %v2266_v62 = vpop.permute.xlu1 %2265 }
 0x6ae   : > { %v2366_v11 = vsel %vm2365_vm6, %v2357_v32, %v2266_v62  ;;  %v2274_v22 = vpop.permute.xlu2 %2273 }
 0x6af   : > { %v2375_v27 = vsel %vm2374_vm7, %v2366_v11, %v4477_v37  ;;  %v2370_v48 = vsel %vm2365_vm6, %v2361_v36, %v2274_v22  ;;  %v2360_v37 = vsel %vm2356_vm5, %v2351_v21, %v4444_v24 }
 0x6b0   : > { %2383 = vst.msk [vmem:[%s4557_s29] sm:$0xff] %vm317_vm0, %v2375_v27  ;;  %v2379_v26 = vsel %vm2374_vm7, %v2370_v48, %v4469_v12 }
 0x6b1   : > { %2387 = vst.msk [vmem:[%s4557_s29 + $0x20] sm:$0xff] %vm317_vm0, %v2379_v26 }
 0x6b5   : > { %v2272_v47 = vpop.permute.xlu1 %2271 }
 0x6b6   : > { %v2369_v1 = vsel %vm2365_vm6, %v2360_v37, %v2272_v47 }
 0x6b7   : > { %v2378_v53 = vsel %vm2374_vm7, %v2369_v1, %v4482_v45 }
 0x6b8   : > { %2386 = vst.msk [vmem:[%s4557_s29 + $0x18] sm:$0xff] %vm317_vm0, %v2378_v53 }
 0x6bd   : > { %v2276_v38 = vpop.permute.xlu0 %2275 }
 0x6be   : > { %v2371_v31 = vsel %vm2365_vm6, %v2362_v54, %v2276_v38 }
 0x6c5   : > { %v2310_v17 = vpop.permute.xlu0 %2309 }
 0x6eb   : > { %v2280_v12 = vpop.permute.xlu2 %2279 }
 0x6ec   : > { %v2373_v45 = vsel %vm2365_vm6, %v2364_v14, %v2280_v12 }
 0x6f3   : > { %v2308_v28 = vpop.permute.xlu2 %2307 }
 0x6f4   : > { %v2380_v52 = vsel %vm2374_vm7, %v2371_v31, %v2308_v28 }
 0x6f5   : > { %2388 = vst.msk [vmem:[%s4557_s29 + $0x28] sm:$0xff] %vm317_vm0, %v2380_v52 }
 0x6fb   : > { %v2278_v20 = vpop.permute.xlu1 %2277 }
 0x6fc   : > { %v2372_v24 = vsel %vm2365_vm6, %v4544_v56, %v2278_v20 }
 0x6fd   : > { %v2381_v34 = vsel %vm2374_vm7, %v2372_v24, %v2310_v17 }
 0x6fe   : > { %2389 = vst.msk [vmem:[%s4557_s29 + $0x30] sm:$0xff] %vm317_vm0, %v2381_v34 }
 0x703   : > { %v2312_v25 = vpop.permute.xlu1 %2311 }
 0x704   : > { %v2382_v57 = vsel %vm2374_vm7, %v2373_v45, %v2312_v25 }
 0x705   : > { %2390 = vst.msk [vmem:[%s4557_s29 + $0x38] sm:$0xff] %vm317_vm0, %v2382_v57 }
 0x706 PF: > { %p16_p4 = scmp.ge.s32.totalorder %s3157_s27, 4   ;;  %s4674_s15 = smov %s3061_s16 }
 0x707   : > { %s4675_s16 = smov %s3065_s17  ;;  %s4676_s17 = smov %s3170_s6 }
 0x708   : > { %s4677_s18 = smov %s3157_s27  ;;  %18 = sbr.rel (!%p16_p4) target bundleno = 4 (0x4), region = 88 }
 0x70d   :  { %2436 = vsyncpa [#allocation3], 1 }
 0x70e   :  { %2438 = vsyncpa [#allocation3 + $0x1], 1 }
 0x70f   :  { %2439 = vsyncpa [#allocation5], 1 }

// kernel: ablock_forward.4
= control target key start
LH: loop header
LB: loop body
LE: loop exit
PB: predicated region body
PF: predicated region fallthrough
CT: control target
= control target key end

     0   :  { %s3315_s12 = smov 0   ;;  %s4937_s0 = inlined_call_operand.vmem [shape: f32[2,8,512], index: 0, kind: input, shape index: {}]   ;;  %s4938_s1 = inlined_call_operand.vmem [shape: f32[49,512], index: 1, kind: input, shape index: {}]   ;;  %s4939_s2 = inlined_call_operand.vmem [shape: f32[1,512], index: 2, kind: input, shape index: {}]   ;;  %s4940_s3 = inlined_call_operand.vmem [shape: f32[2,8,512], index: 3, kind: output, shape index: {}]  }
   0x1 LB: > { %s3214_s13 = sadd.s32 4294967295, %s3291_s12   ;;  %p3218_p0 = scmp.ge.s32.totalorder %s3291_s12, 1  ;;  %s3291_s12 = sphi %s3315_s12, %s13_s12  }
   0x2   : > { %p137_p1 = scmp.lt.s32.totalorder %s3291_s12, 3 }
   0x4   : > { %p138_p2 = pnand %p3218_p0, %p137_p1 }
   0x5   : > { %p161_p3 = scmp.lt.s32.totalorder (!%p138_p2), %s3214_s13, 1  ;;  %s3293_s16 = smov (!%p138_p2), 64  }
   0x6   : > { %141 = sbr.rel (%p138_p2) target bundleno = 2029 (0x7ed), region = 32 }
   0xb   : > { %v3223_v0 = vld [vmem:[%s4938_s1 + $0x1] ss:$8 sm:$0xf]  ;;  %s4942_s13 = smov (!%p161_p3, %s3214_s13), 1  ;;  %vm186_vm0 = vcmask 523267   ;;  %v3294_v36 = vmov 0.0  }
   0xc   : > { %v262_v1 = vperm.slane %v3223_v0, 0  ;;  %s3273_s17 = sshll.u32 %s4942_s13, 5  ;;  %v263_v6 = vperm.slane %v3223_v0, 1  ;;  %v3225_v11 = vld [vmem:[%s4938_s1 + $0x3] ss:$8 sm:$0xf] }
   0xd   : > { %s165_s20 = scalar_lea.vmem %s4937_s0, %s3273_s17  ;;  %v338_v12 = vperm.slane %v3225_v11, 1  ;;  %v265_v13 = vperm.slane %v3223_v0, 3  ;;  %v264_v14 = vperm.slane %v3223_v0, 2  ;;  %v3227_v15 = vld [vmem:[%s4938_s1 + $0x5] ss:$8 sm:$0xf]  ;;  %s170_s28 = scalar_lea.vmem %s4940_s3, %s3273_s17 }
   0xe   : > { %266 = vrot.lane.b32.xlu2 %v262_v1, %s3293_s16  ;;  %v199_v2 = vld [vmem:[%s165_s20 + $0x10] sm:$0xff]  ;;  %v197_v3 = vld [vmem:[%s165_s20] sm:$0xff]  ;;  %v200_v7 = vld [vmem:[%s165_s20 + $0x18] sm:$0xff]  ;;  %v413_v16 = vperm.slane %v3227_v15, 1  ;;  %v337_v17 = vperm.slane %v3225_v11, 0  ;;  %v339_v18 = vperm.slane %v3225_v11, 2 }
   0xf   : > { %v207_v4 = vrot.slane %v199_v2, 5  ;;  %v205_v5 = vrot.slane %v197_v3, 5  ;;  %v198_v8 = vld [vmem:[%s165_s20 + $0x8] sm:$0xff]  ;;  %v208_v9 = vrot.slane %v200_v7, 5  ;;  %v340_v21 = vperm.slane %v3225_v11, 3 }
  0x10   : > { %v206_v10 = vrot.slane %v198_v8, 5  ;;  %v3230_v19 = vld [vmem:[%s4938_s1 + $0x20] ss:$8 sm:$0xf]  ;;  %v414_v22 = vperm.slane %v3227_v15, 2  ;;  %v412_v25 = vperm.slane %v3227_v15, 0 }
  0x11   : > { %213 = vrot.lane.b32.xlu1 %v207_v4, %s3293_s16  ;;  %209 = vrot.lane.b32.xlu0 %v205_v5, %s3293_s16  ;;  %v545_v20 = vperm.slane %v3230_v19, 1  ;;  %v3232_v23 = vld [vmem:[%s4938_s1 + $0x22] ss:$8 sm:$0xf]  ;;  %v546_v26 = vperm.slane %v3230_v19, 2  ;;  %v415_v29 = vperm.slane %v3227_v15, 3 }
  0x12   : > { %v674_v24 = vperm.slane %v3232_v23, 1  ;;  %v3234_v27 = vld [vmem:[%s4938_s1 + $0x24] ss:$8 sm:$0xf]  ;;  %v675_v30 = vperm.slane %v3232_v23, 2  ;;  %v544_v31 = vperm.slane %v3230_v19, 0 }
  0x13   : > { %v803_v28 = vperm.slane %v3234_v27, 1  ;;  %v804_v32 = vperm.slane %v3234_v27, 2  ;;  %v547_v33 = vperm.slane %v3230_v19, 3  ;;  %v673_v34 = vperm.slane %v3232_v23, 0  ;;  %187 = vst.msk [vmem:[#allocation2 + $0x8] sm:$0xf8] %vm186_vm0, %v3294_v36 }
  0x14   : > { %v676_v35 = vperm.slane %v3232_v23, 3  ;;  %vm189_vm1 = vcmask 518144   ;;  %v802_v37 = vperm.slane %v3234_v27, 0  ;;  %171 = vst [vmem:[#allocation2] sm:$0x7] %v3294_v36  ;;  %v805_v38 = vperm.slane %v3234_v27, 3 }
  0x15   : > { %190 = vst.msk [vmem:[#allocation2 + $0x40] sm:$0x7] %vm189_vm1, %v3294_v36  ;;  %vm191_vm2 = vcmask 1048067   ;;  %vm194_vm3 = vcmask 1042944   ;;  %vm217_vm4 = vcmask 523264   ;;  %vm518_vm5 = vcmask 1046528  }
  0x16   : > { %268 = vrot.lane.b32.xlu2 %v263_v6, %s3293_s16  ;;  %172 = vst [vmem:[#allocation2 + $0x8] sm:$0x7] %v3294_v36  ;;  %v3396_v50 = vld [vmem:[%s4938_s1 + $0x21] ss:$8 sm:$0xf]  ;;  %vm961_vm6 = vcmask 1045504  }
  0x17   : > { %173 = vst [vmem:[#allocation2 + $0x10] sm:$0x7] %v3294_v36  ;;  %v627_v52 = vperm.slane %v3396_v50, 3  ;;  %v3404_v53 = vld [vmem:[%s4938_s1 + $0x23] ss:$8 sm:$0xf] }
  0x18   : > { %174 = vst [vmem:[#allocation2 + $0x18] sm:$0x7] %v3294_v36  ;;  %v755_v59 = vperm.slane %v3404_v53, 2  ;;  %vm1404_vm7 = vcmask 1044480   ;;  %vm1847_vm8 = vcmask 1043456   ;;  %vm2290_vm9 = vcmask 1042432  }
  0x19   : > { %215 = vrot.lane.b32.xlu1 %v208_v9, %s3293_s16  ;;  %211 = vrot.lane.b32.xlu0 %v206_v10, %s3293_s16  ;;  %175 = vst [vmem:[#allocation2 + $0x20] sm:$0x7] %v3294_v36  ;;  %vm2733_vm10 = vcmask 1041408  }
  0x1a   : > { %176 = vst [vmem:[#allocation2 + $0x28] sm:$0x7] %v3294_v36 }
  0x1b   : > { %177 = vst [vmem:[#allocation2 + $0x30] sm:$0x7] %v3294_v36 }
  0x1c   : > { %178 = vst [vmem:[#allocation2 + $0x38] sm:$0x38] %v3294_v36 }
  0x1d   : > { %179 = vst [vmem:[#allocation2 + $0x40] sm:$0x38] %v3294_v36 }
  0x1e   : > { %343 = vrot.lane.b32.xlu2 %v338_v12, %s3293_s16  ;;  %180 = vst [vmem:[#allocation2 + $0x48] sm:$0x38] %v3294_v36 }
  0x1f   : > { %181 = vst [vmem:[#allocation2 + $0x50] sm:$0x38] %v3294_v36 }
  0x20   : > { %182 = vst [vmem:[#allocation2 + $0x58] sm:$0x38] %v3294_v36 }
  0x21   : > { %272 = vrot.lane.b32.xlu1 %v265_v13, %s3293_s16  ;;  %270 = vrot.lane.b32.xlu0 %v264_v14, %s3293_s16  ;;  %183 = vst [vmem:[#allocation2 + $0x60] sm:$0x38] %v3294_v36  ;;  %v3444_v13 = vld [vmem:[%s4938_s1 + $0x7] ss:$8 sm:$0xf] }
  0x22   : > { %184 = vst [vmem:[#allocation2 + $0x68] sm:$0x38] %v3294_v36  ;;  %v495_v14 = vperm.slane %v3444_v13, 1 }
  0x23   : > { %185 = vst [vmem:[#allocation2] sm:$0xf8] %v3294_v36 }
  0x24   : > { %188 = vst [vmem:[#allocation2 + $0x38] sm:$0x7] %v3294_v36 }
  0x25   : > { %192 = vst.msk [vmem:[#allocation2 + $0x28] sm:$0xf8] %vm191_vm2, %v3294_v36 }
  0x26   : > { %418 = vrot.lane.b32.xlu2 %v413_v16, %s3293_s16  ;;  %193 = vst [vmem:[#allocation2 + $0x30] sm:$0xf8] %v3294_v36 }
  0x27   : > { %195 = vst.msk [vmem:[#allocation2 + $0x60] sm:$0x7] %vm194_vm3, %v3294_v36 }
  0x28   : > { %196 = vst [vmem:[#allocation2 + $0x68] sm:$0x7] %v3294_v36 }
  0x29   : > { %341 = vrot.lane.b32.xlu1 %v337_v17, %s3293_s16  ;;  %345 = vrot.lane.b32.xlu0 %v339_v18, %s3293_s16  ;;  %v496_v18 = vperm.slane %v3444_v13, 2 }
  0x2a   : > { %v3381_v40 = vld [vmem:[#allocation2] sm:$0xff] }
  0x2e   : > { %550 = vrot.lane.b32.xlu2 %v545_v20, %s3293_s16 }
  0x31   : > { %347 = vrot.lane.b32.xlu1 %v340_v21, %s3293_s16  ;;  %420 = vrot.lane.b32.xlu0 %v414_v22, %s3293_s16 }
  0x36   : > { %679 = vrot.lane.b32.xlu2 %v674_v24, %s3293_s16 }
  0x39   : > { %416 = vrot.lane.b32.xlu1 %v412_v25, %s3293_s16  ;;  %552 = vrot.lane.b32.xlu0 %v546_v26, %s3293_s16 }
  0x3e   : > { %808 = vrot.lane.b32.xlu2 %v803_v28, %s3293_s16  ;;  %v3476_v28 = vld [vmem:[%s4938_s1 + $0x25] ss:$8 sm:$0xf] }
  0x41   : > { %422 = vrot.lane.b32.xlu1 %v415_v29, %s3293_s16  ;;  %681 = vrot.lane.b32.xlu0 %v675_v30, %s3293_s16 }
  0x49   : > { %548 = vrot.lane.b32.xlu1 %v544_v31, %s3293_s16  ;;  %810 = vrot.lane.b32.xlu0 %v804_v32, %s3293_s16 }
  0x51   : > { %554 = vrot.lane.b32.xlu1 %v547_v33, %s3293_s16 }
  0x59   : > { %677 = vrot.lane.b32.xlu1 %v673_v34, %s3293_s16 }
  0x61   : > { %683 = vrot.lane.b32.xlu1 %v676_v35, %s3293_s16 }
  0x68   : > { %v3379_v39 = vpop.permute.xlu2 %266 }
  0x69   : > { %806 = vrot.lane.b32.xlu1 %v802_v37, %s3293_s16  ;;  %v282_v41 = vmul.f32 %v3379_v39, %v3381_v40  ;;  %v624_v37 = vperm.slane %v3396_v50, 0 }
  0x6b   : > { %292 = vrot.lane.b32.xlu2 %v282_v41, %s3293_s16 }
  0x70   : > { %v3386_v44 = vpop.permute.xlu2 %268 }
  0x71   : > { %812 = vrot.lane.b32.xlu1 %v805_v38, %s3293_s16  ;;  %v883_v38 = vperm.slane %v3476_v28, 1 }
  0x78   : > { %v3398_v51 = vpop.permute.xlu2 %343 }
  0x80   : > { %v3425_v3 = vpop.permute.xlu2 %418 }
  0x83   : > { %v214_v42 = vpop.permute.xlu1 %213  ;;  %v210_v43 = vpop.permute.xlu0 %209 }
  0x84   : > { %226 = vst.msk [vmem:[#allocation2 + $0x8] sm:$0xf8] %vm191_vm2, %v210_v43 }
  0x85   : > { %231 = vst.msk [vmem:[#allocation2 + $0x40] sm:$0x7] %vm194_vm3, %v210_v43 }
  0x88   : > { %v3471_v27 = vpop.permute.xlu2 %550 }
  0x8b   : > { %v216_v45 = vpop.permute.xlu1 %215  ;;  %v212_v46 = vpop.permute.xlu0 %211  ;;  %v3447_v15 = vld [vmem:[#allocation2 + $0x8] sm:$0xfe] }
  0x8c   : > { %v220_v47 = vsel %vm217_vm4, %v214_v42, %v216_v45  ;;  %230 = vst.msk [vmem:[#allocation2 + $0x28] sm:$0xf8] %vm186_vm0, %v216_v45  ;;  %v218_v48 = vsel %vm217_vm4, %v210_v43, %v212_v46  ;;  %v219_v49 = vsel %vm217_vm4, %v212_v46, %v214_v42  ;;  %v3449_v16 = vld [vmem:[#allocation2 + $0x40] sm:$0x1]  ;;  %v503_v21 = vmul.f32 %v495_v14, %v3447_v15 }
  0x8d   : > { %229 = vst [vmem:[#allocation2 + $0x20] sm:$0xf8] %v220_v47  ;;  %v507_v22 = vmul.f32 %v495_v14, %v3449_v16  ;;  %v625_v42 = vperm.slane %v3396_v50, 1  ;;  %v632_v43 = vmul.f32 %v624_v37, %v3447_v15  ;;  %v753_v46 = vperm.slane %v3404_v53, 0 }
  0x8e   : > { %234 = vst [vmem:[#allocation2 + $0x58] sm:$0x7] %v220_v47  ;;  %v522_v32 = vrot.slane %v503_v21, 1 }
  0x8f   : > { %235 = vst.msk [vmem:[#allocation2 + $0x60] sm:$0x7] %vm189_vm1, %v216_v45  ;;  %v523_v33 = vrot.slane %v507_v22, 1  ;;  %v636_v45 = vmul.f32 %v624_v37, %v3449_v16 }
  0x90   : > { %227 = vst [vmem:[#allocation2 + $0x10] sm:$0xf8] %v218_v48  ;;  %v680_v14 = vpop.permute.xlu2 %679 }
  0x91   : > { %228 = vst [vmem:[#allocation2 + $0x18] sm:$0xf8] %v219_v49  ;;  %v3482_v36 = vsel %vm518_vm5, %v522_v32, %v523_v33 }
  0x92   : > { %232 = vst [vmem:[#allocation2 + $0x48] sm:$0x7] %v218_v48 }
  0x93   : > { %233 = vst [vmem:[#allocation2 + $0x50] sm:$0x7] %v219_v49  ;;  %v3406_v54 = vpop.permute.xlu1 %272  ;;  %v3408_v55 = vpop.permute.xlu0 %270 }
  0x94   : > { %v3410_v56 = vld [vmem:[#allocation2 + $0x20] sm:$0xfe]  ;;  %v275_v57 = vsel %vm217_vm4, %v3386_v44, %v3408_v55 }
  0x95   : > { %v3415_v58 = vld [vmem:[#allocation2 + $0x58] sm:$0x1]  ;;  %v635_v60 = vmul.f32 %v627_v52, %v3410_v56  ;;  %v763_v2 = vmul.f32 %v755_v59, %v3410_v56  ;;  %v3469_v26 = vld [vmem:[#allocation2 + $0x20] sm:$0xff] }
  0x96   : > { %v639_v61 = vmul.f32 %v627_v52, %v3415_v58  ;;  %v767_v4 = vmul.f32 %v755_v59, %v3415_v58  ;;  %v648_v59 = vrot.slane %v632_v43, 1 }
  0x97   : > { %v3420_v62 = vld [vmem:[#allocation2 + $0x10] sm:$0xff]  ;;  %v657_v0 = vrot.slane %v635_v60, 1  ;;  %v783_v10 = vrot.slane %v763_v2, 1  ;;  %v891_v60 = vmul.f32 %v883_v38, %v3410_v56 }
  0x98   : > { %v284_v63 = vmul.f32 %v275_v57, %v3420_v62  ;;  %v658_v1 = vrot.slane %v639_v61, 1  ;;  %v3438_v9 = vld [vmem:[#allocation2 + $0x18] sm:$0xff]  ;;  %v784_v12 = vrot.slane %v767_v4, 1  ;;  %v3465_v24 = vld [vmem:[#allocation2 + $0x10] sm:$0xfe]  ;;  %v895_v61 = vmul.f32 %v883_v38, %v3415_v58 }
  0x99   : > { %v3467_v25 = vld [vmem:[#allocation2 + $0x48] sm:$0x1]  ;;  %v504_v29 = vmul.f32 %v496_v18, %v3465_v24  ;;  %v633_v49 = vmul.f32 %v625_v42, %v3465_v24  ;;  %v909_v22 = vrot.slane %v891_v60, 1 }
  0x9a   : > { %296 = vrot.lane.b32.xlu1 %v284_v63, %s3293_s16  ;;  %v3433_v7 = vsel %vm518_vm5, %v657_v0, %v658_v1  ;;  %v3452_v17 = vsel %vm518_vm5, %v783_v10, %v784_v12  ;;  %v508_v30 = vmul.f32 %v496_v18, %v3467_v25  ;;  %v637_v52 = vmul.f32 %v625_v42, %v3467_v25  ;;  %v3528_v42 = vld [vmem:[#allocation2 + $0x18] sm:$0xfe]  ;;  %v3530_v43 = vld [vmem:[#allocation2 + $0x50] sm:$0x1] }
  0x9b   : > { %v3428_v5 = vpop.permute.xlu1 %341  ;;  %v3430_v6 = vpop.permute.xlu0 %345  ;;  %v525_v34 = vrot.slane %v504_v29, 1  ;;  %v649_v1 = vrot.slane %v636_v45, 1  ;;  %v651_v2 = vrot.slane %v633_v49, 1  ;;  %v765_v10 = vmul.f32 %v753_v46, %v3467_v25 }
  0x9c   : > { %v350_v8 = vsel %vm217_vm4, %v3398_v51, %v3430_v6  ;;  %v526_v35 = vrot.slane %v508_v30, 1  ;;  %v652_v4 = vrot.slane %v637_v52, 1  ;;  %v3516_v30 = vld [vmem:[#allocation2 + $0x30] sm:$0xff] }
  0x9d   : > { %v359_v11 = vmul.f32 %v350_v8, %v3438_v9  ;;  %v761_v8 = vmul.f32 %v753_v46, %v3465_v24  ;;  %v3510_v18 = vsel %vm518_vm5, %v648_v59, %v649_v1  ;;  %v778_v32 = vrot.slane %v765_v10, 1  ;;  %v3548_v1 = vld [vmem:[#allocation2 + $0x8] sm:$0xff] }
  0x9e   : > { %v3487_v41 = vsel %vm518_vm5, %v525_v34, %v526_v35  ;;  %v3513_v21 = vsel %vm518_vm5, %v651_v2, %v652_v4  ;;  %v274_v59 = vsel %vm217_vm4, %v3379_v39, %v3386_v44 }
  0x9f   : > { %v283_v44 = vmul.f32 %v274_v59, %v3548_v1  ;;  %v357_v59 = vmul.f32 %v3428_v5, %v3548_v1 }
  0xa2   : > { %371 = vrot.lane.b32.xlu1 %v359_v11, %s3293_s16 }
  0xa3   : > { %v3456_v19 = vpop.permute.xlu1 %347  ;;  %v3458_v20 = vpop.permute.xlu0 %420 }
  0xa4   : > { %v425_v23 = vsel %vm217_vm4, %v3425_v3, %v3458_v20 }
  0xa5   : > { %v434_v31 = vmul.f32 %v425_v23, %v3469_v26  ;;  %v910_v23 = vrot.slane %v895_v61, 1  ;;  %v3541_v61 = vpop.permute.xlu2 %808 }
  0xa7   : > { %v3520_v33 = vsel %vm518_vm5, %v909_v22, %v910_v23 }
  0xaa   : > { %446 = vrot.lane.b32.xlu1 %v434_v31, %s3293_s16  ;;  %v777_v31 = vrot.slane %v761_v8, 1 }
  0xab   : > { %v3494_v47 = vpop.permute.xlu1 %416  ;;  %v3496_v48 = vpop.permute.xlu0 %552 }
  0xac   : > { %v557_v57 = vsel %vm217_vm4, %v3471_v27, %v3496_v48  ;;  %v3525_v37 = vsel %vm518_vm5, %v777_v31, %v778_v32 }
  0xad   : > { %v566_v63 = vmul.f32 %v557_v57, %v3465_v24  ;;  %v571_v0 = vmul.f32 %v557_v57, %v3467_v25 }
  0xaf   : > { %v590_v11 = vrot.slane %v566_v63, 1  ;;  %v591_v12 = vrot.slane %v571_v0, 1  ;;  %v3543_v63 = vld [vmem:[#allocation2] sm:$0xfe]  ;;  %v3545_v0 = vld [vmem:[#allocation2 + $0x38] sm:$0x1] }
  0xb1   : > { %v592_v29 = vsel %vm518_vm5, %v590_v11, %v591_v12 }
  0xb2   : > { %603 = vrot.lane.b32.xlu1 %v592_v29, %s3293_s16 }
  0xb3   : > { %v423_v34 = vpop.permute.xlu1 %422  ;;  %v3522_v35 = vpop.permute.xlu0 %681 }
  0xb4   : > { %v436_v38 = vmul.f32 %v423_v34, %v3516_v30  ;;  %v686_v45 = vsel %vm217_vm4, %v680_v14, %v3522_v35 }
  0xb5   : > { %v695_v46 = vmul.f32 %v686_v45, %v3528_v42  ;;  %v700_v49 = vmul.f32 %v686_v45, %v3530_v43  ;;  %v3565_v45 = vld [vmem:[#allocation2 + $0x28] sm:$0xff] }
  0xb6   : > { %450 = vrot.lane.b32.xlu0 %v436_v38, %s3293_s16 }
  0xb7   : > { %v719_v52 = vrot.slane %v695_v46, 1  ;;  %v720_v57 = vrot.slane %v700_v49, 1  ;;  %v3570_v49 = vld [vmem:[%s4938_s1 + $0x27] ss:$8 sm:$0xf] }
  0xb9   : > { %v721_v60 = vsel %vm518_vm5, %v719_v52, %v720_v57  ;;  %v361_v52 = vmul.f32 %v3456_v19, %v3565_v45  ;;  %v987_v57 = vperm.slane %v3570_v49, 0 }
  0xba   : > { %732 = vrot.lane.b32.xlu1 %v721_v60, %s3293_s16 }
  0xbb   : > { %v549_v2 = vpop.permute.xlu1 %548  ;;  %v3550_v4 = vpop.permute.xlu0 %810 }
  0xbc   : > { %v564_v8 = vmul.f32 %v549_v2, %v3543_v63  ;;  %v569_v10 = vmul.f32 %v549_v2, %v3545_v0  ;;  %v815_v39 = vsel %vm217_vm4, %v3541_v61, %v3550_v4 }
  0xbd   : > { %v824_v11 = vmul.f32 %v815_v39, %v3410_v56  ;;  %v829_v12 = vmul.f32 %v815_v39, %v3415_v58 }
  0xbe   : > { %294 = vrot.lane.b32.xlu0 %v283_v44, %s3293_s16  ;;  %v584_v22 = vrot.slane %v564_v8, 1  ;;  %v585_v23 = vrot.slane %v569_v10, 1  ;;  %v286_v8 = vmul.f32 %v3406_v54, %v3469_v26  ;;  %v426_v10 = vsel %vm217_vm4, %v3458_v20, %v423_v34 }
  0xbf   : > { %v848_v29 = vrot.slane %v824_v11, 1  ;;  %v849_v31 = vrot.slane %v829_v12, 1  ;;  %v990_v12 = vperm.slane %v3570_v49, 3  ;;  %v276_v34 = vsel %vm217_vm4, %v3408_v55, %v3406_v54 }
  0xc0   : > { %v586_v32 = vsel %vm518_vm5, %v584_v22, %v585_v23  ;;  %v435_v22 = vmul.f32 %v426_v10, %v3565_v45  ;;  %v351_v54 = vsel %vm217_vm4, %v3430_v6, %v3456_v19 }
  0xc1   : > { %599 = vrot.lane.b32.xlu2 %v586_v32, %s3293_s16  ;;  %v850_v38 = vsel %vm518_vm5, %v848_v29, %v849_v31  ;;  %v349_v31 = vsel %vm217_vm4, %v3428_v5, %v3398_v51  ;;  %v424_v51 = vsel %vm217_vm4, %v3494_v47, %v3425_v3  ;;  %v556_v5 = vsel %vm217_vm4, %v549_v2, %v3471_v27 }
  0xc2   : > { %861 = vrot.lane.b32.xlu1 %v850_v38, %s3293_s16  ;;  %v358_v32 = vmul.f32 %v349_v31, %v3420_v62  ;;  %v285_v38 = vmul.f32 %v276_v34, %v3438_v9  ;;  %v570_v3 = vmul.f32 %v556_v5, %v3449_v16  ;;  %v360_v27 = vmul.f32 %v351_v54, %v3469_v26 }
  0xc3   : > { %v555_v46 = vpop.permute.xlu1 %554 }
  0xc4   : > { %v588_v19 = vrot.slane %v570_v3, 1  ;;  %v573_v54 = vmul.f32 %v555_v46, %v3415_v58 }
  0xc6   : > { %375 = vrot.lane.b32.xlu0 %v361_v52, %s3293_s16 }
  0xc9   : > { %367 = vrot.lane.b32.xlu2 %v357_v59, %s3293_s16  ;;  %v433_v59 = vmul.f32 %v424_v51, %v3438_v9  ;;  %v558_v51 = vsel %vm217_vm4, %v3496_v48, %v555_v46 }
  0xca   : > { %991 = vrot.lane.b32.xlu1 %v987_v57, %s3293_s16 }
  0xcb   : > { %v678_v60 = vpop.permute.xlu1 %677 }
  0xcc   : > { %v685_v39 = vsel %vm217_vm4, %v678_v60, %v680_v14 }
  0xcd   : > { %v694_v44 = vmul.f32 %v685_v39, %v3465_v24  ;;  %v699_v11 = vmul.f32 %v685_v39, %v3467_v25 }
  0xce   : > { %300 = vrot.lane.b32.xlu0 %v286_v8, %s3293_s16  ;;  %v565_v8 = vmul.f32 %v556_v5, %v3447_v15  ;;  %v568_v5 = vmul.f32 %v555_v46, %v3410_v56 }
  0xcf   : > { %v716_v23 = vrot.slane %v694_v44, 1  ;;  %v717_v29 = vrot.slane %v699_v11, 1 }
  0xd0   : > { %v587_v6 = vrot.slane %v565_v8, 1 }
  0xd1   : > { %448 = vrot.lane.b32.xlu2 %v435_v22, %s3293_s16  ;;  %v3595_v20 = vsel %vm518_vm5, %v716_v23, %v717_v29  ;;  %v432_v22 = vmul.f32 %v3494_v47, %v3420_v62  ;;  %v693_v23 = vmul.f32 %v678_v60, %v3447_v15  ;;  %v698_v29 = vmul.f32 %v678_v60, %v3449_v16 }
  0xd2   : > { %997 = vrot.lane.b32.xlu1 %v990_v12, %s3293_s16  ;;  %v589_v12 = vsel %vm518_vm5, %v587_v6, %v588_v19  ;;  %v567_v16 = vmul.f32 %v558_v51, %v3528_v42  ;;  %v572_v47 = vmul.f32 %v558_v51, %v3530_v43  ;;  %v596_v60 = vrot.slane %v568_v5, 1 }
  0xd3   : > { %v684_v14 = vpop.permute.xlu1 %683 }
  0xd4   : > { %v594_v48 = vrot.slane %v572_v47, 1  ;;  %v687_v8 = vsel %vm217_vm4, %v3522_v35, %v684_v14 }
  0xd6   : > { %369 = vrot.lane.b32.xlu0 %v358_v32, %s3293_s16  ;;  %v713_v32 = vrot.slane %v693_v23, 1 }
  0xd9   : > { %298 = vrot.lane.b32.xlu2 %v285_v38, %s3293_s16  ;;  %v714_v38 = vrot.slane %v698_v29, 1 }
  0xdb   : > { %v807_v52 = vpop.permute.xlu1 %806  ;;  %v715_v15 = vsel %vm518_vm5, %v713_v32, %v714_v38 }
  0xdc   : > { %v822_v55 = vmul.f32 %v807_v52, %v3465_v24  ;;  %v827_v57 = vmul.f32 %v807_v52, %v3467_v25  ;;  %v3622_v24 = vld [vmem:[#allocation2 + $0x28] sm:$0xfe]  ;;  %v3624_v25 = vld [vmem:[#allocation2 + $0x60] sm:$0x1] }
  0xdd   : > { %v697_v44 = vmul.f32 %v684_v14, %v3622_v24  ;;  %v702_v11 = vmul.f32 %v684_v14, %v3624_v25  ;;  %v3659_v14 = vld [vmem:[#allocation2 + $0x30] sm:$0xfe] }
  0xde   : > { %444 = vrot.lane.b32.xlu0 %v433_v59, %s3293_s16  ;;  %v842_v10 = vrot.slane %v822_v55, 1  ;;  %v843_v39 = vrot.slane %v827_v57, 1  ;;  %v597_v57 = vrot.slane %v573_v54, 1  ;;  %v593_v59 = vrot.slane %v567_v16, 1 }
  0xdf   : > { %v725_v31 = vrot.slane %v697_v44, 1  ;;  %v726_v34 = vrot.slane %v702_v11, 1  ;;  %v3661_v11 = vld [vmem:[#allocation2 + $0x68] sm:$0x1]  ;;  %v989_v54 = vperm.slane %v3570_v49, 2 }
  0xe0   : > { %v844_v2 = vsel %vm518_vm5, %v842_v10, %v843_v39  ;;  %v598_v46 = vsel %vm518_vm5, %v596_v60, %v597_v57  ;;  %v595_v3 = vsel %vm518_vm5, %v593_v59, %v594_v48  ;;  %v696_v10 = vmul.f32 %v687_v8, %v3410_v56  ;;  %v240_v57 = vld [vmem:[%s4938_s1] ss:$8 sm:$0xf] }
  0xe1   : > { %373 = vrot.lane.b32.xlu2 %v360_v27, %s3293_s16  ;;  %v727_v55 = vsel %vm518_vm5, %v725_v31, %v726_v34  ;;  %v701_v39 = vmul.f32 %v687_v8, %v3415_v58  ;;  %v814_v27 = vsel %vm217_vm4, %v807_v52, %v3541_v61  ;;  %v494_v59 = vperm.slane %v3444_v13, 0 }
  0xe2   : > { %v722_v6 = vrot.slane %v696_v10, 1  ;;  %v823_v44 = vmul.f32 %v814_v27, %v3528_v42  ;;  %v828_v35 = vmul.f32 %v814_v27, %v3530_v43  ;;  %v242_v48 = vperm.slane %v240_v57, 0 }
  0xe3   : > { %v723_v19 = vrot.slane %v701_v39, 1  ;;  %v813_v61 = vpop.permute.xlu1 %812  ;;  %v506_v10 = vmul.f32 %v494_v59, %v3545_v0  ;;  %v3224_v39 = vld [vmem:[%s4938_s1 + $0x2] ss:$8 sm:$0xf] }
  0xe4   : > { %v845_v58 = vrot.slane %v823_v44, 1  ;;  %v826_v52 = vmul.f32 %v813_v61, %v3659_v14  ;;  %v816_v23 = vsel %vm217_vm4, %v3550_v4, %v813_v61  ;;  %v250_v27 = vmul.f32 %v242_v48, %v3381_v40 }
  0xe5   : > { %v724_v56 = vsel %vm518_vm5, %v722_v6, %v723_v19  ;;  %v825_v34 = vmul.f32 %v816_v23, %v3622_v24  ;;  %v830_v32 = vmul.f32 %v816_v23, %v3624_v25  ;;  %v317_v6 = vperm.slane %v3224_v39, 0 }
  0xe6   : > { %601 = vrot.lane.b32.xlu0 %v589_v12, %s3293_s16  ;;  %v846_v12 = vrot.slane %v828_v35, 1  ;;  %v854_v29 = vrot.slane %v826_v52, 1  ;;  %v318_v19 = vperm.slane %v3224_v39, 1  ;;  %v244_v44 = vperm.slane %v240_v57, 2 }
  0xe7   : > { %v851_v51 = vrot.slane %v825_v34, 1  ;;  %v852_v5 = vrot.slane %v830_v32, 1  ;;  %v325_v23 = vmul.f32 %v317_v6, %v3548_v1 }
  0xe8   : > { %v252_v40 = vmul.f32 %v244_v44, %v3420_v62 }
  0xe9   : > { %442 = vrot.lane.b32.xlu2 %v432_v22, %s3293_s16  ;;  %v831_v22 = vmul.f32 %v813_v61, %v3661_v11  ;;  %v853_v4 = vsel %vm518_vm5, %v851_v51, %v852_v5  ;;  %v520_v61 = vrot.slane %v506_v10, 1 }
  0xeb   : > { %v855_v31 = vrot.slane %v831_v22, 1 }
  0xed   : > { %v856_v38 = vsel %vm518_vm5, %v854_v29, %v855_v31 }
  0xee   : > { %736 = vrot.lane.b32.xlu0 %v727_v55, %s3293_s16  ;;  %v293_v55 = vpop.permute.xlu2 %292 }
  0xf1   : > { %728 = vrot.lane.b32.xlu2 %v715_v15, %s3293_s16  ;;  %v988_v15 = vperm.slane %v3570_v49, 1 }
  0xf6   : > { %607 = vrot.lane.b32.xlu0 %v598_v46, %s3293_s16  ;;  %v243_v46 = vperm.slane %v240_v57, 1 }
  0xf8   : > { %v251_v35 = vmul.f32 %v243_v46, %v3548_v1  ;;  %v3226_v1 = vld [vmem:[%s4938_s1 + $0x4] ss:$8 sm:$0xf] }
  0xf9   : > { %605 = vrot.lane.b32.xlu2 %v595_v3, %s3293_s16  ;;  %v502_v3 = vmul.f32 %v494_v59, %v3543_v63  ;;  %v3228_v59 = vld [vmem:[%s4938_s1 + $0x6] ss:$8 sm:$0xf] }
  0xfa   : > { %v469_v6 = vperm.slane %v3228_v59, 2 }
  0xfe   : > { %730 = vrot.lane.b32.xlu0 %v3595_v20, %s3293_s16  ;;  %v847_v20 = vsel %vm518_vm5, %v845_v58, %v846_v12  ;;  %v319_v58 = vperm.slane %v3224_v39, 2  ;;  %v519_v12 = vrot.slane %v502_v3, 1  ;;  %v245_v3 = vperm.slane %v240_v57, 3 }
 0x100   : > { %v327_v5 = vmul.f32 %v319_v58, %v3438_v9 }
 0x101   : > { %734 = vrot.lane.b32.xlu2 %v724_v56, %s3293_s16 }
 0x106   : > { %859 = vrot.lane.b32.xlu0 %v847_v20, %s3293_s16  ;;  %v326_v20 = vmul.f32 %v318_v19, %v3420_v62  ;;  %v320_v19 = vperm.slane %v3224_v39, 3  ;;  %v470_v39 = vperm.slane %v3228_v59, 3 }
 0x108   : > { %v328_v57 = vmul.f32 %v320_v19, %v3469_v26 }
 0x109   : > { %857 = vrot.lane.b32.xlu2 %v844_v2, %s3293_s16 }
 0x10c   : > { %v297_v16 = vpop.permute.xlu1 %296 }
 0x10e   : > { %865 = vrot.lane.b32.xlu0 %v856_v38, %s3293_s16 }
 0x111   : > { %863 = vrot.lane.b32.xlu2 %v853_v4, %s3293_s16  ;;  %v3713_v4 = vsel %vm518_vm5, %v519_v12, %v520_v61 }
 0x114   : > { %v3692_v8 = vpop.permute.xlu1 %371 }
 0x116   : > { %995 = vrot.lane.b32.xlu0 %v989_v54, %s3293_s16 }
 0x119   : > { %993 = vrot.lane.b32.xlu2 %v988_v15, %s3293_s16  ;;  %v394_v15 = vperm.slane %v3226_v1, 2 }
 0x11b   : > { %v3682_v2 = vpop.permute.xlu2 %599  ;;  %v402_v10 = vmul.f32 %v394_v15, %v3469_v26  ;;  %v392_v15 = vperm.slane %v3226_v1, 0 }
 0x11c   : > { %v3708_v31 = vpop.permute.xlu1 %446 }
 0x123   : > { %v3684_v47 = vpop.permute.xlu2 %367 }
 0x124   : > { %v3721_v48 = vpop.permute.xlu1 %603 }
 0x128   : > { %v3686_v60 = vpop.permute.xlu0 %450 }
 0x12b   : > { %v3694_v49 = vpop.permute.xlu2 %448 }
 0x130   : > { %v295_v56 = vpop.permute.xlu0 %294 }
 0x131   : > { %v302_v52 = vsel %vm217_vm4, %v293_v55, %v295_v56  ;;  %v303_v63 = vsel %vm217_vm4, %v295_v56, %v297_v16  ;;  %v253_v56 = vmul.f32 %v245_v3, %v3438_v9 }
 0x132   : > { %v310_v0 = vadd.f32 %v302_v52, %v250_v27  ;;  %v311_v22 = vadd.f32 %v303_v63, %v251_v35  ;;  %v454_v35 = vsel %vm217_vm4, %v3708_v31, %v3694_v49  ;;  %v477_v52 = vmul.f32 %v469_v6, %v3565_v45 }
 0x133   : > { %v299_v29 = vpop.permute.xlu2 %298  ;;  %v395_v63 = vperm.slane %v3226_v1, 3 }
 0x134   : > { %v304_v34 = vsel %vm217_vm4, %v297_v16, %v299_v29  ;;  %v329_v32 = vadd.f32 %v325_v23, %v310_v0  ;;  %v330_v38 = vadd.f32 %v326_v20, %v311_v22 }
 0x135   : > { %v312_v51 = vadd.f32 %v304_v34, %v252_v40  ;;  %v393_v34 = vperm.slane %v3226_v1, 1  ;;  %v400_v1 = vmul.f32 %v392_v15, %v3420_v62 }
 0x137   : > { %v331_v54 = vadd.f32 %v327_v5, %v312_v51  ;;  %v3735_v5 = vpop.permute.xlu1 %732 }
 0x138   : > { %v376_v55 = vpop.permute.xlu0 %375 }
 0x13b   : > { %v374_v16 = vpop.permute.xlu2 %373 }
 0x13c   : > { %v379_v46 = vsel %vm217_vm4, %v3692_v8, %v374_v16  ;;  %v380_v40 = vsel %vm217_vm4, %v374_v16, %v376_v55  ;;  %v401_v16 = vmul.f32 %v393_v34, %v3438_v9 }
 0x13d   : > { %v387_v27 = vadd.f32 %v379_v46, %v331_v54  ;;  %v403_v54 = vmul.f32 %v395_v63, %v3565_v45  ;;  %v478_v46 = vmul.f32 %v470_v39, %v3516_v30 }
 0x13f   : > { %v406_v44 = vadd.f32 %v402_v10, %v387_v27  ;;  %v455_v27 = vsel %vm217_vm4, %v3694_v49, %v3686_v60  ;;  %v468_v60 = vperm.slane %v3228_v59, 1  ;;  %v626_v49 = vperm.slane %v3396_v50, 2 }
 0x140   : > { %v301_v58 = vpop.permute.xlu0 %300 }
 0x141   : > { %v462_v12 = vadd.f32 %v454_v35, %v406_v44  ;;  %v305_v61 = vsel %vm217_vm4, %v299_v29, %v301_v58  ;;  %v467_v58 = vperm.slane %v3228_v59, 0  ;;  %v634_v59 = vmul.f32 %v626_v49, %v3528_v42 }
 0x142   : > { %v313_v0 = vadd.f32 %v305_v61, %v253_v56  ;;  %v638_v50 = vmul.f32 %v626_v49, %v3530_v43 }
 0x143   : > { %v443_v22 = vpop.permute.xlu2 %442  ;;  %v481_v23 = vadd.f32 %v477_v52, %v462_v12  ;;  %v3752_v12 = vpop.permute.xlu1 %861 }
 0x144   : > { %v332_v20 = vadd.f32 %v328_v57, %v313_v0  ;;  %v655_v34 = vrot.slane %v638_v50, 1 }
 0x145   : > { %v537_v51 = vadd.f32 %v3487_v41, %v481_v23 }
 0x146   : > { %v388_v29 = vadd.f32 %v380_v40, %v332_v20  ;;  %v654_v40 = vrot.slane %v634_v59, 1 }
 0x148   : > { %v407_v3 = vadd.f32 %v403_v54, %v388_v29  ;;  %v370_v10 = vpop.permute.xlu0 %369 }
 0x149   : > { %v377_v55 = vsel %vm217_vm4, %v3684_v47, %v370_v10  ;;  %v378_v41 = vsel %vm217_vm4, %v370_v10, %v3692_v8  ;;  %v885_v47 = vperm.slane %v3476_v28, 3 }
 0x14a   : > { %v385_v6 = vadd.f32 %v377_v55, %v329_v32  ;;  %v386_v45 = vadd.f32 %v378_v41, %v330_v38  ;;  %v463_v19 = vadd.f32 %v455_v27, %v407_v3  ;;  %v475_v32 = vmul.f32 %v467_v58, %v3438_v9  ;;  %v930_v3 = vld [vmem:[#allocation2 + $0x38] sm:$0x3] }
 0x14b   : > { %v3748_v30 = vpop.permute.xlu2 %728  ;;  %v476_v38 = vmul.f32 %v468_v60, %v3469_v26  ;;  %v893_v63 = vmul.f32 %v885_v47, %v3659_v14  ;;  %v897_v23 = vmul.f32 %v885_v47, %v3661_v11  ;;  %v992_v10 = vpop.permute.xlu1 %991 }
 0x14c   : > { %v404_v44 = vadd.f32 %v400_v1, %v385_v6  ;;  %v405_v35 = vadd.f32 %v401_v16, %v386_v45  ;;  %v482_v56 = vadd.f32 %v478_v46, %v463_v19  ;;  %v926_v46 = vld [vmem:[#allocation2] sm:$0xfc]  ;;  %v497_v6 = vperm.slane %v3444_v13, 3 }
 0x14d   : > { %v915_v54 = vrot.slane %v893_v63, 1  ;;  %v916_v29 = vrot.slane %v897_v23, 1  ;;  %v1007_v55 = vmul.f32 %v992_v10, %v926_v46 }
 0x14f   : > { %v3778_v1 = vsel %vm518_vm5, %v915_v54, %v916_v29  ;;  %v1027_v60 = vrot.slane %v1007_v55, 2  ;;  %v3813_v55 = vld [vmem:[#allocation2 + $0x8] sm:$0xfc] }
 0x150   : > { %v445_v8 = vpop.permute.xlu0 %444 }
 0x151   : > { %v452_v62 = vsel %vm217_vm4, %v443_v22, %v445_v8  ;;  %v453_v61 = vsel %vm217_vm4, %v445_v8, %v3708_v31 }
 0x152   : > { %v460_v52 = vadd.f32 %v452_v62, %v404_v44  ;;  %v461_v57 = vadd.f32 %v453_v61, %v405_v35  ;;  %v505_v44 = vmul.f32 %v497_v6, %v3528_v42  ;;  %v509_v35 = vmul.f32 %v497_v6, %v3530_v43 }
 0x153   : > { %v606_v0 = vpop.permute.xlu2 %605 }
 0x154   : > { %v479_v39 = vadd.f32 %v475_v32, %v460_v52  ;;  %v480_v9 = vadd.f32 %v476_v38, %v461_v57  ;;  %v611_v26 = vsel %vm217_vm4, %v3721_v48, %v606_v0  ;;  %v528_v8 = vrot.slane %v505_v44, 1 }
 0x155   : > { %v619_v22 = vadd.f32 %v611_v26, %v537_v51  ;;  %v529_v32 = vrot.slane %v509_v35, 1  ;;  %v754_v52 = vperm.slane %v3404_v53, 1 }
 0x156   : > { %v535_v20 = vadd.f32 %v3713_v4, %v479_v39  ;;  %v536_v31 = vadd.f32 %v3482_v36, %v480_v9  ;;  %v656_v4 = vsel %vm518_vm5, %v654_v40, %v655_v34  ;;  %v1012_v36 = vmul.f32 %v992_v10, %v930_v3 }
 0x157   : > { %v666_v41 = vadd.f32 %v656_v4, %v619_v22  ;;  %v882_v39 = vperm.slane %v3476_v28, 0  ;;  %v766_v9 = vmul.f32 %v754_v52, %v3530_v43 }
 0x158   : > { %v602_v15 = vpop.permute.xlu0 %601  ;;  %v1028_v49 = vrot.slane %v1012_v36, 2 }
 0x159   : > { %v609_v14 = vsel %vm217_vm4, %v3682_v2, %v602_v15  ;;  %v610_v11 = vsel %vm217_vm4, %v602_v15, %v3721_v48  ;;  %v890_v54 = vmul.f32 %v882_v39, %v3528_v42 }
 0x15a   : > { %v617_v27 = vadd.f32 %v609_v14, %v535_v20  ;;  %v618_v51 = vadd.f32 %v610_v11, %v536_v31  ;;  %v756_v20 = vperm.slane %v3404_v53, 3  ;;  %v781_v14 = vrot.slane %v766_v9, 1  ;;  %v3815_v53 = vld [vmem:[#allocation2 + $0x40] sm:$0x3] }
 0x15b   : > { %v735_v16 = vpop.permute.xlu2 %734  ;;  %v894_v11 = vmul.f32 %v882_v39, %v3530_v43 }
 0x15c   : > { %v740_v45 = vsel %vm217_vm4, %v3735_v5, %v735_v16  ;;  %v664_v2 = vadd.f32 %v3510_v18, %v617_v27  ;;  %v665_v48 = vadd.f32 %v3513_v21, %v618_v51  ;;  %v1029_v18 = vsel %vm961_vm6, %v1027_v60, %v1028_v49 }
 0x15d   : > { %v748_v19 = vadd.f32 %v740_v45, %v666_v41  ;;  %1042 = vrot.lane.b32.xlu2 %v1029_v18, %s3293_s16  ;;  %v530_v21 = vsel %vm518_vm5, %v528_v8, %v529_v32  ;;  %v768_v6 = vmul.f32 %v756_v20, %v3624_v25 }
 0x15e   : > { %v538_v38 = vadd.f32 %v530_v21, %v482_v56  ;;  %v762_v56 = vmul.f32 %v754_v52, %v3528_v42 }
 0x15f   : > { %v795_v58 = vadd.f32 %v3452_v17, %v748_v19 }
 0x160   : > { %v737_v13 = vpop.permute.xlu0 %736  ;;  %v780_v34 = vrot.slane %v762_v56, 1 }
 0x161   : > { %v741_v63 = vsel %vm217_vm4, %v735_v16, %v737_v13  ;;  %v764_v16 = vmul.f32 %v756_v20, %v3622_v24 }
 0x162   : > { %v782_v43 = vsel %vm518_vm5, %v780_v34, %v781_v14  ;;  %v3853_v34 = vld [vmem:[#allocation2 + $0x48] sm:$0x3] }
 0x163   : > { %v858_v47 = vpop.permute.xlu2 %857 }
 0x168   : > { %v608_v62 = vpop.permute.xlu0 %607 }
 0x169   : > { %v612_v61 = vsel %vm217_vm4, %v606_v0, %v608_v62  ;;  %v3802_v0 = vld [vmem:[%s4938_s1 + $0x26] ss:$8 sm:$0xf]  ;;  %v787_v62 = vrot.slane %v768_v6, 1 }
 0x16a   : > { %v620_v17 = vadd.f32 %v612_v61, %v538_v38  ;;  %v937_v26 = vperm.slane %v3802_v0, 0  ;;  %v786_v38 = vrot.slane %v764_v16, 1 }
 0x16b   : > { %v3788_v57 = vpop.permute.xlu2 %863 }
 0x16c   : > { %v667_v59 = vadd.f32 %v3433_v7, %v620_v17  ;;  %v869_v50 = vsel %vm217_vm4, %v3752_v12, %v3788_v57  ;;  %v945_v27 = vmul.f32 %v937_v26, %v926_v46  ;;  %v949_v51 = vmul.f32 %v937_v26, %v930_v3 }
 0x16d   : > { %v3795_v23 = vadd.f32 %v869_v50, %v795_v58  ;;  %v906_v46 = vrot.slane %v890_v54, 1  ;;  %v907_v3 = vrot.slane %v894_v11, 1 }
 0x16e   : > { %v749_v7 = vadd.f32 %v741_v63, %v667_v59  ;;  %v962_v45 = vrot.slane %v945_v27, 2 }
 0x16f   : > { %v908_v21 = vsel %vm518_vm5, %v906_v46, %v907_v3 }
 0x170   : > { %v731_v22 = vpop.permute.xlu0 %730 }
 0x171   : > { %v738_v31 = vsel %vm217_vm4, %v3748_v30, %v731_v22  ;;  %v739_v40 = vsel %vm217_vm4, %v731_v22, %v3735_v5  ;;  %v998_v5 = vpop.permute.xlu1 %997 }
 0x172   : > { %v746_v29 = vadd.f32 %v738_v31, %v664_v2  ;;  %v747_v15 = vadd.f32 %v739_v40, %v665_v48  ;;  %v963_v2 = vrot.slane %v949_v51, 2  ;;  %v3824_v48 = vld [vmem:[#allocation2 + $0x20] sm:$0xfc]  ;;  %v3849_v31 = vld [vmem:[#allocation2 + $0x18] sm:$0xfc] }
 0x173   : > { %v994_v4 = vpop.permute.xlu2 %993  ;;  %v1011_v44 = vmul.f32 %v998_v5, %v3824_v48 }
 0x174   : > { %v999_v30 = vsel %vm217_vm4, %v992_v10, %v994_v4  ;;  %v793_v36 = vadd.f32 %v3525_v37, %v746_v29  ;;  %v3826_v37 = vld [vmem:[#allocation2 + $0x58] sm:$0x3]  ;;  %v794_v35 = vadd.f32 %v782_v43, %v747_v15  ;;  %v964_v61 = vsel %vm961_vm6, %v962_v45, %v963_v2 }
 0x175   : > { %v1008_v41 = vmul.f32 %v999_v30, %v3813_v55  ;;  %v1013_v42 = vmul.f32 %v999_v30, %v3815_v53  ;;  %v1016_v60 = vmul.f32 %v998_v5, %v3826_v37  ;;  %v940_v43 = vperm.slane %v3802_v0, 3 }
 0x177   : > { %v1030_v10 = vrot.slane %v1008_v41, 2  ;;  %v1031_v19 = vrot.slane %v1013_v42, 2  ;;  %v1040_v59 = vrot.slane %v1016_v60, 2  ;;  %v948_v3 = vmul.f32 %v940_v43, %v3849_v31 }
 0x178   : > { %v860_v58 = vpop.permute.xlu0 %859 }
 0x179   : > { %v867_v49 = vsel %vm217_vm4, %v858_v47, %v860_v58  ;;  %v868_v13 = vsel %vm217_vm4, %v860_v58, %v3752_v12  ;;  %v1032_v8 = vsel %vm961_vm6, %v1030_v10, %v1031_v19  ;;  %v1039_v47 = vrot.slane %v1011_v44, 2 }
 0x17a   : > { %v875_v32 = vadd.f32 %v867_v49, %v793_v36  ;;  %v876_v18 = vadd.f32 %v868_v13, %v794_v35  ;;  %1044 = vrot.lane.b32.xlu0 %v1032_v8, %s3293_s16  ;;  %v788_v12 = vsel %vm518_vm5, %v786_v38, %v787_v62  ;;  %v884_v19 = vperm.slane %v3476_v28, 2 }
 0x17b   : > { %v796_v63 = vadd.f32 %v788_v12, %v749_v7  ;;  %v1041_v9 = vsel %vm961_vm6, %v1039_v47, %v1040_v59  ;;  %v3851_v7 = vld [vmem:[#allocation2 + $0x10] sm:$0xfc]  ;;  %v971_v44 = vrot.slane %v948_v3, 2 }
 0x17c   : > { %v922_v52 = vadd.f32 %v908_v21, %v875_v32  ;;  %v3838_v17 = vadd.f32 %v3520_v33, %v876_v18  ;;  %v3239_v33 = vld [vmem:[%s4938_s1 + $0x41] ss:$8 sm:$0xf]  ;;  %v892_v60 = vmul.f32 %v884_v19, %v3622_v24  ;;  %v896_v49 = vmul.f32 %v884_v19, %v3624_v25 }
 0x17d   : > { %v1118_v20 = vperm.slane %v3239_v33, 2  ;;  %v1117_v42 = vperm.slane %v3239_v33, 1  ;;  %v1119_v16 = vperm.slane %v3239_v33, 3  ;;  %v938_v18 = vperm.slane %v3802_v0, 1 }
 0x17e   : > { %v978_v50 = vadd.f32 %v964_v61, %v922_v52  ;;  %v939_v21 = vperm.slane %v3802_v0, 2  ;;  %v912_v28 = vrot.slane %v892_v60, 1  ;;  %v913_v61 = vrot.slane %v896_v49, 1 }
 0x17f   : > { %v946_v52 = vmul.f32 %v938_v18, %v3813_v55  ;;  %v950_v25 = vmul.f32 %v938_v18, %v3815_v53 }
 0x180   : > { %v866_v56 = vpop.permute.xlu0 %865  ;;  %v947_v24 = vmul.f32 %v939_v21, %v3851_v7  ;;  %v951_v47 = vmul.f32 %v939_v21, %v3853_v34 }
 0x181   : > { %v870_v39 = vsel %vm217_vm4, %v3788_v57, %v866_v56  ;;  %v3855_v57 = vld [vmem:[#allocation2 + $0x50] sm:$0x3]  ;;  %v966_v0 = vrot.slane %v950_v25, 2 }
 0x182   : > { %v878_v26 = vadd.f32 %v870_v39, %v796_v63  ;;  %1050 = vrot.lane.b32.xlu0 %v1041_v9, %s3293_s16  ;;  %v952_v6 = vmul.f32 %v940_v43, %v3855_v57  ;;  %v965_v63 = vrot.slane %v946_v52, 2  ;;  %v968_v56 = vrot.slane %v947_v24, 2 }
 0x183   : > { %v969_v39 = vrot.slane %v951_v47, 2 }
 0x184   : > { %v925_v22 = vadd.f32 %v3778_v1, %v878_v26  ;;  %v972_v35 = vrot.slane %v952_v6, 2 }
 0x186   : > { %v973_v13 = vsel %vm961_vm6, %v971_v44, %v972_v35  ;;  %v3917_v35 = vld [vmem:[#allocation2 + $0x28] sm:$0xfc] }
 0x187   : > { %v981_v8 = vadd.f32 %v973_v13, %v925_v22 }
 0x188   : > { %v996_v40 = vpop.permute.xlu0 %995 }
 0x189   : > { %v1000_v54 = vsel %vm217_vm4, %v994_v4, %v996_v40  ;;  %v1001_v29 = vsel %vm217_vm4, %v996_v40, %v998_v5  ;;  %v1116_v5 = vperm.slane %v3239_v33, 0 }
 0x18a   : > { %v1009_v15 = vmul.f32 %v1000_v54, %v3851_v7  ;;  %v1010_v14 = vmul.f32 %v1001_v29, %v3849_v31  ;;  %v1014_v1 = vmul.f32 %v1000_v54, %v3853_v34  ;;  %v1015_v11 = vmul.f32 %v1001_v29, %v3855_v57  ;;  %1124 = vrot.lane.b32.xlu0 %v1118_v20, %s3293_s16 }
 0x18b   : > { %v967_v54 = vsel %vm961_vm6, %v965_v63, %v966_v0  ;;  %v970_v29 = vsel %vm961_vm6, %v968_v56, %v969_v39 }
 0x18c   : > { %v1033_v27 = vrot.slane %v1009_v15, 2  ;;  %v1034_v51 = vrot.slane %v1014_v1, 2  ;;  %v1036_v30 = vrot.slane %v1010_v14, 2  ;;  %v1037_v36 = vrot.slane %v1015_v11, 2 }
 0x18d   : > { %v979_v15 = vadd.f32 %v967_v54, %v3838_v17 }
 0x18e   : > { %v1038_v41 = vsel %vm961_vm6, %v1036_v30, %v1037_v36  ;;  %v1035_v4 = vsel %vm961_vm6, %v1033_v27, %v1034_v51  ;;  %v3241_v36 = vld [vmem:[%s4938_s1 + $0x43] ss:$8 sm:$0xf] }
 0x18f   : > { %1048 = vrot.lane.b32.xlu2 %v1038_v41, %s3293_s16  ;;  %1046 = vrot.lane.b32.xlu1 %v1035_v4, %s3293_s16  ;;  %v1245_v41 = vperm.slane %v3241_v36, 0  ;;  %v1248_v44 = vperm.slane %v3241_v36, 3  ;;  %v1247_v25 = vperm.slane %v3241_v36, 2  ;;  %v1246_v47 = vperm.slane %v3241_v36, 1 }
 0x197   : > { %1120 = vrot.lane.b32.xlu1 %v1116_v5, %s3293_s16  ;;  %1122 = vrot.lane.b32.xlu2 %v1117_v42, %s3293_s16 }
 0x19f   : > { %1126 = vrot.lane.b32.xlu1 %v1119_v16, %s3293_s16 }
 0x1b7   : > { %v1043_v46 = vpop.permute.xlu2 %1042 }
 0x1e9   : > { %v1049_v58 = vpop.permute.xlu2 %1048 }
 0x1ec   : > { %v1045_v45 = vpop.permute.xlu0 %1044 }
 0x1ed   : > { %v1052_v2 = vsel %vm217_vm4, %v1043_v46, %v1045_v45 }
 0x1ee   : > { %v3875_v10 = vadd.f32 %v1052_v2, %v978_v50  ;;  %v914_v50 = vsel %vm518_vm5, %v912_v28, %v913_v61 }
 0x1ef   : > { %v924_v9 = vadd.f32 %v914_v50, %v3795_v23 }
 0x1f1   : > { %v1123_v59 = vpop.permute.xlu2 %1122  ;;  %v980_v14 = vadd.f32 %v970_v29, %v924_v9 }
 0x1f4   : > { %v1051_v32 = vpop.permute.xlu0 %1050 }
 0x1f5   : > { %v1055_v38 = vsel %vm217_vm4, %v1049_v58, %v1051_v32 }
 0x1f6   : > { %v3884_v62 = vadd.f32 %v1055_v38, %v981_v8 }
 0x1fc   : > { %v1125_v12 = vpop.permute.xlu0 %1124 }
 0x1fd   : > { %v1129_v26 = vsel %vm217_vm4, %v1123_v59, %v1125_v12 }
 0x1fe   : > { %v1138_v33 = vmul.f32 %v1129_v26, %v3849_v31  ;;  %v1143_v22 = vmul.f32 %v1129_v26, %v3855_v57 }
 0x200   : > { %v1162_v20 = vrot.slane %v1138_v33, 2  ;;  %v1163_v40 = vrot.slane %v1143_v22, 2 }
 0x201   : > { %v1047_v1 = vpop.permute.xlu1 %1046 }
 0x202   : > { %v1053_v11 = vsel %vm217_vm4, %v1045_v45, %v1047_v1  ;;  %v1054_v23 = vsel %vm217_vm4, %v1047_v1, %v1049_v58  ;;  %v1164_v27 = vsel %vm961_vm6, %v1162_v20, %v1163_v40  ;;  %v3919_v58 = vld [vmem:[#allocation2 + $0x60] sm:$0x3] }
 0x203   : > { %v3901_v51 = vadd.f32 %v1053_v11, %v979_v15  ;;  %v1062_v30 = vadd.f32 %v1054_v23, %v980_v14  ;;  %1175 = vrot.lane.b32.xlu1 %v1164_v27, %s3293_s16 }
 0x209   : > { %v1121_v4 = vpop.permute.xlu1 %1120 }
 0x20a   : > { %v1128_v17 = vsel %vm217_vm4, %v1121_v4, %v1123_v59  ;;  %v1136_v5 = vmul.f32 %v1121_v4, %v3813_v55  ;;  %v1141_v42 = vmul.f32 %v1121_v4, %v3815_v53  ;;  %v3238_v59 = vld [vmem:[%s4938_s1 + $0x40] ss:$8 sm:$0xf] }
 0x20b   : > { %v1137_v16 = vmul.f32 %v1128_v17, %v3851_v7  ;;  %v1142_v43 = vmul.f32 %v1128_v17, %v3853_v34  ;;  %1249 = vrot.lane.b32.xlu1 %v1245_v41, %s3293_s16  ;;  %v1069_v50 = vperm.slane %v3238_v59, 2  ;;  %v1067_v20 = vperm.slane %v3238_v59, 0 }
 0x20c   : > { %v1156_v46 = vrot.slane %v1136_v5, 2  ;;  %v1157_v3 = vrot.slane %v1141_v42, 2  ;;  %v1068_v40 = vperm.slane %v3238_v59, 1  ;;  %v1070_v27 = vperm.slane %v3238_v59, 3 }
 0x20d   : > { %v1159_v6 = vrot.slane %v1137_v16, 2  ;;  %v1160_v45 = vrot.slane %v1142_v43, 2  ;;  %v1077_v63 = vmul.f32 %v1069_v50, %v3849_v31  ;;  %v1081_v0 = vmul.f32 %v1069_v50, %v3855_v57 }
 0x20e   : > { %v1158_v2 = vsel %vm961_vm6, %v1156_v46, %v1157_v3  ;;  %v1075_v15 = vmul.f32 %v1067_v20, %v3813_v55  ;;  %v1076_v14 = vmul.f32 %v1068_v40, %v3851_v7  ;;  %v1079_v1 = vmul.f32 %v1067_v20, %v3815_v53 }
 0x20f   : > { %1171 = vrot.lane.b32.xlu2 %v1158_v2, %s3293_s16  ;;  %v1161_v19 = vsel %vm961_vm6, %v1159_v6, %v1160_v45  ;;  %v1097_v56 = vrot.slane %v1077_v63, 2  ;;  %v1098_v39 = vrot.slane %v1081_v0, 2  ;;  %v1080_v11 = vmul.f32 %v1068_v40, %v3853_v34 }
 0x210   : > { %1173 = vrot.lane.b32.xlu0 %v1161_v19, %s3293_s16  ;;  %v1091_v41 = vrot.slane %v1075_v15, 2  ;;  %v1094_v4 = vrot.slane %v1076_v14, 2  ;;  %v1078_v3 = vmul.f32 %v1070_v27, %v3824_v48  ;;  %v1082_v6 = vmul.f32 %v1070_v27, %v3826_v37 }
 0x211   : > { %v1127_v60 = vpop.permute.xlu1 %1126  ;;  %v1099_v26 = vsel %vm961_vm6, %v1097_v56, %v1098_v39  ;;  %v1095_v17 = vrot.slane %v1080_v11, 2 }
 0x212   : > { %v1130_v49 = vsel %vm217_vm4, %v1125_v12, %v1127_v60  ;;  %v1140_v13 = vmul.f32 %v1127_v60, %v3917_v35  ;;  %v1145_v8 = vmul.f32 %v1127_v60, %v3919_v58  ;;  %v1109_v33 = vadd.f32 %v1099_v26, %v1062_v30 }
 0x213   : > { %v1139_v32 = vmul.f32 %v1130_v49, %v3824_v48  ;;  %v1144_v18 = vmul.f32 %v1130_v49, %v3826_v37  ;;  %1255 = vrot.lane.b32.xlu1 %v1248_v44, %s3293_s16  ;;  %v1092_v30 = vrot.slane %v1079_v1, 2  ;;  %v1096_v44 = vsel %vm961_vm6, %v1094_v4, %v1095_v17 }
 0x214   : > { %v1168_v21 = vrot.slane %v1140_v13, 2  ;;  %v1169_v38 = vrot.slane %v1145_v8, 2  ;;  %v1108_v49 = vadd.f32 %v1096_v44, %v3901_v51  ;;  %v1100_v51 = vrot.slane %v1078_v3, 2  ;;  %v3240_v3 = vld [vmem:[%s4938_s1 + $0x42] ss:$8 sm:$0xf] }
 0x215   : > { %v1165_v28 = vrot.slane %v1139_v32, 2  ;;  %v1166_v61 = vrot.slane %v1144_v18, 2  ;;  %v1093_v19 = vsel %vm961_vm6, %v1091_v41, %v1092_v30 }
 0x216   : > { %v1170_v52 = vsel %vm961_vm6, %v1168_v21, %v1169_v38  ;;  %v1107_v60 = vadd.f32 %v1093_v19, %v3875_v10  ;;  %v1240_v38 = vld [vmem:[#allocation2 + $0x30] sm:$0xfc] }
 0x217   : > { %v1167_v24 = vsel %vm961_vm6, %v1165_v28, %v1166_v61  ;;  %v1241_v28 = vld [vmem:[#allocation2 + $0x68] sm:$0x3] }
 0x218   : > { %1179 = vrot.lane.b32.xlu0 %v1170_v52, %s3293_s16  ;;  %1177 = vrot.lane.b32.xlu2 %v1167_v24, %s3293_s16  ;;  %v1101_v24 = vrot.slane %v1082_v6, 2  ;;  %v1196_v6 = vperm.slane %v3240_v3, 0 }
 0x220   : > { %1253 = vrot.lane.b32.xlu0 %v1247_v25, %s3293_s16  ;;  %1251 = vrot.lane.b32.xlu2 %v1246_v47, %s3293_s16 }
 0x269   : > { %v1172_v12 = vpop.permute.xlu2 %1171 }
 0x272   : > { %v1178_v9 = vpop.permute.xlu2 %1177 }
 0x275   : > { %v1176_v22 = vpop.permute.xlu1 %1175 }
 0x276   : > { %v1183_v54 = vsel %vm217_vm4, %v1176_v22, %v1178_v9 }
 0x277   : > { %v3940_v29 = vadd.f32 %v1183_v54, %v1109_v33  ;;  %v3244_v33 = vld [vmem:[%s4938_s1 + $0x46] ss:$8 sm:$0xf] }
 0x278   : > { %v1430_v30 = vperm.slane %v3244_v33, 0  ;;  %v1431_v4 = vperm.slane %v3244_v33, 1  ;;  %v1433_v17 = vperm.slane %v3244_v33, 3 }
 0x27a   : > { %v1252_v23 = vpop.permute.xlu2 %1251 }
 0x27d   : > { %v1250_v36 = vpop.permute.xlu1 %1249 }
 0x27e   : > { %v1257_v5 = vsel %vm217_vm4, %v1250_v36, %v1252_v23  ;;  %v1265_v42 = vmul.f32 %v1250_v36, %v3851_v7  ;;  %v1270_v16 = vmul.f32 %v1250_v36, %v3853_v34 }
 0x27f   : > { %v1266_v55 = vmul.f32 %v1257_v5, %v3849_v31  ;;  %v1271_v43 = vmul.f32 %v1257_v5, %v3855_v57  ;;  %v3990_v5 = vld [vmem:[%s4938_s1 + $0x44] ss:$8 sm:$0xf] }
 0x280   : > { %v1285_v53 = vrot.slane %v1265_v42, 2  ;;  %v1286_v46 = vrot.slane %v1270_v16, 2  ;;  %v1328_v42 = vperm.slane %v3990_v5, 3 }
 0x281   : > { %v1288_v45 = vrot.slane %v1266_v55, 2  ;;  %v1289_v2 = vrot.slane %v1271_v43, 2 }
 0x282   : > { %v1174_v13 = vpop.permute.xlu0 %1173  ;;  %v1287_v8 = vsel %vm961_vm6, %v1285_v53, %v1286_v46  ;;  %v1336_v16 = vmul.f32 %v1328_v42, %v1240_v38  ;;  %v1340_v55 = vmul.f32 %v1328_v42, %v1241_v28 }
 0x283   : > { %v1181_v32 = vsel %vm217_vm4, %v1172_v12, %v1174_v13  ;;  %v1182_v18 = vsel %vm217_vm4, %v1174_v13, %v1176_v22  ;;  %1300 = vrot.lane.b32.xlu2 %v1287_v8, %s3293_s16  ;;  %v1290_v21 = vsel %vm961_vm6, %v1288_v45, %v1289_v2  ;;  %v1102_v12 = vsel %vm961_vm6, %v1100_v51, %v1101_v24 }
 0x284   : > { %v1189_v61 = vadd.f32 %v1181_v32, %v1107_v60  ;;  %v3962_v52 = vadd.f32 %v1182_v18, %v1108_v49  ;;  %1302 = vrot.lane.b32.xlu0 %v1290_v21, %s3293_s16  ;;  %v1110_v63 = vadd.f32 %v1102_v12, %v3884_v62  ;;  %v1432_v22 = vperm.slane %v3244_v33, 2 }
 0x285   : > { %v1256_v10 = vpop.permute.xlu1 %1255  ;;  %v1358_v43 = vrot.slane %v1336_v16, 2  ;;  %v1359_v53 = vrot.slane %v1340_v55, 2  ;;  %v1204_v45 = vmul.f32 %v1196_v6, %v3851_v7  ;;  %v1208_v2 = vmul.f32 %v1196_v6, %v3853_v34 }
 0x286   : > { %v1269_v25 = vmul.f32 %v1256_v10, %v1240_v38  ;;  %v1274_v47 = vmul.f32 %v1256_v10, %v1241_v28  ;;  %v1199_v60 = vperm.slane %v3240_v3, 3  ;;  %v1197_v24 = vperm.slane %v3240_v3, 1 }
 0x287   : > { %v1360_v46 = vsel %vm961_vm6, %v1358_v43, %v1359_v53  ;;  %v1220_v19 = vrot.slane %v1204_v45, 2  ;;  %v1221_v44 = vrot.slane %v1208_v2, 2  ;;  %v1369_v45 = vld [vmem:[#allocation2] sm:$0xf8]  ;;  %v1373_v2 = vld [vmem:[#allocation2 + $0x38] sm:$0x7] }
 0x288   : > { %v1297_v59 = vrot.slane %v1269_v25, 2  ;;  %v1298_v50 = vrot.slane %v1274_v47, 2  ;;  %v1207_v8 = vmul.f32 %v1199_v60, %v3917_v35  ;;  %v1211_v32 = vmul.f32 %v1199_v60, %v3919_v58 }
 0x289   : > { %v1222_v13 = vsel %vm961_vm6, %v1220_v19, %v1221_v44 }
 0x28a   : > { %v1180_v0 = vpop.permute.xlu0 %1179  ;;  %v1299_v56 = vsel %vm961_vm6, %v1297_v59, %v1298_v50  ;;  %v1236_v18 = vadd.f32 %v1222_v13, %v1189_v61  ;;  %v1230_v7 = vrot.slane %v1211_v32, 2  ;;  %v1198_v59 = vperm.slane %v3240_v3, 2  ;;  %v4049_v32 = vld [vmem:[#allocation2 + $0x40] sm:$0x7] }
 0x28b   : > { %v1184_v39 = vsel %vm217_vm4, %v1178_v9, %v1180_v0 }
 0x28c   : > { %v1192_v26 = vadd.f32 %v1184_v39, %v1110_v63  ;;  %1308 = vrot.lane.b32.xlu0 %v1299_v56, %s3293_s16  ;;  %v1205_v63 = vmul.f32 %v1197_v24, %v3849_v31  ;;  %v1206_v0 = vmul.f32 %v1198_v59, %v3824_v48  ;;  %v1209_v56 = vmul.f32 %v1197_v24, %v3855_v57 }
 0x28d   : > { %v1210_v39 = vmul.f32 %v1198_v59, %v3826_v37 }
 0x292   : > { %v1254_v20 = vpop.permute.xlu0 %1253 }
 0x293   : > { %v1258_v40 = vsel %vm217_vm4, %v1252_v23, %v1254_v20  ;;  %v1259_v54 = vsel %vm217_vm4, %v1254_v20, %v1256_v10  ;;  %v1229_v10 = vrot.slane %v1207_v8, 2  ;;  %v1223_v20 = vrot.slane %v1205_v63, 2  ;;  %v4047_v8 = vld [vmem:[#allocation2 + $0x8] sm:$0xf8] }
 0x294   : > { %v1267_v62 = vmul.f32 %v1258_v40, %v3824_v48  ;;  %v1268_v15 = vmul.f32 %v1259_v54, %v3917_v35  ;;  %v1272_v14 = vmul.f32 %v1258_v40, %v3826_v37  ;;  %v1273_v9 = vmul.f32 %v1259_v54, %v3919_v58  ;;  %1438 = vrot.lane.b32.xlu0 %v1432_v22, %s3293_s16 }
 0x295   : > { %v1231_v34 = vsel %vm961_vm6, %v1229_v10, %v1230_v7  ;;  %v1226_v40 = vrot.slane %v1206_v0, 2  ;;  %v1227_v54 = vrot.slane %v1210_v39, 2  ;;  %v4063_v39 = vld [vmem:[#allocation2 + $0x58] sm:$0x7] }
 0x296   : > { %v1291_v1 = vrot.slane %v1267_v62, 2  ;;  %v1292_v11 = vrot.slane %v1272_v14, 2  ;;  %v1294_v27 = vrot.slane %v1268_v15, 2  ;;  %v1295_v36 = vrot.slane %v1273_v9, 2  ;;  %v4015_v62 = vld [vmem:[#allocation2 + $0x10] sm:$0xf8] }
 0x297   : > { %v1239_v25 = vadd.f32 %v1231_v34, %v1192_v26  ;;  %v1224_v26 = vrot.slane %v1209_v56, 2  ;;  %v4017_v15 = vld [vmem:[#allocation2 + $0x48] sm:$0x7]  ;;  %v4061_v56 = vld [vmem:[#allocation2 + $0x20] sm:$0xf8] }
 0x298   : > { %v1296_v41 = vsel %vm961_vm6, %v1294_v27, %v1295_v36  ;;  %v1293_v23 = vsel %vm961_vm6, %v1291_v1, %v1292_v11 }
 0x299   : > { %1306 = vrot.lane.b32.xlu2 %v1296_v41, %s3293_s16  ;;  %1304 = vrot.lane.b32.xlu1 %v1293_v23, %s3293_s16  ;;  %v1225_v36 = vsel %vm961_vm6, %v1223_v20, %v1224_v26  ;;  %v1228_v41 = vsel %vm961_vm6, %v1226_v40, %v1227_v54  ;;  %v1325_v23 = vperm.slane %v3990_v5, 0  ;;  %v4065_v20 = vld [vmem:[#allocation2 + $0x18] sm:$0xf8]  ;;  %v4067_v26 = vld [vmem:[#allocation2 + $0x50] sm:$0x7] }
 0x29b   : > { %v1337_v3 = vmul.f32 %v1325_v23, %v3855_v57 }
 0x29d   : > { %v1350_v60 = vrot.slane %v1337_v3, 2 }
 0x2a1   : > { %1434 = vrot.lane.b32.xlu1 %v1430_v30, %s3293_s16  ;;  %1436 = vrot.lane.b32.xlu2 %v1431_v4, %s3293_s16  ;;  %v1237_v30 = vadd.f32 %v1225_v36, %v3962_v52  ;;  %v1238_v4 = vadd.f32 %v1228_v41, %v3940_v29  ;;  %v4039_v52 = vld [vmem:[%s4938_s1 + $0x45] ss:$8 sm:$0xf]  ;;  %v3246_v29 = vld [vmem:[%s4938_s1 + $0x60] ss:$8 sm:$0xf] }
 0x2a2   : > { %v1380_v6 = vperm.slane %v4039_v52, 0  ;;  %v1559_v19 = vperm.slane %v3246_v29, 0  ;;  %v1562_v0 = vperm.slane %v3246_v29, 3 }
 0x2a9   : > { %1440 = vrot.lane.b32.xlu1 %v1433_v17, %s3293_s16 }
 0x2dd   : > { %v1301_v49 = vpop.permute.xlu2 %1300 }
 0x2f3   : > { %v1307_v51 = vpop.permute.xlu2 %1306 }
 0x2f6   : > { %v1303_v21 = vpop.permute.xlu0 %1302 }
 0x2f7   : > { %v1310_v38 = vsel %vm217_vm4, %v1301_v49, %v1303_v21  ;;  %v1388_v49 = vmul.f32 %v1380_v6, %v1369_v45 }
 0x2f8   : > { %v4003_v28 = vadd.f32 %v1310_v38, %v1236_v18  ;;  %v1392_v18 = vmul.f32 %v1380_v6, %v1373_v2 }
 0x2fa   : > { %v1406_v59 = vrot.slane %v1392_v18, 3 }
 0x2fb   : > { %v1437_v33 = vpop.permute.xlu2 %1436 }
 0x2fe   : > { %v1309_v47 = vpop.permute.xlu0 %1308 }
 0x2ff   : > { %v1313_v50 = vsel %vm217_vm4, %v1307_v51, %v1309_v47  ;;  %v1405_v47 = vrot.slane %v1388_v49, 3  ;;  %v1326_v49 = vperm.slane %v3990_v5, 1 }
 0x300   : > { %v1321_v12 = vadd.f32 %v1313_v50, %v1239_v25 }
 0x301   : > { %v1334_v18 = vmul.f32 %v1326_v49, %v3824_v48 }
 0x302   : > { %v4008_v61 = vadd.f32 %v1360_v46, %v1321_v12  ;;  %v1333_v46 = vmul.f32 %v1325_v23, %v3849_v31 }
 0x304   : > { %v1349_v44 = vrot.slane %v1333_v46, 2  ;;  %v1382_v46 = vperm.slane %v4039_v52, 2 }
 0x306   : > { %v4013_v22 = vpop.permute.xlu0 %1438  ;;  %v1351_v25 = vsel %vm961_vm6, %v1349_v44, %v1350_v60 }
 0x307   : > { %v1443_v14 = vsel %vm217_vm4, %v1437_v33, %v4013_v22  ;;  %v1365_v12 = vadd.f32 %v1351_v25, %v4003_v28  ;;  %v1383_v25 = vperm.slane %v4039_v52, 3 }
 0x308   : > { %v1452_v9 = vmul.f32 %v1443_v14, %v4015_v62  ;;  %v1457_v1 = vmul.f32 %v1443_v14, %v4017_v15  ;;  %v1407_v14 = vsel %vm1404_vm7, %v1405_v47, %v1406_v59 }
 0x30a   : > { %v1476_v11 = vrot.slane %v1452_v9, 3  ;;  %v1477_v27 = vrot.slane %v1457_v1, 3 }
 0x30b   : > { %v1305_v17 = vpop.permute.xlu1 %1304 }
 0x30c   : > { %v1311_v42 = vsel %vm217_vm4, %v1303_v21, %v1305_v17  ;;  %v1312_v16 = vsel %vm217_vm4, %v1305_v17, %v1307_v51  ;;  %v1478_v55 = vsel %vm1404_vm7, %v1476_v11, %v1477_v27  ;;  %v4077_v11 = vadd.f32 %v1407_v14, %v1365_v12 }
 0x30d   : > { %v4031_v43 = vadd.f32 %v1311_v42, %v1237_v30  ;;  %v4033_v53 = vadd.f32 %v1312_v16, %v1238_v4  ;;  %1489 = vrot.lane.b32.xlu1 %v1478_v55, %s3293_s16  ;;  %v1561_v4 = vperm.slane %v3246_v29, 2  ;;  %v1560_v17 = vperm.slane %v3246_v29, 1 }
 0x30e   : > { %v1327_v42 = vperm.slane %v3990_v5, 2 }
 0x310   : > { %v1335_v16 = vmul.f32 %v1327_v42, %v3917_v35  ;;  %v1339_v55 = vmul.f32 %v1327_v42, %v3919_v58  ;;  %v4123_v42 = vld [vmem:[#allocation2 + $0x28] sm:$0xf8] }
 0x312   : > { %v1355_v6 = vrot.slane %v1335_v16, 2  ;;  %v4125_v16 = vld [vmem:[#allocation2 + $0x60] sm:$0x7] }
 0x313   : > { %v1435_v13 = vpop.permute.xlu1 %1434 }
 0x314   : > { %v1442_v21 = vsel %vm217_vm4, %v1435_v13, %v1437_v33  ;;  %v1450_v38 = vmul.f32 %v1435_v13, %v1369_v45  ;;  %v1455_v31 = vmul.f32 %v1435_v13, %v1373_v2  ;;  %v1356_v45 = vrot.slane %v1339_v55, 2 }
 0x315   : > { %v1451_v57 = vmul.f32 %v1442_v21, %v4047_v8  ;;  %v1456_v10 = vmul.f32 %v1442_v21, %v4049_v32  ;;  %1563 = vrot.lane.b32.xlu1 %v1559_v19, %s3293_s16  ;;  %v1390_v2 = vmul.f32 %v1382_v46, %v4015_v62  ;;  %v1394_v19 = vmul.f32 %v1382_v46, %v4017_v15 }
 0x316   : > { %v1470_v7 = vrot.slane %v1450_v38, 3  ;;  %v1471_v51 = vrot.slane %v1455_v31, 3  ;;  %v1357_v29 = vsel %vm961_vm6, %v1355_v6, %v1356_v45  ;;  %v1338_v21 = vmul.f32 %v1326_v49, %v3826_v37 }
 0x317   : > { %v1473_v34 = vrot.slane %v1451_v57, 3  ;;  %v1474_v24 = vrot.slane %v1456_v10, 3  ;;  %v1411_v44 = vrot.slane %v1390_v2, 3  ;;  %v1412_v60 = vrot.slane %v1394_v19, 3 }
 0x318   : > { %v1472_v50 = vsel %vm1404_vm7, %v1470_v7, %v1471_v51  ;;  %v1367_v13 = vadd.f32 %v1357_v29, %v4033_v53  ;;  %v1381_v57 = vperm.slane %v4039_v52, 1  ;;  %v1352_v51 = vrot.slane %v1334_v18, 2 }
 0x319   : > { %1485 = vrot.lane.b32.xlu2 %v1472_v50, %s3293_s16  ;;  %v1475_v63 = vsel %vm1404_vm7, %v1473_v34, %v1474_v24  ;;  %v1413_v58 = vsel %vm1404_vm7, %v1411_v44, %v1412_v60  ;;  %v1353_v34 = vrot.slane %v1338_v21, 2  ;;  %v1391_v52 = vmul.f32 %v1383_v25, %v4065_v20 }
 0x31a   : > { %1487 = vrot.lane.b32.xlu0 %v1475_v63, %s3293_s16  ;;  %v1423_v38 = vadd.f32 %v1413_v58, %v1367_v13  ;;  %v1389_v5 = vmul.f32 %v1381_v57, %v4047_v8  ;;  %v1393_v53 = vmul.f32 %v1381_v57, %v4049_v32  ;;  %v3248_v58 = vld [vmem:[%s4938_s1 + $0x62] ss:$8 sm:$0xf] }
 0x31b   : > { %v1441_v33 = vpop.permute.xlu1 %1440  ;;  %v1354_v48 = vsel %vm961_vm6, %v1352_v51, %v1353_v34  ;;  %v1414_v46 = vrot.slane %v1391_v52, 3  ;;  %v1690_v18 = vperm.slane %v3248_v58, 2 }
 0x31c   : > { %v1444_v40 = vsel %vm217_vm4, %v4013_v22, %v1441_v33  ;;  %v1454_v28 = vmul.f32 %v1441_v33, %v4061_v56  ;;  %v1459_v54 = vmul.f32 %v1441_v33, %v4063_v39  ;;  %v1408_v47 = vrot.slane %v1389_v5, 3 }
 0x31d   : > { %v1453_v9 = vmul.f32 %v1444_v40, %v4065_v20  ;;  %v1458_v1 = vmul.f32 %v1444_v40, %v4067_v26  ;;  %1569 = vrot.lane.b32.xlu1 %v1562_v0, %s3293_s16  ;;  %v1409_v59 = vrot.slane %v1393_v53, 3  ;;  %v1366_v50 = vadd.f32 %v1354_v48, %v4031_v43 }
 0x31e   : > { %v1482_v27 = vrot.slane %v1454_v28, 3  ;;  %v1483_v36 = vrot.slane %v1459_v54, 3  ;;  %v1395_v43 = vmul.f32 %v1383_v25, %v4067_v26  ;;  %v1688_v48 = vperm.slane %v3248_v58, 0 }
 0x31f   : > { %v1479_v41 = vrot.slane %v1453_v9, 3  ;;  %v1480_v23 = vrot.slane %v1458_v1, 3  ;;  %v1410_v1 = vsel %vm1404_vm7, %v1408_v47, %v1409_v59  ;;  %v1691_v47 = vperm.slane %v3248_v58, 3  ;;  %v3245_v59 = vld [vmem:[%s4938_s1 + $0x47] ss:$8 sm:$0xf] }
 0x320   : > { %v1484_v22 = vsel %vm1404_vm7, %v1482_v27, %v1483_v36  ;;  %v1422_v27 = vadd.f32 %v1410_v1, %v1366_v50  ;;  %v1415_v6 = vrot.slane %v1395_v43, 3  ;;  %v1510_v50 = vperm.slane %v3245_v59, 0 }
 0x321   : > { %v1481_v30 = vsel %vm1404_vm7, %v1479_v41, %v1480_v23 }
 0x322   : > { %1493 = vrot.lane.b32.xlu0 %v1484_v22, %s3293_s16  ;;  %1491 = vrot.lane.b32.xlu2 %v1481_v30, %s3293_s16  ;;  %v1416_v29 = vsel %vm1404_vm7, %v1414_v46, %v1415_v6 }
 0x32a   : > { %1567 = vrot.lane.b32.xlu0 %v1561_v4, %s3293_s16  ;;  %1565 = vrot.lane.b32.xlu2 %v1560_v17, %s3293_s16 }
 0x373   : > { %v1486_v3 = vpop.permute.xlu2 %1485 }
 0x37c   : > { %v1492_v35 = vpop.permute.xlu2 %1491 }
 0x37f   : > { %v1490_v31 = vpop.permute.xlu1 %1489 }
 0x380   : > { %v1497_v10 = vsel %vm217_vm4, %v1490_v31, %v1492_v35 }
 0x381   : > { %v4099_v7 = vadd.f32 %v1497_v10, %v1423_v38 }
 0x384   : > { %v1566_v24 = vpop.permute.xlu2 %1565 }
 0x387   : > { %v1564_v37 = vpop.permute.xlu1 %1563 }
 0x388   : > { %v1571_v12 = vsel %vm217_vm4, %v1564_v37, %v1566_v24  ;;  %v1579_v63 = vmul.f32 %v1564_v37, %v4047_v8  ;;  %v1584_v0 = vmul.f32 %v1564_v37, %v4049_v32  ;;  %v1689_v37 = vperm.slane %v3248_v58, 1 }
 0x389   : > { %v1580_v33 = vmul.f32 %v1571_v12, %v4015_v62  ;;  %v1585_v40 = vmul.f32 %v1571_v12, %v4017_v15  ;;  %v1518_v12 = vmul.f32 %v1510_v50, %v4047_v8 }
 0x38a   : > { %v1599_v28 = vrot.slane %v1579_v63, 3  ;;  %v1600_v54 = vrot.slane %v1584_v0, 3  ;;  %v1522_v63 = vmul.f32 %v1510_v50, %v4049_v32 }
 0x38b   : > { %v1602_v14 = vrot.slane %v1580_v33, 3  ;;  %v1603_v9 = vrot.slane %v1585_v40, 3  ;;  %v1534_v0 = vrot.slane %v1518_v12, 3  ;;  %v1513_v40 = vperm.slane %v3245_v59, 3 }
 0x38c   : > { %v1488_v36 = vpop.permute.xlu0 %1487  ;;  %v1601_v41 = vsel %vm1404_vm7, %v1599_v28, %v1600_v54  ;;  %v1535_v33 = vrot.slane %v1522_v63, 3 }
 0x38d   : > { %v1495_v23 = vsel %vm217_vm4, %v1486_v3, %v1488_v36  ;;  %v1496_v22 = vsel %vm217_vm4, %v1488_v36, %v1490_v31  ;;  %1614 = vrot.lane.b32.xlu2 %v1601_v41, %s3293_s16  ;;  %v1604_v30 = vsel %vm1404_vm7, %v1602_v14, %v1603_v9  ;;  %v1521_v52 = vmul.f32 %v1513_v40, %v4061_v56 }
 0x38e   : > { %v1503_v4 = vadd.f32 %v1495_v23, %v4077_v11  ;;  %v4120_v17 = vadd.f32 %v1496_v22, %v1422_v27  ;;  %1616 = vrot.lane.b32.xlu0 %v1604_v30, %s3293_s16  ;;  %v1424_v11 = vadd.f32 %v1416_v29, %v4008_v61  ;;  %v1536_v54 = vsel %vm1404_vm7, %v1534_v0, %v1535_v33 }
 0x38f   : > { %v1570_v55 = vpop.permute.xlu1 %1569  ;;  %v1525_v14 = vmul.f32 %v1513_v40, %v4063_v39  ;;  %v1543_v36 = vrot.slane %v1521_v52, 3  ;;  %v1511_v30 = vperm.slane %v3245_v59, 1  ;;  %v1684_v52 = vld [vmem:[#allocation2 + $0x68] sm:$0x7] }
 0x390   : > { %v1583_v3 = vmul.f32 %v1570_v55, %v4123_v42  ;;  %v1588_v45 = vmul.f32 %v1570_v55, %v4125_v16  ;;  %v1550_v9 = vadd.f32 %v1536_v54, %v1503_v4  ;;  %v1683_v54 = vld [vmem:[#allocation2 + $0x30] sm:$0xf8] }
 0x391   : > { %v1544_v8 = vrot.slane %v1525_v14, 3  ;;  %v1519_v4 = vmul.f32 %v1511_v30, %v4015_v62 }
 0x392   : > { %v1611_v2 = vrot.slane %v1583_v3, 3  ;;  %v1612_v19 = vrot.slane %v1588_v45, 3  ;;  %v1523_v45 = vmul.f32 %v1511_v30, %v4017_v15 }
 0x393   : > { %v1545_v32 = vsel %vm1404_vm7, %v1543_v36, %v1544_v8 }
 0x394   : > { %v1494_v44 = vpop.permute.xlu0 %1493  ;;  %v1613_v60 = vsel %vm1404_vm7, %v1611_v2, %v1612_v19 }
 0x395   : > { %v1498_v49 = vsel %vm217_vm4, %v1492_v35, %v1494_v44  ;;  %v1538_v44 = vrot.slane %v1523_v45, 3  ;;  %v4209_v45 = vld [vmem:[%s4938_s1 + $0x63] ss:$8 sm:$0xf] }
 0x396   : > { %v1506_v13 = vadd.f32 %v1498_v49, %v1424_v11  ;;  %1622 = vrot.lane.b32.xlu0 %v1613_v60, %s3293_s16  ;;  %v1537_v11 = vrot.slane %v1519_v4, 3 }
 0x398   : > { %v1553_v23 = vadd.f32 %v1545_v32, %v1506_v13 }
 0x39c   : > { %v1568_v21 = vpop.permute.xlu0 %1567 }
 0x39d   : > { %v1572_v38 = vsel %vm217_vm4, %v1566_v24, %v1568_v21  ;;  %v1573_v31 = vsel %vm217_vm4, %v1568_v21, %v1570_v55  ;;  %v1512_v55 = vperm.slane %v3245_v59, 2 }
 0x39e   : > { %v1581_v61 = vmul.f32 %v1572_v38, %v4065_v20  ;;  %v1582_v57 = vmul.f32 %v1573_v31, %v4061_v56  ;;  %v1586_v10 = vmul.f32 %v1572_v38, %v4067_v26  ;;  %v1587_v35 = vmul.f32 %v1573_v31, %v4063_v39  ;;  %1696 = vrot.lane.b32.xlu0 %v1690_v18, %s3293_s16 }
 0x39f   : > { %v1520_v3 = vmul.f32 %v1512_v55, %v4065_v20  ;;  %v1524_v2 = vmul.f32 %v1512_v55, %v4067_v26  ;;  %v1539_v31 = vsel %vm1404_vm7, %v1537_v11, %v1538_v44 }
 0x3a0   : > { %v1605_v51 = vrot.slane %v1581_v61, 3  ;;  %v1606_v34 = vrot.slane %v1586_v10, 3  ;;  %v1608_v5 = vrot.slane %v1582_v57, 3  ;;  %v1609_v53 = vrot.slane %v1587_v35, 3 }
 0x3a1   : > { %v1540_v60 = vrot.slane %v1520_v3, 3  ;;  %v1541_v49 = vrot.slane %v1524_v2, 3  ;;  %v1551_v57 = vadd.f32 %v1539_v31, %v4120_v17  ;;  %v1771_v2 = vperm.slane %v4209_v45, 3 }
 0x3a2   : > { %v1610_v25 = vsel %vm1404_vm7, %v1608_v5, %v1609_v53  ;;  %v1607_v24 = vsel %vm1404_vm7, %v1605_v51, %v1606_v34 }
 0x3a3   : > { %1620 = vrot.lane.b32.xlu2 %v1610_v25, %s3293_s16  ;;  %1618 = vrot.lane.b32.xlu1 %v1607_v24, %s3293_s16  ;;  %v1542_v61 = vsel %vm1404_vm7, %v1540_v60, %v1541_v49  ;;  %v3251_v24 = vld [vmem:[%s4938_s1 + $0x65] ss:$8 sm:$0xf]  ;;  %v3247_v60 = vld [vmem:[%s4938_s1 + $0x61] ss:$8 sm:$0xf] }
 0x3a4   : > { %v1552_v10 = vadd.f32 %v1542_v61, %v4099_v7  ;;  %v1876_v14 = vperm.slane %v3251_v24, 3  ;;  %v1875_v4 = vperm.slane %v3251_v24, 2  ;;  %v1874_v3 = vperm.slane %v3251_v24, 1 }
 0x3a5   : > { %v1641_v49 = vperm.slane %v3247_v60, 2 }
 0x3ab   : > { %1692 = vrot.lane.b32.xlu1 %v1688_v48, %s3293_s16  ;;  %1694 = vrot.lane.b32.xlu2 %v1689_v37, %s3293_s16  ;;  %v1873_v48 = vperm.slane %v3251_v24, 0 }
 0x3b3   : > { %1698 = vrot.lane.b32.xlu1 %v1691_v47, %s3293_s16 }
 0x3e7   : > { %v1615_v28 = vpop.permute.xlu2 %1614 }
 0x3fd   : > { %v1621_v41 = vpop.permute.xlu2 %1620 }
 0x400   : > { %v1617_v1 = vpop.permute.xlu0 %1616 }
 0x401   : > { %v1624_v43 = vsel %vm217_vm4, %v1615_v28, %v1617_v1 }
 0x402   : > { %v4160_v27 = vadd.f32 %v1624_v43, %v1550_v9 }
 0x405   : > { %v1695_v19 = vpop.permute.xlu2 %1694 }
 0x408   : > { %v1623_v22 = vpop.permute.xlu0 %1622 }
 0x409   : > { %v1627_v46 = vsel %vm217_vm4, %v1621_v41, %v1623_v22 }
 0x40a   : > { %v4164_v6 = vadd.f32 %v1627_v46, %v1553_v23 }
 0x410   : > { %v1697_v29 = vpop.permute.xlu0 %1696 }
 0x411   : > { %v1701_v13 = vsel %vm217_vm4, %v1695_v19, %v1697_v29 }
 0x412   : > { %v1710_v58 = vmul.f32 %v1701_v13, %v4061_v56  ;;  %v1715_v18 = vmul.f32 %v1701_v13, %v4063_v39 }
 0x414   : > { %v1734_v21 = vrot.slane %v1710_v58, 3  ;;  %v1735_v38 = vrot.slane %v1715_v18, 3  ;;  %v1649_v18 = vmul.f32 %v1641_v49, %v4061_v56 }
 0x415   : > { %v1619_v35 = vpop.permute.xlu1 %1618 }
 0x416   : > { %v1625_v51 = vsel %vm217_vm4, %v1617_v1, %v1619_v35  ;;  %v1626_v34 = vsel %vm217_vm4, %v1619_v35, %v1621_v41  ;;  %v1736_v5 = vsel %vm1404_vm7, %v1734_v21, %v1735_v38  ;;  %v1653_v21 = vmul.f32 %v1641_v49, %v4063_v39 }
 0x417   : > { %v4180_v53 = vadd.f32 %v1625_v51, %v1551_v57  ;;  %v1634_v25 = vadd.f32 %v1626_v34, %v1552_v10  ;;  %1747 = vrot.lane.b32.xlu1 %v1736_v5, %s3293_s16  ;;  %v1669_v38 = vrot.slane %v1649_v18, 3  ;;  %v1640_v57 = vperm.slane %v3247_v60, 1 }
 0x418   : > { %v1670_v31 = vrot.slane %v1653_v21, 3  ;;  %v1639_v34 = vperm.slane %v3247_v60, 0 }
 0x41a   : > { %v1671_v10 = vsel %vm1404_vm7, %v1669_v38, %v1670_v31 }
 0x41b   : > { %v1681_v35 = vadd.f32 %v1671_v10, %v1634_v25  ;;  %v4230_v25 = vld [vmem:[#allocation2 + $0x38] sm:$0xf] }
 0x41d   : > { %v1693_v17 = vpop.permute.xlu1 %1692 }
 0x41e   : > { %v1700_v7 = vsel %vm217_vm4, %v1693_v17, %v1695_v19  ;;  %v1708_v37 = vmul.f32 %v1693_v17, %v4015_v62  ;;  %v1713_v47 = vmul.f32 %v1693_v17, %v4017_v15  ;;  %v1779_v19 = vmul.f32 %v1771_v2, %v1683_v54 }
 0x41f   : > { %v1709_v59 = vmul.f32 %v1700_v7, %v4065_v20  ;;  %v1714_v50 = vmul.f32 %v1700_v7, %v4067_v26  ;;  %1877 = vrot.lane.b32.xlu1 %v1873_v48, %s3293_s16  ;;  %v1648_v48 = vmul.f32 %v1640_v57, %v4065_v20  ;;  %v1652_v17 = vmul.f32 %v1640_v57, %v4067_v26 }
 0x420   : > { %v1728_v12 = vrot.slane %v1708_v37, 3  ;;  %v1729_v63 = vrot.slane %v1713_v47, 3  ;;  %v1801_v11 = vrot.slane %v1779_v19, 3  ;;  %v1647_v7 = vmul.f32 %v1639_v34, %v4015_v62 }
 0x421   : > { %v1731_v0 = vrot.slane %v1709_v59, 3  ;;  %v1732_v33 = vrot.slane %v1714_v50, 3  ;;  %v1651_v37 = vmul.f32 %v1639_v34, %v4017_v15  ;;  %v1666_v59 = vrot.slane %v1648_v48, 3 }
 0x422   : > { %v1730_v40 = vsel %vm1404_vm7, %v1728_v12, %v1729_v63  ;;  %v1667_v50 = vrot.slane %v1652_v17, 3  ;;  %v1642_v12 = vperm.slane %v3247_v60, 3  ;;  %v4228_v63 = vld [vmem:[#allocation2] sm:$0xf0] }
 0x423   : > { %1743 = vrot.lane.b32.xlu2 %v1730_v40, %s3293_s16  ;;  %v1733_v28 = vsel %vm1404_vm7, %v1731_v0, %v1732_v33  ;;  %v1663_v33 = vrot.slane %v1647_v7, 3  ;;  %v1664_v40 = vrot.slane %v1651_v37, 3  ;;  %v4270_v7 = vld [vmem:[#allocation2 + $0x18] sm:$0xf0] }
 0x424   : > { %1745 = vrot.lane.b32.xlu0 %v1733_v28, %s3293_s16  ;;  %v4232_v28 = vld [vmem:[#allocation2 + $0x8] sm:$0xf0] }
 0x425   : > { %v1699_v9 = vpop.permute.xlu1 %1698 }
 0x426   : > { %v1702_v1 = vsel %vm217_vm4, %v1697_v29, %v1699_v9  ;;  %v1712_v43 = vmul.f32 %v1699_v9, %v1683_v54  ;;  %v1717_v36 = vmul.f32 %v1699_v9, %v1684_v52  ;;  %v1783_v29 = vmul.f32 %v1771_v2, %v1684_v52  ;;  %v4234_v54 = vld [vmem:[#allocation2 + $0x40] sm:$0xf] }
 0x427   : > { %v1711_v8 = vmul.f32 %v1702_v1, %v4123_v42  ;;  %v1716_v41 = vmul.f32 %v1702_v1, %v4125_v16  ;;  %1883 = vrot.lane.b32.xlu1 %v1876_v14, %s3293_s16  ;;  %v1668_v1 = vsel %vm1404_vm7, %v1666_v59, %v1667_v50  ;;  %v4272_v59 = vld [vmem:[#allocation2 + $0x10] sm:$0xf0]  ;;  %v4276_v50 = vld [vmem:[#allocation2 + $0x50] sm:$0xf] }
 0x428   : > { %v1740_v32 = vrot.slane %v1712_v43, 3  ;;  %v1741_v23 = vrot.slane %v1717_v36, 3  ;;  %v1802_v44 = vrot.slane %v1783_v29, 3 }
 0x429   : > { %v1737_v22 = vrot.slane %v1711_v8, 3  ;;  %v1738_v30 = vrot.slane %v1716_v41, 3  ;;  %v1650_v8 = vmul.f32 %v1642_v12, %v4123_v42 }
 0x42a   : > { %v1742_v55 = vsel %vm1404_vm7, %v1740_v32, %v1741_v23  ;;  %v4216_v13 = vsel %vm1404_vm7, %v1801_v11, %v1802_v44  ;;  %v1665_v23 = vsel %vm1404_vm7, %v1663_v33, %v1664_v40  ;;  %v4255_v44 = vld [vmem:[#allocation2 + $0x20] sm:$0xf0] }
 0x42b   : > { %v1739_v46 = vsel %vm1404_vm7, %v1737_v22, %v1738_v30  ;;  %v1654_v22 = vmul.f32 %v1642_v12, %v4125_v16  ;;  %v1679_v30 = vadd.f32 %v1665_v23, %v4160_v27  ;;  %v4257_v27 = vld [vmem:[#allocation2 + $0x58] sm:$0xf]  ;;  %v1672_v60 = vrot.slane %v1650_v8, 3 }
 0x42c   : > { %1751 = vrot.lane.b32.xlu0 %v1742_v55, %s3293_s16  ;;  %1749 = vrot.lane.b32.xlu2 %v1739_v46, %s3293_s16  ;;  %v1680_v55 = vadd.f32 %v1668_v1, %v4180_v53  ;;  %v1768_v8 = vperm.slane %v4209_v45, 0 }
 0x42d   : > { %v1673_v49 = vrot.slane %v1654_v22, 3 }
 0x42e   : > { %v1776_v23 = vmul.f32 %v1768_v8, %v4065_v20  ;;  %v1780_v22 = vmul.f32 %v1768_v8, %v4067_v26 }
 0x42f   : > { %v1674_v31 = vsel %vm1404_vm7, %v1672_v60, %v1673_v49 }
 0x430   : > { %v1682_v57 = vadd.f32 %v1674_v31, %v4164_v6  ;;  %v4274_v6 = vld [vmem:[#allocation2 + $0x48] sm:$0xf]  ;;  %v1769_v31 = vperm.slane %v4209_v45, 1 }
 0x434   : > { %1881 = vrot.lane.b32.xlu0 %v1875_v4, %s3293_s16  ;;  %1879 = vrot.lane.b32.xlu2 %v1874_v3, %s3293_s16 }
 0x47d   : > { %v1744_v58 = vpop.permute.xlu2 %1743 }
 0x486   : > { %v1750_v61 = vpop.permute.xlu2 %1749 }
 0x489   : > { %v1748_v51 = vpop.permute.xlu1 %1747 }
 0x48a   : > { %v1755_v5 = vsel %vm217_vm4, %v1748_v51, %v1750_v61 }
 0x48b   : > { %v4222_v24 = vadd.f32 %v1755_v5, %v1681_v35  ;;  %v3253_v5 = vld [vmem:[%s4938_s1 + $0x67] ss:$8 sm:$0xf] }
 0x48c   : > { %v2004_v17 = vperm.slane %v3253_v5, 2  ;;  %v2002_v1 = vperm.slane %v3253_v5, 0 }
 0x48e   : > { %v1880_v47 = vpop.permute.xlu2 %1879 }
 0x491   : > { %v1878_v0 = vpop.permute.xlu1 %1877 }
 0x492   : > { %v1885_v52 = vsel %vm217_vm4, %v1878_v0, %v1880_v47  ;;  %v1893_v62 = vmul.f32 %v1878_v0, %v4228_v63  ;;  %v1898_v15 = vmul.f32 %v1878_v0, %v4230_v25 }
 0x493   : > { %v1894_v14 = vmul.f32 %v1885_v52, %v4232_v28  ;;  %v1899_v9 = vmul.f32 %v1885_v52, %v4234_v54 }
 0x494   : > { %v1913_v43 = vrot.slane %v1893_v62, 4  ;;  %v1914_v36 = vrot.slane %v1898_v15, 4 }
 0x495   : > { %v1916_v41 = vrot.slane %v1894_v14, 4  ;;  %v1917_v32 = vrot.slane %v1899_v9, 4 }
 0x496   : > { %v1746_v46 = vpop.permute.xlu0 %1745  ;;  %v1915_v4 = vsel %vm1847_vm8, %v1913_v43, %v1914_v36  ;;  %v2003_v43 = vperm.slane %v3253_v5, 1  ;;  %v2005_v36 = vperm.slane %v3253_v5, 3  ;;  %v1781_v5 = vmul.f32 %v1769_v31, %v4063_v39 }
 0x497   : > { %v1753_v3 = vsel %vm217_vm4, %v1744_v58, %v1746_v46  ;;  %v1754_v2 = vsel %vm217_vm4, %v1746_v46, %v1748_v51  ;;  %v1918_v19 = vsel %vm1847_vm8, %v1916_v41, %v1917_v32  ;;  %1928 = vrot.lane.b32.xlu2 %v1915_v4, %s3293_s16  ;;  %v3250_v41 = vld [vmem:[%s4938_s1 + $0x64] ss:$8 sm:$0xf]  ;;  %v1792_v46 = vrot.slane %v1776_v23, 3 }
 0x498   : > { %v1761_v29 = vadd.f32 %v1753_v3, %v1679_v30  ;;  %v4252_v11 = vadd.f32 %v1754_v2, %v1680_v55  ;;  %1930 = vrot.lane.b32.xlu0 %v1918_v19, %s3293_s16  ;;  %v1823_v32 = vperm.slane %v3250_v41, 0  ;;  %v1793_v4 = vrot.slane %v1780_v22, 3 }
 0x499   : > { %v1884_v53 = vpop.permute.xlu1 %1883 }
 0x49a   : > { %v1897_v58 = vmul.f32 %v1884_v53, %v4255_v44  ;;  %v1902_v18 = vmul.f32 %v1884_v53, %v4257_v27  ;;  %v1831_v30 = vmul.f32 %v1823_v32, %v4228_v63  ;;  %v1835_v55 = vmul.f32 %v1823_v32, %v4230_v25 }
 0x49b   : > { %v1794_v19 = vsel %vm1404_vm7, %v1792_v46, %v1793_v4  ;;  %v1770_v25 = vperm.slane %v4209_v45, 2 }
 0x49c   : > { %v1925_v21 = vrot.slane %v1897_v58, 4  ;;  %v1926_v38 = vrot.slane %v1902_v18, 4  ;;  %v1848_v3 = vrot.slane %v1831_v30, 4  ;;  %v1849_v2 = vrot.slane %v1835_v55, 4 }
 0x49d   : > { %v1826_v58 = vperm.slane %v3250_v41, 3 }
 0x49e   : > { %v1752_v10 = vpop.permute.xlu0 %1751  ;;  %v1927_v35 = vsel %vm1847_vm8, %v1925_v21, %v1926_v38  ;;  %v1850_v60 = vsel %vm1847_vm8, %v1848_v3, %v1849_v2 }
 0x49f   : > { %v1756_v51 = vsel %vm217_vm4, %v1750_v61, %v1752_v10  ;;  %v1834_v20 = vmul.f32 %v1826_v58, %v4270_v7  ;;  %v1838_v26 = vmul.f32 %v1826_v58, %v4276_v50  ;;  %v1778_v10 = vmul.f32 %v1770_v25, %v4123_v42  ;;  %v3255_v58 = vld [vmem:[%s4938_s1 + $0x81] ss:$8 sm:$0xf] }
 0x4a0   : > { %v1764_v34 = vadd.f32 %v1756_v51, %v1682_v57  ;;  %1936 = vrot.lane.b32.xlu0 %v1927_v35, %s3293_s16  ;;  %v1782_v51 = vmul.f32 %v1770_v25, %v4125_v16 }
 0x4a1   : > { %v1857_v57 = vrot.slane %v1834_v20, 4 }
 0x4a2   : > { %v1811_v48 = vadd.f32 %v4216_v13, %v1764_v34  ;;  %v1777_v34 = vmul.f32 %v1769_v31, %v4061_v56 }
 0x4a4   : > { %v1795_v42 = vrot.slane %v1777_v34, 3 }
 0x4a6   : > { %v1882_v37 = vpop.permute.xlu0 %1881 }
 0x4a7   : > { %v1886_v61 = vsel %vm217_vm4, %v1880_v47, %v1882_v37  ;;  %v1887_v12 = vsel %vm217_vm4, %v1882_v37, %v1884_v53  ;;  %v1808_v53 = vadd.f32 %v1794_v19, %v1761_v29  ;;  %v1858_v29 = vrot.slane %v1838_v26, 4 }
 0x4a8   : > { %v1895_v0 = vmul.f32 %v1886_v61, %v4272_v59  ;;  %v1896_v33 = vmul.f32 %v1887_v12, %v4270_v7  ;;  %v1900_v13 = vmul.f32 %v1886_v61, %v4274_v6  ;;  %v1901_v40 = vmul.f32 %v1887_v12, %v4276_v50  ;;  %2010 = vrot.lane.b32.xlu0 %v2004_v17, %s3293_s16 }
 0x4a9   : > { %v1864_v49 = vadd.f32 %v1850_v60, %v1808_v53  ;;  %v1859_v17 = vsel %vm1847_vm8, %v1857_v57, %v1858_v29  ;;  %v1824_v12 = vperm.slane %v3250_v41, 1 }
 0x4aa   : > { %v1919_v52 = vrot.slane %v1895_v0, 4  ;;  %v1920_v62 = vrot.slane %v1900_v13, 4  ;;  %v1922_v15 = vrot.slane %v1896_v33, 4  ;;  %v1923_v14 = vrot.slane %v1901_v40, 4 }
 0x4ab   : > { %v1867_v37 = vadd.f32 %v1859_v17, %v1811_v48  ;;  %v1825_v0 = vperm.slane %v3250_v41, 2  ;;  %v1798_v13 = vrot.slane %v1778_v10, 3  ;;  %v1799_v40 = vrot.slane %v1782_v51, 3  ;;  %v4349_v17 = vld [vmem:[#allocation2 + $0x28] sm:$0xf0] }
 0x4ac   : > { %v1924_v9 = vsel %vm1847_vm8, %v1922_v15, %v1923_v14  ;;  %v1921_v47 = vsel %vm1847_vm8, %v1919_v52, %v1920_v62  ;;  %v1796_v52 = vrot.slane %v1781_v5, 3  ;;  %v1832_v16 = vmul.f32 %v1824_v12, %v4232_v28 }
 0x4ad   : > { %1934 = vrot.lane.b32.xlu2 %v1924_v9, %s3293_s16  ;;  %1932 = vrot.lane.b32.xlu1 %v1921_v47, %s3293_s16  ;;  %v1833_v56 = vmul.f32 %v1825_v0, %v4272_v59  ;;  %v1836_v39 = vmul.f32 %v1824_v12, %v4234_v54  ;;  %v1837_v62 = vmul.f32 %v1825_v0, %v4274_v6  ;;  %v2134_v5 = vperm.slane %v3255_v58, 3 }
 0x4ae   : > { %v1800_v15 = vsel %vm1404_vm7, %v1798_v13, %v1799_v40  ;;  %v1797_v14 = vsel %vm1404_vm7, %v1795_v42, %v1796_v52  ;;  %v1851_v47 = vrot.slane %v1832_v16, 4 }
 0x4af   : > { %v1810_v8 = vadd.f32 %v1800_v15, %v4222_v24  ;;  %v1809_v41 = vadd.f32 %v1797_v14, %v4252_v11  ;;  %v2132_v15 = vperm.slane %v3255_v58, 1  ;;  %v3252_v14 = vld [vmem:[%s4938_s1 + $0x66] ss:$8 sm:$0xf] }
 0x4b5   : > { %2006 = vrot.lane.b32.xlu1 %v2002_v1, %s3293_s16  ;;  %2008 = vrot.lane.b32.xlu2 %v2003_v43, %s3293_s16  ;;  %v1852_v1 = vrot.slane %v1836_v39, 4  ;;  %v1854_v43 = vrot.slane %v1833_v56, 4 }
 0x4b7   : > { %v1853_v46 = vsel %vm1847_vm8, %v1851_v47, %v1852_v1 }
 0x4b8   : > { %v1865_v3 = vadd.f32 %v1853_v46, %v1809_v41 }
 0x4bd   : > { %2012 = vrot.lane.b32.xlu1 %v2005_v36, %s3293_s16  ;;  %v1855_v36 = vrot.slane %v1837_v62, 4 }
 0x4bf   : > { %v1856_v4 = vsel %vm1847_vm8, %v1854_v43, %v1855_v36 }
 0x4c0   : > { %v1866_v2 = vadd.f32 %v1856_v4, %v1810_v8 }
 0x4f1   : > { %v1929_v18 = vpop.permute.xlu2 %1928 }
 0x507   : > { %v1935_v35 = vpop.permute.xlu2 %1934 }
 0x50a   : > { %v1931_v21 = vpop.permute.xlu0 %1930 }
 0x50b   : > { %v1938_v63 = vsel %vm217_vm4, %v1929_v18, %v1931_v21  ;;  %v2131_v18 = vperm.slane %v3255_v58, 0 }
 0x50c   : > { %v4306_v38 = vadd.f32 %v1938_v63, %v1864_v49 }
 0x50f   : > { %v2009_v48 = vpop.permute.xlu2 %2008 }
 0x512   : > { %v1937_v61 = vpop.permute.xlu0 %1936 }
 0x513   : > { %v1941_v33 = vsel %vm217_vm4, %v1935_v35, %v1937_v61 }
 0x514   : > { %v4315_v45 = vadd.f32 %v1941_v33, %v1867_v37  ;;  %v4351_v37 = vld [vmem:[#allocation2 + $0x60] sm:$0xf] }
 0x51a   : > { %v2011_v9 = vpop.permute.xlu0 %2010 }
 0x51b   : > { %v2015_v32 = vsel %vm217_vm4, %v2009_v48, %v2011_v9 }
 0x51c   : > { %v2024_v23 = vmul.f32 %v2015_v32, %v4270_v7  ;;  %v2029_v22 = vmul.f32 %v2015_v32, %v4276_v50 }
 0x51e   : > { %v2048_v30 = vrot.slane %v2024_v23, 4  ;;  %v2049_v55 = vrot.slane %v2029_v22, 4 }
 0x51f   : > { %v1933_v19 = vpop.permute.xlu1 %1932 }
 0x520   : > { %v1939_v53 = vsel %vm217_vm4, %v1931_v21, %v1933_v19  ;;  %v1940_v24 = vsel %vm217_vm4, %v1933_v19, %v1935_v35  ;;  %v2050_v11 = vsel %vm1847_vm8, %v2048_v30, %v2049_v55  ;;  %v1953_v30 = vperm.slane %v3252_v14, 0 }
 0x521   : > { %v4333_v60 = vadd.f32 %v1939_v53, %v1865_v3  ;;  %v1948_v49 = vadd.f32 %v1940_v24, %v1866_v2  ;;  %2061 = vrot.lane.b32.xlu1 %v2050_v11, %s3293_s16  ;;  %v1954_v55 = vperm.slane %v3252_v14, 1  ;;  %v1956_v11 = vperm.slane %v3252_v14, 3 }
 0x522   : > { %v1961_v3 = vmul.f32 %v1953_v30, %v4232_v28  ;;  %v1965_v19 = vmul.f32 %v1953_v30, %v4234_v54 }
 0x523   : > { %v1962_v2 = vmul.f32 %v1954_v55, %v4272_v59  ;;  %v1966_v53 = vmul.f32 %v1954_v55, %v4274_v6 }
 0x527   : > { %v2007_v20 = vpop.permute.xlu1 %2006 }
 0x528   : > { %v2014_v26 = vsel %vm217_vm4, %v2007_v20, %v2009_v48  ;;  %v2022_v63 = vmul.f32 %v2007_v20, %v4232_v28  ;;  %v2027_v21 = vmul.f32 %v2007_v20, %v4234_v54  ;;  %v2133_v48 = vperm.slane %v3255_v58, 2 }
 0x529   : > { %v2023_v25 = vmul.f32 %v2014_v26, %v4272_v59  ;;  %v2028_v31 = vmul.f32 %v2014_v26, %v4274_v6  ;;  %2135 = vrot.lane.b32.xlu1 %v2131_v18, %s3293_s16  ;;  %v1977_v18 = vrot.slane %v1961_v3, 4  ;;  %v1980_v20 = vrot.slane %v1962_v2, 4 }
 0x52a   : > { %v2042_v57 = vrot.slane %v2022_v63, 4  ;;  %v2043_v29 = vrot.slane %v2027_v21, 4  ;;  %v1981_v26 = vrot.slane %v1966_v53, 4 }
 0x52b   : > { %v2045_v10 = vrot.slane %v2023_v25, 4  ;;  %v2046_v35 = vrot.slane %v2028_v31, 4 }
 0x52c   : > { %v2044_v51 = vsel %vm1847_vm8, %v2042_v57, %v2043_v29  ;;  %v1964_v29 = vmul.f32 %v1956_v11, %v4255_v44 }
 0x52d   : > { %2057 = vrot.lane.b32.xlu2 %v2044_v51, %s3293_s16  ;;  %v2047_v34 = vsel %vm1847_vm8, %v2045_v10, %v2046_v35  ;;  %v1968_v10 = vmul.f32 %v1956_v11, %v4257_v27 }
 0x52e   : > { %2059 = vrot.lane.b32.xlu0 %v2047_v34, %s3293_s16 }
 0x52f   : > { %v2013_v61 = vpop.permute.xlu1 %2012 }
 0x530   : > { %v2016_v12 = vsel %vm217_vm4, %v2011_v9, %v2013_v61  ;;  %v2026_v0 = vmul.f32 %v2013_v61, %v4349_v17  ;;  %v2031_v33 = vmul.f32 %v2013_v61, %v4351_v37  ;;  %v1955_v9 = vperm.slane %v3252_v14, 2 }
 0x531   : > { %v2025_v13 = vmul.f32 %v2016_v12, %v4255_v44  ;;  %v2030_v40 = vmul.f32 %v2016_v12, %v4257_v27  ;;  %2141 = vrot.lane.b32.xlu1 %v2134_v5, %s3293_s16  ;;  %v1982_v5 = vsel %vm1847_vm8, %v1980_v20, %v1981_v26 }
 0x532   : > { %v2054_v42 = vrot.slane %v2026_v0, 4  ;;  %v2055_v52 = vrot.slane %v2031_v33, 4  ;;  %v1963_v1 = vmul.f32 %v1955_v9, %v4270_v7  ;;  %v1967_v43 = vmul.f32 %v1955_v9, %v4276_v50 }
 0x533   : > { %v2051_v16 = vrot.slane %v2025_v13, 4  ;;  %v2052_v56 = vrot.slane %v2030_v40, 4  ;;  %v1994_v12 = vadd.f32 %v1982_v5, %v4333_v60  ;;  %v1986_v60 = vrot.slane %v1964_v29, 4  ;;  %v3254_v29 = vld [vmem:[%s4938_s1 + $0x80] ss:$8 sm:$0xf] }
 0x534   : > { %v2056_v39 = vsel %vm1847_vm8, %v2054_v42, %v2055_v52  ;;  %v1983_v36 = vrot.slane %v1963_v1, 4  ;;  %v1984_v8 = vrot.slane %v1967_v43, 4  ;;  %v2126_v52 = vld [vmem:[#allocation2 + $0x30] sm:$0xf0] }
 0x535   : > { %v2053_v62 = vsel %vm1847_vm8, %v2051_v16, %v2052_v56  ;;  %v2127_v16 = vld [vmem:[#allocation2 + $0x68] sm:$0xf] }
 0x536   : > { %2065 = vrot.lane.b32.xlu0 %v2056_v39, %s3293_s16  ;;  %2063 = vrot.lane.b32.xlu2 %v2053_v62, %s3293_s16  ;;  %v1985_v32 = vsel %vm1847_vm8, %v1983_v36, %v1984_v8  ;;  %v1987_v62 = vrot.slane %v1968_v10, 4  ;;  %v2082_v10 = vperm.slane %v3254_v29, 0 }
 0x537   : > { %v1995_v23 = vadd.f32 %v1985_v32, %v1948_v49  ;;  %v1978_v49 = vrot.slane %v1965_v19, 4 }
 0x539   : > { %v1979_v34 = vsel %vm1847_vm8, %v1977_v18, %v1978_v49 }
 0x53a   : > { %v1993_v61 = vadd.f32 %v1979_v34, %v4306_v38 }
 0x53e   : > { %2139 = vrot.lane.b32.xlu0 %v2133_v48, %s3293_s16  ;;  %2137 = vrot.lane.b32.xlu2 %v2132_v15, %s3293_s16 }
 0x587   : > { %v2058_v47 = vpop.permute.xlu2 %2057 }
 0x590   : > { %v2064_v41 = vpop.permute.xlu2 %2063 }
 0x593   : > { %v2062_v22 = vpop.permute.xlu1 %2061 }
 0x594   : > { %v2069_v46 = vsel %vm217_vm4, %v2062_v22, %v2064_v41 }
 0x595   : > { %v4372_v4 = vadd.f32 %v2069_v46, %v1995_v23  ;;  %v3258_v23 = vld [vmem:[%s4938_s1 + $0x84] ss:$8 sm:$0xf] }
 0x596   : > { %v2316_v49 = vperm.slane %v3258_v23, 0  ;;  %v2317_v20 = vperm.slane %v3258_v23, 1  ;;  %v2319_v26 = vperm.slane %v3258_v23, 3 }
 0x598   : > { %v2138_v24 = vpop.permute.xlu2 %2137 }
 0x59b   : > { %v2136_v58 = vpop.permute.xlu1 %2135 }
 0x59c   : > { %v2143_v63 = vsel %vm217_vm4, %v2136_v58, %v2138_v24  ;;  %v2151_v21 = vmul.f32 %v2136_v58, %v4272_v59  ;;  %v2156_v25 = vmul.f32 %v2136_v58, %v4274_v6 }
 0x59d   : > { %v2152_v28 = vmul.f32 %v2143_v63, %v4270_v7  ;;  %v2157_v31 = vmul.f32 %v2143_v63, %v4276_v50  ;;  %v4422_v63 = vld [vmem:[%s4938_s1 + $0x82] ss:$8 sm:$0xf] }
 0x59e   : > { %v2171_v54 = vrot.slane %v2151_v21, 4  ;;  %v2172_v57 = vrot.slane %v2156_v25, 4  ;;  %v2214_v21 = vperm.slane %v4422_v63, 3 }
 0x59f   : > { %v2174_v35 = vrot.slane %v2152_v28, 4  ;;  %v2175_v51 = vrot.slane %v2157_v31, 4 }
 0x5a0   : > { %v2060_v0 = vpop.permute.xlu0 %2059  ;;  %v2173_v33 = vsel %vm1847_vm8, %v2171_v54, %v2172_v57  ;;  %v2222_v25 = vmul.f32 %v2214_v21, %v2126_v52  ;;  %v2226_v28 = vmul.f32 %v2214_v21, %v2127_v16 }
 0x5a1   : > { %v2067_v13 = vsel %vm217_vm4, %v2058_v47, %v2060_v0  ;;  %v2068_v40 = vsel %vm217_vm4, %v2060_v0, %v2062_v22  ;;  %2186 = vrot.lane.b32.xlu2 %v2173_v33, %s3293_s16  ;;  %v2176_v42 = vsel %vm1847_vm8, %v2174_v35, %v2175_v51  ;;  %v1988_v47 = vsel %vm1847_vm8, %v1986_v60, %v1987_v62 }
 0x5a2   : > { %v2075_v56 = vadd.f32 %v2067_v13, %v1993_v61  ;;  %v4394_v39 = vadd.f32 %v2068_v40, %v1994_v12  ;;  %2188 = vrot.lane.b32.xlu0 %v2176_v42, %s3293_s16  ;;  %v1996_v1 = vadd.f32 %v1988_v47, %v4315_v45  ;;  %v2318_v22 = vperm.slane %v3258_v23, 2 }
 0x5a3   : > { %v2142_v38 = vpop.permute.xlu1 %2141  ;;  %v2244_v31 = vrot.slane %v2222_v25, 4  ;;  %v2245_v54 = vrot.slane %v2226_v28, 4  ;;  %v2090_v35 = vmul.f32 %v2082_v10, %v4272_v59  ;;  %v2094_v51 = vmul.f32 %v2082_v10, %v4274_v6  ;;  %v4467_v10 = vld [vmem:[#allocation2 + $0x8] sm:$0xe0] }
 0x5a4   : > { %v2155_v48 = vmul.f32 %v2142_v38, %v2126_v52  ;;  %v2160_v15 = vmul.f32 %v2142_v38, %v2127_v16  ;;  %v2085_v61 = vperm.slane %v3254_v29, 3  ;;  %v2083_v62 = vperm.slane %v3254_v29, 1 }
 0x5a5   : > { %v2246_v57 = vsel %vm1847_vm8, %v2244_v31, %v2245_v54  ;;  %v2106_v34 = vrot.slane %v2090_v35, 4  ;;  %v2107_v5 = vrot.slane %v2094_v51, 4  ;;  %v4469_v35 = vld [vmem:[#allocation2 + $0x40] sm:$0x1f] }
 0x5a6   : > { %v2183_v14 = vrot.slane %v2155_v48, 4  ;;  %v2184_v9 = vrot.slane %v2160_v15, 4  ;;  %v2093_v33 = vmul.f32 %v2085_v61, %v4349_v17  ;;  %v2097_v13 = vmul.f32 %v2085_v61, %v4351_v37 }
 0x5a7   : > { %v2108_v0 = vsel %vm1847_vm8, %v2106_v34, %v2107_v5 }
 0x5a8   : > { %v2066_v43 = vpop.permute.xlu0 %2065  ;;  %v2185_v36 = vsel %vm1847_vm8, %v2183_v14, %v2184_v9  ;;  %v2122_v40 = vadd.f32 %v2108_v0, %v2075_v56  ;;  %v2116_v59 = vrot.slane %v2097_v13, 4  ;;  %v2084_v14 = vperm.slane %v3254_v29, 2 }
 0x5a9   : > { %v2070_v8 = vsel %vm217_vm4, %v2064_v41, %v2066_v43 }
 0x5aa   : > { %v2078_v32 = vadd.f32 %v2070_v8, %v1996_v1  ;;  %2194 = vrot.lane.b32.xlu0 %v2185_v36, %s3293_s16  ;;  %v2091_v1 = vmul.f32 %v2083_v62, %v4270_v7  ;;  %v2092_v43 = vmul.f32 %v2084_v14, %v4255_v44  ;;  %v2095_v36 = vmul.f32 %v2083_v62, %v4276_v50  ;;  %v4483_v62 = vld [vmem:[#allocation2 + $0x18] sm:$0xe0] }
 0x5ab   : > { %v2096_v8 = vmul.f32 %v2084_v14, %v4257_v27 }
 0x5b0   : > { %v2140_v30 = vpop.permute.xlu0 %2139 }
 0x5b1   : > { %v2144_v55 = vsel %vm217_vm4, %v2138_v24, %v2140_v30  ;;  %v2145_v46 = vsel %vm217_vm4, %v2140_v30, %v2142_v38  ;;  %v2115_v38 = vrot.slane %v2093_v33, 4  ;;  %v2109_v30 = vrot.slane %v2091_v1, 4 }
 0x5b2   : > { %v2153_v45 = vmul.f32 %v2144_v55, %v4255_v44  ;;  %v2154_v3 = vmul.f32 %v2145_v46, %v4349_v17  ;;  %v2158_v2 = vmul.f32 %v2144_v55, %v4257_v27  ;;  %v2159_v41 = vmul.f32 %v2145_v46, %v4351_v37  ;;  %2324 = vrot.lane.b32.xlu0 %v2318_v22, %s3293_s16 }
 0x5b3   : > { %v2117_v6 = vsel %vm1847_vm8, %v2115_v38, %v2116_v59  ;;  %v2110_v55 = vrot.slane %v2095_v36, 4  ;;  %v2113_v46 = vrot.slane %v2096_v8, 4  ;;  %v4479_v59 = vld [vmem:[#allocation2 + $0x20] sm:$0xe0] }
 0x5b4   : > { %v2177_v19 = vrot.slane %v2153_v45, 4  ;;  %v2178_v53 = vrot.slane %v2158_v2, 4  ;;  %v2180_v11 = vrot.slane %v2154_v3, 4  ;;  %v2181_v58 = vrot.slane %v2159_v41, 4  ;;  %v4445_v45 = vld [vmem:[#allocation2 + $0x10] sm:$0xe0] }
 0x5b5   : > { %v2125_v48 = vadd.f32 %v2117_v6, %v2078_v32  ;;  %v2112_v32 = vrot.slane %v2092_v43, 4  ;;  %v4447_v3 = vld [vmem:[#allocation2 + $0x48] sm:$0x1f] }
 0x5b6   : > { %v2182_v18 = vsel %vm1847_vm8, %v2180_v11, %v2181_v58  ;;  %v2179_v24 = vsel %vm1847_vm8, %v2177_v19, %v2178_v53  ;;  %v2111_v58 = vsel %vm1847_vm8, %v2109_v30, %v2110_v55 }
 0x5b7   : > { %2192 = vrot.lane.b32.xlu2 %v2182_v18, %s3293_s16  ;;  %2190 = vrot.lane.b32.xlu1 %v2179_v24, %s3293_s16  ;;  %v2114_v18 = vsel %vm1847_vm8, %v2112_v32, %v2113_v46  ;;  %v2123_v24 = vadd.f32 %v2111_v58, %v4394_v39  ;;  %v3260_v39 = vld [vmem:[%s4938_s1 + $0x86] ss:$8 sm:$0xf]  ;;  %v2211_v46 = vperm.slane %v4422_v63, 0 }
 0x5b8   : > { %v2445_v54 = vperm.slane %v3260_v39, 0  ;;  %v2448_v38 = vperm.slane %v3260_v39, 3  ;;  %v2446_v32 = vperm.slane %v3260_v39, 1 }
 0x5bf   : > { %2320 = vrot.lane.b32.xlu1 %v2316_v49, %s3293_s16  ;;  %2322 = vrot.lane.b32.xlu2 %v2317_v20, %s3293_s16  ;;  %v2124_v49 = vadd.f32 %v2114_v18, %v4372_v4  ;;  %v2255_v4 = vld [vmem:[#allocation2] sm:$0xe0] }
 0x5c7   : > { %2326 = vrot.lane.b32.xlu1 %v2319_v26, %s3293_s16 }
 0x5fb   : > { %v2187_v12 = vpop.permute.xlu2 %2186 }
 0x611   : > { %v2193_v60 = vpop.permute.xlu2 %2192 }
 0x614   : > { %v2189_v42 = vpop.permute.xlu0 %2188 }
 0x615   : > { %v2196_v52 = vsel %vm217_vm4, %v2187_v12, %v2189_v42 }
 0x616   : > { %v4435_v16 = vadd.f32 %v2196_v52, %v2122_v40 }
 0x619   : > { %v2323_v23 = vpop.permute.xlu2 %2322 }
 0x61c   : > { %v2195_v15 = vpop.permute.xlu0 %2194 }
 0x61d   : > { %v2199_v9 = vsel %vm217_vm4, %v2193_v60, %v2195_v15 }
 0x61e   : > { %v2207_v47 = vadd.f32 %v2199_v9, %v2125_v48  ;;  %v4485_v48 = vld [vmem:[#allocation2 + $0x50] sm:$0x1f] }
 0x620   : > { %v4440_v56 = vadd.f32 %v2246_v57, %v2207_v47  ;;  %v2259_v57 = vld [vmem:[#allocation2 + $0x38] sm:$0x1f] }
 0x624   : > { %v2325_v22 = vpop.permute.xlu0 %2324 }
 0x625   : > { %v2329_v2 = vsel %vm217_vm4, %v2323_v23, %v2325_v22 }
 0x626   : > { %v2338_v41 = vmul.f32 %v2329_v2, %v4445_v45  ;;  %v2343_v19 = vmul.f32 %v2329_v2, %v4447_v3  ;;  %v3257_v2 = vld [vmem:[%s4938_s1 + $0x83] ss:$8 sm:$0xf] }
 0x628   : > { %v2362_v53 = vrot.slane %v2338_v41, 5  ;;  %v2363_v11 = vrot.slane %v2343_v19, 5  ;;  %v2219_v41 = vmul.f32 %v2211_v46, %v4270_v7  ;;  %v2223_v19 = vmul.f32 %v2211_v46, %v4276_v50 }
 0x629   : > { %v2191_v20 = vpop.permute.xlu1 %2190 }
 0x62a   : > { %v2197_v26 = vsel %vm217_vm4, %v2189_v42, %v2191_v20  ;;  %v2198_v21 = vsel %vm217_vm4, %v2191_v20, %v2193_v60  ;;  %v2364_v25 = vsel %vm2290_vm9, %v2362_v53, %v2363_v11  ;;  %v4481_v60 = vld [vmem:[#allocation2 + $0x58] sm:$0x1f]  ;;  %v2266_v53 = vperm.slane %v3257_v2, 0 }
 0x62b   : > { %v4459_v28 = vadd.f32 %v2197_v26, %v2123_v24  ;;  %v4461_v31 = vadd.f32 %v2198_v21, %v2124_v49  ;;  %2375 = vrot.lane.b32.xlu1 %v2364_v25, %s3293_s16  ;;  %v2235_v11 = vrot.slane %v2219_v41, 4  ;;  %v2236_v58 = vrot.slane %v2223_v19, 4 }
 0x62c   : > { %v2274_v18 = vmul.f32 %v2266_v53, %v2255_v4  ;;  %v2278_v24 = vmul.f32 %v2266_v53, %v2259_v57 }
 0x62d   : > { %v2237_v49 = vsel %vm1847_vm8, %v2235_v11, %v2236_v58 }
 0x62e   : > { %v2291_v20 = vrot.slane %v2274_v18, 5  ;;  %v2292_v26 = vrot.slane %v2278_v24, 5  ;;  %v2251_v21 = vadd.f32 %v2237_v49, %v4435_v16 }
 0x630   : > { %v2293_v25 = vsel %vm2290_vm9, %v2291_v20, %v2292_v26 }
 0x631   : > { %v2321_v29 = vpop.permute.xlu1 %2320 }
 0x632   : > { %v2328_v51 = vsel %vm217_vm4, %v2321_v29, %v2323_v23  ;;  %v2336_v34 = vmul.f32 %v2321_v29, %v2255_v4  ;;  %v2341_v5 = vmul.f32 %v2321_v29, %v2259_v57  ;;  %v2268_v29 = vperm.slane %v3257_v2, 2 }
 0x633   : > { %v2337_v61 = vmul.f32 %v2328_v51, %v4467_v10  ;;  %v2342_v12 = vmul.f32 %v2328_v51, %v4469_v35  ;;  %2449 = vrot.lane.b32.xlu1 %v2445_v54, %s3293_s16  ;;  %v2213_v54 = vperm.slane %v4422_v63, 2 }
 0x634   : > { %v2356_v0 = vrot.slane %v2336_v34, 5  ;;  %v2357_v33 = vrot.slane %v2341_v5, 5  ;;  %v2276_v57 = vmul.f32 %v2268_v29, %v4445_v45  ;;  %v2280_v5 = vmul.f32 %v2268_v29, %v4447_v3 }
 0x635   : > { %v2359_v13 = vrot.slane %v2337_v61, 5  ;;  %v2360_v40 = vrot.slane %v2342_v12, 5  ;;  %v2221_v7 = vmul.f32 %v2213_v54, %v4349_v17  ;;  %v2225_v50 = vmul.f32 %v2213_v54, %v4351_v37  ;;  %v4544_v54 = vld [vmem:[#allocation2 + $0x28] sm:$0xe0] }
 0x636   : > { %v2358_v42 = vsel %vm2290_vm9, %v2356_v0, %v2357_v33  ;;  %v2297_v16 = vrot.slane %v2276_v57, 5  ;;  %v2298_v12 = vrot.slane %v2280_v5, 5  ;;  %v2212_v0 = vperm.slane %v4422_v63, 1 }
 0x637   : > { %2371 = vrot.lane.b32.xlu2 %v2358_v42, %s3293_s16  ;;  %v2361_v52 = vsel %vm2290_vm9, %v2359_v13, %v2360_v40  ;;  %v2241_v34 = vrot.slane %v2221_v7, 4  ;;  %v2242_v4 = vrot.slane %v2225_v50, 4  ;;  %v4546_v7 = vld [vmem:[#allocation2 + $0x60] sm:$0x1f] }
 0x638   : > { %2373 = vrot.lane.b32.xlu0 %v2361_v52, %s3293_s16  ;;  %v2299_v17 = vsel %vm2290_vm9, %v2297_v16, %v2298_v12  ;;  %v2220_v37 = vmul.f32 %v2212_v0, %v4255_v44  ;;  %v2224_v40 = vmul.f32 %v2212_v0, %v4257_v27 }
 0x639   : > { %v2327_v6 = vpop.permute.xlu1 %2326  ;;  %v2243_v61 = vsel %vm1847_vm8, %v2241_v34, %v2242_v4 }
 0x63a   : > { %v2330_v15 = vsel %vm217_vm4, %v2325_v22, %v2327_v6  ;;  %v2340_v14 = vmul.f32 %v2327_v6, %v4479_v59  ;;  %v2345_v9 = vmul.f32 %v2327_v6, %v4481_v60  ;;  %v2447_v22 = vperm.slane %v3260_v39, 2 }
 0x63b   : > { %v2339_v47 = vmul.f32 %v2330_v15, %v4483_v62  ;;  %v2344_v1 = vmul.f32 %v2330_v15, %v4485_v48  ;;  %2455 = vrot.lane.b32.xlu1 %v2448_v38, %s3293_s16  ;;  %v2307_v39 = vadd.f32 %v2293_v25, %v2251_v21  ;;  %v2253_v33 = vadd.f32 %v2243_v61, %v4461_v31 }
 0x63c   : > { %v2368_v43 = vrot.slane %v2340_v14, 5  ;;  %v2369_v36 = vrot.slane %v2345_v9, 5  ;;  %v2267_v38 = vperm.slane %v3257_v2, 1  ;;  %v2238_v14 = vrot.slane %v2220_v37, 4 }
 0x63d   : > { %v2365_v8 = vrot.slane %v2339_v47, 5  ;;  %v2366_v23 = vrot.slane %v2344_v1, 5  ;;  %v2309_v42 = vadd.f32 %v2299_v17, %v2253_v33  ;;  %v2239_v9 = vrot.slane %v2224_v40, 4  ;;  %v3262_v17 = vld [vmem:[%s4938_s1 + $0xa0] ss:$8 sm:$0xf] }
 0x63e   : > { %v2370_v30 = vsel %vm2290_vm9, %v2368_v43, %v2369_v36  ;;  %v2275_v63 = vmul.f32 %v2267_v38, %v4467_v10  ;;  %v2279_v31 = vmul.f32 %v2267_v38, %v4469_v35  ;;  %v2269_v1 = vperm.slane %v3257_v2, 3 }
 0x63f   : > { %v2367_v55 = vsel %vm2290_vm9, %v2365_v8, %v2366_v23  ;;  %v2240_v43 = vsel %vm1847_vm8, %v2238_v14, %v2239_v9  ;;  %v2576_v37 = vperm.slane %v3262_v17, 2  ;;  %v3265_v14 = vld [vmem:[%s4938_s1 + $0xa3] ss:$8 sm:$0xf] }
 0x640   : > { %2379 = vrot.lane.b32.xlu0 %v2370_v30, %s3293_s16  ;;  %2377 = vrot.lane.b32.xlu2 %v2367_v55, %s3293_s16  ;;  %v2294_v36 = vrot.slane %v2275_v63, 5  ;;  %v2295_v27 = vrot.slane %v2279_v31, 5  ;;  %v2252_v8 = vadd.f32 %v2240_v43, %v4459_v28  ;;  %v2277_v2 = vmul.f32 %v2269_v1, %v4483_v62 }
 0x641   : > { %v2281_v28 = vmul.f32 %v2269_v1, %v4485_v48 }
 0x642   : > { %v2296_v11 = vsel %vm2290_vm9, %v2294_v36, %v2295_v27  ;;  %v2300_v29 = vrot.slane %v2277_v2, 5  ;;  %v2575_v36 = vperm.slane %v3262_v17, 1  ;;  %v2574_v27 = vperm.slane %v3262_v17, 0 }
 0x643   : > { %v2308_v58 = vadd.f32 %v2296_v11, %v2252_v8  ;;  %v2301_v34 = vrot.slane %v2281_v28, 5  ;;  %v3267_v8 = vld [vmem:[%s4938_s1 + $0xa5] ss:$8 sm:$0xf] }
 0x648   : > { %2453 = vrot.lane.b32.xlu0 %v2447_v22, %s3293_s16  ;;  %2451 = vrot.lane.b32.xlu2 %v2446_v32, %s3293_s16 }
 0x691   : > { %v2372_v51 = vpop.permute.xlu2 %2371 }
 0x69a   : > { %v2378_v13 = vpop.permute.xlu2 %2377 }
 0x69d   : > { %v2376_v52 = vpop.permute.xlu1 %2375 }
 0x69e   : > { %v2383_v6 = vsel %vm217_vm4, %v2376_v52, %v2378_v13 }
 0x69f   : > { %v4520_v15 = vadd.f32 %v2383_v6, %v2309_v42 }
 0x6a2   : > { %v2452_v47 = vpop.permute.xlu2 %2451 }
 0x6a5   : > { %v2450_v44 = vpop.permute.xlu1 %2449 }
 0x6a6   : > { %v2457_v23 = vsel %vm217_vm4, %v2450_v44, %v2452_v47  ;;  %v2465_v30 = vmul.f32 %v2450_v44, %v4467_v10  ;;  %v2470_v55 = vmul.f32 %v2450_v44, %v4469_v35  ;;  %v2760_v44 = vperm.slane %v3265_v14, 1 }
 0x6a7   : > { %v2466_v22 = vmul.f32 %v2457_v23, %v4445_v45  ;;  %v2471_v32 = vmul.f32 %v2457_v23, %v4447_v3  ;;  %v2888_v23 = vperm.slane %v3267_v8, 0 }
 0x6a8   : > { %v2485_v46 = vrot.slane %v2465_v30, 5  ;;  %v2486_v41 = vrot.slane %v2470_v55, 5  ;;  %v2759_v30 = vperm.slane %v3265_v14, 0  ;;  %v2577_v55 = vperm.slane %v3262_v17, 3 }
 0x6a9   : > { %v2488_v19 = vrot.slane %v2466_v22, 5  ;;  %v2489_v53 = vrot.slane %v2471_v32, 5  ;;  %v2891_v22 = vperm.slane %v3267_v8, 3  ;;  %v2762_v32 = vperm.slane %v3265_v14, 3 }
 0x6aa   : > { %v2374_v18 = vpop.permute.xlu0 %2373  ;;  %v2487_v24 = vsel %vm2290_vm9, %v2485_v46, %v2486_v41  ;;  %v2761_v46 = vperm.slane %v3265_v14, 2  ;;  %v3269_v41 = vld [vmem:[%s4938_s1 + $0xa7] ss:$8 sm:$0xf] }
 0x6ab   : > { %v2381_v49 = vsel %vm217_vm4, %v2372_v51, %v2374_v18  ;;  %v2382_v20 = vsel %vm217_vm4, %v2374_v18, %v2376_v52  ;;  %2500 = vrot.lane.b32.xlu2 %v2487_v24, %s3293_s16  ;;  %v2490_v26 = vsel %vm2290_vm9, %v2488_v19, %v2489_v53  ;;  %v3019_v2 = vperm.slane %v3269_v41, 2  ;;  %v3259_v18 = vld [vmem:[%s4938_s1 + $0x85] ss:$8 sm:$0xf] }
 0x6ac   : > { %v4539_v21 = vadd.f32 %v2381_v49, %v2307_v39  ;;  %v4541_v25 = vadd.f32 %v2382_v20, %v2308_v58  ;;  %2502 = vrot.lane.b32.xlu0 %v2490_v26, %s3293_s16  ;;  %v2302_v39 = vsel %vm2290_vm9, %v2300_v29, %v2301_v34  ;;  %v2889_v19 = vperm.slane %v3267_v8, 1 }
 0x6ad   : > { %v2456_v50 = vpop.permute.xlu1 %2455  ;;  %v2310_v61 = vadd.f32 %v2302_v39, %v4440_v56  ;;  %v2890_v53 = vperm.slane %v3267_v8, 2  ;;  %v3017_v11 = vperm.slane %v3269_v41, 0  ;;  %v3018_v28 = vperm.slane %v3269_v41, 1 }
 0x6ae   : > { %v2469_v51 = vmul.f32 %v2456_v50, %v4544_v54  ;;  %v2474_v4 = vmul.f32 %v2456_v50, %v4546_v7  ;;  %v3020_v58 = vperm.slane %v3269_v41, 3  ;;  %v2396_v24 = vperm.slane %v3259_v18, 0 }
 0x6af   : > { %v2399_v34 = vperm.slane %v3259_v18, 3 }
 0x6b0   : > { %v2497_v57 = vrot.slane %v2469_v51, 5  ;;  %v2498_v5 = vrot.slane %v2474_v4, 5  ;;  %v2404_v49 = vmul.f32 %v2396_v24, %v4467_v10  ;;  %v2408_v20 = vmul.f32 %v2396_v24, %v4469_v35 }
 0x6b1   : > { %v2407_v4 = vmul.f32 %v2399_v34, %v4479_v59 }
 0x6b2   : > { %v2380_v16 = vpop.permute.xlu0 %2379  ;;  %v2499_v12 = vsel %vm2290_vm9, %v2497_v57, %v2498_v5  ;;  %v2421_v29 = vrot.slane %v2408_v20, 5  ;;  %v2411_v57 = vmul.f32 %v2399_v34, %v4481_v60 }
 0x6b3   : > { %v2384_v0 = vsel %vm217_vm4, %v2378_v13, %v2380_v16  ;;  %v2429_v10 = vrot.slane %v2407_v4, 5 }
 0x6b4   : > { %v4554_v33 = vadd.f32 %v2384_v0, %v2310_v61  ;;  %2508 = vrot.lane.b32.xlu0 %v2499_v12, %s3293_s16  ;;  %v2430_v35 = vrot.slane %v2411_v57, 5 }
 0x6b6   : > { %v2431_v0 = vsel %vm2290_vm9, %v2429_v10, %v2430_v35  ;;  %v4647_v10 = vld [vmem:[#allocation2 + $0x30] sm:$0xe0]  ;;  %v4649_v35 = vld [vmem:[#allocation2 + $0x68] sm:$0x1f] }
 0x6b7   : > { %v2439_v17 = vadd.f32 %v2431_v0, %v4554_v33 }
 0x6ba   : > { %v2454_v40 = vpop.permute.xlu0 %2453 }
 0x6bb   : > { %v2458_v42 = vsel %vm217_vm4, %v2452_v47, %v2454_v40  ;;  %v2459_v52 = vsel %vm217_vm4, %v2454_v40, %v2456_v50  ;;  %v2420_v50 = vrot.slane %v2404_v49, 5  ;;  %v2397_v40 = vperm.slane %v3259_v18, 1 }
 0x6bc   : > { %v2467_v56 = vmul.f32 %v2458_v42, %v4483_v62  ;;  %v2468_v38 = vmul.f32 %v2459_v52, %v4479_v59  ;;  %v2472_v13 = vmul.f32 %v2458_v42, %v4485_v48  ;;  %v2473_v6 = vmul.f32 %v2459_v52, %v4481_v60  ;;  %2582 = vrot.lane.b32.xlu0 %v2576_v37, %s3293_s16 }
 0x6bd   : > { %v2422_v51 = vsel %vm2290_vm9, %v2420_v50, %v2421_v29  ;;  %v2398_v42 = vperm.slane %v3259_v18, 2 }
 0x6be   : > { %v2491_v9 = vrot.slane %v2467_v56, 5  ;;  %v2492_v63 = vrot.slane %v2472_v13, 5  ;;  %v2494_v31 = vrot.slane %v2468_v38, 5  ;;  %v2495_v47 = vrot.slane %v2473_v6, 5 }
 0x6bf   : > { %v2436_v39 = vadd.f32 %v2422_v51, %v4539_v21  ;;  %v2405_v21 = vmul.f32 %v2397_v40, %v4445_v45  ;;  %v2406_v13 = vmul.f32 %v2398_v42, %v4483_v62  ;;  %v2409_v6 = vmul.f32 %v2397_v40, %v4447_v3 }
 0x6c0   : > { %v2496_v1 = vsel %vm2290_vm9, %v2494_v31, %v2495_v47  ;;  %v2493_v43 = vsel %vm2290_vm9, %v2491_v9, %v2492_v63  ;;  %v2410_v14 = vmul.f32 %v2398_v42, %v4485_v48 }
 0x6c1   : > { %2506 = vrot.lane.b32.xlu2 %v2496_v1, %s3293_s16  ;;  %2504 = vrot.lane.b32.xlu1 %v2493_v43, %s3293_s16  ;;  %v2423_v63 = vrot.slane %v2405_v21, 5  ;;  %v2424_v31 = vrot.slane %v2409_v6, 5  ;;  %v2426_v33 = vrot.slane %v2406_v13, 5  ;;  %v4617_v43 = vld [vmem:[#allocation2] sm:$0xc0] }
 0x6c2   : > { %v2427_v47 = vrot.slane %v2410_v14, 5 }
 0x6c4   : > { %2765 = vrot.lane.b32.xlu0 %v2760_v44, %s3293_s16  ;;  %v4619_v44 = vld [vmem:[#allocation2 + $0x38] sm:$0x3f] }
 0x6c9   : > { %2580 = vrot.lane.b32.xlu2 %v2575_v36, %s3293_s16  ;;  %2578 = vrot.lane.b32.xlu1 %v2574_v27, %s3293_s16 }
 0x6cc   : > { %2892 = vrot.lane.b32.xlu0 %v2888_v23, %s3293_s16 }
 0x6d1   : > { %2763 = vrot.lane.b32.xlu2 %v2759_v30, %s3293_s16  ;;  %2584 = vrot.lane.b32.xlu1 %v2577_v55, %s3293_s16  ;;  %v2425_v55 = vsel %vm2290_vm9, %v2423_v63, %v2424_v31 }
 0x6d2   : > { %v2437_v41 = vadd.f32 %v2425_v55, %v4541_v25  ;;  %v4672_v55 = vld [vmem:[#allocation2 + $0x48] sm:$0x3f] }
 0x6d4   : > { %2898 = vrot.lane.b32.xlu0 %v2891_v22, %s3293_s16  ;;  %v2428_v22 = vsel %vm2290_vm9, %v2426_v33, %v2427_v47  ;;  %v4659_v47 = vld [vmem:[#allocation2 + $0x8] sm:$0xc0] }
 0x6d9   : > { %2769 = vrot.lane.b32.xlu2 %v2762_v32, %s3293_s16  ;;  %2767 = vrot.lane.b32.xlu1 %v2761_v46, %s3293_s16 }
 0x6dc   : > { %3025 = vrot.lane.b32.xlu0 %v3019_v2, %s3293_s16  ;;  %v2438_v2 = vadd.f32 %v2428_v22, %v4520_v15  ;;  %v4674_v22 = vld [vmem:[#allocation2 + $0x50] sm:$0x3f] }
 0x6e1   : > { %2894 = vrot.lane.b32.xlu1 %v2889_v19, %s3293_s16  ;;  %2896 = vrot.lane.b32.xlu2 %v2890_v53, %s3293_s16 }
 0x6e9   : > { %3021 = vrot.lane.b32.xlu1 %v3017_v11, %s3293_s16  ;;  %3023 = vrot.lane.b32.xlu2 %v3018_v28, %s3293_s16 }
 0x6f1   : > { %3027 = vrot.lane.b32.xlu1 %v3020_v58, %s3293_s16 }
 0x705   : > { %v2501_v26 = vpop.permute.xlu2 %2500 }
 0x71b   : > { %v2507_v5 = vpop.permute.xlu2 %2506 }
 0x71e   : > { %v2503_v61 = vpop.permute.xlu0 %2502 }
 0x71f   : > { %v2510_v16 = vsel %vm217_vm4, %v2501_v26, %v2503_v61 }
 0x720   : > { %v4605_v12 = vadd.f32 %v2510_v16, %v2436_v39 }
 0x723   : > { %v2581_v56 = vpop.permute.xlu2 %2580 }
 0x726   : > { %v2509_v37 = vpop.permute.xlu0 %2508 }
 0x727   : > { %v2513_v52 = vsel %vm217_vm4, %v2507_v5, %v2509_v37 }
 0x728   : > { %v4610_v38 = vadd.f32 %v2513_v52, %v2439_v17 }
 0x72b   : > { %v2764_v8 = vpop.permute.xlu2 %2763 }
 0x72c   : > { %v2779_v32 = vmul.f32 %v2764_v8, %v4617_v43  ;;  %v2784_v46 = vmul.f32 %v2764_v8, %v4619_v44 }
 0x72e   : > { %v2583_v9 = vpop.permute.xlu0 %2582  ;;  %v2799_v24 = vrot.slane %v2779_v32, 6  ;;  %v2800_v49 = vrot.slane %v2784_v46, 6 }
 0x72f   : > { %v2587_v1 = vsel %vm217_vm4, %v2581_v56, %v2583_v9 }
 0x730   : > { %v2596_v36 = vmul.f32 %v2587_v1, %v4479_v59  ;;  %v2601_v27 = vmul.f32 %v2587_v1, %v4481_v60  ;;  %v2801_v25 = vsel %vm2733_vm10, %v2799_v24, %v2800_v49 }
 0x732   : > { %v2620_v23 = vrot.slane %v2596_v36, 5  ;;  %v2621_v30 = vrot.slane %v2601_v27, 5 }
 0x733   : > { %v2505_v19 = vpop.permute.xlu1 %2504  ;;  %v2770_v31 = vpop.permute.xlu2 %2769 }
 0x734   : > { %v2511_v53 = vsel %vm217_vm4, %v2503_v61, %v2505_v19  ;;  %v2512_v11 = vsel %vm217_vm4, %v2505_v19, %v2507_v5  ;;  %v2622_v18 = vsel %vm2290_vm9, %v2620_v23, %v2621_v30  ;;  %v4670_v30 = vld [vmem:[#allocation2 + $0x10] sm:$0xc0] }
 0x735   : > { %v4631_v28 = vadd.f32 %v2511_v53, %v2437_v41  ;;  %v4633_v58 = vadd.f32 %v2512_v11, %v2438_v2  ;;  %2633 = vrot.lane.b32.xlu1 %v2622_v18, %s3293_s16 }
 0x736   : > { %v2766_v29 = vpop.permute.xlu0 %2765 }
 0x737   : > { %v2771_v13 = vsel %vm217_vm4, %v2764_v8, %v2766_v29  ;;  %v4668_v8 = vld [vmem:[#allocation2 + $0x18] sm:$0xc0] }
 0x738   : > { %v2780_v36 = vmul.f32 %v2771_v13, %v4659_v47 }
 0x73a   : > { %v2802_v11 = vrot.slane %v2780_v36, 6 }
 0x73b   : > { %v2579_v20 = vpop.permute.xlu1 %2578 }
 0x73c   : > { %v2586_v15 = vsel %vm217_vm4, %v2579_v20, %v2581_v56  ;;  %v2594_v26 = vmul.f32 %v2579_v20, %v4445_v45  ;;  %v2599_v50 = vmul.f32 %v2579_v20, %v4447_v3 }
 0x73d   : > { %v2595_v34 = vmul.f32 %v2586_v15, %v4483_v62  ;;  %v2600_v51 = vmul.f32 %v2586_v15, %v4485_v48  ;;  %2814 = vrot.lane.b32.xlu1 %v2801_v25, %s3293_s16 }
 0x73e   : > { %v2614_v4 = vrot.slane %v2594_v26, 5  ;;  %v2615_v57 = vrot.slane %v2599_v50, 5  ;;  %v2893_v6 = vpop.permute.xlu0 %2892  ;;  %v2897_v26 = vpop.permute.xlu2 %2896  ;;  %v4683_v50 = vld [vmem:[#allocation2 + $0x20] sm:$0xc0] }
 0x73f   : > { %v2617_v5 = vrot.slane %v2595_v34, 5  ;;  %v2618_v39 = vrot.slane %v2600_v51, 5  ;;  %v2908_v15 = vmul.f32 %v2893_v6, %v4659_v47 }
 0x740   : > { %v2616_v61 = vsel %vm2290_vm9, %v2614_v4, %v2615_v57 }
 0x741   : > { %2629 = vrot.lane.b32.xlu2 %v2616_v61, %s3293_s16  ;;  %v2619_v16 = vsel %vm2290_vm9, %v2617_v5, %v2618_v39  ;;  %v2783_v5 = vmul.f32 %v2770_v31, %v4683_v50 }
 0x742   : > { %2631 = vrot.lane.b32.xlu0 %v2619_v16, %s3293_s16 }
 0x743   : > { %v2585_v0 = vpop.permute.xlu1 %2584 }
 0x744   : > { %v2588_v17 = vsel %vm217_vm4, %v2583_v9, %v2585_v0  ;;  %v2598_v37 = vmul.f32 %v2585_v0, %v4647_v10  ;;  %v2603_v40 = vmul.f32 %v2585_v0, %v4649_v35  ;;  %v4661_v9 = vld [vmem:[#allocation2 + $0x40] sm:$0x3f]  ;;  %v2928_v0 = vrot.slane %v2908_v15, 6 }
 0x745   : > { %v2597_v42 = vmul.f32 %v2588_v17, %v4544_v54  ;;  %v2602_v52 = vmul.f32 %v2588_v17, %v4546_v7  ;;  %v2785_v27 = vmul.f32 %v2771_v13, %v4661_v9  ;;  %v2913_v34 = vmul.f32 %v2893_v6, %v4661_v9  ;;  %v4700_v13 = vld [vmem:[#allocation2 + $0x28] sm:$0xc0] }
 0x746   : > { %v2626_v56 = vrot.slane %v2598_v37, 5  ;;  %v2627_v21 = vrot.slane %v2603_v40, 5  ;;  %v2899_v51 = vpop.permute.xlu0 %2898 }
 0x747   : > { %v2623_v14 = vrot.slane %v2597_v42, 5  ;;  %v2624_v63 = vrot.slane %v2602_v52, 5  ;;  %v2803_v18 = vrot.slane %v2785_v27, 6  ;;  %v2929_v37 = vrot.slane %v2913_v34, 6 }
 0x748   : > { %v2628_v33 = vsel %vm2290_vm9, %v2626_v56, %v2627_v21  ;;  %v2902_v40 = vsel %vm217_vm4, %v2897_v26, %v2899_v51  ;;  %v2811_v56 = vrot.slane %v2783_v5, 6 }
 0x749   : > { %v2625_v1 = vsel %vm2290_vm9, %v2623_v14, %v2624_v63  ;;  %v2804_v61 = vsel %vm2733_vm10, %v2802_v11, %v2803_v18  ;;  %v4702_v14 = vld [vmem:[#allocation2 + $0x60] sm:$0x3f] }
 0x74a   : > { %2637 = vrot.lane.b32.xlu0 %v2628_v33, %s3293_s16  ;;  %2635 = vrot.lane.b32.xlu2 %v2625_v1, %s3293_s16  ;;  %v2911_v1 = vmul.f32 %v2902_v40, %v4683_v50  ;;  %v2917_v27 = vmul.f32 %v2899_v51, %v4702_v14 }
 0x74b   : > { %v2768_v23 = vpop.permute.xlu1 %2767 }
 0x74c   : > { %v2772_v32 = vsel %vm217_vm4, %v2766_v29, %v2768_v23  ;;  %v2773_v46 = vsel %vm217_vm4, %v2768_v23, %v2770_v31  ;;  %v4685_v29 = vld [vmem:[#allocation2 + $0x58] sm:$0x3f]  ;;  %v2930_v23 = vsel %vm2733_vm10, %v2928_v0, %v2929_v37  ;;  %v2937_v18 = vrot.slane %v2911_v1, 6  ;;  %v4731_v37 = vld [vmem:[#allocation2 + $0x30] sm:$0xc0] }
 0x74d   : > { %v2781_v41 = vmul.f32 %v2772_v32, %v4670_v30  ;;  %v2782_v2 = vmul.f32 %v2773_v46, %v4668_v8  ;;  %v2786_v19 = vmul.f32 %v2772_v32, %v4672_v55  ;;  %v2787_v53 = vmul.f32 %v2773_v46, %v4674_v22  ;;  %v3024_v46 = vpop.permute.xlu2 %3023 }
 0x74e   : > { %v2788_v39 = vmul.f32 %v2770_v31, %v4685_v29  ;;  %v2916_v36 = vmul.f32 %v2902_v40, %v4685_v29  ;;  %v4733_v40 = vld [vmem:[#allocation2 + $0x68] sm:$0x3f] }
 0x74f   : > { %v2805_v24 = vrot.slane %v2781_v41, 6  ;;  %v2806_v49 = vrot.slane %v2786_v19, 6  ;;  %v2808_v20 = vrot.slane %v2782_v2, 6  ;;  %v2809_v25 = vrot.slane %v2787_v53, 6  ;;  %v3026_v53 = vpop.permute.xlu0 %3025 }
 0x750   : > { %v2812_v21 = vrot.slane %v2788_v39, 6 }
 0x751   : > { %v2810_v4 = vsel %vm2733_vm10, %v2808_v20, %v2809_v25  ;;  %v2807_v57 = vsel %vm2733_vm10, %v2805_v24, %v2806_v49  ;;  %v2938_v24 = vrot.slane %v2916_v36, 6  ;;  %v2941_v20 = vrot.slane %v2917_v27, 6 }
 0x752   : > { %2820 = vrot.lane.b32.xlu1 %v2810_v4, %s3293_s16  ;;  %2818 = vrot.lane.b32.xlu0 %v2807_v57, %s3293_s16  ;;  %v2813_v19 = vsel %vm2733_vm10, %v2811_v56, %v2812_v21  ;;  %v3030_v25 = vsel %vm217_vm4, %v3024_v46, %v3026_v53 }
 0x753   : > { %2816 = vrot.lane.b32.xlu2 %v2804_v61, %s3293_s16  ;;  %v2895_v16 = vpop.permute.xlu1 %2894  ;;  %v2939_v4 = vsel %vm2733_vm10, %v2937_v18, %v2938_v24  ;;  %v3039_v57 = vmul.f32 %v3030_v25, %v4683_v50  ;;  %v3044_v5 = vmul.f32 %v3030_v25, %v4685_v29 }
 0x754   : > { %v2900_v17 = vsel %vm217_vm4, %v2893_v6, %v2895_v16  ;;  %v2901_v63 = vsel %vm217_vm4, %v2895_v16, %v2897_v26  ;;  %v2912_v6 = vmul.f32 %v2899_v51, %v4700_v13 }
 0x755   : > { %v2909_v42 = vmul.f32 %v2900_v17, %v4670_v30  ;;  %v2914_v52 = vmul.f32 %v2900_v17, %v4672_v55  ;;  %v2910_v41 = vmul.f32 %v2901_v63, %v4668_v8  ;;  %v2915_v2 = vmul.f32 %v2901_v63, %v4674_v22 }
 0x756   : > { %v2940_v49 = vrot.slane %v2912_v6, 6  ;;  %v3064_v56 = vrot.slane %v3044_v5, 6 }
 0x757   : > { %v2931_v31 = vrot.slane %v2909_v42, 6  ;;  %v2932_v33 = vrot.slane %v2914_v52, 6  ;;  %v2934_v15 = vrot.slane %v2910_v41, 6  ;;  %v2935_v26 = vrot.slane %v2915_v2, 6 }
 0x758   : > { %v2942_v51 = vsel %vm2733_vm10, %v2940_v49, %v2941_v20  ;;  %v3063_v52 = vrot.slane %v3039_v57, 6  ;;  %v4753_v49 = vld [vmem:[%s4938_s1 + $0xa2] ss:$8 sm:$0xf] }
 0x759   : > { %v2933_v32 = vsel %vm2733_vm10, %v2931_v31, %v2932_v33  ;;  %v2936_v17 = vsel %vm2733_vm10, %v2934_v15, %v2935_v26  ;;  %v2709_v20 = vperm.slane %v4753_v49, 0  ;;  %v3263_v26 = vld [vmem:[%s4938_s1 + $0xa1] ss:$8 sm:$0xf] }
 0x75a   : > { %2943 = vrot.lane.b32.xlu0 %v2930_v23, %s3293_s16  ;;  %2945 = vrot.lane.b32.xlu1 %v2933_v32, %s3293_s16  ;;  %v3065_v23 = vsel %vm2733_vm10, %v3063_v52, %v3064_v56  ;;  %v2654_v52 = vperm.slane %v3263_v26, 0 }
 0x75b   : > { %2822 = vrot.lane.b32.xlu2 %v2813_v19, %s3293_s16  ;;  %v3022_v11 = vpop.permute.xlu1 %3021  ;;  %v2717_v25 = vmul.f32 %v2709_v20, %v4617_v43  ;;  %v2721_v15 = vmul.f32 %v2709_v20, %v4619_v44  ;;  %v3261_v44 = vld [vmem:[%s4938_s1 + $0x87] ss:$8 sm:$0xf] }
 0x75c   : > { %v3029_v34 = vsel %vm217_vm4, %v3022_v11, %v3024_v46  ;;  %v3037_v16 = vmul.f32 %v3022_v11, %v4670_v30  ;;  %v3042_v0 = vmul.f32 %v3022_v11, %v4672_v55  ;;  %v2662_v56 = vmul.f32 %v2654_v52, %v4483_v62 }
 0x75d   : > { %v3038_v39 = vmul.f32 %v3029_v34, %v4668_v8  ;;  %v3043_v61 = vmul.f32 %v3029_v34, %v4674_v22  ;;  %v2734_v34 = vrot.slane %v2717_v25, 6 }
 0x75e   : > { %v3057_v31 = vrot.slane %v3037_v16, 6  ;;  %v3058_v33 = vrot.slane %v3042_v0, 6 }
 0x75f   : > { %v3060_v21 = vrot.slane %v3038_v39, 6  ;;  %v3061_v63 = vrot.slane %v3043_v61, 6 }
 0x760   : > { %v3059_v41 = vsel %vm2733_vm10, %v3057_v31, %v3058_v33  ;;  %v2666_v31 = vmul.f32 %v2654_v52, %v4485_v48  ;;  %v2528_v33 = vperm.slane %v3261_v44, 3 }
 0x761   : > { %v3062_v27 = vsel %vm2733_vm10, %v3060_v21, %v3061_v63 }
 0x762   : > { %2951 = vrot.lane.b32.xlu1 %v2942_v51, %s3293_s16  ;;  %2949 = vrot.lane.b32.xlu0 %v2939_v4, %s3293_s16  ;;  %v2735_v51 = vrot.slane %v2721_v15, 6  ;;  %v2657_v4 = vperm.slane %v3263_v26, 3 }
 0x763   : > { %2947 = vrot.lane.b32.xlu2 %v2936_v17, %s3293_s16  ;;  %v3028_v42 = vpop.permute.xlu1 %3027  ;;  %v2525_v17 = vperm.slane %v3261_v44, 0 }
 0x764   : > { %v3031_v1 = vsel %vm217_vm4, %v3026_v53, %v3028_v42  ;;  %v3041_v6 = vmul.f32 %v3028_v42, %v4731_v37  ;;  %v3046_v36 = vmul.f32 %v3028_v42, %v4733_v40  ;;  %v2665_v57 = vmul.f32 %v2657_v4, %v4647_v10 }
 0x765   : > { %v3040_v32 = vmul.f32 %v3031_v1, %v4700_v13  ;;  %v3045_v46 = vmul.f32 %v3031_v1, %v4702_v14  ;;  %v2669_v5 = vmul.f32 %v2657_v4, %v4649_v35  ;;  %v2736_v39 = vsel %vm2733_vm10, %v2734_v34, %v2735_v51 }
 0x766   : > { %v3069_v2 = vrot.slane %v3041_v6, 6  ;;  %v3070_v19 = vrot.slane %v3046_v36, 6  ;;  %v2687_v61 = vrot.slane %v2665_v57, 5  ;;  %v2533_v10 = vmul.f32 %v2525_v17, %v4445_v45  ;;  %v4796_v57 = vld [vmem:[%s4938_s1 + $0xc0] ss:$8 sm:$0xf] }
 0x767   : > { %v3066_v53 = vrot.slane %v3040_v32, 6  ;;  %v3067_v11 = vrot.slane %v3045_v46, 6  ;;  %v2688_v16 = vrot.slane %v2669_v5, 5  ;;  %v2537_v35 = vmul.f32 %v2525_v17, %v4447_v3 }
 0x768   : > { %v3071_v18 = vsel %vm2733_vm10, %v3069_v2, %v3070_v19  ;;  %v2549_v21 = vrot.slane %v2533_v10, 5  ;;  %v2527_v1 = vperm.slane %v3261_v44, 2  ;;  %v2656_v6 = vperm.slane %v3263_v26, 2 }
 0x769   : > { %v3068_v24 = vsel %vm2733_vm10, %v3066_v53, %v3067_v11  ;;  %v4765_v0 = vsel %vm2290_vm9, %v2687_v61, %v2688_v16  ;;  %v2550_v63 = vrot.slane %v2537_v35, 5  ;;  %v2679_v46 = vrot.slane %v2666_v31, 5 }
 0x76a   : > { %3074 = vrot.lane.b32.xlu0 %v3062_v27, %s3293_s16  ;;  %3076 = vrot.lane.b32.xlu1 %v3065_v23, %s3293_s16  ;;  %v2678_v27 = vrot.slane %v2662_v56, 5  ;;  %v2536_v45 = vmul.f32 %v2528_v33, %v4544_v54  ;;  %v2540_v3 = vmul.f32 %v2528_v33, %v4546_v7  ;;  %v2526_v19 = vperm.slane %v3261_v44, 1 }
 0x76b   : > { %3072 = vrot.lane.b32.xlu2 %v3059_v41, %s3293_s16  ;;  %v2551_v32 = vsel %vm2290_vm9, %v2549_v21, %v2550_v63  ;;  %v2535_v11 = vmul.f32 %v2527_v1, %v4479_v59  ;;  %v2668_v25 = vmul.f32 %v2656_v6, %v4546_v7  ;;  %v3100_v16 = vperm.slane %v4796_v57, 3 }
 0x76c   : > { %v2565_v41 = vadd.f32 %v2551_v32, %v4605_v12  ;;  %v2680_v15 = vsel %vm2290_vm9, %v2678_v27, %v2679_v46  ;;  %v2558_v34 = vrot.slane %v2536_v45, 5  ;;  %v2559_v51 = vrot.slane %v2540_v3, 5 }
 0x76d   : > { %v2655_v12 = vperm.slane %v3263_v26, 1  ;;  %v2534_v5 = vmul.f32 %v2526_v19, %v4483_v62  ;;  %v2538_v61 = vmul.f32 %v2526_v19, %v4485_v48  ;;  %v2555_v7 = vrot.slane %v2535_v11, 5 }
 0x76e   : > { %v2685_v26 = vrot.slane %v2668_v25, 5  ;;  %v2560_v52 = vsel %vm2290_vm9, %v2558_v34, %v2559_v51  ;;  %v2710_v46 = vperm.slane %v4753_v49, 1  ;;  %v2711_v45 = vperm.slane %v4753_v49, 2 }
 0x76f   : > { %v4808_v35 = vmul.f32 %v2655_v12, %v4479_v59  ;;  %v4811_v62 = vmul.f32 %v2655_v12, %v4481_v60  ;;  %v2568_v48 = vadd.f32 %v2560_v52, %v4610_v38  ;;  %v2553_v63 = vrot.slane %v2538_v61, 5  ;;  %v3266_v59 = vld [vmem:[%s4938_s1 + $0xa4] ss:$8 sm:$0xf] }
 0x770   : > { %v2841_v19 = vperm.slane %v3266_v59, 2  ;;  %v2718_v34 = vmul.f32 %v2710_v46, %v4659_v47  ;;  %v2723_v51 = vmul.f32 %v2711_v45, %v4672_v55 }
 0x771   : > { %v2682_v11 = vrot.slane %v4811_v62, 5 }
 0x772   : > { %3080 = vrot.lane.b32.xlu0 %v3071_v18, %s3293_s16  ;;  %v2539_v18 = vmul.f32 %v2527_v1, %v4481_v60  ;;  %v3108_v1 = vmul.f32 %v3100_v16, %v4731_v37  ;;  %v3112_v60 = vmul.f32 %v3100_v16, %v4733_v40  ;;  %v2681_v40 = vrot.slane %v4808_v35, 5 }
 0x773   : > { %3078 = vrot.lane.b32.xlu2 %v3068_v24, %s3293_s16  ;;  %v2664_v24 = vmul.f32 %v2656_v6, %v4544_v54  ;;  %v2712_v54 = vperm.slane %v4753_v49, 3  ;;  %v2719_v49 = vmul.f32 %v2711_v45, %v4670_v30  ;;  %v2853_v62 = vmul.f32 %v2841_v19, %v4674_v22 }
 0x774   : > { %v2556_v44 = vrot.slane %v2539_v18, 5  ;;  %v2839_v18 = vperm.slane %v3266_v59, 0 }
 0x775   : > { %v2684_v17 = vrot.slane %v2664_v24, 5  ;;  %v2720_v33 = vmul.f32 %v2712_v54, %v4668_v8  ;;  %v2724_v38 = vmul.f32 %v2712_v54, %v4674_v22  ;;  %v3130_v24 = vrot.slane %v3108_v1, 6 }
 0x776   : > { %v2557_v27 = vsel %vm2290_vm9, %v2555_v7, %v2556_v44  ;;  %v2849_v54 = vmul.f32 %v2841_v19, %v4668_v8 }
 0x777   : > { %v2686_v32 = vsel %vm2290_vm9, %v2684_v17, %v2685_v26  ;;  %v2743_v25 = vrot.slane %v2720_v33, 6  ;;  %v2847_v17 = vmul.f32 %v2839_v18, %v4659_v47  ;;  %v2851_v26 = vmul.f32 %v2839_v18, %v4661_v9 }
 0x778   : > { %v2567_v52 = vadd.f32 %v2557_v27, %v4633_v58 }
 0x779   : > { %v2864_v33 = vrot.slane %v2851_v26, 6  ;;  %v3098_v26 = vperm.slane %v4796_v57, 1 }
 0x79b   : > { %v2630_v43 = vpop.permute.xlu2 %2629 }
 0x7a4   : > { %v4770_v42 = vpop.permute.xlu2 %2635 }
 0x7a7   : > { %v4776_v36 = vpop.permute.xlu1 %2633 }
 0x7a8   : > { %v2641_v7 = vsel %vm217_vm4, %v4776_v36, %v4770_v42 }
 0x7ad   : > { %v4778_v23 = vpop.permute.xlu2 %2816 }
 0x7af   : > { %v4805_v10 = vpop.permute.xlu1 %2814 }
 0x7b4   : > { %v4784_v2 = vpop.permute.xlu0 %2631 }
 0x7b5   : > { %v2639_v53 = vsel %vm217_vm4, %v2630_v43, %v4784_v2  ;;  %v4814_v21 = vpop.permute.xlu2 %2822  ;;  %v2640_v44 = vsel %vm217_vm4, %v4784_v2, %v4776_v36  ;;  %v2737_v36 = vrot.slane %v2718_v34, 6  ;;  %v2740_v2 = vrot.slane %v2719_v49, 6 }
 0x7b6   : > { %v2647_v20 = vadd.f32 %v2639_v53, %v2565_v41  ;;  %v2840_v41 = vperm.slane %v3266_v59, 1  ;;  %v2842_v53 = vperm.slane %v3266_v59, 3 }
 0x7b8   : > { %v2694_v4 = vadd.f32 %v2680_v15, %v2647_v20  ;;  %v3131_v20 = vrot.slane %v3112_v60, 6  ;;  %v2744_v15 = vrot.slane %v2724_v38, 6  ;;  %v2852_v61 = vmul.f32 %v2840_v41, %v4672_v55 }
 0x7b9   : > { %v2850_v16 = vmul.f32 %v2842_v53, %v4683_v50  ;;  %v2854_v59 = vmul.f32 %v2842_v53, %v4685_v29  ;;  %v2869_v60 = vrot.slane %v2849_v54, 6  ;;  %v3099_v38 = vperm.slane %v4796_v57, 2 }
 0x7ba   : > { %v4802_v43 = vadd.f32 %v2736_v39, %v2694_v4  ;;  %v2552_v39 = vrot.slane %v2534_v5, 5  ;;  %v2848_v5 = vmul.f32 %v2840_v41, %v4670_v30  ;;  %v2745_v45 = vsel %vm2733_vm10, %v2743_v25, %v2744_v15 }
 0x7bb   : > { %v2872_v34 = vrot.slane %v2850_v16, 6  ;;  %v3107_v25 = vmul.f32 %v3099_v38, %v4700_v13  ;;  %v3111_v15 = vmul.f32 %v3099_v38, %v4702_v14 }
 0x7bc   : > { %v2638_v56 = vpop.permute.xlu0 %2637  ;;  %v2554_v37 = vsel %vm2290_vm9, %v2552_v39, %v2553_v63  ;;  %v2649_v39 = vadd.f32 %v2641_v7, %v2567_v52  ;;  %v2866_v63 = vrot.slane %v2848_v5, 6  ;;  %v2824_v52 = vsel %vm217_vm4, %v4805_v10, %v4778_v23 }
 0x7bd   : > { %v2642_v31 = vsel %vm217_vm4, %v4770_v42, %v2638_v56  ;;  %v2566_v35 = vadd.f32 %v2554_v37, %v4631_v28  ;;  %v4862_v42 = vsel %vm2733_vm10, %v3130_v24, %v3131_v20  ;;  %v4864_v56 = vpop.permute.xlu2 %2947  ;;  %v2867_v28 = vrot.slane %v2852_v61, 6 }
 0x7be   : > { %v2650_v6 = vadd.f32 %v2642_v31, %v2568_v48  ;;  %v4859_v48 = vld [vmem:[%s4938_s1 + $0xa6] ss:$8 sm:$0xf]  ;;  %v2863_v31 = vrot.slane %v2847_v17, 6  ;;  %v2696_v37 = vadd.f32 %v2686_v32, %v2649_v39  ;;  %v3097_v17 = vperm.slane %v4796_v57, 0 }
 0x7bf   : > { %v2648_v58 = vadd.f32 %v2640_v44, %v2566_v35  ;;  %v2970_v1 = vperm.slane %v4859_v48, 2  ;;  %v2969_v27 = vperm.slane %v4859_v48, 1  ;;  %v2868_v53 = vsel %vm2733_vm10, %v2866_v63, %v2867_v28 }
 0x7c0   : > { %v4830_v3 = vadd.f32 %v4765_v0, %v2650_v6  ;;  %v2722_v0 = vmul.f32 %v2710_v46, %v4661_v9  ;;  %v2741_v9 = vrot.slane %v2723_v51, 6  ;;  %v2870_v6 = vrot.slane %v2853_v62, 6 }
 0x7c1   : > { %v2683_v46 = vsel %vm2290_vm9, %v2681_v40, %v2682_v11  ;;  %v2865_v49 = vsel %vm2733_vm10, %v2863_v31, %v2864_v33  ;;  %v2978_v51 = vmul.f32 %v2970_v1, %v4683_v50  ;;  %v2982_v40 = vmul.f32 %v2970_v1, %v4685_v29 }
 0x7c2   : > { %v2738_v47 = vrot.slane %v2722_v0, 6  ;;  %v2742_v19 = vsel %vm2733_vm10, %v2740_v2, %v2741_v9  ;;  %v2695_v18 = vadd.f32 %v2683_v46, %v2648_v58  ;;  %v2873_v0 = vrot.slane %v2854_v59, 6 }
 0x7c3   : > { %v2871_v11 = vsel %vm2733_vm10, %v2869_v60, %v2870_v6  ;;  %v2977_v32 = vmul.f32 %v2969_v27, %v4668_v8  ;;  %v2968_v54 = vperm.slane %v4859_v48, 0  ;;  %v2981_v16 = vmul.f32 %v2969_v27, %v4674_v22 }
 0x7c4   : > { %v4839_v12 = vpop.permute.xlu1 %2820  ;;  %v2819_v4 = vpop.permute.xlu0 %2818  ;;  %v2739_v41 = vsel %vm2733_vm10, %v2737_v36, %v2738_v47  ;;  %v2752_v44 = vadd.f32 %v2742_v19, %v2696_v37  ;;  %v2874_v62 = vsel %vm2733_vm10, %v2872_v34, %v2873_v0  ;;  %v2998_v36 = vrot.slane %v2978_v51, 6 }
 0x7c5   : > { %v2825_v5 = vsel %vm217_vm4, %v4778_v23, %v2819_v4  ;;  %v2826_v61 = vsel %vm217_vm4, %v2819_v4, %v4839_v12  ;;  %v2751_v7 = vadd.f32 %v2739_v41, %v2695_v18  ;;  %v3073_v35 = vpop.permute.xlu2 %3072  ;;  %v2999_v47 = vrot.slane %v2982_v40, 6 }
 0x7c6   : > { %v2834_v2 = vadd.f32 %v2826_v61, %v2752_v44  ;;  %v2832_v9 = vadd.f32 %v2824_v52, %v4802_v43  ;;  %v3127_v39 = vrot.slane %v3107_v25, 6  ;;  %v3128_v58 = vrot.slane %v3111_v15, 6 }
 0x7c7   : > { %v2833_v4 = vadd.f32 %v2825_v5, %v2751_v7  ;;  %v2976_v63 = vmul.f32 %v2968_v54, %v4670_v30  ;;  %v2980_v28 = vmul.f32 %v2968_v54, %v4672_v55  ;;  %v2971_v57 = vperm.slane %v4859_v48, 3 }
 0x7c8   : > { %v2995_v23 = vrot.slane %v2977_v32, 6  ;;  %v2996_v10 = vrot.slane %v2981_v16, 6  ;;  %v3105_v59 = vmul.f32 %v3097_v17, %v4668_v8  ;;  %v3106_v1 = vmul.f32 %v3098_v26, %v4683_v50 }
 0x7c9   : > { %v3109_v55 = vmul.f32 %v3097_v17, %v4674_v22  ;;  %v2880_v6 = vadd.f32 %v2868_v53, %v2833_v4  ;;  %v2879_v48 = vadd.f32 %v2865_v49, %v2832_v9  ;;  %v2881_v38 = vadd.f32 %v2871_v11, %v2834_v2  ;;  %v3141_v22 = vld [vmem:[%s4939_s2] sm:$0xf] }
 0x7ca   : > { %v3110_v27 = vmul.f32 %v3098_v26, %v4685_v29  ;;  %v2827_v8 = vsel %vm217_vm4, %v4839_v12, %v4814_v21  ;;  %v3000_v50 = vsel %vm2733_vm10, %v2998_v36, %v2999_v47  ;;  %v2992_v46 = vrot.slane %v2976_v63, 6 }
 0x7cb   : > { %v2993_v41 = vrot.slane %v2980_v28, 6  ;;  %v2753_v19 = vadd.f32 %v2745_v45, %v4830_v3  ;;  %v3129_v53 = vsel %vm2733_vm10, %v3127_v39, %v3128_v58  ;;  %v2997_v29 = vsel %vm2733_vm10, %v2995_v23, %v2996_v10 }
 0x7cc   : > { %v2946_v24 = vpop.permute.xlu1 %2945  ;;  %v2944_v20 = vpop.permute.xlu0 %2943  ;;  %v2979_v21 = vmul.f32 %v2971_v57, %v4700_v13  ;;  %v3124_v34 = vrot.slane %v3106_v1, 6  ;;  %v3125_v49 = vrot.slane %v3110_v27, 6  ;;  %v3145_v3 = vperm.slane %v3141_v22, 2 }
 0x7cd   : > { %v2954_v60 = vsel %vm217_vm4, %v2946_v24, %v4864_v56  ;;  %v2953_v43 = vsel %vm217_vm4, %v2944_v20, %v2946_v24  ;;  %v3121_v24 = vrot.slane %v3105_v59, 6  ;;  %v2835_v12 = vadd.f32 %v2827_v8, %v2753_v19  ;;  %v3079_v0 = vpop.permute.xlu2 %3078 }
 0x7ce   : > { %v2962_v37 = vadd.f32 %v2954_v60, %v2880_v6  ;;  %v2961_v18 = vadd.f32 %v2953_v43, %v2879_v48  ;;  %v3122_v20 = vrot.slane %v3109_v55, 6  ;;  %v2994_v45 = vsel %vm2733_vm10, %v2992_v46, %v2993_v41 }
 0x7cf   : > { %v3143_v51 = vperm.slane %v3141_v22, 0  ;;  %v2983_v40 = vmul.f32 %v2971_v57, %v4702_v14  ;;  %v3144_v5 = vperm.slane %v3141_v22, 1  ;;  %v2882_v44 = vadd.f32 %v2874_v62, %v2835_v12 }
 0x7d0   : > { %v3008_v15 = vadd.f32 %v2994_v45, %v2961_v18  ;;  %v3009_v32 = vadd.f32 %v2997_v29, %v2962_v37  ;;  %v3123_v14 = vsel %vm2733_vm10, %v3121_v24, %v3122_v20  ;;  %v3126_v36 = vsel %vm2733_vm10, %v3124_v34, %v3125_v49 }
 0x7d1   : > { %v3001_v47 = vrot.slane %v2979_v21, 6  ;;  %v3002_v4 = vrot.slane %v2983_v40, 6  ;;  %v3146_v23 = vperm.slane %v3141_v22, 3 }
 0x7d3   : > { %v3003_v28 = vsel %vm2733_vm10, %v3001_v47, %v3002_v4 }
 0x7d4   : > { %v2952_v31 = vpop.permute.xlu1 %2951  ;;  %v2950_v33 = vpop.permute.xlu0 %2949 }
 0x7d5   : > { %v2955_v30 = vsel %vm217_vm4, %v4864_v56, %v2950_v33  ;;  %v2956_v54 = vsel %vm217_vm4, %v2950_v33, %v2952_v31 }
 0x7d6   : > { %v2963_v56 = vadd.f32 %v2955_v30, %v2881_v38  ;;  %v2964_v2 = vadd.f32 %v2956_v54, %v2882_v44 }
 0x7d8   : > { %v3010_v25 = vadd.f32 %v3000_v50, %v2963_v56  ;;  %v3011_v57 = vadd.f32 %v3003_v28, %v2964_v2 }
 0x7dc   : > { %v3077_v11 = vpop.permute.xlu1 %3076  ;;  %v3075_v61 = vpop.permute.xlu0 %3074 }
 0x7dd   : > { %v3084_v13 = vsel %vm217_vm4, %v3077_v11, %v3079_v0  ;;  %v3082_v16 = vsel %vm217_vm4, %v3073_v35, %v3075_v61  ;;  %v3083_v7 = vsel %vm217_vm4, %v3075_v61, %v3077_v11 }
 0x7de   : > { %v3092_v17 = vadd.f32 %v3084_v13, %v3010_v25  ;;  %v3090_v26 = vadd.f32 %v3082_v16, %v3008_v15  ;;  %v3091_v52 = vadd.f32 %v3083_v7, %v3009_v32 }
 0x7e0   : > { %v3139_v9 = vadd.f32 %v3129_v53, %v3092_v17  ;;  %v3137_v39 = vadd.f32 %v3123_v14, %v3090_v26  ;;  %v3138_v58 = vadd.f32 %v3126_v36, %v3091_v52 }
 0x7e2   : > { %v3153_v35 = vadd.f32 %v3145_v3, %v3139_v9  ;;  %v3151_v62 = vadd.f32 %v3143_v51, %v3137_v39  ;;  %v3152_v63 = vadd.f32 %v3144_v5, %v3138_v58 }
 0x7e4   : > { %3157 = vst [vmem:[%s170_s28 + $0x10] sm:$0xff] %v3153_v35  ;;  %v3081_v31 = vpop.permute.xlu0 %3080 }
 0x7e5   : > { %3155 = vst [vmem:[%s170_s28] sm:$0xff] %v3151_v62  ;;  %v3085_v33 = vsel %vm217_vm4, %v3079_v0, %v3081_v31 }
 0x7e6   : > { %3156 = vst [vmem:[%s170_s28 + $0x8] sm:$0xff] %v3152_v63  ;;  %v3093_v10 = vadd.f32 %v3085_v33, %v3011_v57 }
 0x7e8   : > { %v3140_v59 = vadd.f32 %v4862_v42, %v3093_v10 }
 0x7ea   : > { %v3154_v1 = vadd.f32 %v3146_v23, %v3140_v59 }
 0x7ec   : > { %3158 = vst [vmem:[%s170_s28 + $0x18] sm:$0xff] %v3154_v1 }
 0x7ed PF: > { %s13_s12 = sadd.s32 1, %s3291_s12  }
 0x7ee   : > { %p10_p4 = scmp.ge.s32.totalorder %s13_s12, 4  }
 0x7f0   :  { %12 = sbr.rel (!%p10_p4) target bundleno = 1 (0x1), region = 110 }

</bundles_post_ra>
